<compile_context>
chip_gen: v5e
topology: v5e:2x2
jax: 0.10.0
libtpu: 0.0.40
codegen_flags: <defaults>
</compile_context>

<pallas_src>
import jax
import jax.numpy as jnp
from jax.experimental import pallas as pl
from jax.experimental.pallas import tpu as pltpu

# Keep the pure-JAX reference matmuls in full f32 so it matches the kernel's
# f32 MXU accumulation.
jax.config.update("jax_default_matmul_precision", "highest")


# ------------------------------ fused decode kernel ------------------------------
def _make_seq2seq_kernel(n_layers, max_len, Bp, H, Op):
    four_h = 4 * H

    def kernel(*refs):
        # inputs
        tf_ref, trg_ref, h0_ref, c0_ref = refs[:4]
        base = 4
        wx_refs = refs[base:base + n_layers]                      # (In_l, 4H) each
        wh_refs = refs[base + n_layers:base + 2 * n_layers]       # (H, 4H) each
        b_refs = refs[base + 2 * n_layers:base + 3 * n_layers]    # (1, 4H) each
        wout_ref, bout_ref = refs[base + 3 * n_layers:base + 3 * n_layers + 2]
        # outputs
        out_ref, h_ref, c_ref = refs[base + 3 * n_layers + 2:base + 3 * n_layers + 5]
        # scratch
        x_sc = refs[base + 3 * n_layers + 5]                      # (Bp, Op) next input

        # Carry hidden/cell in the VMEM-resident output blocks (HBM side is aliased
        # to the hidden/cell inputs via input_output_aliases).
        h_ref[...] = h0_ref[...]
        c_ref[...] = c0_ref[...]
        x_sc[...] = jnp.zeros_like(x_sc)                          # first decoder input = 0

        # Single-tanh activation over the whole packed (Bp, 4H) gate slab:
        #   g lanes [2H,3H): tanh(x)
        #   i/f/o lanes:     sigmoid(x) = 0.5*tanh(0.5*x) + 0.5
        # -> act = tanh(gates * scale) * scale + offset, one EUP pass per layer.
        lane = jax.lax.broadcasted_iota(jnp.int32, (Bp, four_h), 1)
        g_mask = jnp.logical_and(lane >= 2 * H, lane < 3 * H)
        scale = jnp.where(g_mask, 1.0, 0.5).astype(jnp.float32)
        offset = jnp.where(g_mask, 0.0, 0.5).astype(jnp.float32)

        # Loop-invariant bias broadcasts (JAX does not CSE broadcast_in_dim).
        biases = [jnp.broadcast_to(b_refs[l][...], (Bp, four_h)) for l in range(n_layers)]
        bout = jnp.broadcast_to(bout_ref[...], (Bp, Op))

        for t in range(max_len):                                  # fully unrolled time loop
            x = x_sc[...]                                         # (Bp, Op) layer-0 input
            for l in range(n_layers):                             # unrolled layer loop
                h = h_ref[l]                                      # (Bp, H)
                c = c_ref[l]                                      # (Bp, H)
                gates = (jnp.dot(x, wx_refs[l][...],
                                 preferred_element_type=jnp.float32)
                         + jnp.dot(h, wh_refs[l][...],
                                   preferred_element_type=jnp.float32)
                         + biases[l])                             # (Bp, 4H)
                act = jnp.tanh(gates * scale) * scale + offset
                i_g = act[:, 0 * H:1 * H]
                f_g = act[:, 1 * H:2 * H]
                g_g = act[:, 2 * H:3 * H]
                o_g = act[:, 3 * H:4 * H]
                c_new = f_g * c + i_g * g_g
                h_new = o_g * jnp.tanh(c_new)
                h_ref[l] = h_new
                c_ref[l] = c_new
                x = h_new                                         # no dropout: eval mode
            pred = (jnp.dot(x, wout_ref[...], preferred_element_type=jnp.float32)
                    + bout)                                       # (Bp, Op) lane-dense
            out_ref[t] = pred

            if t + 1 < max_len:
                # Teacher forcing: scalar-path conditional copy of the next input.
                tf_t = tf_ref[t]

                @pl.when(tf_t != 0)
                def _():
                    x_sc[...] = trg_ref[t]

                @pl.when(tf_t == 0)
                def _():
                    x_sc[...] = pred

    return kernel


# ------------------------------ host-side wrapper ---------------------------------
def seq2seq_forward(params, trg, hidden, cell, tf_flags):
    """Full Seq2Seq decode loop in one fused Pallas kernel.

    trg:      (max_len, B, output_dim) f32 targets (teacher-forcing inputs)
    hidden:   (n_layers, B, hid_dim)   f32 encoder final hidden state
    cell:     (n_layers, B, hid_dim)   f32 encoder final cell state
    tf_flags: (max_len,) int32, 1 => feed trg[t] as next input, else feed pred
    Returns (outputs (max_len, B, output_dim), final hidden, final cell).
    """
    max_len, B, O = trg.shape
    n_layers, _, H = hidden.shape

    # Pad batch (sublane dim) to a multiple of 8, output dim (lane dim) to a
    # multiple of 128 so per-step stores are unmasked lane-dense vst.
    Bp = ((B + 7) // 8) * 8
    Op = ((O + 127) // 128) * 128
    pad_b = Bp - B
    pad_o = Op - O
    if pad_b or pad_o:
        trg = jnp.pad(trg, ((0, 0), (0, pad_b), (0, pad_o)))
    if pad_b:
        hidden = jnp.pad(hidden, ((0, 0), (0, pad_b), (0, 0)))
        cell = jnp.pad(cell, ((0, 0), (0, pad_b), (0, 0)))

    wx_list, wh_list, b_list = [], [], []
    for l, (wx, wh, b) in enumerate(params["lstm"]):
        if l == 0 and pad_o:
            wx = jnp.pad(wx, ((0, pad_o), (0, 0)))   # zero rows: padded input lanes ignored
        wx_list.append(wx)
        wh_list.append(wh)
        b_list.append(b)
    out_w = params["out_w_t"]                        # (H, O)
    out_b = params["out_b"]                          # (1, O)
    if pad_o:
        out_w = jnp.pad(out_w, ((0, 0), (0, pad_o)))
        out_b = jnp.pad(out_b, ((0, 0), (0, pad_o)))

    kernel = _make_seq2seq_kernel(n_layers, max_len, Bp, H, Op)
    vmem = pl.BlockSpec(memory_space=pltpu.MemorySpace.VMEM)
    smem = pl.BlockSpec(memory_space=pltpu.MemorySpace.SMEM)
    n_in = 4 + 3 * n_layers + 2

    outputs, h_f, c_f = pl.pallas_call(
        kernel,
        out_shape=(
            jax.ShapeDtypeStruct((max_len, Bp, Op), jnp.float32),
            jax.ShapeDtypeStruct((n_layers, Bp, H), jnp.float32),
            jax.ShapeDtypeStruct((n_layers, Bp, H), jnp.float32),
        ),
        in_specs=[smem] + [vmem] * (n_in - 1),
        out_specs=(vmem, vmem, vmem),
        scratch_shapes=[pltpu.VMEM((Bp, Op), jnp.float32)],
        # hidden (in #2) -> h_f (out #1), cell (in #3) -> c_f (out #2)
        input_output_aliases={2: 1, 3: 2},
        compiler_params=pltpu.CompilerParams(vmem_limit_bytes=32 * 1024 * 1024),
    )(tf_flags, trg, hidden, cell, *wx_list, *wh_list, *b_list, out_w, out_b)

    return outputs[:, :B, :O], h_f[:, :B], c_f[:, :B]


# ------------------------------ pure-JAX reference --------------------------------
def seq2seq_forward_ref(params, trg, hidden, cell, tf_flags):
    max_len, B, O = trg.shape
    n_layers, _, H = hidden.shape
    h, c = hidden, cell
    x = jnp.zeros((B, O), jnp.float32)
    outs = []
    for t in range(max_len):
        inp = x
        new_h, new_c = [], []
        for l, (wx, wh, b) in enumerate(params["lstm"]):
            gates = inp @ wx + h[l] @ wh + b
            i = jax.nn.sigmoid(gates[:, :H])
            f = jax.nn.sigmoid(gates[:, H:2 * H])
            g = jnp.tanh(gates[:, 2 * H:3 * H])
            o = jax.nn.sigmoid(gates[:, 3 * H:])
            c_new = f * c[l] + i * g
            h_new = o * jnp.tanh(c_new)
            new_h.append(h_new)
            new_c.append(c_new)
            inp = h_new
        h = jnp.stack(new_h, 0)
        c = jnp.stack(new_c, 0)
        pred = inp @ params["out_w_t"] + params["out_b"]
        outs.append(pred)
        x = jnp.where(tf_flags[t] != 0, trg[t], pred)
    return jnp.stack(outs, 0), h, c


# ------------------------------ param init ----------------------------------------
def init_params(key, output_dim, hid_dim, n_layers):
    lstm = []
    bound = 1.0 / jnp.sqrt(hid_dim)
    for l in range(n_layers):
        in_dim = output_dim if l == 0 else hid_dim
        key, k1, k2, k3, k4 = jax.random.split(key, 5)
        w_ih = jax.random.uniform(k1, (4 * hid_dim, in_dim), jnp.float32, -bound, bound)
        w_hh = jax.random.uniform(k2, (4 * hid_dim, hid_dim), jnp.float32, -bound, bound)
        b_ih = jax.random.uniform(k3, (4 * hid_dim,), jnp.float32, -bound, bound)
        b_hh = jax.random.uniform(k4, (4 * hid_dim,), jnp.float32, -bound, bound)
        # Split weights (no packed concat): x-path (in_dim, 4H), h-path (H, 4H).
        w_x = w_ih.T
        w_h = w_hh.T
        b = (b_ih + b_hh).reshape(1, 4 * hid_dim)
        lstm.append((w_x, w_h, b))
    key, k5, k6 = jax.random.split(key, 3)
    out_w = jax.random.uniform(k5, (output_dim, hid_dim), jnp.float32, -bound, bound)
    out_b = jax.random.uniform(k6, (output_dim,), jnp.float32, -bound, bound)
    return {"lstm": lstm, "out_w_t": out_w.T, "out_b": out_b.reshape(1, output_dim)}


if __name__ == "__main__":
    output_dim, hid_dim, n_layers = 16, 32, 2
    batch, max_len = 4, 8
    teacher_forcing_ratio = 0.5

    key = jax.random.PRNGKey(0)
    kp, ktrg, kh, kc, ktf = jax.random.split(key, 5)
    params = init_params(kp, output_dim, hid_dim, n_layers)

    trg = jax.random.normal(ktrg, (max_len, batch, output_dim), jnp.float32)
    hidden = jax.random.normal(kh, (n_layers, batch, hid_dim), jnp.float32)
    cell = jax.random.normal(kc, (n_layers, batch, hid_dim), jnp.float32)
    # Deterministic replacement for torch's per-step `random.random() < ratio`.
    tf_flags = (jax.random.uniform(ktf, (max_len,)) < teacher_forcing_ratio).astype(jnp.int32)

    fwd = jax.jit(seq2seq_forward)
    outputs, h_f, c_f = fwd(params, trg, hidden, cell, tf_flags)
    jax.block_until_ready((outputs, h_f, c_f))

    outputs_r, h_r, c_r = seq2seq_forward_ref(params, trg, hidden, cell, tf_flags)
    assert jnp.allclose(outputs, outputs_r, atol=1e-4), "outputs mismatch"
    assert jnp.allclose(h_f, h_r, atol=1e-4), "hidden mismatch"
    assert jnp.allclose(c_f, c_r, atol=1e-4), "cell mismatch"

    print("KERNEL_OK")
</pallas_src>

<mosaic_0001>
module attributes {stable_mosaic.version = 11 : i64} {
  func.func @kernel(%arg0: memref<8xi32, #tpu.memory_space<smem>>, %arg1: memref<8x8x128xf32, #tpu.memory_space<vmem>>, %arg2: memref<2x8x32xf32, #tpu.memory_space<vmem>>, %arg3: memref<2x8x32xf32, #tpu.memory_space<vmem>>, %arg4: memref<128x128xf32, #tpu.memory_space<vmem>>, %arg5: memref<32x128xf32, #tpu.memory_space<vmem>>, %arg6: memref<32x128xf32, #tpu.memory_space<vmem>>, %arg7: memref<32x128xf32, #tpu.memory_space<vmem>>, %arg8: memref<1x128xf32, #tpu.memory_space<vmem>>, %arg9: memref<1x128xf32, #tpu.memory_space<vmem>>, %arg10: memref<32x128xf32, #tpu.memory_space<vmem>>, %arg11: memref<1x128xf32, #tpu.memory_space<vmem>>, %arg12: memref<8x8x128xf32, #tpu.memory_space<vmem>>, %arg13: memref<2x8x32xf32, #tpu.memory_space<vmem>>, %arg14: memref<2x8x32xf32, #tpu.memory_space<vmem>>, %arg15: memref<8x128xf32, #tpu.memory_space<vmem>>) attributes {dimension_semantics = [], scalar_prefetch = 0 : i64, scratch_operands = 1 : i64, tpu.core_type = #tpu.core_type<tc>} {
    %c0 = arith.constant 0 : index
    %c0_0 = arith.constant 0 : index
    %c0_1 = arith.constant 0 : index
    %0 = vector.load %arg2[%c0, %c0_0, %c0_1] : memref<2x8x32xf32, #tpu.memory_space<vmem>>, vector<2x8x32xf32>
    %c0_2 = arith.constant 0 : index
    %c0_3 = arith.constant 0 : index
    %c0_4 = arith.constant 0 : index
    %1 = vector.load %arg13[%c0_2, %c0_3, %c0_4] : memref<2x8x32xf32, #tpu.memory_space<vmem>>, vector<2x8x32xf32>
    tpu.vector_store %arg13[%c0_2, %c0_3, %c0_4], %0 {strides = array<i32>} : memref<2x8x32xf32, #tpu.memory_space<vmem>>, vector<2x8x32xf32>,
    %c0_5 = arith.constant 0 : index
    %c0_6 = arith.constant 0 : index
    %c0_7 = arith.constant 0 : index
    %2 = vector.load %arg3[%c0_5, %c0_6, %c0_7] : memref<2x8x32xf32, #tpu.memory_space<vmem>>, vector<2x8x32xf32>
    %c0_8 = arith.constant 0 : index
    %c0_9 = arith.constant 0 : index
    %c0_10 = arith.constant 0 : index
    %3 = vector.load %arg14[%c0_8, %c0_9, %c0_10] : memref<2x8x32xf32, #tpu.memory_space<vmem>>, vector<2x8x32xf32>
    tpu.vector_store %arg14[%c0_8, %c0_9, %c0_10], %2 {strides = array<i32>} : memref<2x8x32xf32, #tpu.memory_space<vmem>>, vector<2x8x32xf32>,
    %cst = arith.constant 0.000000e+00 : f32
    %4 = vector.broadcast %cst : f32 to vector<8x128xf32>
    %c0_11 = arith.constant 0 : index
    %c0_12 = arith.constant 0 : index
    %5 = vector.load %arg15[%c0_11, %c0_12] : memref<8x128xf32, #tpu.memory_space<vmem>>, vector<8x128xf32>
    tpu.vector_store %arg15[%c0_11, %c0_12], %4 {strides = array<i32>} : memref<8x128xf32, #tpu.memory_space<vmem>>, vector<8x128xf32>,
    %6 = tpu.iota {dimensions = array<i32: 1>} : vector<8x128xi32>
    %c64_i32 = arith.constant 64 : i32
    %7 = vector.broadcast %c64_i32 : i32 to vector<8x128xi32>
    %8 = arith.cmpi sge, %6, %7 : vector<8x128xi32>
    %c96_i32 = arith.constant 96 : i32
    %9 = vector.broadcast %c96_i32 : i32 to vector<8x128xi32>
    %10 = arith.cmpi slt, %6, %9 : vector<8x128xi32>
    %11 = arith.andi %8, %10 : vector<8x128xi1>
    %cst_13 = arith.constant 1.000000e+00 : f32
    %cst_14 = arith.constant 5.000000e-01 : f32
    %12 = vector.broadcast %cst_13 : f32 to vector<8x128xf32>
    %13 = vector.broadcast %cst_14 : f32 to vector<8x128xf32>
    %14 = arith.select %11, %12, %13 : vector<8x128xi1>, vector<8x128xf32>
    %cst_15 = arith.constant 0.000000e+00 : f32
    %cst_16 = arith.constant 5.000000e-01 : f32
    %15 = vector.broadcast %cst_15 : f32 to vector<8x128xf32>
    %16 = vector.broadcast %cst_16 : f32 to vector<8x128xf32>
    %17 = arith.select %11, %15, %16 : vector<8x128xi1>, vector<8x128xf32>
    %c0_17 = arith.constant 0 : index
    %c0_18 = arith.constant 0 : index
    %18 = vector.load %arg8[%c0_17, %c0_18] : memref<1x128xf32, #tpu.memory_space<vmem>>, vector<1x128xf32>
    %19 = vector.shape_cast %18 : vector<1x128xf32> to vector<1x128xf32>
    %20 = vector.broadcast %19 : vector<1x128xf32> to vector<8x128xf32>
    %c0_19 = arith.constant 0 : index
    %c0_20 = arith.constant 0 : index
    %21 = vector.load %arg9[%c0_19, %c0_20] : memref<1x128xf32, #tpu.memory_space<vmem>>, vector<1x128xf32>
    %22 = vector.shape_cast %21 : vector<1x128xf32> to vector<1x128xf32>
    %23 = vector.broadcast %22 : vector<1x128xf32> to vector<8x128xf32>
    %c0_21 = arith.constant 0 : index
    %c0_22 = arith.constant 0 : index
    %24 = vector.load %arg11[%c0_21, %c0_22] : memref<1x128xf32, #tpu.memory_space<vmem>>, vector<1x128xf32>
    %25 = vector.shape_cast %24 : vector<1x128xf32> to vector<1x128xf32>
    %26 = vector.broadcast %25 : vector<1x128xf32> to vector<8x128xf32>
    %c0_23 = arith.constant 0 : index
    %c0_24 = arith.constant 0 : index
    %27 = vector.load %arg15[%c0_23, %c0_24] : memref<8x128xf32, #tpu.memory_space<vmem>>, vector<8x128xf32>
    %c0_25 = arith.constant 0 : index
    %c0_26 = arith.constant 0 : index
    %c0_27 = arith.constant 0 : index
    %28 = vector.load %arg13[%c0_25, %c0_26, %c0_27] : memref<2x8x32xf32, #tpu.memory_space<vmem>>, vector<1x8x32xf32>
    %29 = vector.shape_cast %28 : vector<1x8x32xf32> to vector<8x32xf32>
    %c0_28 = arith.constant 0 : index
    %c0_29 = arith.constant 0 : index
    %c0_30 = arith.constant 0 : index
    %30 = vector.load %arg14[%c0_28, %c0_29, %c0_30] : memref<2x8x32xf32, #tpu.memory_space<vmem>>, vector<1x8x32xf32>
    %31 = vector.shape_cast %30 : vector<1x8x32xf32> to vector<8x32xf32>
    %c0_31 = arith.constant 0 : index
    %c0_32 = arith.constant 0 : index
    %32 = vector.load %arg4[%c0_31, %c0_32] : memref<128x128xf32, #tpu.memory_space<vmem>>, vector<128x128xf32>
    %cst_33 = arith.constant dense<0.000000e+00> : vector<8x128xf32>
    %33 = tpu.matmul %27, %32, %cst_33 {dimension_numbers = #tpu.dot_dimension_numbers<[1], [0], [0], [1], [0, 0, 1, 1], [], []>, precision = #tpu.contract_precision<fp32>} : vector<8x128xf32>, vector<128x128xf32>, vector<8x128xf32> -> vector<8x128xf32>
    %c0_34 = arith.constant 0 : index
    %c0_35 = arith.constant 0 : index
    %34 = vector.load %arg6[%c0_34, %c0_35] : memref<32x128xf32, #tpu.memory_space<vmem>>, vector<32x128xf32>
    %cst_36 = arith.constant dense<0.000000e+00> : vector<8x128xf32>
    %35 = tpu.matmul %29, %34, %cst_36 {dimension_numbers = #tpu.dot_dimension_numbers<[1], [0], [0], [1], [0, 0, 1, 1], [], []>, precision = #tpu.contract_precision<fp32>} : vector<8x32xf32>, vector<32x128xf32>, vector<8x128xf32> -> vector<8x128xf32>
    %36 = arith.addf %33, %35 : vector<8x128xf32>
    %37 = arith.addf %36, %20 : vector<8x128xf32>
    %38 = arith.mulf %37, %14 : vector<8x128xf32>
    %39 = math.tanh %38 : vector<8x128xf32>
    %40 = arith.mulf %39, %14 : vector<8x128xf32>
    %41 = arith.addf %40, %17 : vector<8x128xf32>
    %42 = vector.extract_strided_slice %41 {offsets = [0, 0], sizes = [8, 32], strides = [1, 1]} : vector<8x128xf32> to vector<8x32xf32>
    %43 = vector.extract_strided_slice %41 {offsets = [0, 32], sizes = [8, 32], strides = [1, 1]} : vector<8x128xf32> to vector<8x32xf32>
    %44 = vector.extract_strided_slice %41 {offsets = [0, 64], sizes = [8, 32], strides = [1, 1]} : vector<8x128xf32> to vector<8x32xf32>
    %45 = vector.extract_strided_slice %41 {offsets = [0, 96], sizes = [8, 32], strides = [1, 1]} : vector<8x128xf32> to vector<8x32xf32>
    %46 = arith.mulf %43, %31 : vector<8x32xf32>
    %47 = arith.mulf %42, %44 : vector<8x32xf32>
    %48 = arith.addf %46, %47 : vector<8x32xf32>
    %49 = math.tanh %48 : vector<8x32xf32>
    %50 = arith.mulf %45, %49 : vector<8x32xf32>
    %c0_37 = arith.constant 0 : index
    %c0_38 = arith.constant 0 : index
    %c0_39 = arith.constant 0 : index
    %51 = vector.load %arg13[%c0_37, %c0_38, %c0_39] : memref<2x8x32xf32, #tpu.memory_space<vmem>>, vector<1x8x32xf32>
    %52 = vector.shape_cast %51 : vector<1x8x32xf32> to vector<8x32xf32>
    %53 = vector.shape_cast %50 : vector<8x32xf32> to vector<1x8x32xf32>
    tpu.vector_store %arg13[%c0_37, %c0_38, %c0_39], %53 {strides = array<i32>} : memref<2x8x32xf32, #tpu.memory_space<vmem>>, vector<1x8x32xf32>,
    %c0_40 = arith.constant 0 : index
    %c0_41 = arith.constant 0 : index
    %c0_42 = arith.constant 0 : index
    %54 = vector.load %arg14[%c0_40, %c0_41, %c0_42] : memref<2x8x32xf32, #tpu.memory_space<vmem>>, vector<1x8x32xf32>
    %55 = vector.shape_cast %54 : vector<1x8x32xf32> to vector<8x32xf32>
    %56 = vector.shape_cast %48 : vector<8x32xf32> to vector<1x8x32xf32>
    tpu.vector_store %arg14[%c0_40, %c0_41, %c0_42], %56 {strides = array<i32>} : memref<2x8x32xf32, #tpu.memory_space<vmem>>, vector<1x8x32xf32>,
    %c1 = arith.constant 1 : index
    %c0_43 = arith.constant 0 : index
    %c0_44 = arith.constant 0 : index
    %57 = vector.load %arg13[%c1, %c0_43, %c0_44] : memref<2x8x32xf32, #tpu.memory_space<vmem>>, vector<1x8x32xf32>
    %58 = vector.shape_cast %57 : vector<1x8x32xf32> to vector<8x32xf32>
    %c1_45 = arith.constant 1 : index
    %c0_46 = arith.constant 0 : index
    %c0_47 = arith.constant 0 : index
    %59 = vector.load %arg14[%c1_45, %c0_46, %c0_47] : memref<2x8x32xf32, #tpu.memory_space<vmem>>, vector<1x8x32xf32>
    %60 = vector.shape_cast %59 : vector<1x8x32xf32> to vector<8x32xf32>
    %c0_48 = arith.constant 0 : index
    %c0_49 = arith.constant 0 : index
    %61 = vector.load %arg5[%c0_48, %c0_49] : memref<32x128xf32, #tpu.memory_space<vmem>>, vector<32x128xf32>
    %cst_50 = arith.constant dense<0.000000e+00> : vector<8x128xf32>
    %62 = tpu.matmul %50, %61, %cst_50 {dimension_numbers = #tpu.dot_dimension_numbers<[1], [0], [0], [1], [0, 0, 1, 1], [], []>, precision = #tpu.contract_precision<fp32>} : vector<8x32xf32>, vector<32x128xf32>, vector<8x128xf32> -> vector<8x128xf32>
    %c0_51 = arith.constant 0 : index
    %c0_52 = arith.constant 0 : index
    %63 = vector.load %arg7[%c0_51, %c0_52] : memref<32x128xf32, #tpu.memory_space<vmem>>, vector<32x128xf32>
    %cst_53 = arith.constant dense<0.000000e+00> : vector<8x128xf32>
    %64 = tpu.matmul %58, %63, %cst_53 {dimension_numbers = #tpu.dot_dimension_numbers<[1], [0], [0], [1], [0, 0, 1, 1], [], []>, precision = #tpu.contract_precision<fp32>} : vector<8x32xf32>, vector<32x128xf32>, vector<8x128xf32> -> vector<8x128xf32>
    %65 = arith.addf %62, %64 : vector<8x128xf32>
    %66 = arith.addf %65, %23 : vector<8x128xf32>
    %67 = arith.mulf %66, %14 : vector<8x128xf32>
    %68 = math.tanh %67 : vector<8x128xf32>
    %69 = arith.mulf %68, %14 : vector<8x128xf32>
    %70 = arith.addf %69, %17 : vector<8x128xf32>
    %71 = vector.extract_strided_slice %70 {offsets = [0, 0], sizes = [8, 32], strides = [1, 1]} : vector<8x128xf32> to vector<8x32xf32>
    %72 = vector.extract_strided_slice %70 {offsets = [0, 32], sizes = [8, 32], strides = [1, 1]} : vector<8x128xf32> to vector<8x32xf32>
    %73 = vector.extract_strided_slice %70 {offsets = [0, 64], sizes = [8, 32], strides = [1, 1]} : vector<8x128xf32> to vector<8x32xf32>
    %74 = vector.extract_strided_slice %70 {offsets = [0, 96], sizes = [8, 32], strides = [1, 1]} : vector<8x128xf32> to vector<8x32xf32>
    %75 = arith.mulf %72, %60 : vector<8x32xf32>
    %76 = arith.mulf %71, %73 : vector<8x32xf32>
    %77 = arith.addf %75, %76 : vector<8x32xf32>
    %78 = math.tanh %77 : vector<8x32xf32>
    %79 = arith.mulf %74, %78 : vector<8x32xf32>
    %c1_54 = arith.constant 1 : index
    %c0_55 = arith.constant 0 : index
    %c0_56 = arith.constant 0 : index
    %80 = vector.load %arg13[%c1_54, %c0_55, %c0_56] : memref<2x8x32xf32, #tpu.memory_space<vmem>>, vector<1x8x32xf32>
    %81 = vector.shape_cast %80 : vector<1x8x32xf32> to vector<8x32xf32>
    %82 = vector.shape_cast %79 : vector<8x32xf32> to vector<1x8x32xf32>
    tpu.vector_store %arg13[%c1_54, %c0_55, %c0_56], %82 {strides = array<i32>} : memref<2x8x32xf32, #tpu.memory_space<vmem>>, vector<1x8x32xf32>,
    %c1_57 = arith.constant 1 : index
    %c0_58 = arith.constant 0 : index
    %c0_59 = arith.constant 0 : index
    %83 = vector.load %arg14[%c1_57, %c0_58, %c0_59] : memref<2x8x32xf32, #tpu.memory_space<vmem>>, vector<1x8x32xf32>
    %84 = vector.shape_cast %83 : vector<1x8x32xf32> to vector<8x32xf32>
    %85 = vector.shape_cast %77 : vector<8x32xf32> to vector<1x8x32xf32>
    tpu.vector_store %arg14[%c1_57, %c0_58, %c0_59], %85 {strides = array<i32>} : memref<2x8x32xf32, #tpu.memory_space<vmem>>, vector<1x8x32xf32>,
    %c0_60 = arith.constant 0 : index
    %c0_61 = arith.constant 0 : index
    %86 = vector.load %arg10[%c0_60, %c0_61] : memref<32x128xf32, #tpu.memory_space<vmem>>, vector<32x128xf32>
    %cst_62 = arith.constant dense<0.000000e+00> : vector<8x128xf32>
    %87 = tpu.matmul %79, %86, %cst_62 {dimension_numbers = #tpu.dot_dimension_numbers<[1], [0], [0], [1], [0, 0, 1, 1], [], []>, precision = #tpu.contract_precision<fp32>} : vector<8x32xf32>, vector<32x128xf32>, vector<8x128xf32> -> vector<8x128xf32>
    %88 = arith.addf %87, %26 : vector<8x128xf32>
    %c0_63 = arith.constant 0 : index
    %c0_64 = arith.constant 0 : index
    %c0_65 = arith.constant 0 : index
    %89 = vector.load %arg12[%c0_63, %c0_64, %c0_65] : memref<8x8x128xf32, #tpu.memory_space<vmem>>, vector<1x8x128xf32>
    %90 = vector.shape_cast %89 : vector<1x8x128xf32> to vector<8x128xf32>
    %91 = vector.shape_cast %88 : vector<8x128xf32> to vector<1x8x128xf32>
    tpu.vector_store %arg12[%c0_63, %c0_64, %c0_65], %91 {strides = array<i32>} : memref<8x8x128xf32, #tpu.memory_space<vmem>>, vector<1x8x128xf32>,
    %c0_66 = arith.constant 0 : index
    %92 = memref.load %arg0[%c0_66] : memref<8xi32, #tpu.memory_space<smem>>
    %c0_i32 = arith.constant 0 : i32
    %93 = arith.cmpi ne, %92, %c0_i32 : i32
    %94 = arith.extui %93 : i1 to i32
    %c0_i32_67 = arith.constant 0 : i32
    %95 = arith.cmpi ne, %94, %c0_i32_67 : i32
    scf.if %95 {
      %c0_402 = arith.constant 0 : index
      %c0_403 = arith.constant 0 : index
      %c0_404 = arith.constant 0 : index
      %596 = vector.load %arg1[%c0_402, %c0_403, %c0_404] : memref<8x8x128xf32, #tpu.memory_space<vmem>>, vector<1x8x128xf32>
      %597 = vector.shape_cast %596 : vector<1x8x128xf32> to vector<8x128xf32>
      %c0_405 = arith.constant 0 : index
      %c0_406 = arith.constant 0 : index
      %598 = vector.load %arg15[%c0_405, %c0_406] : memref<8x128xf32, #tpu.memory_space<vmem>>, vector<8x128xf32>
      tpu.vector_store %arg15[%c0_405, %c0_406], %597 {strides = array<i32>} : memref<8x128xf32, #tpu.memory_space<vmem>>, vector<8x128xf32>,
    } else {
    }
    %c0_i32_68 = arith.constant 0 : i32
    %96 = arith.cmpi eq, %92, %c0_i32_68 : i32
    %97 = arith.extui %96 : i1 to i32
    %c0_i32_69 = arith.constant 0 : i32
    %98 = arith.cmpi ne, %97, %c0_i32_69 : i32
    scf.if %98 {
      %c0_402 = arith.constant 0 : index
      %c0_403 = arith.constant 0 : index
      %596 = vector.load %arg15[%c0_402, %c0_403] : memref<8x128xf32, #tpu.memory_space<vmem>>, vector<8x128xf32>
      tpu.vector_store %arg15[%c0_402, %c0_403], %88 {strides = array<i32>} : memref<8x128xf32, #tpu.memory_space<vmem>>, vector<8x128xf32>,
    } else {
    }
    %c0_70 = arith.constant 0 : index
    %c0_71 = arith.constant 0 : index
    %99 = vector.load %arg15[%c0_70, %c0_71] : memref<8x128xf32, #tpu.memory_space<vmem>>, vector<8x128xf32>
    %c0_72 = arith.constant 0 : index
    %c0_73 = arith.constant 0 : index
    %c0_74 = arith.constant 0 : index
    %100 = vector.load %arg13[%c0_72, %c0_73, %c0_74] : memref<2x8x32xf32, #tpu.memory_space<vmem>>, vector<1x8x32xf32>
    %101 = vector.shape_cast %100 : vector<1x8x32xf32> to vector<8x32xf32>
    %c0_75 = arith.constant 0 : index
    %c0_76 = arith.constant 0 : index
    %c0_77 = arith.constant 0 : index
    %102 = vector.load %arg14[%c0_75, %c0_76, %c0_77] : memref<2x8x32xf32, #tpu.memory_space<vmem>>, vector<1x8x32xf32>
    %103 = vector.shape_cast %102 : vector<1x8x32xf32> to vector<8x32xf32>
    %c0_78 = arith.constant 0 : index
    %c0_79 = arith.constant 0 : index
    %104 = vector.load %arg4[%c0_78, %c0_79] : memref<128x128xf32, #tpu.memory_space<vmem>>, vector<128x128xf32>
    %cst_80 = arith.constant dense<0.000000e+00> : vector<8x128xf32>
    %105 = tpu.matmul %99, %104, %cst_80 {dimension_numbers = #tpu.dot_dimension_numbers<[1], [0], [0], [1], [0, 0, 1, 1], [], []>, precision = #tpu.contract_precision<fp32>} : vector<8x128xf32>, vector<128x128xf32>, vector<8x128xf32> -> vector<8x128xf32>
    %c0_81 = arith.constant 0 : index
    %c0_82 = arith.constant 0 : index
    %106 = vector.load %arg6[%c0_81, %c0_82] : memref<32x128xf32, #tpu.memory_space<vmem>>, vector<32x128xf32>
    %cst_83 = arith.constant dense<0.000000e+00> : vector<8x128xf32>
    %107 = tpu.matmul %101, %106, %cst_83 {dimension_numbers = #tpu.dot_dimension_numbers<[1], [0], [0], [1], [0, 0, 1, 1], [], []>, precision = #tpu.contract_precision<fp32>} : vector<8x32xf32>, vector<32x128xf32>, vector<8x128xf32> -> vector<8x128xf32>
    %108 = arith.addf %105, %107 : vector<8x128xf32>
    %109 = arith.addf %108, %20 : vector<8x128xf32>
    %110 = arith.mulf %109, %14 : vector<8x128xf32>
    %111 = math.tanh %110 : vector<8x128xf32>
    %112 = arith.mulf %111, %14 : vector<8x128xf32>
    %113 = arith.addf %112, %17 : vector<8x128xf32>
    %114 = vector.extract_strided_slice %113 {offsets = [0, 0], sizes = [8, 32], strides = [1, 1]} : vector<8x128xf32> to vector<8x32xf32>
    %115 = vector.extract_strided_slice %113 {offsets = [0, 32], sizes = [8, 32], strides = [1, 1]} : vector<8x128xf32> to vector<8x32xf32>
    %116 = vector.extract_strided_slice %113 {offsets = [0, 64], sizes = [8, 32], strides = [1, 1]} : vector<8x128xf32> to vector<8x32xf32>
    %117 = vector.extract_strided_slice %113 {offsets = [0, 96], sizes = [8, 32], strides = [1, 1]} : vector<8x128xf32> to vector<8x32xf32>
    %118 = arith.mulf %115, %103 : vector<8x32xf32>
    %119 = arith.mulf %114, %116 : vector<8x32xf32>
    %120 = arith.addf %118, %119 : vector<8x32xf32>
    %121 = math.tanh %120 : vector<8x32xf32>
    %122 = arith.mulf %117, %121 : vector<8x32xf32>
    %c0_84 = arith.constant 0 : index
    %c0_85 = arith.constant 0 : index
    %c0_86 = arith.constant 0 : index
    %123 = vector.load %arg13[%c0_84, %c0_85, %c0_86] : memref<2x8x32xf32, #tpu.memory_space<vmem>>, vector<1x8x32xf32>
    %124 = vector.shape_cast %123 : vector<1x8x32xf32> to vector<8x32xf32>
    %125 = vector.shape_cast %122 : vector<8x32xf32> to vector<1x8x32xf32>
    tpu.vector_store %arg13[%c0_84, %c0_85, %c0_86], %125 {strides = array<i32>} : memref<2x8x32xf32, #tpu.memory_space<vmem>>, vector<1x8x32xf32>,
    %c0_87 = arith.constant 0 : index
    %c0_88 = arith.constant 0 : index
    %c0_89 = arith.constant 0 : index
    %126 = vector.load %arg14[%c0_87, %c0_88, %c0_89] : memref<2x8x32xf32, #tpu.memory_space<vmem>>, vector<1x8x32xf32>
    %127 = vector.shape_cast %126 : vector<1x8x32xf32> to vector<8x32xf32>
    %128 = vector.shape_cast %120 : vector<8x32xf32> to vector<1x8x32xf32>
    tpu.vector_store %arg14[%c0_87, %c0_88, %c0_89], %128 {strides = array<i32>} : memref<2x8x32xf32, #tpu.memory_space<vmem>>, vector<1x8x32xf32>,
    %c1_90 = arith.constant 1 : index
    %c0_91 = arith.constant 0 : index
    %c0_92 = arith.constant 0 : index
    %129 = vector.load %arg13[%c1_90, %c0_91, %c0_92] : memref<2x8x32xf32, #tpu.memory_space<vmem>>, vector<1x8x32xf32>
    %130 = vector.shape_cast %129 : vector<1x8x32xf32> to vector<8x32xf32>
    %c1_93 = arith.constant 1 : index
    %c0_94 = arith.constant 0 : index
    %c0_95 = arith.constant 0 : index
    %131 = vector.load %arg14[%c1_93, %c0_94, %c0_95] : memref<2x8x32xf32, #tpu.memory_space<vmem>>, vector<1x8x32xf32>
    %132 = vector.shape_cast %131 : vector<1x8x32xf32> to vector<8x32xf32>
    %c0_96 = arith.constant 0 : index
    %c0_97 = arith.constant 0 : index
    %133 = vector.load %arg5[%c0_96, %c0_97] : memref<32x128xf32, #tpu.memory_space<vmem>>, vector<32x128xf32>
    %cst_98 = arith.constant dense<0.000000e+00> : vector<8x128xf32>
    %134 = tpu.matmul %122, %133, %cst_98 {dimension_numbers = #tpu.dot_dimension_numbers<[1], [0], [0], [1], [0, 0, 1, 1], [], []>, precision = #tpu.contract_precision<fp32>} : vector<8x32xf32>, vector<32x128xf32>, vector<8x128xf32> -> vector<8x128xf32>
    %c0_99 = arith.constant 0 : index
    %c0_100 = arith.constant 0 : index
    %135 = vector.load %arg7[%c0_99, %c0_100] : memref<32x128xf32, #tpu.memory_space<vmem>>, vector<32x128xf32>
    %cst_101 = arith.constant dense<0.000000e+00> : vector<8x128xf32>
    %136 = tpu.matmul %130, %135, %cst_101 {dimension_numbers = #tpu.dot_dimension_numbers<[1], [0], [0], [1], [0, 0, 1, 1], [], []>, precision = #tpu.contract_precision<fp32>} : vector<8x32xf32>, vector<32x128xf32>, vector<8x128xf32> -> vector<8x128xf32>
    %137 = arith.addf %134, %136 : vector<8x128xf32>
    %138 = arith.addf %137, %23 : vector<8x128xf32>
    %139 = arith.mulf %138, %14 : vector<8x128xf32>
    %140 = math.tanh %139 : vector<8x128xf32>
    %141 = arith.mulf %140, %14 : vector<8x128xf32>
    %142 = arith.addf %141, %17 : vector<8x128xf32>
    %143 = vector.extract_strided_slice %142 {offsets = [0, 0], sizes = [8, 32], strides = [1, 1]} : vector<8x128xf32> to vector<8x32xf32>
    %144 = vector.extract_strided_slice %142 {offsets = [0, 32], sizes = [8, 32], strides = [1, 1]} : vector<8x128xf32> to vector<8x32xf32>
    %145 = vector.extract_strided_slice %142 {offsets = [0, 64], sizes = [8, 32], strides = [1, 1]} : vector<8x128xf32> to vector<8x32xf32>
    %146 = vector.extract_strided_slice %142 {offsets = [0, 96], sizes = [8, 32], strides = [1, 1]} : vector<8x128xf32> to vector<8x32xf32>
    %147 = arith.mulf %144, %132 : vector<8x32xf32>
    %148 = arith.mulf %143, %145 : vector<8x32xf32>
    %149 = arith.addf %147, %148 : vector<8x32xf32>
    %150 = math.tanh %149 : vector<8x32xf32>
    %151 = arith.mulf %146, %150 : vector<8x32xf32>
    %c1_102 = arith.constant 1 : index
    %c0_103 = arith.constant 0 : index
    %c0_104 = arith.constant 0 : index
    %152 = vector.load %arg13[%c1_102, %c0_103, %c0_104] : memref<2x8x32xf32, #tpu.memory_space<vmem>>, vector<1x8x32xf32>
    %153 = vector.shape_cast %152 : vector<1x8x32xf32> to vector<8x32xf32>
    %154 = vector.shape_cast %151 : vector<8x32xf32> to vector<1x8x32xf32>
    tpu.vector_store %arg13[%c1_102, %c0_103, %c0_104], %154 {strides = array<i32>} : memref<2x8x32xf32, #tpu.memory_space<vmem>>, vector<1x8x32xf32>,
    %c1_105 = arith.constant 1 : index
    %c0_106 = arith.constant 0 : index
    %c0_107 = arith.constant 0 : index
    %155 = vector.load %arg14[%c1_105, %c0_106, %c0_107] : memref<2x8x32xf32, #tpu.memory_space<vmem>>, vector<1x8x32xf32>
    %156 = vector.shape_cast %155 : vector<1x8x32xf32> to vector<8x32xf32>
    %157 = vector.shape_cast %149 : vector<8x32xf32> to vector<1x8x32xf32>
    tpu.vector_store %arg14[%c1_105, %c0_106, %c0_107], %157 {strides = array<i32>} : memref<2x8x32xf32, #tpu.memory_space<vmem>>, vector<1x8x32xf32>,
    %c0_108 = arith.constant 0 : index
    %c0_109 = arith.constant 0 : index
    %158 = vector.load %arg10[%c0_108, %c0_109] : memref<32x128xf32, #tpu.memory_space<vmem>>, vector<32x128xf32>
    %cst_110 = arith.constant dense<0.000000e+00> : vector<8x128xf32>
    %159 = tpu.matmul %151, %158, %cst_110 {dimension_numbers = #tpu.dot_dimension_numbers<[1], [0], [0], [1], [0, 0, 1, 1], [], []>, precision = #tpu.contract_precision<fp32>} : vector<8x32xf32>, vector<32x128xf32>, vector<8x128xf32> -> vector<8x128xf32>
    %160 = arith.addf %159, %26 : vector<8x128xf32>
    %c1_111 = arith.constant 1 : index
    %c0_112 = arith.constant 0 : index
    %c0_113 = arith.constant 0 : index
    %161 = vector.load %arg12[%c1_111, %c0_112, %c0_113] : memref<8x8x128xf32, #tpu.memory_space<vmem>>, vector<1x8x128xf32>
    %162 = vector.shape_cast %161 : vector<1x8x128xf32> to vector<8x128xf32>
    %163 = vector.shape_cast %160 : vector<8x128xf32> to vector<1x8x128xf32>
    tpu.vector_store %arg12[%c1_111, %c0_112, %c0_113], %163 {strides = array<i32>} : memref<8x8x128xf32, #tpu.memory_space<vmem>>, vector<1x8x128xf32>,
    %c1_114 = arith.constant 1 : index
    %164 = memref.load %arg0[%c1_114] : memref<8xi32, #tpu.memory_space<smem>>
    %c0_i32_115 = arith.constant 0 : i32
    %165 = arith.cmpi ne, %164, %c0_i32_115 : i32
    %166 = arith.extui %165 : i1 to i32
    %c0_i32_116 = arith.constant 0 : i32
    %167 = arith.cmpi ne, %166, %c0_i32_116 : i32
    scf.if %167 {
      %c1_402 = arith.constant 1 : index
      %c0_403 = arith.constant 0 : index
      %c0_404 = arith.constant 0 : index
      %596 = vector.load %arg1[%c1_402, %c0_403, %c0_404] : memref<8x8x128xf32, #tpu.memory_space<vmem>>, vector<1x8x128xf32>
      %597 = vector.shape_cast %596 : vector<1x8x128xf32> to vector<8x128xf32>
      %c0_405 = arith.constant 0 : index
      %c0_406 = arith.constant 0 : index
      %598 = vector.load %arg15[%c0_405, %c0_406] : memref<8x128xf32, #tpu.memory_space<vmem>>, vector<8x128xf32>
      tpu.vector_store %arg15[%c0_405, %c0_406], %597 {strides = array<i32>} : memref<8x128xf32, #tpu.memory_space<vmem>>, vector<8x128xf32>,
    } else {
    }
    %c0_i32_117 = arith.constant 0 : i32
    %168 = arith.cmpi eq, %164, %c0_i32_117 : i32
    %169 = arith.extui %168 : i1 to i32
    %c0_i32_118 = arith.constant 0 : i32
    %170 = arith.cmpi ne, %169, %c0_i32_118 : i32
    scf.if %170 {
      %c0_402 = arith.constant 0 : index
      %c0_403 = arith.constant 0 : index
      %596 = vector.load %arg15[%c0_402, %c0_403] : memref<8x128xf32, #tpu.memory_space<vmem>>, vector<8x128xf32>
      tpu.vector_store %arg15[%c0_402, %c0_403], %160 {strides = array<i32>} : memref<8x128xf32, #tpu.memory_space<vmem>>, vector<8x128xf32>,
    } else {
    }
    %c0_119 = arith.constant 0 : index
    %c0_120 = arith.constant 0 : index
    %171 = vector.load %arg15[%c0_119, %c0_120] : memref<8x128xf32, #tpu.memory_space<vmem>>, vector<8x128xf32>
    %c0_121 = arith.constant 0 : index
    %c0_122 = arith.constant 0 : index
    %c0_123 = arith.constant 0 : index
    %172 = vector.load %arg13[%c0_121, %c0_122, %c0_123] : memref<2x8x32xf32, #tpu.memory_space<vmem>>, vector<1x8x32xf32>
    %173 = vector.shape_cast %172 : vector<1x8x32xf32> to vector<8x32xf32>
    %c0_124 = arith.constant 0 : index
    %c0_125 = arith.constant 0 : index
    %c0_126 = arith.constant 0 : index
    %174 = vector.load %arg14[%c0_124, %c0_125, %c0_126] : memref<2x8x32xf32, #tpu.memory_space<vmem>>, vector<1x8x32xf32>
    %175 = vector.shape_cast %174 : vector<1x8x32xf32> to vector<8x32xf32>
    %c0_127 = arith.constant 0 : index
    %c0_128 = arith.constant 0 : index
    %176 = vector.load %arg4[%c0_127, %c0_128] : memref<128x128xf32, #tpu.memory_space<vmem>>, vector<128x128xf32>
    %cst_129 = arith.constant dense<0.000000e+00> : vector<8x128xf32>
    %177 = tpu.matmul %171, %176, %cst_129 {dimension_numbers = #tpu.dot_dimension_numbers<[1], [0], [0], [1], [0, 0, 1, 1], [], []>, precision = #tpu.contract_precision<fp32>} : vector<8x128xf32>, vector<128x128xf32>, vector<8x128xf32> -> vector<8x128xf32>
    %c0_130 = arith.constant 0 : index
    %c0_131 = arith.constant 0 : index
    %178 = vector.load %arg6[%c0_130, %c0_131] : memref<32x128xf32, #tpu.memory_space<vmem>>, vector<32x128xf32>
    %cst_132 = arith.constant dense<0.000000e+00> : vector<8x128xf32>
    %179 = tpu.matmul %173, %178, %cst_132 {dimension_numbers = #tpu.dot_dimension_numbers<[1], [0], [0], [1], [0, 0, 1, 1], [], []>, precision = #tpu.contract_precision<fp32>} : vector<8x32xf32>, vector<32x128xf32>, vector<8x128xf32> -> vector<8x128xf32>
    %180 = arith.addf %177, %179 : vector<8x128xf32>
    %181 = arith.addf %180, %20 : vector<8x128xf32>
    %182 = arith.mulf %181, %14 : vector<8x128xf32>
    %183 = math.tanh %182 : vector<8x128xf32>
    %184 = arith.mulf %183, %14 : vector<8x128xf32>
    %185 = arith.addf %184, %17 : vector<8x128xf32>
    %186 = vector.extract_strided_slice %185 {offsets = [0, 0], sizes = [8, 32], strides = [1, 1]} : vector<8x128xf32> to vector<8x32xf32>
    %187 = vector.extract_strided_slice %185 {offsets = [0, 32], sizes = [8, 32], strides = [1, 1]} : vector<8x128xf32> to vector<8x32xf32>
    %188 = vector.extract_strided_slice %185 {offsets = [0, 64], sizes = [8, 32], strides = [1, 1]} : vector<8x128xf32> to vector<8x32xf32>
    %189 = vector.extract_strided_slice %185 {offsets = [0, 96], sizes = [8, 32], strides = [1, 1]} : vector<8x128xf32> to vector<8x32xf32>
    %190 = arith.mulf %187, %175 : vector<8x32xf32>
    %191 = arith.mulf %186, %188 : vector<8x32xf32>
    %192 = arith.addf %190, %191 : vector<8x32xf32>
    %193 = math.tanh %192 : vector<8x32xf32>
    %194 = arith.mulf %189, %193 : vector<8x32xf32>
    %c0_133 = arith.constant 0 : index
    %c0_134 = arith.constant 0 : index
    %c0_135 = arith.constant 0 : index
    %195 = vector.load %arg13[%c0_133, %c0_134, %c0_135] : memref<2x8x32xf32, #tpu.memory_space<vmem>>, vector<1x8x32xf32>
    %196 = vector.shape_cast %195 : vector<1x8x32xf32> to vector<8x32xf32>
    %197 = vector.shape_cast %194 : vector<8x32xf32> to vector<1x8x32xf32>
    tpu.vector_store %arg13[%c0_133, %c0_134, %c0_135], %197 {strides = array<i32>} : memref<2x8x32xf32, #tpu.memory_space<vmem>>, vector<1x8x32xf32>,
    %c0_136 = arith.constant 0 : index
    %c0_137 = arith.constant 0 : index
    %c0_138 = arith.constant 0 : index
    %198 = vector.load %arg14[%c0_136, %c0_137, %c0_138] : memref<2x8x32xf32, #tpu.memory_space<vmem>>, vector<1x8x32xf32>
    %199 = vector.shape_cast %198 : vector<1x8x32xf32> to vector<8x32xf32>
    %200 = vector.shape_cast %192 : vector<8x32xf32> to vector<1x8x32xf32>
    tpu.vector_store %arg14[%c0_136, %c0_137, %c0_138], %200 {strides = array<i32>} : memref<2x8x32xf32, #tpu.memory_space<vmem>>, vector<1x8x32xf32>,
    %c1_139 = arith.constant 1 : index
    %c0_140 = arith.constant 0 : index
    %c0_141 = arith.constant 0 : index
    %201 = vector.load %arg13[%c1_139, %c0_140, %c0_141] : memref<2x8x32xf32, #tpu.memory_space<vmem>>, vector<1x8x32xf32>
    %202 = vector.shape_cast %201 : vector<1x8x32xf32> to vector<8x32xf32>
    %c1_142 = arith.constant 1 : index
    %c0_143 = arith.constant 0 : index
    %c0_144 = arith.constant 0 : index
    %203 = vector.load %arg14[%c1_142, %c0_143, %c0_144] : memref<2x8x32xf32, #tpu.memory_space<vmem>>, vector<1x8x32xf32>
    %204 = vector.shape_cast %203 : vector<1x8x32xf32> to vector<8x32xf32>
    %c0_145 = arith.constant 0 : index
    %c0_146 = arith.constant 0 : index
    %205 = vector.load %arg5[%c0_145, %c0_146] : memref<32x128xf32, #tpu.memory_space<vmem>>, vector<32x128xf32>
    %cst_147 = arith.constant dense<0.000000e+00> : vector<8x128xf32>
    %206 = tpu.matmul %194, %205, %cst_147 {dimension_numbers = #tpu.dot_dimension_numbers<[1], [0], [0], [1], [0, 0, 1, 1], [], []>, precision = #tpu.contract_precision<fp32>} : vector<8x32xf32>, vector<32x128xf32>, vector<8x128xf32> -> vector<8x128xf32>
    %c0_148 = arith.constant 0 : index
    %c0_149 = arith.constant 0 : index
    %207 = vector.load %arg7[%c0_148, %c0_149] : memref<32x128xf32, #tpu.memory_space<vmem>>, vector<32x128xf32>
    %cst_150 = arith.constant dense<0.000000e+00> : vector<8x128xf32>
    %208 = tpu.matmul %202, %207, %cst_150 {dimension_numbers = #tpu.dot_dimension_numbers<[1], [0], [0], [1], [0, 0, 1, 1], [], []>, precision = #tpu.contract_precision<fp32>} : vector<8x32xf32>, vector<32x128xf32>, vector<8x128xf32> -> vector<8x128xf32>
    %209 = arith.addf %206, %208 : vector<8x128xf32>
    %210 = arith.addf %209, %23 : vector<8x128xf32>
    %211 = arith.mulf %210, %14 : vector<8x128xf32>
    %212 = math.tanh %211 : vector<8x128xf32>
    %213 = arith.mulf %212, %14 : vector<8x128xf32>
    %214 = arith.addf %213, %17 : vector<8x128xf32>
    %215 = vector.extract_strided_slice %214 {offsets = [0, 0], sizes = [8, 32], strides = [1, 1]} : vector<8x128xf32> to vector<8x32xf32>
    %216 = vector.extract_strided_slice %214 {offsets = [0, 32], sizes = [8, 32], strides = [1, 1]} : vector<8x128xf32> to vector<8x32xf32>
    %217 = vector.extract_strided_slice %214 {offsets = [0, 64], sizes = [8, 32], strides = [1, 1]} : vector<8x128xf32> to vector<8x32xf32>
    %218 = vector.extract_strided_slice %214 {offsets = [0, 96], sizes = [8, 32], strides = [1, 1]} : vector<8x128xf32> to vector<8x32xf32>
    %219 = arith.mulf %216, %204 : vector<8x32xf32>
    %220 = arith.mulf %215, %217 : vector<8x32xf32>
    %221 = arith.addf %219, %220 : vector<8x32xf32>
    %222 = math.tanh %221 : vector<8x32xf32>
    %223 = arith.mulf %218, %222 : vector<8x32xf32>
    %c1_151 = arith.constant 1 : index
    %c0_152 = arith.constant 0 : index
    %c0_153 = arith.constant 0 : index
    %224 = vector.load %arg13[%c1_151, %c0_152, %c0_153] : memref<2x8x32xf32, #tpu.memory_space<vmem>>, vector<1x8x32xf32>
    %225 = vector.shape_cast %224 : vector<1x8x32xf32> to vector<8x32xf32>
    %226 = vector.shape_cast %223 : vector<8x32xf32> to vector<1x8x32xf32>
    tpu.vector_store %arg13[%c1_151, %c0_152, %c0_153], %226 {strides = array<i32>} : memref<2x8x32xf32, #tpu.memory_space<vmem>>, vector<1x8x32xf32>,
    %c1_154 = arith.constant 1 : index
    %c0_155 = arith.constant 0 : index
    %c0_156 = arith.constant 0 : index
    %227 = vector.load %arg14[%c1_154, %c0_155, %c0_156] : memref<2x8x32xf32, #tpu.memory_space<vmem>>, vector<1x8x32xf32>
    %228 = vector.shape_cast %227 : vector<1x8x32xf32> to vector<8x32xf32>
    %229 = vector.shape_cast %221 : vector<8x32xf32> to vector<1x8x32xf32>
    tpu.vector_store %arg14[%c1_154, %c0_155, %c0_156], %229 {strides = array<i32>} : memref<2x8x32xf32, #tpu.memory_space<vmem>>, vector<1x8x32xf32>,
    %c0_157 = arith.constant 0 : index
    %c0_158 = arith.constant 0 : index
    %230 = vector.load %arg10[%c0_157, %c0_158] : memref<32x128xf32, #tpu.memory_space<vmem>>, vector<32x128xf32>
    %cst_159 = arith.constant dense<0.000000e+00> : vector<8x128xf32>
    %231 = tpu.matmul %223, %230, %cst_159 {dimension_numbers = #tpu.dot_dimension_numbers<[1], [0], [0], [1], [0, 0, 1, 1], [], []>, precision = #tpu.contract_precision<fp32>} : vector<8x32xf32>, vector<32x128xf32>, vector<8x128xf32> -> vector<8x128xf32>
    %232 = arith.addf %231, %26 : vector<8x128xf32>
    %c2 = arith.constant 2 : index
    %c0_160 = arith.constant 0 : index
    %c0_161 = arith.constant 0 : index
    %233 = vector.load %arg12[%c2, %c0_160, %c0_161] : memref<8x8x128xf32, #tpu.memory_space<vmem>>, vector<1x8x128xf32>
    %234 = vector.shape_cast %233 : vector<1x8x128xf32> to vector<8x128xf32>
    %235 = vector.shape_cast %232 : vector<8x128xf32> to vector<1x8x128xf32>
    tpu.vector_store %arg12[%c2, %c0_160, %c0_161], %235 {strides = array<i32>} : memref<8x8x128xf32, #tpu.memory_space<vmem>>, vector<1x8x128xf32>,
    %c2_162 = arith.constant 2 : index
    %236 = memref.load %arg0[%c2_162] : memref<8xi32, #tpu.memory_space<smem>>
    %c0_i32_163 = arith.constant 0 : i32
    %237 = arith.cmpi ne, %236, %c0_i32_163 : i32
    %238 = arith.extui %237 : i1 to i32
    %c0_i32_164 = arith.constant 0 : i32
    %239 = arith.cmpi ne, %238, %c0_i32_164 : i32
    scf.if %239 {
      %c2_402 = arith.constant 2 : index
      %c0_403 = arith.constant 0 : index
      %c0_404 = arith.constant 0 : index
      %596 = vector.load %arg1[%c2_402, %c0_403, %c0_404] : memref<8x8x128xf32, #tpu.memory_space<vmem>>, vector<1x8x128xf32>
      %597 = vector.shape_cast %596 : vector<1x8x128xf32> to vector<8x128xf32>
      %c0_405 = arith.constant 0 : index
      %c0_406 = arith.constant 0 : index
      %598 = vector.load %arg15[%c0_405, %c0_406] : memref<8x128xf32, #tpu.memory_space<vmem>>, vector<8x128xf32>
      tpu.vector_store %arg15[%c0_405, %c0_406], %597 {strides = array<i32>} : memref<8x128xf32, #tpu.memory_space<vmem>>, vector<8x128xf32>,
    } else {
    }
    %c0_i32_165 = arith.constant 0 : i32
    %240 = arith.cmpi eq, %236, %c0_i32_165 : i32
    %241 = arith.extui %240 : i1 to i32
    %c0_i32_166 = arith.constant 0 : i32
    %242 = arith.cmpi ne, %241, %c0_i32_166 : i32
    scf.if %242 {
      %c0_402 = arith.constant 0 : index
      %c0_403 = arith.constant 0 : index
      %596 = vector.load %arg15[%c0_402, %c0_403] : memref<8x128xf32, #tpu.memory_space<vmem>>, vector<8x128xf32>
      tpu.vector_store %arg15[%c0_402, %c0_403], %232 {strides = array<i32>} : memref<8x128xf32, #tpu.memory_space<vmem>>, vector<8x128xf32>,
    } else {
    }
    %c0_167 = arith.constant 0 : index
    %c0_168 = arith.constant 0 : index
    %243 = vector.load %arg15[%c0_167, %c0_168] : memref<8x128xf32, #tpu.memory_space<vmem>>, vector<8x128xf32>
    %c0_169 = arith.constant 0 : index
    %c0_170 = arith.constant 0 : index
    %c0_171 = arith.constant 0 : index
    %244 = vector.load %arg13[%c0_169, %c0_170, %c0_171] : memref<2x8x32xf32, #tpu.memory_space<vmem>>, vector<1x8x32xf32>
    %245 = vector.shape_cast %244 : vector<1x8x32xf32> to vector<8x32xf32>
    %c0_172 = arith.constant 0 : index
    %c0_173 = arith.constant 0 : index
    %c0_174 = arith.constant 0 : index
    %246 = vector.load %arg14[%c0_172, %c0_173, %c0_174] : memref<2x8x32xf32, #tpu.memory_space<vmem>>, vector<1x8x32xf32>
    %247 = vector.shape_cast %246 : vector<1x8x32xf32> to vector<8x32xf32>
    %c0_175 = arith.constant 0 : index
    %c0_176 = arith.constant 0 : index
    %248 = vector.load %arg4[%c0_175, %c0_176] : memref<128x128xf32, #tpu.memory_space<vmem>>, vector<128x128xf32>
    %cst_177 = arith.constant dense<0.000000e+00> : vector<8x128xf32>
    %249 = tpu.matmul %243, %248, %cst_177 {dimension_numbers = #tpu.dot_dimension_numbers<[1], [0], [0], [1], [0, 0, 1, 1], [], []>, precision = #tpu.contract_precision<fp32>} : vector<8x128xf32>, vector<128x128xf32>, vector<8x128xf32> -> vector<8x128xf32>
    %c0_178 = arith.constant 0 : index
    %c0_179 = arith.constant 0 : index
    %250 = vector.load %arg6[%c0_178, %c0_179] : memref<32x128xf32, #tpu.memory_space<vmem>>, vector<32x128xf32>
    %cst_180 = arith.constant dense<0.000000e+00> : vector<8x128xf32>
    %251 = tpu.matmul %245, %250, %cst_180 {dimension_numbers = #tpu.dot_dimension_numbers<[1], [0], [0], [1], [0, 0, 1, 1], [], []>, precision = #tpu.contract_precision<fp32>} : vector<8x32xf32>, vector<32x128xf32>, vector<8x128xf32> -> vector<8x128xf32>
    %252 = arith.addf %249, %251 : vector<8x128xf32>
    %253 = arith.addf %252, %20 : vector<8x128xf32>
    %254 = arith.mulf %253, %14 : vector<8x128xf32>
    %255 = math.tanh %254 : vector<8x128xf32>
    %256 = arith.mulf %255, %14 : vector<8x128xf32>
    %257 = arith.addf %256, %17 : vector<8x128xf32>
    %258 = vector.extract_strided_slice %257 {offsets = [0, 0], sizes = [8, 32], strides = [1, 1]} : vector<8x128xf32> to vector<8x32xf32>
    %259 = vector.extract_strided_slice %257 {offsets = [0, 32], sizes = [8, 32], strides = [1, 1]} : vector<8x128xf32> to vector<8x32xf32>
    %260 = vector.extract_strided_slice %257 {offsets = [0, 64], sizes = [8, 32], strides = [1, 1]} : vector<8x128xf32> to vector<8x32xf32>
    %261 = vector.extract_strided_slice %257 {offsets = [0, 96], sizes = [8, 32], strides = [1, 1]} : vector<8x128xf32> to vector<8x32xf32>
    %262 = arith.mulf %259, %247 : vector<8x32xf32>
    %263 = arith.mulf %258, %260 : vector<8x32xf32>
    %264 = arith.addf %262, %263 : vector<8x32xf32>
    %265 = math.tanh %264 : vector<8x32xf32>
    %266 = arith.mulf %261, %265 : vector<8x32xf32>
    %c0_181 = arith.constant 0 : index
    %c0_182 = arith.constant 0 : index
    %c0_183 = arith.constant 0 : index
    %267 = vector.load %arg13[%c0_181, %c0_182, %c0_183] : memref<2x8x32xf32, #tpu.memory_space<vmem>>, vector<1x8x32xf32>
    %268 = vector.shape_cast %267 : vector<1x8x32xf32> to vector<8x32xf32>
    %269 = vector.shape_cast %266 : vector<8x32xf32> to vector<1x8x32xf32>
    tpu.vector_store %arg13[%c0_181, %c0_182, %c0_183], %269 {strides = array<i32>} : memref<2x8x32xf32, #tpu.memory_space<vmem>>, vector<1x8x32xf32>,
    %c0_184 = arith.constant 0 : index
    %c0_185 = arith.constant 0 : index
    %c0_186 = arith.constant 0 : index
    %270 = vector.load %arg14[%c0_184, %c0_185, %c0_186] : memref<2x8x32xf32, #tpu.memory_space<vmem>>, vector<1x8x32xf32>
    %271 = vector.shape_cast %270 : vector<1x8x32xf32> to vector<8x32xf32>
    %272 = vector.shape_cast %264 : vector<8x32xf32> to vector<1x8x32xf32>
    tpu.vector_store %arg14[%c0_184, %c0_185, %c0_186], %272 {strides = array<i32>} : memref<2x8x32xf32, #tpu.memory_space<vmem>>, vector<1x8x32xf32>,
    %c1_187 = arith.constant 1 : index
    %c0_188 = arith.constant 0 : index
    %c0_189 = arith.constant 0 : index
    %273 = vector.load %arg13[%c1_187, %c0_188, %c0_189] : memref<2x8x32xf32, #tpu.memory_space<vmem>>, vector<1x8x32xf32>
    %274 = vector.shape_cast %273 : vector<1x8x32xf32> to vector<8x32xf32>
    %c1_190 = arith.constant 1 : index
    %c0_191 = arith.constant 0 : index
    %c0_192 = arith.constant 0 : index
    %275 = vector.load %arg14[%c1_190, %c0_191, %c0_192] : memref<2x8x32xf32, #tpu.memory_space<vmem>>, vector<1x8x32xf32>
    %276 = vector.shape_cast %275 : vector<1x8x32xf32> to vector<8x32xf32>
    %c0_193 = arith.constant 0 : index
    %c0_194 = arith.constant 0 : index
    %277 = vector.load %arg5[%c0_193, %c0_194] : memref<32x128xf32, #tpu.memory_space<vmem>>, vector<32x128xf32>
    %cst_195 = arith.constant dense<0.000000e+00> : vector<8x128xf32>
    %278 = tpu.matmul %266, %277, %cst_195 {dimension_numbers = #tpu.dot_dimension_numbers<[1], [0], [0], [1], [0, 0, 1, 1], [], []>, precision = #tpu.contract_precision<fp32>} : vector<8x32xf32>, vector<32x128xf32>, vector<8x128xf32> -> vector<8x128xf32>
    %c0_196 = arith.constant 0 : index
    %c0_197 = arith.constant 0 : index
    %279 = vector.load %arg7[%c0_196, %c0_197] : memref<32x128xf32, #tpu.memory_space<vmem>>, vector<32x128xf32>
    %cst_198 = arith.constant dense<0.000000e+00> : vector<8x128xf32>
    %280 = tpu.matmul %274, %279, %cst_198 {dimension_numbers = #tpu.dot_dimension_numbers<[1], [0], [0], [1], [0, 0, 1, 1], [], []>, precision = #tpu.contract_precision<fp32>} : vector<8x32xf32>, vector<32x128xf32>, vector<8x128xf32> -> vector<8x128xf32>
    %281 = arith.addf %278, %280 : vector<8x128xf32>
    %282 = arith.addf %281, %23 : vector<8x128xf32>
    %283 = arith.mulf %282, %14 : vector<8x128xf32>
    %284 = math.tanh %283 : vector<8x128xf32>
    %285 = arith.mulf %284, %14 : vector<8x128xf32>
    %286 = arith.addf %285, %17 : vector<8x128xf32>
    %287 = vector.extract_strided_slice %286 {offsets = [0, 0], sizes = [8, 32], strides = [1, 1]} : vector<8x128xf32> to vector<8x32xf32>
    %288 = vector.extract_strided_slice %286 {offsets = [0, 32], sizes = [8, 32], strides = [1, 1]} : vector<8x128xf32> to vector<8x32xf32>
    %289 = vector.extract_strided_slice %286 {offsets = [0, 64], sizes = [8, 32], strides = [1, 1]} : vector<8x128xf32> to vector<8x32xf32>
    %290 = vector.extract_strided_slice %286 {offsets = [0, 96], sizes = [8, 32], strides = [1, 1]} : vector<8x128xf32> to vector<8x32xf32>
    %291 = arith.mulf %288, %276 : vector<8x32xf32>
    %292 = arith.mulf %287, %289 : vector<8x32xf32>
    %293 = arith.addf %291, %292 : vector<8x32xf32>
    %294 = math.tanh %293 : vector<8x32xf32>
    %295 = arith.mulf %290, %294 : vector<8x32xf32>
    %c1_199 = arith.constant 1 : index
    %c0_200 = arith.constant 0 : index
    %c0_201 = arith.constant 0 : index
    %296 = vector.load %arg13[%c1_199, %c0_200, %c0_201] : memref<2x8x32xf32, #tpu.memory_space<vmem>>, vector<1x8x32xf32>
    %297 = vector.shape_cast %296 : vector<1x8x32xf32> to vector<8x32xf32>
    %298 = vector.shape_cast %295 : vector<8x32xf32> to vector<1x8x32xf32>
    tpu.vector_store %arg13[%c1_199, %c0_200, %c0_201], %298 {strides = array<i32>} : memref<2x8x32xf32, #tpu.memory_space<vmem>>, vector<1x8x32xf32>,
    %c1_202 = arith.constant 1 : index
    %c0_203 = arith.constant 0 : index
    %c0_204 = arith.constant 0 : index
    %299 = vector.load %arg14[%c1_202, %c0_203, %c0_204] : memref<2x8x32xf32, #tpu.memory_space<vmem>>, vector<1x8x32xf32>
    %300 = vector.shape_cast %299 : vector<1x8x32xf32> to vector<8x32xf32>
    %301 = vector.shape_cast %293 : vector<8x32xf32> to vector<1x8x32xf32>
    tpu.vector_store %arg14[%c1_202, %c0_203, %c0_204], %301 {strides = array<i32>} : memref<2x8x32xf32, #tpu.memory_space<vmem>>, vector<1x8x32xf32>,
    %c0_205 = arith.constant 0 : index
    %c0_206 = arith.constant 0 : index
    %302 = vector.load %arg10[%c0_205, %c0_206] : memref<32x128xf32, #tpu.memory_space<vmem>>, vector<32x128xf32>
    %cst_207 = arith.constant dense<0.000000e+00> : vector<8x128xf32>
    %303 = tpu.matmul %295, %302, %cst_207 {dimension_numbers = #tpu.dot_dimension_numbers<[1], [0], [0], [1], [0, 0, 1, 1], [], []>, precision = #tpu.contract_precision<fp32>} : vector<8x32xf32>, vector<32x128xf32>, vector<8x128xf32> -> vector<8x128xf32>
    %304 = arith.addf %303, %26 : vector<8x128xf32>
    %c3 = arith.constant 3 : index
    %c0_208 = arith.constant 0 : index
    %c0_209 = arith.constant 0 : index
    %305 = vector.load %arg12[%c3, %c0_208, %c0_209] : memref<8x8x128xf32, #tpu.memory_space<vmem>>, vector<1x8x128xf32>
    %306 = vector.shape_cast %305 : vector<1x8x128xf32> to vector<8x128xf32>
    %307 = vector.shape_cast %304 : vector<8x128xf32> to vector<1x8x128xf32>
    tpu.vector_store %arg12[%c3, %c0_208, %c0_209], %307 {strides = array<i32>} : memref<8x8x128xf32, #tpu.memory_space<vmem>>, vector<1x8x128xf32>,
    %c3_210 = arith.constant 3 : index
    %308 = memref.load %arg0[%c3_210] : memref<8xi32, #tpu.memory_space<smem>>
    %c0_i32_211 = arith.constant 0 : i32
    %309 = arith.cmpi ne, %308, %c0_i32_211 : i32
    %310 = arith.extui %309 : i1 to i32
    %c0_i32_212 = arith.constant 0 : i32
    %311 = arith.cmpi ne, %310, %c0_i32_212 : i32
    scf.if %311 {
      %c3_402 = arith.constant 3 : index
      %c0_403 = arith.constant 0 : index
      %c0_404 = arith.constant 0 : index
      %596 = vector.load %arg1[%c3_402, %c0_403, %c0_404] : memref<8x8x128xf32, #tpu.memory_space<vmem>>, vector<1x8x128xf32>
      %597 = vector.shape_cast %596 : vector<1x8x128xf32> to vector<8x128xf32>
      %c0_405 = arith.constant 0 : index
      %c0_406 = arith.constant 0 : index
      %598 = vector.load %arg15[%c0_405, %c0_406] : memref<8x128xf32, #tpu.memory_space<vmem>>, vector<8x128xf32>
      tpu.vector_store %arg15[%c0_405, %c0_406], %597 {strides = array<i32>} : memref<8x128xf32, #tpu.memory_space<vmem>>, vector<8x128xf32>,
    } else {
    }
    %c0_i32_213 = arith.constant 0 : i32
    %312 = arith.cmpi eq, %308, %c0_i32_213 : i32
    %313 = arith.extui %312 : i1 to i32
    %c0_i32_214 = arith.constant 0 : i32
    %314 = arith.cmpi ne, %313, %c0_i32_214 : i32
    scf.if %314 {
      %c0_402 = arith.constant 0 : index
      %c0_403 = arith.constant 0 : index
      %596 = vector.load %arg15[%c0_402, %c0_403] : memref<8x128xf32, #tpu.memory_space<vmem>>, vector<8x128xf32>
      tpu.vector_store %arg15[%c0_402, %c0_403], %304 {strides = array<i32>} : memref<8x128xf32, #tpu.memory_space<vmem>>, vector<8x128xf32>,
    } else {
    }
    %c0_215 = arith.constant 0 : index
    %c0_216 = arith.constant 0 : index
    %315 = vector.load %arg15[%c0_215, %c0_216] : memref<8x128xf32, #tpu.memory_space<vmem>>, vector<8x128xf32>
    %c0_217 = arith.constant 0 : index
    %c0_218 = arith.constant 0 : index
    %c0_219 = arith.constant 0 : index
    %316 = vector.load %arg13[%c0_217, %c0_218, %c0_219] : memref<2x8x32xf32, #tpu.memory_space<vmem>>, vector<1x8x32xf32>
    %317 = vector.shape_cast %316 : vector<1x8x32xf32> to vector<8x32xf32>
    %c0_220 = arith.constant 0 : index
    %c0_221 = arith.constant 0 : index
    %c0_222 = arith.constant 0 : index
    %318 = vector.load %arg14[%c0_220, %c0_221, %c0_222] : memref<2x8x32xf32, #tpu.memory_space<vmem>>, vector<1x8x32xf32>
    %319 = vector.shape_cast %318 : vector<1x8x32xf32> to vector<8x32xf32>
    %c0_223 = arith.constant 0 : index
    %c0_224 = arith.constant 0 : index
    %320 = vector.load %arg4[%c0_223, %c0_224] : memref<128x128xf32, #tpu.memory_space<vmem>>, vector<128x128xf32>
    %cst_225 = arith.constant dense<0.000000e+00> : vector<8x128xf32>
    %321 = tpu.matmul %315, %320, %cst_225 {dimension_numbers = #tpu.dot_dimension_numbers<[1], [0], [0], [1], [0, 0, 1, 1], [], []>, precision = #tpu.contract_precision<fp32>} : vector<8x128xf32>, vector<128x128xf32>, vector<8x128xf32> -> vector<8x128xf32>
    %c0_226 = arith.constant 0 : index
    %c0_227 = arith.constant 0 : index
    %322 = vector.load %arg6[%c0_226, %c0_227] : memref<32x128xf32, #tpu.memory_space<vmem>>, vector<32x128xf32>
    %cst_228 = arith.constant dense<0.000000e+00> : vector<8x128xf32>
    %323 = tpu.matmul %317, %322, %cst_228 {dimension_numbers = #tpu.dot_dimension_numbers<[1], [0], [0], [1], [0, 0, 1, 1], [], []>, precision = #tpu.contract_precision<fp32>} : vector<8x32xf32>, vector<32x128xf32>, vector<8x128xf32> -> vector<8x128xf32>
    %324 = arith.addf %321, %323 : vector<8x128xf32>
    %325 = arith.addf %324, %20 : vector<8x128xf32>
    %326 = arith.mulf %325, %14 : vector<8x128xf32>
    %327 = math.tanh %326 : vector<8x128xf32>
    %328 = arith.mulf %327, %14 : vector<8x128xf32>
    %329 = arith.addf %328, %17 : vector<8x128xf32>
    %330 = vector.extract_strided_slice %329 {offsets = [0, 0], sizes = [8, 32], strides = [1, 1]} : vector<8x128xf32> to vector<8x32xf32>
    %331 = vector.extract_strided_slice %329 {offsets = [0, 32], sizes = [8, 32], strides = [1, 1]} : vector<8x128xf32> to vector<8x32xf32>
    %332 = vector.extract_strided_slice %329 {offsets = [0, 64], sizes = [8, 32], strides = [1, 1]} : vector<8x128xf32> to vector<8x32xf32>
    %333 = vector.extract_strided_slice %329 {offsets = [0, 96], sizes = [8, 32], strides = [1, 1]} : vector<8x128xf32> to vector<8x32xf32>
    %334 = arith.mulf %331, %319 : vector<8x32xf32>
    %335 = arith.mulf %330, %332 : vector<8x32xf32>
    %336 = arith.addf %334, %335 : vector<8x32xf32>
    %337 = math.tanh %336 : vector<8x32xf32>
    %338 = arith.mulf %333, %337 : vector<8x32xf32>
    %c0_229 = arith.constant 0 : index
    %c0_230 = arith.constant 0 : index
    %c0_231 = arith.constant 0 : index
    %339 = vector.load %arg13[%c0_229, %c0_230, %c0_231] : memref<2x8x32xf32, #tpu.memory_space<vmem>>, vector<1x8x32xf32>
    %340 = vector.shape_cast %339 : vector<1x8x32xf32> to vector<8x32xf32>
    %341 = vector.shape_cast %338 : vector<8x32xf32> to vector<1x8x32xf32>
    tpu.vector_store %arg13[%c0_229, %c0_230, %c0_231], %341 {strides = array<i32>} : memref<2x8x32xf32, #tpu.memory_space<vmem>>, vector<1x8x32xf32>,
    %c0_232 = arith.constant 0 : index
    %c0_233 = arith.constant 0 : index
    %c0_234 = arith.constant 0 : index
    %342 = vector.load %arg14[%c0_232, %c0_233, %c0_234] : memref<2x8x32xf32, #tpu.memory_space<vmem>>, vector<1x8x32xf32>
    %343 = vector.shape_cast %342 : vector<1x8x32xf32> to vector<8x32xf32>
    %344 = vector.shape_cast %336 : vector<8x32xf32> to vector<1x8x32xf32>
    tpu.vector_store %arg14[%c0_232, %c0_233, %c0_234], %344 {strides = array<i32>} : memref<2x8x32xf32, #tpu.memory_space<vmem>>, vector<1x8x32xf32>,
    %c1_235 = arith.constant 1 : index
    %c0_236 = arith.constant 0 : index
    %c0_237 = arith.constant 0 : index
    %345 = vector.load %arg13[%c1_235, %c0_236, %c0_237] : memref<2x8x32xf32, #tpu.memory_space<vmem>>, vector<1x8x32xf32>
    %346 = vector.shape_cast %345 : vector<1x8x32xf32> to vector<8x32xf32>
    %c1_238 = arith.constant 1 : index
    %c0_239 = arith.constant 0 : index
    %c0_240 = arith.constant 0 : index
    %347 = vector.load %arg14[%c1_238, %c0_239, %c0_240] : memref<2x8x32xf32, #tpu.memory_space<vmem>>, vector<1x8x32xf32>
    %348 = vector.shape_cast %347 : vector<1x8x32xf32> to vector<8x32xf32>
    %c0_241 = arith.constant 0 : index
    %c0_242 = arith.constant 0 : index
    %349 = vector.load %arg5[%c0_241, %c0_242] : memref<32x128xf32, #tpu.memory_space<vmem>>, vector<32x128xf32>
    %cst_243 = arith.constant dense<0.000000e+00> : vector<8x128xf32>
    %350 = tpu.matmul %338, %349, %cst_243 {dimension_numbers = #tpu.dot_dimension_numbers<[1], [0], [0], [1], [0, 0, 1, 1], [], []>, precision = #tpu.contract_precision<fp32>} : vector<8x32xf32>, vector<32x128xf32>, vector<8x128xf32> -> vector<8x128xf32>
    %c0_244 = arith.constant 0 : index
    %c0_245 = arith.constant 0 : index
    %351 = vector.load %arg7[%c0_244, %c0_245] : memref<32x128xf32, #tpu.memory_space<vmem>>, vector<32x128xf32>
    %cst_246 = arith.constant dense<0.000000e+00> : vector<8x128xf32>
    %352 = tpu.matmul %346, %351, %cst_246 {dimension_numbers = #tpu.dot_dimension_numbers<[1], [0], [0], [1], [0, 0, 1, 1], [], []>, precision = #tpu.contract_precision<fp32>} : vector<8x32xf32>, vector<32x128xf32>, vector<8x128xf32> -> vector<8x128xf32>
    %353 = arith.addf %350, %352 : vector<8x128xf32>
    %354 = arith.addf %353, %23 : vector<8x128xf32>
    %355 = arith.mulf %354, %14 : vector<8x128xf32>
    %356 = math.tanh %355 : vector<8x128xf32>
    %357 = arith.mulf %356, %14 : vector<8x128xf32>
    %358 = arith.addf %357, %17 : vector<8x128xf32>
    %359 = vector.extract_strided_slice %358 {offsets = [0, 0], sizes = [8, 32], strides = [1, 1]} : vector<8x128xf32> to vector<8x32xf32>
    %360 = vector.extract_strided_slice %358 {offsets = [0, 32], sizes = [8, 32], strides = [1, 1]} : vector<8x128xf32> to vector<8x32xf32>
    %361 = vector.extract_strided_slice %358 {offsets = [0, 64], sizes = [8, 32], strides = [1, 1]} : vector<8x128xf32> to vector<8x32xf32>
    %362 = vector.extract_strided_slice %358 {offsets = [0, 96], sizes = [8, 32], strides = [1, 1]} : vector<8x128xf32> to vector<8x32xf32>
    %363 = arith.mulf %360, %348 : vector<8x32xf32>
    %364 = arith.mulf %359, %361 : vector<8x32xf32>
    %365 = arith.addf %363, %364 : vector<8x32xf32>
    %366 = math.tanh %365 : vector<8x32xf32>
    %367 = arith.mulf %362, %366 : vector<8x32xf32>
    %c1_247 = arith.constant 1 : index
    %c0_248 = arith.constant 0 : index
    %c0_249 = arith.constant 0 : index
    %368 = vector.load %arg13[%c1_247, %c0_248, %c0_249] : memref<2x8x32xf32, #tpu.memory_space<vmem>>, vector<1x8x32xf32>
    %369 = vector.shape_cast %368 : vector<1x8x32xf32> to vector<8x32xf32>
    %370 = vector.shape_cast %367 : vector<8x32xf32> to vector<1x8x32xf32>
    tpu.vector_store %arg13[%c1_247, %c0_248, %c0_249], %370 {strides = array<i32>} : memref<2x8x32xf32, #tpu.memory_space<vmem>>, vector<1x8x32xf32>,
    %c1_250 = arith.constant 1 : index
    %c0_251 = arith.constant 0 : index
    %c0_252 = arith.constant 0 : index
    %371 = vector.load %arg14[%c1_250, %c0_251, %c0_252] : memref<2x8x32xf32, #tpu.memory_space<vmem>>, vector<1x8x32xf32>
    %372 = vector.shape_cast %371 : vector<1x8x32xf32> to vector<8x32xf32>
    %373 = vector.shape_cast %365 : vector<8x32xf32> to vector<1x8x32xf32>
    tpu.vector_store %arg14[%c1_250, %c0_251, %c0_252], %373 {strides = array<i32>} : memref<2x8x32xf32, #tpu.memory_space<vmem>>, vector<1x8x32xf32>,
    %c0_253 = arith.constant 0 : index
    %c0_254 = arith.constant 0 : index
    %374 = vector.load %arg10[%c0_253, %c0_254] : memref<32x128xf32, #tpu.memory_space<vmem>>, vector<32x128xf32>
    %cst_255 = arith.constant dense<0.000000e+00> : vector<8x128xf32>
    %375 = tpu.matmul %367, %374, %cst_255 {dimension_numbers = #tpu.dot_dimension_numbers<[1], [0], [0], [1], [0, 0, 1, 1], [], []>, precision = #tpu.contract_precision<fp32>} : vector<8x32xf32>, vector<32x128xf32>, vector<8x128xf32> -> vector<8x128xf32>
    %376 = arith.addf %375, %26 : vector<8x128xf32>
    %c4 = arith.constant 4 : index
    %c0_256 = arith.constant 0 : index
    %c0_257 = arith.constant 0 : index
    %377 = vector.load %arg12[%c4, %c0_256, %c0_257] : memref<8x8x128xf32, #tpu.memory_space<vmem>>, vector<1x8x128xf32>
    %378 = vector.shape_cast %377 : vector<1x8x128xf32> to vector<8x128xf32>
    %379 = vector.shape_cast %376 : vector<8x128xf32> to vector<1x8x128xf32>
    tpu.vector_store %arg12[%c4, %c0_256, %c0_257], %379 {strides = array<i32>} : memref<8x8x128xf32, #tpu.memory_space<vmem>>, vector<1x8x128xf32>,
    %c4_258 = arith.constant 4 : index
    %380 = memref.load %arg0[%c4_258] : memref<8xi32, #tpu.memory_space<smem>>
    %c0_i32_259 = arith.constant 0 : i32
    %381 = arith.cmpi ne, %380, %c0_i32_259 : i32
    %382 = arith.extui %381 : i1 to i32
    %c0_i32_260 = arith.constant 0 : i32
    %383 = arith.cmpi ne, %382, %c0_i32_260 : i32
    scf.if %383 {
      %c4_402 = arith.constant 4 : index
      %c0_403 = arith.constant 0 : index
      %c0_404 = arith.constant 0 : index
      %596 = vector.load %arg1[%c4_402, %c0_403, %c0_404] : memref<8x8x128xf32, #tpu.memory_space<vmem>>, vector<1x8x128xf32>
      %597 = vector.shape_cast %596 : vector<1x8x128xf32> to vector<8x128xf32>
      %c0_405 = arith.constant 0 : index
      %c0_406 = arith.constant 0 : index
      %598 = vector.load %arg15[%c0_405, %c0_406] : memref<8x128xf32, #tpu.memory_space<vmem>>, vector<8x128xf32>
      tpu.vector_store %arg15[%c0_405, %c0_406], %597 {strides = array<i32>} : memref<8x128xf32, #tpu.memory_space<vmem>>, vector<8x128xf32>,
    } else {
    }
    %c0_i32_261 = arith.constant 0 : i32
    %384 = arith.cmpi eq, %380, %c0_i32_261 : i32
    %385 = arith.extui %384 : i1 to i32
    %c0_i32_262 = arith.constant 0 : i32
    %386 = arith.cmpi ne, %385, %c0_i32_262 : i32
    scf.if %386 {
      %c0_402 = arith.constant 0 : index
      %c0_403 = arith.constant 0 : index
      %596 = vector.load %arg15[%c0_402, %c0_403] : memref<8x128xf32, #tpu.memory_space<vmem>>, vector<8x128xf32>
      tpu.vector_store %arg15[%c0_402, %c0_403], %376 {strides = array<i32>} : memref<8x128xf32, #tpu.memory_space<vmem>>, vector<8x128xf32>,
    } else {
    }
    %c0_263 = arith.constant 0 : index
    %c0_264 = arith.constant 0 : index
    %387 = vector.load %arg15[%c0_263, %c0_264] : memref<8x128xf32, #tpu.memory_space<vmem>>, vector<8x128xf32>
    %c0_265 = arith.constant 0 : index
    %c0_266 = arith.constant 0 : index
    %c0_267 = arith.constant 0 : index
    %388 = vector.load %arg13[%c0_265, %c0_266, %c0_267] : memref<2x8x32xf32, #tpu.memory_space<vmem>>, vector<1x8x32xf32>
    %389 = vector.shape_cast %388 : vector<1x8x32xf32> to vector<8x32xf32>
    %c0_268 = arith.constant 0 : index
    %c0_269 = arith.constant 0 : index
    %c0_270 = arith.constant 0 : index
    %390 = vector.load %arg14[%c0_268, %c0_269, %c0_270] : memref<2x8x32xf32, #tpu.memory_space<vmem>>, vector<1x8x32xf32>
    %391 = vector.shape_cast %390 : vector<1x8x32xf32> to vector<8x32xf32>
    %c0_271 = arith.constant 0 : index
    %c0_272 = arith.constant 0 : index
    %392 = vector.load %arg4[%c0_271, %c0_272] : memref<128x128xf32, #tpu.memory_space<vmem>>, vector<128x128xf32>
    %cst_273 = arith.constant dense<0.000000e+00> : vector<8x128xf32>
    %393 = tpu.matmul %387, %392, %cst_273 {dimension_numbers = #tpu.dot_dimension_numbers<[1], [0], [0], [1], [0, 0, 1, 1], [], []>, precision = #tpu.contract_precision<fp32>} : vector<8x128xf32>, vector<128x128xf32>, vector<8x128xf32> -> vector<8x128xf32>
    %c0_274 = arith.constant 0 : index
    %c0_275 = arith.constant 0 : index
    %394 = vector.load %arg6[%c0_274, %c0_275] : memref<32x128xf32, #tpu.memory_space<vmem>>, vector<32x128xf32>
    %cst_276 = arith.constant dense<0.000000e+00> : vector<8x128xf32>
    %395 = tpu.matmul %389, %394, %cst_276 {dimension_numbers = #tpu.dot_dimension_numbers<[1], [0], [0], [1], [0, 0, 1, 1], [], []>, precision = #tpu.contract_precision<fp32>} : vector<8x32xf32>, vector<32x128xf32>, vector<8x128xf32> -> vector<8x128xf32>
    %396 = arith.addf %393, %395 : vector<8x128xf32>
    %397 = arith.addf %396, %20 : vector<8x128xf32>
    %398 = arith.mulf %397, %14 : vector<8x128xf32>
    %399 = math.tanh %398 : vector<8x128xf32>
    %400 = arith.mulf %399, %14 : vector<8x128xf32>
    %401 = arith.addf %400, %17 : vector<8x128xf32>
    %402 = vector.extract_strided_slice %401 {offsets = [0, 0], sizes = [8, 32], strides = [1, 1]} : vector<8x128xf32> to vector<8x32xf32>
    %403 = vector.extract_strided_slice %401 {offsets = [0, 32], sizes = [8, 32], strides = [1, 1]} : vector<8x128xf32> to vector<8x32xf32>
    %404 = vector.extract_strided_slice %401 {offsets = [0, 64], sizes = [8, 32], strides = [1, 1]} : vector<8x128xf32> to vector<8x32xf32>
    %405 = vector.extract_strided_slice %401 {offsets = [0, 96], sizes = [8, 32], strides = [1, 1]} : vector<8x128xf32> to vector<8x32xf32>
    %406 = arith.mulf %403, %391 : vector<8x32xf32>
    %407 = arith.mulf %402, %404 : vector<8x32xf32>
    %408 = arith.addf %406, %407 : vector<8x32xf32>
    %409 = math.tanh %408 : vector<8x32xf32>
    %410 = arith.mulf %405, %409 : vector<8x32xf32>
    %c0_277 = arith.constant 0 : index
    %c0_278 = arith.constant 0 : index
    %c0_279 = arith.constant 0 : index
    %411 = vector.load %arg13[%c0_277, %c0_278, %c0_279] : memref<2x8x32xf32, #tpu.memory_space<vmem>>, vector<1x8x32xf32>
    %412 = vector.shape_cast %411 : vector<1x8x32xf32> to vector<8x32xf32>
    %413 = vector.shape_cast %410 : vector<8x32xf32> to vector<1x8x32xf32>
    tpu.vector_store %arg13[%c0_277, %c0_278, %c0_279], %413 {strides = array<i32>} : memref<2x8x32xf32, #tpu.memory_space<vmem>>, vector<1x8x32xf32>,
    %c0_280 = arith.constant 0 : index
    %c0_281 = arith.constant 0 : index
    %c0_282 = arith.constant 0 : index
    %414 = vector.load %arg14[%c0_280, %c0_281, %c0_282] : memref<2x8x32xf32, #tpu.memory_space<vmem>>, vector<1x8x32xf32>
    %415 = vector.shape_cast %414 : vector<1x8x32xf32> to vector<8x32xf32>
    %416 = vector.shape_cast %408 : vector<8x32xf32> to vector<1x8x32xf32>
    tpu.vector_store %arg14[%c0_280, %c0_281, %c0_282], %416 {strides = array<i32>} : memref<2x8x32xf32, #tpu.memory_space<vmem>>, vector<1x8x32xf32>,
    %c1_283 = arith.constant 1 : index
    %c0_284 = arith.constant 0 : index
    %c0_285 = arith.constant 0 : index
    %417 = vector.load %arg13[%c1_283, %c0_284, %c0_285] : memref<2x8x32xf32, #tpu.memory_space<vmem>>, vector<1x8x32xf32>
    %418 = vector.shape_cast %417 : vector<1x8x32xf32> to vector<8x32xf32>
    %c1_286 = arith.constant 1 : index
    %c0_287 = arith.constant 0 : index
    %c0_288 = arith.constant 0 : index
    %419 = vector.load %arg14[%c1_286, %c0_287, %c0_288] : memref<2x8x32xf32, #tpu.memory_space<vmem>>, vector<1x8x32xf32>
    %420 = vector.shape_cast %419 : vector<1x8x32xf32> to vector<8x32xf32>
    %c0_289 = arith.constant 0 : index
    %c0_290 = arith.constant 0 : index
    %421 = vector.load %arg5[%c0_289, %c0_290] : memref<32x128xf32, #tpu.memory_space<vmem>>, vector<32x128xf32>
    %cst_291 = arith.constant dense<0.000000e+00> : vector<8x128xf32>
    %422 = tpu.matmul %410, %421, %cst_291 {dimension_numbers = #tpu.dot_dimension_numbers<[1], [0], [0], [1], [0, 0, 1, 1], [], []>, precision = #tpu.contract_precision<fp32>} : vector<8x32xf32>, vector<32x128xf32>, vector<8x128xf32> -> vector<8x128xf32>
    %c0_292 = arith.constant 0 : index
    %c0_293 = arith.constant 0 : index
    %423 = vector.load %arg7[%c0_292, %c0_293] : memref<32x128xf32, #tpu.memory_space<vmem>>, vector<32x128xf32>
    %cst_294 = arith.constant dense<0.000000e+00> : vector<8x128xf32>
    %424 = tpu.matmul %418, %423, %cst_294 {dimension_numbers = #tpu.dot_dimension_numbers<[1], [0], [0], [1], [0, 0, 1, 1], [], []>, precision = #tpu.contract_precision<fp32>} : vector<8x32xf32>, vector<32x128xf32>, vector<8x128xf32> -> vector<8x128xf32>
    %425 = arith.addf %422, %424 : vector<8x128xf32>
    %426 = arith.addf %425, %23 : vector<8x128xf32>
    %427 = arith.mulf %426, %14 : vector<8x128xf32>
    %428 = math.tanh %427 : vector<8x128xf32>
    %429 = arith.mulf %428, %14 : vector<8x128xf32>
    %430 = arith.addf %429, %17 : vector<8x128xf32>
    %431 = vector.extract_strided_slice %430 {offsets = [0, 0], sizes = [8, 32], strides = [1, 1]} : vector<8x128xf32> to vector<8x32xf32>
    %432 = vector.extract_strided_slice %430 {offsets = [0, 32], sizes = [8, 32], strides = [1, 1]} : vector<8x128xf32> to vector<8x32xf32>
    %433 = vector.extract_strided_slice %430 {offsets = [0, 64], sizes = [8, 32], strides = [1, 1]} : vector<8x128xf32> to vector<8x32xf32>
    %434 = vector.extract_strided_slice %430 {offsets = [0, 96], sizes = [8, 32], strides = [1, 1]} : vector<8x128xf32> to vector<8x32xf32>
    %435 = arith.mulf %432, %420 : vector<8x32xf32>
    %436 = arith.mulf %431, %433 : vector<8x32xf32>
    %437 = arith.addf %435, %436 : vector<8x32xf32>
    %438 = math.tanh %437 : vector<8x32xf32>
    %439 = arith.mulf %434, %438 : vector<8x32xf32>
    %c1_295 = arith.constant 1 : index
    %c0_296 = arith.constant 0 : index
    %c0_297 = arith.constant 0 : index
    %440 = vector.load %arg13[%c1_295, %c0_296, %c0_297] : memref<2x8x32xf32, #tpu.memory_space<vmem>>, vector<1x8x32xf32>
    %441 = vector.shape_cast %440 : vector<1x8x32xf32> to vector<8x32xf32>
    %442 = vector.shape_cast %439 : vector<8x32xf32> to vector<1x8x32xf32>
    tpu.vector_store %arg13[%c1_295, %c0_296, %c0_297], %442 {strides = array<i32>} : memref<2x8x32xf32, #tpu.memory_space<vmem>>, vector<1x8x32xf32>,
    %c1_298 = arith.constant 1 : index
    %c0_299 = arith.constant 0 : index
    %c0_300 = arith.constant 0 : index
    %443 = vector.load %arg14[%c1_298, %c0_299, %c0_300] : memref<2x8x32xf32, #tpu.memory_space<vmem>>, vector<1x8x32xf32>
    %444 = vector.shape_cast %443 : vector<1x8x32xf32> to vector<8x32xf32>
    %445 = vector.shape_cast %437 : vector<8x32xf32> to vector<1x8x32xf32>
    tpu.vector_store %arg14[%c1_298, %c0_299, %c0_300], %445 {strides = array<i32>} : memref<2x8x32xf32, #tpu.memory_space<vmem>>, vector<1x8x32xf32>,
    %c0_301 = arith.constant 0 : index
    %c0_302 = arith.constant 0 : index
    %446 = vector.load %arg10[%c0_301, %c0_302] : memref<32x128xf32, #tpu.memory_space<vmem>>, vector<32x128xf32>
    %cst_303 = arith.constant dense<0.000000e+00> : vector<8x128xf32>
    %447 = tpu.matmul %439, %446, %cst_303 {dimension_numbers = #tpu.dot_dimension_numbers<[1], [0], [0], [1], [0, 0, 1, 1], [], []>, precision = #tpu.contract_precision<fp32>} : vector<8x32xf32>, vector<32x128xf32>, vector<8x128xf32> -> vector<8x128xf32>
    %448 = arith.addf %447, %26 : vector<8x128xf32>
    %c5 = arith.constant 5 : index
    %c0_304 = arith.constant 0 : index
    %c0_305 = arith.constant 0 : index
    %449 = vector.load %arg12[%c5, %c0_304, %c0_305] : memref<8x8x128xf32, #tpu.memory_space<vmem>>, vector<1x8x128xf32>
    %450 = vector.shape_cast %449 : vector<1x8x128xf32> to vector<8x128xf32>
    %451 = vector.shape_cast %448 : vector<8x128xf32> to vector<1x8x128xf32>
    tpu.vector_store %arg12[%c5, %c0_304, %c0_305], %451 {strides = array<i32>} : memref<8x8x128xf32, #tpu.memory_space<vmem>>, vector<1x8x128xf32>,
    %c5_306 = arith.constant 5 : index
    %452 = memref.load %arg0[%c5_306] : memref<8xi32, #tpu.memory_space<smem>>
    %c0_i32_307 = arith.constant 0 : i32
    %453 = arith.cmpi ne, %452, %c0_i32_307 : i32
    %454 = arith.extui %453 : i1 to i32
    %c0_i32_308 = arith.constant 0 : i32
    %455 = arith.cmpi ne, %454, %c0_i32_308 : i32
    scf.if %455 {
      %c5_402 = arith.constant 5 : index
      %c0_403 = arith.constant 0 : index
      %c0_404 = arith.constant 0 : index
      %596 = vector.load %arg1[%c5_402, %c0_403, %c0_404] : memref<8x8x128xf32, #tpu.memory_space<vmem>>, vector<1x8x128xf32>
      %597 = vector.shape_cast %596 : vector<1x8x128xf32> to vector<8x128xf32>
      %c0_405 = arith.constant 0 : index
      %c0_406 = arith.constant 0 : index
      %598 = vector.load %arg15[%c0_405, %c0_406] : memref<8x128xf32, #tpu.memory_space<vmem>>, vector<8x128xf32>
      tpu.vector_store %arg15[%c0_405, %c0_406], %597 {strides = array<i32>} : memref<8x128xf32, #tpu.memory_space<vmem>>, vector<8x128xf32>,
    } else {
    }
    %c0_i32_309 = arith.constant 0 : i32
    %456 = arith.cmpi eq, %452, %c0_i32_309 : i32
    %457 = arith.extui %456 : i1 to i32
    %c0_i32_310 = arith.constant 0 : i32
    %458 = arith.cmpi ne, %457, %c0_i32_310 : i32
    scf.if %458 {
      %c0_402 = arith.constant 0 : index
      %c0_403 = arith.constant 0 : index
      %596 = vector.load %arg15[%c0_402, %c0_403] : memref<8x128xf32, #tpu.memory_space<vmem>>, vector<8x128xf32>
      tpu.vector_store %arg15[%c0_402, %c0_403], %448 {strides = array<i32>} : memref<8x128xf32, #tpu.memory_space<vmem>>, vector<8x128xf32>,
    } else {
    }
    %c0_311 = arith.constant 0 : index
    %c0_312 = arith.constant 0 : index
    %459 = vector.load %arg15[%c0_311, %c0_312] : memref<8x128xf32, #tpu.memory_space<vmem>>, vector<8x128xf32>
    %c0_313 = arith.constant 0 : index
    %c0_314 = arith.constant 0 : index
    %c0_315 = arith.constant 0 : index
    %460 = vector.load %arg13[%c0_313, %c0_314, %c0_315] : memref<2x8x32xf32, #tpu.memory_space<vmem>>, vector<1x8x32xf32>
    %461 = vector.shape_cast %460 : vector<1x8x32xf32> to vector<8x32xf32>
    %c0_316 = arith.constant 0 : index
    %c0_317 = arith.constant 0 : index
    %c0_318 = arith.constant 0 : index
    %462 = vector.load %arg14[%c0_316, %c0_317, %c0_318] : memref<2x8x32xf32, #tpu.memory_space<vmem>>, vector<1x8x32xf32>
    %463 = vector.shape_cast %462 : vector<1x8x32xf32> to vector<8x32xf32>
    %c0_319 = arith.constant 0 : index
    %c0_320 = arith.constant 0 : index
    %464 = vector.load %arg4[%c0_319, %c0_320] : memref<128x128xf32, #tpu.memory_space<vmem>>, vector<128x128xf32>
    %cst_321 = arith.constant dense<0.000000e+00> : vector<8x128xf32>
    %465 = tpu.matmul %459, %464, %cst_321 {dimension_numbers = #tpu.dot_dimension_numbers<[1], [0], [0], [1], [0, 0, 1, 1], [], []>, precision = #tpu.contract_precision<fp32>} : vector<8x128xf32>, vector<128x128xf32>, vector<8x128xf32> -> vector<8x128xf32>
    %c0_322 = arith.constant 0 : index
    %c0_323 = arith.constant 0 : index
    %466 = vector.load %arg6[%c0_322, %c0_323] : memref<32x128xf32, #tpu.memory_space<vmem>>, vector<32x128xf32>
    %cst_324 = arith.constant dense<0.000000e+00> : vector<8x128xf32>
    %467 = tpu.matmul %461, %466, %cst_324 {dimension_numbers = #tpu.dot_dimension_numbers<[1], [0], [0], [1], [0, 0, 1, 1], [], []>, precision = #tpu.contract_precision<fp32>} : vector<8x32xf32>, vector<32x128xf32>, vector<8x128xf32> -> vector<8x128xf32>
    %468 = arith.addf %465, %467 : vector<8x128xf32>
    %469 = arith.addf %468, %20 : vector<8x128xf32>
    %470 = arith.mulf %469, %14 : vector<8x128xf32>
    %471 = math.tanh %470 : vector<8x128xf32>
    %472 = arith.mulf %471, %14 : vector<8x128xf32>
    %473 = arith.addf %472, %17 : vector<8x128xf32>
    %474 = vector.extract_strided_slice %473 {offsets = [0, 0], sizes = [8, 32], strides = [1, 1]} : vector<8x128xf32> to vector<8x32xf32>
    %475 = vector.extract_strided_slice %473 {offsets = [0, 32], sizes = [8, 32], strides = [1, 1]} : vector<8x128xf32> to vector<8x32xf32>
    %476 = vector.extract_strided_slice %473 {offsets = [0, 64], sizes = [8, 32], strides = [1, 1]} : vector<8x128xf32> to vector<8x32xf32>
    %477 = vector.extract_strided_slice %473 {offsets = [0, 96], sizes = [8, 32], strides = [1, 1]} : vector<8x128xf32> to vector<8x32xf32>
    %478 = arith.mulf %475, %463 : vector<8x32xf32>
    %479 = arith.mulf %474, %476 : vector<8x32xf32>
    %480 = arith.addf %478, %479 : vector<8x32xf32>
    %481 = math.tanh %480 : vector<8x32xf32>
    %482 = arith.mulf %477, %481 : vector<8x32xf32>
    %c0_325 = arith.constant 0 : index
    %c0_326 = arith.constant 0 : index
    %c0_327 = arith.constant 0 : index
    %483 = vector.load %arg13[%c0_325, %c0_326, %c0_327] : memref<2x8x32xf32, #tpu.memory_space<vmem>>, vector<1x8x32xf32>
    %484 = vector.shape_cast %483 : vector<1x8x32xf32> to vector<8x32xf32>
    %485 = vector.shape_cast %482 : vector<8x32xf32> to vector<1x8x32xf32>
    tpu.vector_store %arg13[%c0_325, %c0_326, %c0_327], %485 {strides = array<i32>} : memref<2x8x32xf32, #tpu.memory_space<vmem>>, vector<1x8x32xf32>,
    %c0_328 = arith.constant 0 : index
    %c0_329 = arith.constant 0 : index
    %c0_330 = arith.constant 0 : index
    %486 = vector.load %arg14[%c0_328, %c0_329, %c0_330] : memref<2x8x32xf32, #tpu.memory_space<vmem>>, vector<1x8x32xf32>
    %487 = vector.shape_cast %486 : vector<1x8x32xf32> to vector<8x32xf32>
    %488 = vector.shape_cast %480 : vector<8x32xf32> to vector<1x8x32xf32>
    tpu.vector_store %arg14[%c0_328, %c0_329, %c0_330], %488 {strides = array<i32>} : memref<2x8x32xf32, #tpu.memory_space<vmem>>, vector<1x8x32xf32>,
    %c1_331 = arith.constant 1 : index
    %c0_332 = arith.constant 0 : index
    %c0_333 = arith.constant 0 : index
    %489 = vector.load %arg13[%c1_331, %c0_332, %c0_333] : memref<2x8x32xf32, #tpu.memory_space<vmem>>, vector<1x8x32xf32>
    %490 = vector.shape_cast %489 : vector<1x8x32xf32> to vector<8x32xf32>
    %c1_334 = arith.constant 1 : index
    %c0_335 = arith.constant 0 : index
    %c0_336 = arith.constant 0 : index
    %491 = vector.load %arg14[%c1_334, %c0_335, %c0_336] : memref<2x8x32xf32, #tpu.memory_space<vmem>>, vector<1x8x32xf32>
    %492 = vector.shape_cast %491 : vector<1x8x32xf32> to vector<8x32xf32>
    %c0_337 = arith.constant 0 : index
    %c0_338 = arith.constant 0 : index
    %493 = vector.load %arg5[%c0_337, %c0_338] : memref<32x128xf32, #tpu.memory_space<vmem>>, vector<32x128xf32>
    %cst_339 = arith.constant dense<0.000000e+00> : vector<8x128xf32>
    %494 = tpu.matmul %482, %493, %cst_339 {dimension_numbers = #tpu.dot_dimension_numbers<[1], [0], [0], [1], [0, 0, 1, 1], [], []>, precision = #tpu.contract_precision<fp32>} : vector<8x32xf32>, vector<32x128xf32>, vector<8x128xf32> -> vector<8x128xf32>
    %c0_340 = arith.constant 0 : index
    %c0_341 = arith.constant 0 : index
    %495 = vector.load %arg7[%c0_340, %c0_341] : memref<32x128xf32, #tpu.memory_space<vmem>>, vector<32x128xf32>
    %cst_342 = arith.constant dense<0.000000e+00> : vector<8x128xf32>
    %496 = tpu.matmul %490, %495, %cst_342 {dimension_numbers = #tpu.dot_dimension_numbers<[1], [0], [0], [1], [0, 0, 1, 1], [], []>, precision = #tpu.contract_precision<fp32>} : vector<8x32xf32>, vector<32x128xf32>, vector<8x128xf32> -> vector<8x128xf32>
    %497 = arith.addf %494, %496 : vector<8x128xf32>
    %498 = arith.addf %497, %23 : vector<8x128xf32>
    %499 = arith.mulf %498, %14 : vector<8x128xf32>
    %500 = math.tanh %499 : vector<8x128xf32>
    %501 = arith.mulf %500, %14 : vector<8x128xf32>
    %502 = arith.addf %501, %17 : vector<8x128xf32>
    %503 = vector.extract_strided_slice %502 {offsets = [0, 0], sizes = [8, 32], strides = [1, 1]} : vector<8x128xf32> to vector<8x32xf32>
    %504 = vector.extract_strided_slice %502 {offsets = [0, 32], sizes = [8, 32], strides = [1, 1]} : vector<8x128xf32> to vector<8x32xf32>
    %505 = vector.extract_strided_slice %502 {offsets = [0, 64], sizes = [8, 32], strides = [1, 1]} : vector<8x128xf32> to vector<8x32xf32>
    %506 = vector.extract_strided_slice %502 {offsets = [0, 96], sizes = [8, 32], strides = [1, 1]} : vector<8x128xf32> to vector<8x32xf32>
    %507 = arith.mulf %504, %492 : vector<8x32xf32>
    %508 = arith.mulf %503, %505 : vector<8x32xf32>
    %509 = arith.addf %507, %508 : vector<8x32xf32>
    %510 = math.tanh %509 : vector<8x32xf32>
    %511 = arith.mulf %506, %510 : vector<8x32xf32>
    %c1_343 = arith.constant 1 : index
    %c0_344 = arith.constant 0 : index
    %c0_345 = arith.constant 0 : index
    %512 = vector.load %arg13[%c1_343, %c0_344, %c0_345] : memref<2x8x32xf32, #tpu.memory_space<vmem>>, vector<1x8x32xf32>
    %513 = vector.shape_cast %512 : vector<1x8x32xf32> to vector<8x32xf32>
    %514 = vector.shape_cast %511 : vector<8x32xf32> to vector<1x8x32xf32>
    tpu.vector_store %arg13[%c1_343, %c0_344, %c0_345], %514 {strides = array<i32>} : memref<2x8x32xf32, #tpu.memory_space<vmem>>, vector<1x8x32xf32>,
    %c1_346 = arith.constant 1 : index
    %c0_347 = arith.constant 0 : index
    %c0_348 = arith.constant 0 : index
    %515 = vector.load %arg14[%c1_346, %c0_347, %c0_348] : memref<2x8x32xf32, #tpu.memory_space<vmem>>, vector<1x8x32xf32>
    %516 = vector.shape_cast %515 : vector<1x8x32xf32> to vector<8x32xf32>
    %517 = vector.shape_cast %509 : vector<8x32xf32> to vector<1x8x32xf32>
    tpu.vector_store %arg14[%c1_346, %c0_347, %c0_348], %517 {strides = array<i32>} : memref<2x8x32xf32, #tpu.memory_space<vmem>>, vector<1x8x32xf32>,
    %c0_349 = arith.constant 0 : index
    %c0_350 = arith.constant 0 : index
    %518 = vector.load %arg10[%c0_349, %c0_350] : memref<32x128xf32, #tpu.memory_space<vmem>>, vector<32x128xf32>
    %cst_351 = arith.constant dense<0.000000e+00> : vector<8x128xf32>
    %519 = tpu.matmul %511, %518, %cst_351 {dimension_numbers = #tpu.dot_dimension_numbers<[1], [0], [0], [1], [0, 0, 1, 1], [], []>, precision = #tpu.contract_precision<fp32>} : vector<8x32xf32>, vector<32x128xf32>, vector<8x128xf32> -> vector<8x128xf32>
    %520 = arith.addf %519, %26 : vector<8x128xf32>
    %c6 = arith.constant 6 : index
    %c0_352 = arith.constant 0 : index
    %c0_353 = arith.constant 0 : index
    %521 = vector.load %arg12[%c6, %c0_352, %c0_353] : memref<8x8x128xf32, #tpu.memory_space<vmem>>, vector<1x8x128xf32>
    %522 = vector.shape_cast %521 : vector<1x8x128xf32> to vector<8x128xf32>
    %523 = vector.shape_cast %520 : vector<8x128xf32> to vector<1x8x128xf32>
    tpu.vector_store %arg12[%c6, %c0_352, %c0_353], %523 {strides = array<i32>} : memref<8x8x128xf32, #tpu.memory_space<vmem>>, vector<1x8x128xf32>,
    %c6_354 = arith.constant 6 : index
    %524 = memref.load %arg0[%c6_354] : memref<8xi32, #tpu.memory_space<smem>>
    %c0_i32_355 = arith.constant 0 : i32
    %525 = arith.cmpi ne, %524, %c0_i32_355 : i32
    %526 = arith.extui %525 : i1 to i32
    %c0_i32_356 = arith.constant 0 : i32
    %527 = arith.cmpi ne, %526, %c0_i32_356 : i32
    scf.if %527 {
      %c6_402 = arith.constant 6 : index
      %c0_403 = arith.constant 0 : index
      %c0_404 = arith.constant 0 : index
      %596 = vector.load %arg1[%c6_402, %c0_403, %c0_404] : memref<8x8x128xf32, #tpu.memory_space<vmem>>, vector<1x8x128xf32>
      %597 = vector.shape_cast %596 : vector<1x8x128xf32> to vector<8x128xf32>
      %c0_405 = arith.constant 0 : index
      %c0_406 = arith.constant 0 : index
      %598 = vector.load %arg15[%c0_405, %c0_406] : memref<8x128xf32, #tpu.memory_space<vmem>>, vector<8x128xf32>
      tpu.vector_store %arg15[%c0_405, %c0_406], %597 {strides = array<i32>} : memref<8x128xf32, #tpu.memory_space<vmem>>, vector<8x128xf32>,
    } else {
    }
    %c0_i32_357 = arith.constant 0 : i32
    %528 = arith.cmpi eq, %524, %c0_i32_357 : i32
    %529 = arith.extui %528 : i1 to i32
    %c0_i32_358 = arith.constant 0 : i32
    %530 = arith.cmpi ne, %529, %c0_i32_358 : i32
    scf.if %530 {
      %c0_402 = arith.constant 0 : index
      %c0_403 = arith.constant 0 : index
      %596 = vector.load %arg15[%c0_402, %c0_403] : memref<8x128xf32, #tpu.memory_space<vmem>>, vector<8x128xf32>
      tpu.vector_store %arg15[%c0_402, %c0_403], %520 {strides = array<i32>} : memref<8x128xf32, #tpu.memory_space<vmem>>, vector<8x128xf32>,
    } else {
    }
    %c0_359 = arith.constant 0 : index
    %c0_360 = arith.constant 0 : index
    %531 = vector.load %arg15[%c0_359, %c0_360] : memref<8x128xf32, #tpu.memory_space<vmem>>, vector<8x128xf32>
    %c0_361 = arith.constant 0 : index
    %c0_362 = arith.constant 0 : index
    %c0_363 = arith.constant 0 : index
    %532 = vector.load %arg13[%c0_361, %c0_362, %c0_363] : memref<2x8x32xf32, #tpu.memory_space<vmem>>, vector<1x8x32xf32>
    %533 = vector.shape_cast %532 : vector<1x8x32xf32> to vector<8x32xf32>
    %c0_364 = arith.constant 0 : index
    %c0_365 = arith.constant 0 : index
    %c0_366 = arith.constant 0 : index
    %534 = vector.load %arg14[%c0_364, %c0_365, %c0_366] : memref<2x8x32xf32, #tpu.memory_space<vmem>>, vector<1x8x32xf32>
    %535 = vector.shape_cast %534 : vector<1x8x32xf32> to vector<8x32xf32>
    %c0_367 = arith.constant 0 : index
    %c0_368 = arith.constant 0 : index
    %536 = vector.load %arg4[%c0_367, %c0_368] : memref<128x128xf32, #tpu.memory_space<vmem>>, vector<128x128xf32>
    %cst_369 = arith.constant dense<0.000000e+00> : vector<8x128xf32>
    %537 = tpu.matmul %531, %536, %cst_369 {dimension_numbers = #tpu.dot_dimension_numbers<[1], [0], [0], [1], [0, 0, 1, 1], [], []>, precision = #tpu.contract_precision<fp32>} : vector<8x128xf32>, vector<128x128xf32>, vector<8x128xf32> -> vector<8x128xf32>
    %c0_370 = arith.constant 0 : index
    %c0_371 = arith.constant 0 : index
    %538 = vector.load %arg6[%c0_370, %c0_371] : memref<32x128xf32, #tpu.memory_space<vmem>>, vector<32x128xf32>
    %cst_372 = arith.constant dense<0.000000e+00> : vector<8x128xf32>
    %539 = tpu.matmul %533, %538, %cst_372 {dimension_numbers = #tpu.dot_dimension_numbers<[1], [0], [0], [1], [0, 0, 1, 1], [], []>, precision = #tpu.contract_precision<fp32>} : vector<8x32xf32>, vector<32x128xf32>, vector<8x128xf32> -> vector<8x128xf32>
    %540 = arith.addf %537, %539 : vector<8x128xf32>
    %541 = arith.addf %540, %20 : vector<8x128xf32>
    %542 = arith.mulf %541, %14 : vector<8x128xf32>
    %543 = math.tanh %542 : vector<8x128xf32>
    %544 = arith.mulf %543, %14 : vector<8x128xf32>
    %545 = arith.addf %544, %17 : vector<8x128xf32>
    %546 = vector.extract_strided_slice %545 {offsets = [0, 0], sizes = [8, 32], strides = [1, 1]} : vector<8x128xf32> to vector<8x32xf32>
    %547 = vector.extract_strided_slice %545 {offsets = [0, 32], sizes = [8, 32], strides = [1, 1]} : vector<8x128xf32> to vector<8x32xf32>
    %548 = vector.extract_strided_slice %545 {offsets = [0, 64], sizes = [8, 32], strides = [1, 1]} : vector<8x128xf32> to vector<8x32xf32>
    %549 = vector.extract_strided_slice %545 {offsets = [0, 96], sizes = [8, 32], strides = [1, 1]} : vector<8x128xf32> to vector<8x32xf32>
    %550 = arith.mulf %547, %535 : vector<8x32xf32>
    %551 = arith.mulf %546, %548 : vector<8x32xf32>
    %552 = arith.addf %550, %551 : vector<8x32xf32>
    %553 = math.tanh %552 : vector<8x32xf32>
    %554 = arith.mulf %549, %553 : vector<8x32xf32>
    %c0_373 = arith.constant 0 : index
    %c0_374 = arith.constant 0 : index
    %c0_375 = arith.constant 0 : index
    %555 = vector.load %arg13[%c0_373, %c0_374, %c0_375] : memref<2x8x32xf32, #tpu.memory_space<vmem>>, vector<1x8x32xf32>
    %556 = vector.shape_cast %555 : vector<1x8x32xf32> to vector<8x32xf32>
    %557 = vector.shape_cast %554 : vector<8x32xf32> to vector<1x8x32xf32>
    tpu.vector_store %arg13[%c0_373, %c0_374, %c0_375], %557 {strides = array<i32>} : memref<2x8x32xf32, #tpu.memory_space<vmem>>, vector<1x8x32xf32>,
    %c0_376 = arith.constant 0 : index
    %c0_377 = arith.constant 0 : index
    %c0_378 = arith.constant 0 : index
    %558 = vector.load %arg14[%c0_376, %c0_377, %c0_378] : memref<2x8x32xf32, #tpu.memory_space<vmem>>, vector<1x8x32xf32>
    %559 = vector.shape_cast %558 : vector<1x8x32xf32> to vector<8x32xf32>
    %560 = vector.shape_cast %552 : vector<8x32xf32> to vector<1x8x32xf32>
    tpu.vector_store %arg14[%c0_376, %c0_377, %c0_378], %560 {strides = array<i32>} : memref<2x8x32xf32, #tpu.memory_space<vmem>>, vector<1x8x32xf32>,
    %c1_379 = arith.constant 1 : index
    %c0_380 = arith.constant 0 : index
    %c0_381 = arith.constant 0 : index
    %561 = vector.load %arg13[%c1_379, %c0_380, %c0_381] : memref<2x8x32xf32, #tpu.memory_space<vmem>>, vector<1x8x32xf32>
    %562 = vector.shape_cast %561 : vector<1x8x32xf32> to vector<8x32xf32>
    %c1_382 = arith.constant 1 : index
    %c0_383 = arith.constant 0 : index
    %c0_384 = arith.constant 0 : index
    %563 = vector.load %arg14[%c1_382, %c0_383, %c0_384] : memref<2x8x32xf32, #tpu.memory_space<vmem>>, vector<1x8x32xf32>
    %564 = vector.shape_cast %563 : vector<1x8x32xf32> to vector<8x32xf32>
    %c0_385 = arith.constant 0 : index
    %c0_386 = arith.constant 0 : index
    %565 = vector.load %arg5[%c0_385, %c0_386] : memref<32x128xf32, #tpu.memory_space<vmem>>, vector<32x128xf32>
    %cst_387 = arith.constant dense<0.000000e+00> : vector<8x128xf32>
    %566 = tpu.matmul %554, %565, %cst_387 {dimension_numbers = #tpu.dot_dimension_numbers<[1], [0], [0], [1], [0, 0, 1, 1], [], []>, precision = #tpu.contract_precision<fp32>} : vector<8x32xf32>, vector<32x128xf32>, vector<8x128xf32> -> vector<8x128xf32>
    %c0_388 = arith.constant 0 : index
    %c0_389 = arith.constant 0 : index
    %567 = vector.load %arg7[%c0_388, %c0_389] : memref<32x128xf32, #tpu.memory_space<vmem>>, vector<32x128xf32>
    %cst_390 = arith.constant dense<0.000000e+00> : vector<8x128xf32>
    %568 = tpu.matmul %562, %567, %cst_390 {dimension_numbers = #tpu.dot_dimension_numbers<[1], [0], [0], [1], [0, 0, 1, 1], [], []>, precision = #tpu.contract_precision<fp32>} : vector<8x32xf32>, vector<32x128xf32>, vector<8x128xf32> -> vector<8x128xf32>
    %569 = arith.addf %566, %568 : vector<8x128xf32>
    %570 = arith.addf %569, %23 : vector<8x128xf32>
    %571 = arith.mulf %570, %14 : vector<8x128xf32>
    %572 = math.tanh %571 : vector<8x128xf32>
    %573 = arith.mulf %572, %14 : vector<8x128xf32>
    %574 = arith.addf %573, %17 : vector<8x128xf32>
    %575 = vector.extract_strided_slice %574 {offsets = [0, 0], sizes = [8, 32], strides = [1, 1]} : vector<8x128xf32> to vector<8x32xf32>
    %576 = vector.extract_strided_slice %574 {offsets = [0, 32], sizes = [8, 32], strides = [1, 1]} : vector<8x128xf32> to vector<8x32xf32>
    %577 = vector.extract_strided_slice %574 {offsets = [0, 64], sizes = [8, 32], strides = [1, 1]} : vector<8x128xf32> to vector<8x32xf32>
    %578 = vector.extract_strided_slice %574 {offsets = [0, 96], sizes = [8, 32], strides = [1, 1]} : vector<8x128xf32> to vector<8x32xf32>
    %579 = arith.mulf %576, %564 : vector<8x32xf32>
    %580 = arith.mulf %575, %577 : vector<8x32xf32>
    %581 = arith.addf %579, %580 : vector<8x32xf32>
    %582 = math.tanh %581 : vector<8x32xf32>
    %583 = arith.mulf %578, %582 : vector<8x32xf32>
    %c1_391 = arith.constant 1 : index
    %c0_392 = arith.constant 0 : index
    %c0_393 = arith.constant 0 : index
    %584 = vector.load %arg13[%c1_391, %c0_392, %c0_393] : memref<2x8x32xf32, #tpu.memory_space<vmem>>, vector<1x8x32xf32>
    %585 = vector.shape_cast %584 : vector<1x8x32xf32> to vector<8x32xf32>
    %586 = vector.shape_cast %583 : vector<8x32xf32> to vector<1x8x32xf32>
    tpu.vector_store %arg13[%c1_391, %c0_392, %c0_393], %586 {strides = array<i32>} : memref<2x8x32xf32, #tpu.memory_space<vmem>>, vector<1x8x32xf32>,
    %c1_394 = arith.constant 1 : index
    %c0_395 = arith.constant 0 : index
    %c0_396 = arith.constant 0 : index
    %587 = vector.load %arg14[%c1_394, %c0_395, %c0_396] : memref<2x8x32xf32, #tpu.memory_space<vmem>>, vector<1x8x32xf32>
    %588 = vector.shape_cast %587 : vector<1x8x32xf32> to vector<8x32xf32>
    %589 = vector.shape_cast %581 : vector<8x32xf32> to vector<1x8x32xf32>
    tpu.vector_store %arg14[%c1_394, %c0_395, %c0_396], %589 {strides = array<i32>} : memref<2x8x32xf32, #tpu.memory_space<vmem>>, vector<1x8x32xf32>,
    %c0_397 = arith.constant 0 : index
    %c0_398 = arith.constant 0 : index
    %590 = vector.load %arg10[%c0_397, %c0_398] : memref<32x128xf32, #tpu.memory_space<vmem>>, vector<32x128xf32>
    %cst_399 = arith.constant dense<0.000000e+00> : vector<8x128xf32>
    %591 = tpu.matmul %583, %590, %cst_399 {dimension_numbers = #tpu.dot_dimension_numbers<[1], [0], [0], [1], [0, 0, 1, 1], [], []>, precision = #tpu.contract_precision<fp32>} : vector<8x32xf32>, vector<32x128xf32>, vector<8x128xf32> -> vector<8x128xf32>
    %592 = arith.addf %591, %26 : vector<8x128xf32>
    %c7 = arith.constant 7 : index
    %c0_400 = arith.constant 0 : index
    %c0_401 = arith.constant 0 : index
    %593 = vector.load %arg12[%c7, %c0_400, %c0_401] : memref<8x8x128xf32, #tpu.memory_space<vmem>>, vector<1x8x128xf32>
    %594 = vector.shape_cast %593 : vector<1x8x128xf32> to vector<8x128xf32>
    %595 = vector.shape_cast %592 : vector<8x128xf32> to vector<1x8x128xf32>
    tpu.vector_store %arg12[%c7, %c0_400, %c0_401], %595 {strides = array<i32>} : memref<8x8x128xf32, #tpu.memory_space<vmem>>, vector<1x8x128xf32>,
    return
  }
}

</mosaic_0001>

<bundles_post_ra>
// kernel: seq2seq_forward.1
= control target key start
LH: loop header
LB: loop body
LE: loop exit
PB: predicated region body
PF: predicated region fallthrough
CT: control target
= control target key end

     0   :  { %20 = vsyncpa [#allocation4], 0  ;;  %s9958_s16 = smov [#allocation3]   ;;  %s14379_s0 = inlined_call_operand.vmem [shape: s32[8], index: 0, kind: input, shape index: {}]   ;;  %s14380_s1 = inlined_call_operand.vmem [shape: f32[8,8,128], index: 1, kind: input, shape index: {}]   ;;  %s14381_s2 = inlined_call_operand.vmem [shape: f32[2,8,32], index: 2, kind: input, shape index: {}, may-alias: {2,13}]   ;;  %s14382_s3 = inlined_call_operand.vmem [shape: f32[2,8,32], index: 3, kind: input, shape index: {}, may-alias: {3,14}]   ;;  %s14383_s4 = inlined_call_operand.vmem [shape: f32[128,128], index: 4, kind: input, shape index: {}]   ;;  %s14384_s5 = inlined_call_operand.vmem [shape: f32[32,128], index: 5, kind: input, shape index: {}]   ;;  %s14385_s6 = inlined_call_operand.vmem [shape: f32[32,128], index: 6, kind: input, shape index: {}]   ;;  %s14386_s7 = inlined_call_operand.vmem [shape: f32[32,128], index: 7, kind: input, shape index: {}]   ;;  %s14387_s8 = inlined_call_operand.vmem [shape: f32[1,128], index: 8, kind: input, shape index: {}]   ;;  %s14388_s9 = inlined_call_operand.vmem [shape: f32[1,128], index: 9, kind: input, shape index: {}]   ;;  %s14389_s10 = inlined_call_operand.vmem [shape: f32[32,128], index: 10, kind: input, shape index: {}]   ;;  %s14390_s11 = inlined_call_operand.vmem [shape: f32[1,128], index: 11, kind: input, shape index: {}]   ;;  %s14391_s12 = inlined_call_operand.vmem [shape: f32[8,8,128], index: 12, kind: output, shape index: {0}]   ;;  %s14392_s13 = inlined_call_operand.vmem [shape: f32[2,8,32], index: 13, kind: output, shape index: {1}, may-alias: {2,13}]   ;;  %s14393_s14 = inlined_call_operand.vmem [shape: f32[2,8,32], index: 14, kind: output, shape index: {2}, may-alias: {3,14}]  }
   0x1   :  { %s26_s15 = sshll.u32 %s14379_s0, 4  ;;  %s27_s15 = int_to_ptr.vmem [resolvable:$true] %s26_s15 }
   0x2   :  { %29 = dma.vmem_to_smem %s27_s15, 16, %s9958_s16, [#allocation4]  }
   0x3   :  { %9956 = dma.done.wait [#allocation4], 16  }
   0x4   :  { %9957 = vsyncadd [#allocation4], 4294967280 }
   0x5   :  { %56 = sfence }
   0x6   :  { %v108_v0 = vld [vmem:[%s14385_s6 + $0x18] sm:$0xff]  ;;  %v107_v1 = vld [vmem:[%s14385_s6 + $0x10] sm:$0xff]  ;;  %v106_v2 = vld [vmem:[%s14385_s6 + $0x8] sm:$0xff]  ;;  %vm59_vm0 = vcmask 261120   ;;  %s9962_s20 = smov 32   ;;  %s1289_s15 = sld [smem:[#allocation3]] }
   0x7   :  { %v10051_v3 = vand.u32 4294901760, %v108_v0  ;;  %v10053_v4 = vand.u32 4294901760, %v107_v1  ;;  %v10055_v5 = vand.u32 4294901760, %v106_v2  ;;  %v105_v6 = vld [vmem:[%s14385_s6] sm:$0xff]  ;;  %v104_v7 = vld [vmem:[%s14383_s4 + $0x78] sm:$0xff]  ;;  %v103_v8 = vld [vmem:[%s14383_s4 + $0x70] sm:$0xff] }
   0x8   :  { %v10066_v9 = vand.u32 4294901760, %v105_v6  ;;  %v10068_v10 = vand.u32 4294901760, %v104_v7  ;;  %v10070_v11 = vand.u32 4294901760, %v103_v8  ;;  %v102_v12 = vld [vmem:[%s14383_s4 + $0x68] sm:$0xff]  ;;  %v101_v13 = vld [vmem:[%s14383_s4 + $0x60] sm:$0xff]  ;;  %v100_v18 = vld [vmem:[%s14383_s4 + $0x58] sm:$0xff] }
   0x9   :  { %v10079_v14 = vsub.f32 %v108_v0, %v10051_v3  ;;  %v10082_v15 = vsub.f32 %v107_v1, %v10053_v4  ;;  %225 = vmatpush.msra.mxu3 %v10051_v3  ;;  %v10086_v16 = vsub.f32 %v106_v2, %v10055_v5  ;;  %125 = vmatpush.msra.mxu0 %v10051_v3  ;;  %v10089_v17 = vand.u32 4294901760, %v102_v12  ;;  %v57_v23 = vld [vmem:[%s14381_s2] sm:$0xff]  ;;  %v99_v40 = vld [vmem:[%s14383_s4 + $0x50] sm:$0xff]  ;;  %v98_v41 = vld [vmem:[%s14383_s4 + $0x48] sm:$0xff] }
   0xa   :  { %v10095_v19 = vsub.f32 %v105_v6, %v10066_v9  ;;  %v10098_v20 = vsub.f32 %v104_v7, %v10068_v10  ;;  %v10101_v21 = vsub.f32 %v103_v8, %v10070_v11  ;;  %v10103_v22 = vand.u32 4294901760, %v101_v13  ;;  %60 = vst.msk [vmem:[%s14392_s13] sm:$0xff] %vm59_vm0, %v57_v23  ;;  %v97_v46 = vld [vmem:[%s14383_s4 + $0x40] sm:$0xff]  ;;  %v96_v47 = vld [vmem:[%s14383_s4 + $0x38] sm:$0xff]  ;;  %v95_v56 = vld [vmem:[%s14383_s4 + $0x30] sm:$0xff] }
   0xb   :  { %196 = vmatpush.msra.mxu2 %v10079_v14  ;;  %227 = vmatpush.msra.mxu3 %v10053_v4  ;;  %v155_v24 = vand.u32 4294901760, %v10079_v14  ;;  %v161_v25 = vand.u32 4294901760, %v10082_v15  ;;  %v10113_v26 = vsub.f32 %v102_v12, %v10089_v17  ;;  %v167_v27 = vand.u32 4294901760, %v10086_v16  ;;  %v94_v62 = vld [vmem:[%s14383_s4 + $0x28] sm:$0xff] }
   0xc   :  { %v340_v28 = vand.u32 4294901760, %v10098_v20  ;;  %127 = vmatpush.msra.mxu0 %v10053_v4  ;;  %v346_v29 = vand.u32 4294901760, %v10101_v21  ;;  %v10123_v30 = vand.u32 4294901760, %v100_v18  ;;  %v10126_v31 = vsub.f32 %v101_v13, %v10103_v22  ;;  %v93_v13 = vld [vmem:[%s14383_s4 + $0x20] sm:$0xff]  ;;  %p9810_p0 = scmp.eq.s32.totalorder %s1289_s15, 0 }
   0xd   :  { %199 = vmatpush.msra.mxu2 %v10082_v15  ;;  %229 = vmatpush.msra.mxu3 %v10055_v5  ;;  %v156_v32 = vsub.f32 %v10079_v14, %v155_v24  ;;  %v162_v33 = vsub.f32 %v10082_v15, %v161_v25  ;;  %v352_v34 = vand.u32 4294901760, %v10113_v26  ;;  %v168_v35 = vsub.f32 %v10086_v16, %v167_v27  ;;  %v92_v15 = vld [vmem:[%s14383_s4 + $0x18] sm:$0xff] }
   0xe   :  { %v341_v36 = vsub.f32 %v10098_v20, %v340_v28  ;;  %v347_v37 = vsub.f32 %v10101_v21, %v346_v29  ;;  %129 = vmatpush.msra.mxu0 %v10055_v5  ;;  %v358_v38 = vand.u32 4294901760, %v10126_v31  ;;  %v173_v39 = vand.u32 4294901760, %v10095_v19 }
   0xf   :  { %202 = vmatpush.msra.mxu2 %v10086_v16  ;;  %231 = vmatpush.msra.mxu3 %v10066_v9  ;;  %v157_v42 = vand.u32 4294901760, %v156_v32  ;;  %v163_v43 = vand.u32 4294901760, %v162_v33  ;;  %v353_v44 = vsub.f32 %v10113_v26, %v352_v34  ;;  %v169_v45 = vand.u32 4294901760, %v168_v35  ;;  %v91_v16 = vld [vmem:[%s14383_s4 + $0x10] sm:$0xff] }
  0x10   :  { %v342_v48 = vand.u32 4294901760, %v341_v36  ;;  %v348_v49 = vand.u32 4294901760, %v347_v37  ;;  %131 = vmatpush.msra.mxu0 %v10066_v9  ;;  %v359_v50 = vsub.f32 %v10126_v31, %v358_v38  ;;  %v174_v51 = vsub.f32 %v10095_v19, %v173_v39 }
  0x11   :  { %205 = vmatpush.msra.mxu2 %v10095_v19  ;;  %158 = vmatpush.msra.mxu1 %v157_v42  ;;  %v354_v52 = vand.u32 4294901760, %v353_v44  ;;  %v10172_v53 = vand.u32 4294901760, %v99_v40  ;;  %v10175_v54 = vsub.f32 %v100_v18, %v10123_v30  ;;  %v10177_v55 = vand.u32 4294901760, %v98_v41  ;;  %v87_v60 = vld [vmem:[%s14392_s13] sm:$0xff] }
  0x12   :  { %343 = vmatpush.msrb.mxu3 %v342_v48  ;;  %v360_v57 = vand.u32 4294901760, %v359_v50  ;;  %v175_v58 = vand.u32 4294901760, %v174_v51  ;;  %v10183_v59 = vand.u32 4294901760, %v97_v46  ;;  %v10188_v61 = vand.u32 4294901760, %v96_v47  ;;  %254 = vmatpush.msrb.mxu0 %v155_v24  ;;  %v90_v48 = vld [vmem:[%s14383_s4 + $0x8] sm:$0xff] }
  0x13   :  { %298 = vmatpush.msrb.mxu2 %v10068_v10  ;;  %164 = vmatpush.msra.mxu1 %v163_v43  ;;  %v364_v63 = vand.u32 4294901760, %v10175_v54  ;;  %v10195_v0 = vsub.f32 %v99_v40, %v10172_v53  ;;  %v10198_v1 = vsub.f32 %v98_v41, %v10177_v55  ;;  %v110_v2 = vsel %vm59_vm0, %v87_v60, 0 }
  0x14   :  { %349 = vmatpush.msrb.mxu3 %v348_v49  ;;  %v10202_v6 = vand.u32 4294901760, %v110_v2  ;;  %v10205_v7 = vsub.f32 %v97_v46, %v10183_v59  ;;  %v10207_v8 = vand.u32 4294901760, %v95_v56  ;;  %v10210_v12 = vsub.f32 %v96_v47, %v10188_v61  ;;  %258 = vmatpush.msrb.mxu0 %v161_v25 }
  0x15   :  { %300 = vmatpush.msrb.mxu2 %v10070_v11  ;;  %170 = vmatpush.msra.mxu1 %v169_v45  ;;  %v365_v14 = vsub.f32 %v10175_v54, %v364_v63  ;;  %v370_v18 = vand.u32 4294901760, %v10195_v0  ;;  %v376_v23 = vand.u32 4294901760, %v10198_v1  ;;  %v10222_v24 = vand.u32 4294901760, %v94_v62 }
  0x16   :  { %355 = vmatpush.msrb.mxu3 %v354_v52  ;;  %v133_v32 = vsub.f32 %v110_v2, %v10202_v6  ;;  %v382_v33 = vand.u32 4294901760, %v10205_v7  ;;  %v388_v35 = vand.u32 4294901760, %v10210_v12  ;;  %v10229_v36 = vsub.f32 %v95_v56, %v10207_v8  ;;  %262 = vmatpush.msrb.mxu0 %v167_v27 }
  0x17   :  { %302 = vmatpush.msrb.mxu2 %v10089_v17  ;;  %176 = vmatpush.msra.mxu1 %v175_v58  ;;  %v366_v25 = vand.u32 4294901760, %v365_v14  ;;  %v371_v37 = vsub.f32 %v10195_v0, %v370_v18  ;;  %v377_v40 = vsub.f32 %v10198_v1, %v376_v23  ;;  %v10242_v41 = vand.u32 4294901760, %v93_v13 }
  0x18   :  { %361 = vmatpush.msrb.mxu3 %v360_v57  ;;  %v134_v42 = vand.u32 4294901760, %v133_v32  ;;  %v383_v43 = vsub.f32 %v10205_v7, %v382_v33  ;;  %v394_v44 = vand.u32 4294901760, %v10229_v36  ;;  %266 = vmatpush.msrb.mxu0 %v173_v39  ;;  %v389_v45 = vsub.f32 %v10210_v12, %v388_v35 }
  0x19   :  { %304 = vmatpush.msrb.mxu2 %v10103_v22  ;;  %285 = vmatpush.msrb.mxu1 %v10051_v3  ;;  %v372_v27 = vand.u32 4294901760, %v371_v37  ;;  %v10259_v46 = vsub.f32 %v94_v62, %v10222_v24  ;;  %v10261_v47 = vand.u32 4294901760, %v92_v15  ;;  %v89_v3 = vld [vmem:[%s14383_s4] sm:$0xff]  ;;  %v378_v19 = vand.u32 4294901760, %v377_v40 }
  0x1a   :  { %367 = vmatpush.msrb.mxu3 %v366_v25  ;;  %v135_v39 = vsub.f32 %v133_v32, %v134_v42  ;;  %v384_v49 = vand.u32 4294901760, %v383_v43  ;;  %v10273_v51 = vsub.f32 %v93_v13, %v10242_v41  ;;  %v10275_v52 = vand.u32 4294901760, %v91_v16  ;;  %208 = vmatmul.f32.vlgmr.msra.gmra.mxu2 %v133_v32 }
  0x1b   :  { %306 = vmatpush.msrb.mxu2 %v10123_v30  ;;  %287 = vmatpush.msrb.mxu1 %v10053_v4  ;;  %v400_v50 = vand.u32 4294901760, %v10259_v46  ;;  %v10278_v56 = vsub.f32 %v92_v15, %v10261_v47  ;;  %v395_v58 = vsub.f32 %v10229_v36, %v394_v44  ;;  %v10284_v4 = vand.u32 4294901760, %v90_v48 }
  0x1c   :  { %373 = vmatpush.msrb.mxu3 %v372_v27  ;;  %v136_v57 = vand.u32 4294901760, %v135_v39  ;;  %v10286_v60 = vand.u32 4294901760, %v89_v3  ;;  %v390_v62 = vand.u32 4294901760, %v389_v45  ;;  %v406_v2 = vand.u32 4294901760, %v10273_v51  ;;  %178 = vmatmul.f32.vlgmr.msra.gmra.mxu1 %v10202_v6 }
  0x1d   :  { %308 = vmatpush.msrb.mxu2 %v10172_v53  ;;  %289 = vmatpush.msrb.mxu1 %v10055_v5  ;;  %v10291_v13 = vsub.f32 %v91_v16, %v10275_v52  ;;  %v401_v14 = vsub.f32 %v10259_v46, %v400_v50  ;;  %v412_v32 = vand.u32 4294901760, %v10278_v56  ;;  %v10299_v15 = vsub.f32 %v90_v48, %v10284_v4 }
  0x1e   :  { %235 = vmatmul.f32.vlgmr.msra.gmra.mxu3 %v134_v42  ;;  %137 = vmatmul.f32.vlgmr.msra.gmra.mxu0 %v136_v57  ;;  %v9959_v5 = vmov 0.0   ;;  %v396_v25 = vand.u32 4294901760, %v395_v58  ;;  %v407_v37 = vsub.f32 %v10273_v51, %v406_v2  ;;  %v10309_v42 = vsub.f32 %v89_v3, %v10286_v60 }
  0x1f   :  { %310 = vmatpush.msrb.mxu2 %v10177_v55  ;;  %379 = vmatpush.msrb.mxu3 %v378_v19  ;;  %66 = vst [vmem:[#allocation2] sm:$0xff] %v9959_v5  ;;  %v418_v40 = vand.u32 4294901760, %v10291_v13  ;;  %v413_v43 = vsub.f32 %v10278_v56, %v412_v32  ;;  %v424_v16 = vand.u32 4294901760, %v10299_v15 }
  0x20   :  { %291 = vmatpush.msrb.mxu1 %v10066_v9  ;;  %441 = vmatpush.msra.mxu0 %v10098_v20  ;;  %v402_v9 = vand.u32 4294901760, %v401_v14  ;;  %v408_v27 = vand.u32 4294901760, %v407_v37  ;;  %v430_v48 = vand.u32 4294901760, %v10309_v42  ;;  %v684_v14 = vld [vmem:[%s14386_s7 + $0x10] sm:$0xff]  ;;  %v682_v37 = vld [vmem:[%s14386_s7] sm:$0xff] }
  0x21   :  { %312 = vmatpush.msrb.mxu2 %v10183_v59  ;;  %385 = vmatpush.msrb.mxu3 %v384_v49  ;;  %v419_v45 = vsub.f32 %v10291_v13, %v418_v40  ;;  %v414_v3 = vand.u32 4294901760, %v413_v43  ;;  %v425_v19 = vsub.f32 %v10299_v15, %v424_v16 }
  0x22   :  { %444 = vmatpush.msra.mxu0 %v10101_v21  ;;  %494 = vmatpush.msra.mxu1 %v10068_v10  ;;  %v431_v49 = vsub.f32 %v10309_v42, %v430_v48 }
  0x23   :  { %314 = vmatpush.msrb.mxu2 %v10188_v61  ;;  %391 = vmatpush.msrb.mxu3 %v390_v62  ;;  %v420_v39 = vand.u32 4294901760, %v419_v45  ;;  %v426_v57 = vand.u32 4294901760, %v425_v19  ;;  %v681_v19 = vld [vmem:[%s14384_s5 + $0x18] sm:$0xff] }
  0x24   :  { %447 = vmatpush.msra.mxu0 %v10113_v26  ;;  %496 = vmatpush.msra.mxu1 %v10070_v11  ;;  %v432_v58 = vand.u32 4294901760, %v431_v49 }
  0x25   :  { %316 = vmatpush.msrb.mxu2 %v10207_v8  ;;  %397 = vmatpush.msrb.mxu3 %v396_v25 }
  0x26   :  { %450 = vmatpush.msra.mxu0 %v10126_v31  ;;  %498 = vmatpush.msra.mxu1 %v10089_v17 }
  0x27   :  { %318 = vmatpush.msrb.mxu2 %v10222_v24  ;;  %403 = vmatpush.msrb.mxu3 %v402_v9 }
  0x28   :  { %453 = vmatpush.msra.mxu0 %v10175_v54  ;;  %500 = vmatpush.msra.mxu1 %v10103_v22  ;;  %v62_v54 = vld [vmem:[%s14382_s3] sm:$0xff] }
  0x29   :  { %320 = vmatpush.msrb.mxu2 %v10242_v41  ;;  %409 = vmatpush.msrb.mxu3 %v408_v27  ;;  %64 = vst.msk [vmem:[%s14393_s14] sm:$0xff] %vm59_vm0, %v62_v54 }
  0x2a   :  { %456 = vmatpush.msra.mxu0 %v10195_v0  ;;  %502 = vmatpush.msra.mxu1 %v10123_v30 }
  0x2b   :  { %322 = vmatpush.msrb.mxu2 %v10261_v47  ;;  %415 = vmatpush.msrb.mxu3 %v414_v3 }
  0x2c   :  { %459 = vmatpush.msra.mxu0 %v10198_v1  ;;  %504 = vmatpush.msra.mxu1 %v10172_v53 }
  0x2d   :  { %324 = vmatpush.msrb.mxu2 %v10275_v52  ;;  %421 = vmatpush.msrb.mxu3 %v420_v39  ;;  %v680_v39 = vld [vmem:[%s14384_s5 + $0x10] sm:$0xff] }
  0x2e   :  { %462 = vmatpush.msra.mxu0 %v10205_v7  ;;  %506 = vmatpush.msra.mxu1 %v10177_v55 }
  0x2f   :  { %326 = vmatpush.msrb.mxu2 %v10284_v4  ;;  %427 = vmatpush.msrb.mxu3 %v426_v57  ;;  %v10496_v57 = vand.u32 4294901760, %v681_v19 }
  0x30   :  { %465 = vmatpush.msra.mxu0 %v10210_v12  ;;  %508 = vmatpush.msra.mxu1 %v10183_v59  ;;  %v10432_v12 = vld [vmem:[%s14387_s8] ss:$0 sm:$0xff]  ;;  %s9961_s8 = smov 64  }
  0x31   :  { %328 = vmatpush.msrb.mxu2 %v10286_v60  ;;  %433 = vmatpush.msrb.mxu3 %v432_v58  ;;  %v10498_v58 = vand.u32 4294901760, %v680_v39 }
  0x32   :  { %468 = vmatpush.msra.mxu0 %v10229_v36  ;;  %510 = vmatpush.msra.mxu1 %v10188_v61 }
  0x33   :  { %535 = vmatpush.msra.mxu2 %v340_v28  ;;  %602 = vmatpush.msra.mxu3 %v10068_v10 }
  0x34   :  { %471 = vmatpush.msra.mxu0 %v10259_v46  ;;  %512 = vmatpush.msra.mxu1 %v10207_v8 }
  0x35   :  { %539 = vmatpush.msra.mxu2 %v346_v29  ;;  %604 = vmatpush.msra.mxu3 %v10070_v11 }
  0x36   :  { %334 = vmatmul.f32.vlgmr.msrb.gmra.mxu2 %v9959_v5  ;;  %474 = vmatpush.msra.mxu0 %v10273_v51 }
  0x37   :  { %543 = vmatpush.msra.mxu2 %v352_v34  ;;  %606 = vmatpush.msra.mxu3 %v10089_v17 }
  0x38   :  { %514 = vmatpush.msra.mxu1 %v10222_v24  ;;  %268 = vmatmul.f32.vlgmr.msrb.gmra.mxu0 %v10202_v6 }
  0x39   :  { %547 = vmatpush.msra.mxu2 %v358_v38  ;;  %435 = vmatmul.f32.vlgmr.msrb.gmra.mxu3 %v9959_v5 }
  0x3a   :  { %608 = vmatpush.msra.mxu3 %v10103_v22  ;;  %477 = vmatpush.msra.mxu0 %v10278_v56 }
  0x3b   :  { %551 = vmatpush.msra.mxu2 %v364_v63  ;;  %516 = vmatpush.msra.mxu1 %v10242_v41 }
  0x3c   :  { %293 = vmatmul.f32.vlgmr.msrb.gmra.mxu1 %v10202_v6  ;;  %610 = vmatpush.msra.mxu3 %v10123_v30 }
  0x3d   :  { %555 = vmatpush.msra.mxu2 %v370_v18  ;;  %480 = vmatpush.msra.mxu0 %v10291_v13  ;;  %v685_v13 = vld [vmem:[%s14386_s7 + $0x18] sm:$0xff] }
  0x3e   :  { %518 = vmatpush.msra.mxu1 %v10261_v47  ;;  %612 = vmatpush.msra.mxu3 %v10172_v53 }
  0x3f   :  { %559 = vmatpush.msra.mxu2 %v376_v23  ;;  %483 = vmatpush.msra.mxu0 %v10299_v15  ;;  %v10466_v15 = vand.u32 4294901760, %v685_v13 }
  0x40   :  { %520 = vmatpush.msra.mxu1 %v10275_v52  ;;  %614 = vmatpush.msra.mxu3 %v10177_v55 }
  0x41   :  { %563 = vmatpush.msra.mxu2 %v382_v33  ;;  %486 = vmatpush.msra.mxu0 %v10309_v42  ;;  %v10478_v42 = vand.u32 4294901760, %v682_v37  ;;  %v731_v9 = vsub.f32 %v685_v13, %v10466_v15 }
  0x42   :  { %522 = vmatpush.msra.mxu1 %v10284_v4  ;;  %489 = vmatmul.f32.vlgmr.msra.gmra.mxu0 %v9959_v5 }
  0x43   :  { %567 = vmatpush.msra.mxu2 %v388_v35  ;;  %616 = vmatpush.msra.mxu3 %v10183_v59  ;;  %v67_v59 = vlaneseq  ;;  %v749_v27 = vsub.f32 %v682_v37, %v10478_v42  ;;  %v732_v45 = vand.u32 4294901760, %v731_v9 }
  0x44   :  { %524 = vmatpush.msra.mxu1 %v10286_v60  ;;  %702 = vmatpush.msrb.mxu0 %v10466_v15 }
  0x45   :  { %528 = vmatmul.f32.vlgmr.msra.gmra.mxu1 %v9959_v5  ;;  %571 = vmatpush.msra.mxu2 %v394_v44  ;;  %v68_v0 = vand.u32 127, %v67_v59  ;;  %v750_v49 = vand.u32 4294901760, %v749_v27 }
  0x46   :  { %618 = vmatpush.msra.mxu3 %v10188_v61 }
  0x47   :  { %575 = vmatpush.msra.mxu2 %v400_v50  ;;  %vm69_vm1 = vcmp.ge.s32.totalorder %v68_v0, 64  ;;  %vm70_vm2 = vcmp.lt.s32.totalorder %v68_v0, 96  ;;  %v88_v50 = vld [vmem:[%s14393_s14] sm:$0xff] }
  0x48   :  { %620 = vmatpush.msra.mxu3 %v10207_v8  ;;  %vm71_vm3 = vmand %vm69_vm1, %vm70_vm2 }
  0x49   :  { %579 = vmatpush.msra.mxu2 %v406_v2 }
  0x4a   :  { %622 = vmatpush.msra.mxu3 %v10222_v24  ;;  %v9960_v24 = vmov 0.5  }
  0x4b   :  { %583 = vmatpush.msra.mxu2 %v412_v32  ;;  %v10434_v33 = vsel %vm71_vm3, 1.0, %v9960_v24  ;;  %v10438_v44 = vsel %vm71_vm3, 0.0, %v9960_v24  ;;  %v683_v32 = vld [vmem:[%s14386_s7 + $0x8] sm:$0xff] }
  0x4c   :  { %624 = vmatpush.msra.mxu3 %v10242_v41  ;;  %v10470_v25 = vand.u32 4294901760, %v683_v32 }
  0x4d   :  { %587 = vmatpush.msra.mxu2 %v418_v40  ;;  %v58_v40 = vld [vmem:[%s14381_s2 + $0x8] sm:$0xff] }
  0x4e   :  { %626 = vmatpush.msra.mxu3 %v10261_v47  ;;  %61 = vst.msk [vmem:[%s14392_s13 + $0x8] sm:$0xff] %vm59_vm0, %v58_v40 }
  0x4f   :  { %591 = vmatpush.msra.mxu2 %v424_v16  ;;  %v743_v16 = vsub.f32 %v683_v32, %v10470_v25 }
  0x50   :  { %628 = vmatpush.msra.mxu3 %v10275_v52 }
  0x51   :  { %595 = vmatpush.msra.mxu2 %v430_v48  ;;  %v744_v3 = vand.u32 4294901760, %v743_v16 }
  0x52   :  { %630 = vmatpush.msra.mxu3 %v10284_v4  ;;  %597 = vmatmul.f32.vlgmr.msra.gmra.mxu2 %v9959_v5 }
  0x54   :  { %632 = vmatpush.msra.mxu3 %v10286_v60 }
  0x55   :  { %634 = vmatmul.f32.vlgmr.msra.gmra.mxu3 %v9959_v5  ;;  %v10468_v5 = vand.u32 4294901760, %v684_v14 }
  0x56   :  { %989 = vmatpush.msrb.mxu3 %v10496_v57 }
  0x57   :  { %v737_v43 = vsub.f32 %v684_v14, %v10468_v5  ;;  %704 = vmatpush.msrb.mxu0 %v10468_v5 }
  0x58   :  { %991 = vmatpush.msrb.mxu3 %v10498_v58 }
  0x59   :  { %v738_v48 = vand.u32 4294901760, %v737_v43  ;;  %706 = vmatpush.msrb.mxu0 %v10470_v25 }
  0x5b   :  { %708 = vmatpush.msrb.mxu0 %v10478_v42 }
  0x5d   :  { %773 = vmatpush.msra.mxu0 %v731_v9 }
  0x5f   :  { %776 = vmatpush.msra.mxu0 %v737_v43 }
  0x61   :  { %779 = vmatpush.msra.mxu0 %v743_v16 }
  0x63   :  { %782 = vmatpush.msra.mxu0 %v749_v27 }
  0x99   :  { %v179_v10 = vpop.f32.mrf.mxu1 }
  0x9b   :  { %v138_v11 = vpop.f32.mrf.mxu0 }
  0x9c   :  { %v180_v17 = vadd.f32 %v179_v10, %v138_v11  ;;  %v733_v10 = vsub.f32 %v731_v9, %v732_v45  ;;  %v739_v11 = vsub.f32 %v737_v43, %v738_v48 }
  0x9d   :  { %v209_v20 = vpop.f32.mrf.mxu2 }
  0x9e   :  { %v210_v21 = vadd.f32 %v209_v20, %v180_v17  ;;  %v745_v17 = vsub.f32 %v743_v16, %v744_v3  ;;  %v10502_v20 = vsub.f32 %v681_v19, %v10496_v57 }
  0xa0   :  { %960 = vmatpush.msrb.mxu2 %v10502_v20 }
  0xa1   :  { %v236_v22 = vpop.f32.mrf.mxu3 }
  0xa2   :  { %v237_v26 = vadd.f32 %v236_v22, %v210_v21  ;;  %v734_v21 = vand.u32 4294901760, %v733_v10  ;;  %v740_v22 = vand.u32 4294901760, %v739_v11 }
  0xa4   :  { %735 = vmatpush.msrb.mxu1 %v734_v21 }
  0xa6   :  { %741 = vmatpush.msrb.mxu1 %v740_v22 }
  0xb5   :  { %v269_v28 = vpop.f32.mrf.mxu0 }
  0xb6   :  { %v270_v29 = vadd.f32 %v269_v28, %v237_v26  ;;  %v9806_v26 = vld [vmem:[%s14392_s13 + $0x8] sm:$0xff]  ;;  %v751_v28 = vsub.f32 %v749_v27, %v750_v49 }
  0xb9   :  { %v294_v30 = vpop.f32.mrf.mxu1  ;;  %v335_v34 = vpop.f32.mrf.mxu2 }
  0xba   :  { %v295_v31 = vadd.f32 %v294_v30, %v270_v29  ;;  %v687_v29 = vsel %vm59_vm0, %v9806_v26, 0  ;;  %v10511_v30 = vsub.f32 %v680_v39, %v10498_v58  ;;  %v10559_v26 = vld [vmem:[%s14388_s9] ss:$0 sm:$0xff]  ;;  %s9963_s9 = smov 96  }
  0xbc   :  { %v336_v38 = vadd.f32 %v335_v34, %v295_v31  ;;  %v436_v53 = vpop.f32.mrf.mxu3  ;;  %v746_v31 = vand.u32 4294901760, %v745_v17  ;;  %v709_v34 = vand.u32 4294901760, %v687_v29  ;;  %963 = vmatpush.msrb.mxu2 %v10511_v30 }
  0xbe   :  { %v437_v55 = vadd.f32 %v436_v53, %v336_v38  ;;  %v710_v38 = vsub.f32 %v687_v29, %v709_v34  ;;  %v752_v53 = vand.u32 4294901760, %v751_v28  ;;  %747 = vmatpush.msrb.mxu1 %v746_v31 }
  0xbf   :  { %v490_v61 = vpop.f32.mrf.mxu0 }
  0xc0   :  { %v491_v63 = vadd.f32 %v490_v61, %v437_v55  ;;  %v711_v54 = vand.u32 4294901760, %v710_v38  ;;  %753 = vmatpush.msrb.mxu1 %v752_v53  ;;  %v919_v61 = vand.u32 4294901760, %v10502_v20 }
  0xc1   :  { %755 = vmatmul.f32.vlgmr.msrb.gmra.mxu1 %v709_v34 }
  0xc2   :  { %v529_v1 = vpop.f32.mrf.mxu1  ;;  %v712_v55 = vsub.f32 %v710_v38, %v711_v54  ;;  %802 = vmatpush.msra.mxu1 %v10466_v15  ;;  %v920_v0 = vsub.f32 %v10502_v20, %v919_v61 }
  0xc3   :  { %v530_v6 = vadd.f32 %v529_v1, %v491_v63  ;;  %v925_v63 = vand.u32 4294901760, %v10511_v30 }
  0xc4   :  { %v713_v59 = vand.u32 4294901760, %v712_v55  ;;  %804 = vmatpush.msra.mxu1 %v10468_v5 }
  0xc6   :  { %714 = vmatmul.f32.vlgmr.msrb.gmra.mxu0 %v713_v59  ;;  %806 = vmatpush.msra.mxu1 %v10470_v25 }
  0xc7   :  { %831 = vmatpush.msrb.mxu0 %v732_v45 }
  0xc8   :  { %808 = vmatpush.msra.mxu1 %v10478_v42 }
  0xc9   :  { %835 = vmatpush.msrb.mxu0 %v738_v48  ;;  %812 = vmatmul.f32.vlgmr.msra.gmra.mxu1 %v711_v54 }
  0xca   :  { %862 = vmatpush.msrb.mxu1 %v10466_v15 }
  0xcb   :  { %839 = vmatpush.msrb.mxu0 %v744_v3 }
  0xcc   :  { %864 = vmatpush.msrb.mxu1 %v10468_v5 }
  0xcd   :  { %843 = vmatpush.msrb.mxu0 %v750_v49 }
  0xce   :  { %785 = vmatmul.f32.vlgmr.msra.gmra.mxu0 %v710_v38  ;;  %866 = vmatpush.msrb.mxu1 %v10470_v25 }
  0xcf   :  { %889 = vmatpush.msra.mxu0 %v10496_v57 }
  0xd0   :  { %868 = vmatpush.msrb.mxu1 %v10478_v42 }
  0xd1   :  { %891 = vmatpush.msra.mxu0 %v10498_v58  ;;  %870 = vmatmul.f32.vlgmr.msrb.gmra.mxu1 %v709_v34 }
  0xd5   :  { %v598_v7 = vpop.f32.mrf.mxu2 }
  0xd6   :  { %v599_v8 = vadd.f32 %v598_v7, %v530_v6  ;;  %v926_v6 = vsub.f32 %v10511_v30, %v925_v63  ;;  %845 = vmatmul.f32.vlgmr.msrb.gmra.mxu0 %v709_v34 }
  0xd8   :  { %v635_v18 = vpop.f32.mrf.mxu3 }
  0xd9   :  { %v636_v23 = vadd.f32 %v635_v18, %v599_v8  ;;  %v921_v8 = vand.u32 4294901760, %v920_v0  ;;  %v927_v18 = vand.u32 4294901760, %v926_v6 }
  0xdb   :  { %v638_v35 = vadd.f32 %v10432_v12, %v636_v23  ;;  %922 = vmatpush.msra.mxu1 %v921_v8  ;;  %v679_v23 = vld [vmem:[%s14384_s5 + $0x8] sm:$0xff]  ;;  %v1099_v8 = vld [vmem:[%s14389_s10 + $0x10] sm:$0xff] }
  0xdc   :  { %v892_v24 = vand.u32 4294901760, %v679_v23 }
  0xdd   :  { %v639_v36 = vmul.f32 %v638_v35, %v10434_v33  ;;  %928 = vmatpush.msra.mxu1 %v927_v18  ;;  %v678_v35 = vld [vmem:[%s14384_s5] sm:$0xff] }
  0xde   :  { %993 = vmatpush.msrb.mxu3 %v892_v24  ;;  %893 = vmatpush.msra.mxu0 %v892_v24 }
  0xdf   :  { %9880 = vtanh.f32 %v639_v36  ;;  %v930_v36 = vsub.f32 %v679_v23, %v892_v24  ;;  %v1117_v23 = vand.u32 4294901760, %v1099_v8 }
  0xe1   :  { %966 = vmatpush.msrb.mxu2 %v930_v36 }
  0xe5   :  { %v9881_v41 = vpop.eup %9880 }
  0xe6   :  { %v641_v46 = vmul.f32 %v9881_v41, %v10434_v33  ;;  %v894_v41 = vand.u32 4294901760, %v678_v35 }
  0xe8   :  { %v10442_v47 = vadd.f32 %v641_v46, %v10438_v44  ;;  %v931_v46 = vand.u32 4294901760, %v930_v36  ;;  %995 = vmatpush.msrb.mxu3 %v894_v41  ;;  %895 = vmatpush.msra.mxu0 %v894_v41 }
  0xea   :  { %649 = vrot.lane.b32.xlu0 %v10442_v47, %s9961_s8  ;;  %1018 = vmatpush.msrb.mxu0 %v919_v61 }
  0xec   :  { %1022 = vmatpush.msrb.mxu0 %v925_v63 }
  0xee   :  { %1026 = vmatpush.msrb.mxu0 %v931_v46 }
  0xf2   :  { %644 = vrot.lane.b32.xlu0 %v88_v50, %s9962_s20  ;;  %v932_v50 = vsub.f32 %v930_v36, %v931_v46 }
 0x13e   :  { %v756_v40 = vpop.f32.mrf.mxu1 }
 0x143   :  { %v715_v42 = vpop.f32.mrf.mxu0 }
 0x144   :  { %v757_v16 = vadd.f32 %v756_v40, %v715_v42 }
 0x146   :  { %v813_v9 = vpop.f32.mrf.mxu1 }
 0x14b   :  { %v786_v43 = vpop.f32.mrf.mxu0 }
 0x14c   :  { %v787_v27 = vadd.f32 %v786_v43, %v757_v16 }
 0x14e   :  { %v871_v45 = vpop.f32.mrf.mxu1  ;;  %v814_v48 = vadd.f32 %v813_v9, %v787_v27 }
 0x153   :  { %v846_v3 = vpop.f32.mrf.mxu0 }
 0x154   :  { %v847_v19 = vadd.f32 %v846_v3, %v814_v48 }
 0x156   :  { %v872_v39 = vadd.f32 %v871_v45, %v847_v19 }
 0x15c   :  { %v650_v51 = vpop.permute.xlu0 %649 }
 0x15d   :  { %v652_v52 = vmul.f32 %v650_v51, %v10442_v47 }
 0x15f   :  { %654 = vrot.lane.b32.xlu1 %v652_v52, %s9962_s20  ;;  %v933_v52 = vand.u32 4294901760, %v932_v50 }
 0x161   :  { %934 = vmatpush.msra.mxu1 %v933_v52 }
 0x164   :  { %v645_v56 = vpop.permute.xlu0 %644 }
 0x165   :  { %v647_v4 = vmul.f32 %v645_v56, %v10442_v47 }
 0x1d1   :  { %v655_v60 = vpop.permute.xlu1 %654 }
 0x1d2   :  { %v10453_v62 = vadd.f32 %v655_v60, %v647_v4  ;;  %v63_v60 = vld [vmem:[%s14382_s3 + $0x8] sm:$0xff] }
 0x1d3   :  { %65 = vst.msk [vmem:[%s14393_s14 + $0x8] sm:$0xff] %vm59_vm0, %v63_v60  ;;  %v1098_v60 = vld [vmem:[%s14389_s10 + $0x8] sm:$0xff] }
 0x1d4   :  { %9882 = vtanh.f32 %v10453_v62 }
 0x1da   :  { %v9883_v2 = vpop.eup %9882 }
 0x1db   :  { %660 = vrot.lane.b32.xlu1 %v9883_v2, %s9961_s8  ;;  %v9807_v2 = vld [vmem:[%s14393_s14 + $0x8] sm:$0xff] }
 0x1dc   :  { %1067 = vrot.lane.b32.xlu0 %v9807_v2, %s9962_s20  ;;  %v1119_v2 = vand.u32 4294901760, %v1098_v60 }
 0x24d   :  { %v661_v1 = vpop.permute.xlu1 %660 }
 0x24e   :  { %v663_v7 = vmul.f32 %v661_v1, %v10442_v47  ;;  %v936_v47 = vsub.f32 %v678_v35, %v894_v41  ;;  %v1068_v61 = vpop.permute.xlu0 %1067  ;;  %v1151_v35 = vsub.f32 %v1099_v8, %v1117_v23 }
 0x250   :  { %665 = vrot.lane.b32.xlu2 %v663_v7, %s9962_s20  ;;  %v937_v51 = vand.u32 4294901760, %v936_v47  ;;  %969 = vmatpush.msrb.mxu2 %v936_v47 }
 0x252   :  { %v938_v56 = vsub.f32 %v936_v47, %v937_v51  ;;  %1030 = vmatpush.msrb.mxu0 %v937_v51 }
 0x254   :  { %v939_v4 = vand.u32 4294901760, %v938_v56 }
 0x256   :  { %940 = vmatpush.msra.mxu1 %v939_v4 }
 0x258   :  { %1049 = vmatpush.msrb.mxu1 %v10496_v57 }
 0x25a   :  { %1051 = vmatpush.msrb.mxu1 %v10498_v58 }
 0x25c   :  { %1053 = vmatpush.msrb.mxu1 %v892_v24 }
 0x25e   :  { %1055 = vmatpush.msrb.mxu1 %v894_v41  ;;  %v1152_v41 = vand.u32 4294901760, %v1151_v35 }
 0x260   :  { %v1153_v47 = vsub.f32 %v1151_v35, %v1152_v41 }
 0x262   :  { %v1154_v51 = vand.u32 4294901760, %v1153_v47 }
 0x2aa   :  { %v666_v13 = vpop.permute.xlu2 %665 }
 0x2ab   :  { %668 = vst.msk [vmem:[%s14392_s13] sm:$0xff] %vm59_vm0, %v666_v13  ;;  %v874_v14 = vsel %vm59_vm0, %v666_v13, 0  ;;  %v1097_v13 = vld [vmem:[%s14389_s10] sm:$0xff] }
 0x2ac   :  { %v896_v32 = vand.u32 4294901760, %v874_v14 }
 0x2ae   :  { %v897_v15 = vsub.f32 %v874_v14, %v896_v32  ;;  %942 = vmatmul.f32.vlgmr.msra.gmra.mxu1 %v896_v32  ;;  %v1157_v14 = vsub.f32 %v1098_v60, %v1119_v2 }
 0x2b0   :  { %v898_v5 = vand.u32 4294901760, %v897_v15  ;;  %972 = vmatmul.f32.vlgmr.msrb.gmra.mxu2 %v897_v15 }
 0x2b2   :  { %v899_v25 = vsub.f32 %v897_v15, %v898_v5  ;;  %999 = vmatmul.f32.vlgmr.msrb.gmra.mxu3 %v898_v5  ;;  %v1158_v15 = vand.u32 4294901760, %v1157_v14 }
 0x2b4   :  { %v900_v37 = vand.u32 4294901760, %v899_v25  ;;  %v1159_v25 = vsub.f32 %v1157_v14, %v1158_v15 }
 0x2b6   :  { %901 = vmatmul.f32.vlgmr.msra.gmra.mxu0 %v900_v37  ;;  %1057 = vmatmul.f32.vlgmr.msrb.gmra.mxu1 %v896_v32  ;;  %v1160_v40 = vand.u32 4294901760, %v1159_v25 }
 0x2be   :  { %1032 = vmatmul.f32.vlgmr.msrb.gmra.mxu0 %v896_v32  ;;  %v1121_v32 = vand.u32 4294901760, %v1097_v13 }
 0x2c0   :  { %v1163_v5 = vsub.f32 %v1097_v13, %v1121_v32 }
 0x2c2   :  { %v1164_v37 = vand.u32 4294901760, %v1163_v5 }
 0x2c4   :  { %v1165_v42 = vsub.f32 %v1163_v5, %v1164_v37 }
 0x2c6   :  { %v1166_v9 = vand.u32 4294901760, %v1165_v42 }
 0x32b   :  { %v943_v49 = vpop.f32.mrf.mxu1 }
 0x333   :  { %v902_v57 = vpop.f32.mrf.mxu0  ;;  %v973_v11 = vpop.f32.mrf.mxu2 }
 0x334   :  { %v903_v58 = vadd.f32 %v902_v57, %v872_v39  ;;  %v1058_v29 = vpop.f32.mrf.mxu1  ;;  %v10600_v39 = vld [vmem:[%s14390_s11] ss:$0 sm:$0xff] }
 0x335   :  { %v1000_v20 = vpop.f32.mrf.mxu3 }
 0x336   :  { %v944_v10 = vadd.f32 %v943_v49, %v903_v58 }
 0x338   :  { %v974_v17 = vadd.f32 %v973_v11, %v944_v10 }
 0x33a   :  { %v1001_v21 = vadd.f32 %v1000_v20, %v974_v17 }
 0x33b   :  { %v1033_v22 = vpop.f32.mrf.mxu0 }
 0x33c   :  { %v1034_v28 = vadd.f32 %v1033_v22, %v1001_v21 }
 0x33e   :  { %v1059_v30 = vadd.f32 %v1058_v29, %v1034_v28 }
 0x340   :  { %v1061_v31 = vadd.f32 %v10559_v26, %v1059_v30 }
 0x342   :  { %v1062_v34 = vmul.f32 %v1061_v31, %v10434_v33 }
 0x344   :  { %9884 = vtanh.f32 %v1062_v34 }
 0x34a   :  { %v9885_v38 = vpop.eup %9884 }
 0x34b   :  { %v1064_v53 = vmul.f32 %v9885_v38, %v10434_v33 }
 0x34d   :  { %v1065_v54 = vadd.f32 %v1064_v53, %v10438_v44 }
 0x34f   :  { %1072 = vrot.lane.b32.xlu2 %v1065_v54, %s9961_s8  ;;  %v1070_v63 = vmul.f32 %v1068_v61, %v1065_v54 }
 0x3a9   :  { %v1073_v55 = vpop.permute.xlu2 %1072 }
 0x3aa   :  { %v1075_v59 = vmul.f32 %v1073_v55, %v1065_v54 }
 0x3ac   :  { %1077 = vrot.lane.b32.xlu1 %v1075_v59, %s9962_s20 }
 0x3b4   :  { %670 = vrot.lane.b32.xlu1 %v10453_v62, %s9963_s9  ;;  %v1100_v62 = vld [vmem:[%s14389_s10 + $0x18] sm:$0xff] }
 0x3b5   :  { %v1115_v18 = vand.u32 4294901760, %v1100_v62 }
 0x3b7   :  { %v1145_v24 = vsub.f32 %v1100_v62, %v1115_v18  ;;  %1216 = vmatpush.msra.mxu1 %v1115_v18  ;;  %1116 = vmatpush.msra.mxu2 %v1115_v18 }
 0x3b9   :  { %v1146_v36 = vand.u32 4294901760, %v1145_v24  ;;  %1187 = vmatpush.msra.mxu0 %v1145_v24  ;;  %1218 = vmatpush.msra.mxu1 %v1117_v23 }
 0x3ba   :  { %1118 = vmatpush.msra.mxu2 %v1117_v23 }
 0x3bb   :  { %v1147_v46 = vsub.f32 %v1145_v24, %v1146_v36  ;;  %1190 = vmatpush.msra.mxu0 %v1151_v35  ;;  %1220 = vmatpush.msra.mxu1 %v1119_v2 }
 0x3bc   :  { %1120 = vmatpush.msra.mxu2 %v1119_v2 }
 0x3bd   :  { %v1148_v50 = vand.u32 4294901760, %v1147_v46  ;;  %1193 = vmatpush.msra.mxu0 %v1157_v14  ;;  %1222 = vmatpush.msra.mxu1 %v1121_v32 }
 0x3be   :  { %1122 = vmatpush.msra.mxu2 %v1121_v32 }
 0x3bf   :  { %1149 = vmatpush.msra.mxu3 %v1148_v50  ;;  %1196 = vmatpush.msra.mxu0 %v1163_v5 }
 0x3c0   :  { %1245 = vmatpush.msrb.mxu2 %v1146_v36 }
 0x3c1   :  { %1155 = vmatpush.msra.mxu3 %v1154_v51 }
 0x3c2   :  { %1249 = vmatpush.msrb.mxu2 %v1152_v41 }
 0x3c3   :  { %1161 = vmatpush.msra.mxu3 %v1160_v40 }
 0x3c4   :  { %1253 = vmatpush.msrb.mxu2 %v1158_v15 }
 0x3c5   :  { %1167 = vmatpush.msra.mxu3 %v1166_v9 }
 0x3c6   :  { %1257 = vmatpush.msrb.mxu2 %v1164_v37 }
 0x3c7   :  { %1276 = vmatpush.msrb.mxu3 %v1115_v18 }
 0x3c9   :  { %1278 = vmatpush.msrb.mxu3 %v1117_v23 }
 0x3cb   :  { %1280 = vmatpush.msrb.mxu3 %v1119_v2 }
 0x3cd   :  { %1282 = vmatpush.msrb.mxu3 %v1121_v32 }
 0x41e   :  { %v1078_v0 = vpop.permute.xlu1 %1077 }
 0x41f   :  { %v1080_v1 = vadd.f32 %v1078_v0, %v1070_v63 }
 0x421   :  { %9886 = vtanh.f32 %v1080_v1 }
 0x426   :  { %v671_v6 = vpop.permute.xlu1 %670 }
 0x427   :  { %v9887_v7 = vpop.eup %9886  ;;  %673 = vst.msk [vmem:[%s14393_s14] sm:$0xff] %vm59_vm0, %v671_v6 }
 0x428   :  { %1083 = vrot.lane.b32.xlu2 %v9887_v7, %s9961_s8 }
 0x430   :  { %1093 = vrot.lane.b32.xlu2 %v1080_v1, %s9963_s9 }
 0x482   :  { %v1084_v52 = vpop.permute.xlu2 %1083 }
 0x483   :  { %v1086_v56 = vmul.f32 %v1084_v52, %v1065_v54 }
 0x485   :  { %1088 = vrot.lane.b32.xlu0 %v1086_v56, %s9962_s20 }
 0x48a   :  { %v1094_v4 = vpop.permute.xlu2 %1093 }
 0x48b   :  { %9809 = vst.msk [vmem:[%s14393_s14 + $0x8] sm:$0xff] %vm59_vm0, %v1094_v4 }
 0x4f7   :  { %v1089_v43 = vpop.permute.xlu0 %1088 }
 0x4f8   :  { %9808 = vst.msk [vmem:[%s14392_s13 + $0x8] sm:$0xff] %vm59_vm0, %v1089_v43  ;;  %v1101_v16 = vsel %vm59_vm0, %v1089_v43, 0 }
 0x4f9   :  { %v1123_v27 = vand.u32 4294901760, %v1101_v16 }
 0x4fb   :  { %v1124_v45 = vsub.f32 %v1101_v16, %v1123_v27  ;;  %1169 = vmatmul.f32.vlgmr.msra.gmra.mxu3 %v1123_v27 }
 0x4fd   :  { %v1125_v48 = vand.u32 4294901760, %v1124_v45  ;;  %1199 = vmatmul.f32.vlgmr.msra.gmra.mxu0 %v1124_v45 }
 0x4ff   :  { %v1126_v3 = vsub.f32 %v1124_v45, %v1125_v48  ;;  %1226 = vmatmul.f32.vlgmr.msra.gmra.mxu1 %v1125_v48 }
 0x501   :  { %v1127_v19 = vand.u32 4294901760, %v1126_v3 }
 0x503   :  { %1128 = vmatmul.f32.vlgmr.msra.gmra.mxu2 %v1127_v19  ;;  %1284 = vmatmul.f32.vlgmr.msrb.gmra.mxu3 %v1123_v27 }
 0x50b   :  { %1259 = vmatmul.f32.vlgmr.msrb.gmra.mxu2 %v1123_v27 }
 0x57a   :  { %v1200_v11 = vpop.f32.mrf.mxu0 }
 0x57c   :  { %v1227_v20 = vpop.f32.mrf.mxu1 }
 0x57e   :  { %v1170_v49 = vpop.f32.mrf.mxu3 }
 0x586   :  { %v1129_v57 = vpop.f32.mrf.mxu2  ;;  %v1285_v29 = vpop.f32.mrf.mxu3 }
 0x587   :  { %v1130_v58 = vadd.f32 %v10600_v39, %v1129_v57 }
 0x589   :  { %v1171_v10 = vadd.f32 %v1170_v49, %v1130_v58 }
 0x58b   :  { %v1201_v17 = vadd.f32 %v1200_v11, %v1171_v10 }
 0x58d   :  { %v1228_v21 = vadd.f32 %v1227_v20, %v1201_v17 }
 0x58e   :  { %v1260_v22 = vpop.f32.mrf.mxu2 }
 0x58f   :  { %v1261_v28 = vadd.f32 %v1260_v22, %v1228_v21  ;;  %1293 = sbr.rel (%p9810_p0) target bundleno = 1430 (0x596), region = 57 }
 0x591   :  { %v1286_v30 = vadd.f32 %v1285_v29, %v1261_v28 }
 0x593   :  { %1288 = vst [vmem:[%s14391_s12] sm:$0xff] %v1286_v30 }
 0x594   :  { %v1294_v31 = vld [vmem:[%s14380_s1] sm:$0xff] }
 0x595   :  { %1295 = vst [vmem:[#allocation2] sm:$0xff] %v1294_v31 }
 0x596 PF:  { %p9811_p1 = scmp.ne.s32.totalorder %s1289_s15, 0 }
 0x598   :  { %1299 = sbr.rel (%p9811_p1) target bundleno = 1438 (0x59e), region = 61 }
 0x59d   :  { %1300 = vst [vmem:[#allocation2] sm:$0xff] %v1286_v30 }
 0x59e PF:  { %v1323_v34 = vld [vmem:[%s14385_s6 + $0x18] sm:$0xff]  ;;  %v1322_v38 = vld [vmem:[%s14385_s6 + $0x10] sm:$0xff]  ;;  %v1321_v53 = vld [vmem:[%s14385_s6 + $0x8] sm:$0xff]  ;;  %s9817_s23 = sld [smem:[#allocation3 + $0x1]] }
 0x59f   :  { %v10618_v54 = vand.u32 4294901760, %v1323_v34  ;;  %v10620_v55 = vand.u32 4294901760, %v1322_v38  ;;  %v10622_v59 = vand.u32 4294901760, %v1321_v53  ;;  %v1320_v61 = vld [vmem:[%s14385_s6] sm:$0xff]  ;;  %v1319_v63 = vld [vmem:[%s14383_s4 + $0x78] sm:$0xff]  ;;  %v1318_v0 = vld [vmem:[%s14383_s4 + $0x70] sm:$0xff] }
 0x5a0   :  { %v10633_v1 = vand.u32 4294901760, %v1320_v61  ;;  %v10635_v6 = vand.u32 4294901760, %v1319_v63  ;;  %v10637_v7 = vand.u32 4294901760, %v1318_v0  ;;  %v1317_v62 = vld [vmem:[%s14383_s4 + $0x68] sm:$0xff]  ;;  %v1316_v8 = vld [vmem:[%s14383_s4 + $0x60] sm:$0xff]  ;;  %v1315_v36 = vld [vmem:[%s14383_s4 + $0x58] sm:$0xff] }
 0x5a1   :  { %v10646_v18 = vsub.f32 %v1323_v34, %v10618_v54  ;;  %v10649_v23 = vsub.f32 %v1322_v38, %v10620_v55  ;;  %1440 = vmatpush.msra.mxu3 %v10618_v54  ;;  %v10653_v24 = vsub.f32 %v1321_v53, %v10622_v59  ;;  %1340 = vmatpush.msrb.mxu0 %v10618_v54  ;;  %v10656_v35 = vand.u32 4294901760, %v1317_v62  ;;  %v1314_v43 = vld [vmem:[%s14383_s4 + $0x50] sm:$0xff]  ;;  %v1313_v16 = vld [vmem:[%s14383_s4 + $0x48] sm:$0xff]  ;;  %v1312_v19 = vld [vmem:[%s14383_s4 + $0x40] sm:$0xff] }
 0x5a2   :  { %v10662_v41 = vsub.f32 %v1320_v61, %v10633_v1  ;;  %v10665_v46 = vsub.f32 %v1319_v63, %v10635_v6  ;;  %v10668_v47 = vsub.f32 %v1318_v0, %v10637_v7  ;;  %v10670_v50 = vand.u32 4294901760, %v1316_v8  ;;  %v1302_v49 = vld [vmem:[%s14392_s13] sm:$0xff]  ;;  %v1311_v28 = vld [vmem:[%s14383_s4 + $0x38] sm:$0xff]  ;;  %v1310_v29 = vld [vmem:[%s14383_s4 + $0x30] sm:$0xff] }
 0x5a3   :  { %1411 = vmatpush.msra.mxu2 %v10646_v18  ;;  %1442 = vmatpush.msra.mxu3 %v10620_v55  ;;  %v1370_v51 = vand.u32 4294901760, %v10646_v18  ;;  %v1376_v52 = vand.u32 4294901760, %v10649_v23  ;;  %v10677_v56 = vsub.f32 %v1317_v62, %v10656_v35  ;;  %v1382_v4 = vand.u32 4294901760, %v10653_v24  ;;  %v1309_v30 = vld [vmem:[%s14383_s4 + $0x28] sm:$0xff] }
 0x5a4   :  { %v1555_v60 = vand.u32 4294901760, %v10665_v46  ;;  %1342 = vmatpush.msrb.mxu0 %v10620_v55  ;;  %v1561_v2 = vand.u32 4294901760, %v10668_v47  ;;  %v10683_v13 = vand.u32 4294901760, %v1315_v36  ;;  %v10686_v14 = vsub.f32 %v1316_v8, %v10670_v50  ;;  %v1308_v8 = vld [vmem:[%s14383_s4 + $0x20] sm:$0xff]  ;;  %p9818_p2 = scmp.eq.s32.totalorder %s9817_s23, 0 }
 0x5a5   :  { %1414 = vmatpush.msra.mxu2 %v10649_v23  ;;  %1444 = vmatpush.msra.mxu3 %v10622_v59  ;;  %v1371_v32 = vsub.f32 %v10646_v18, %v1370_v51  ;;  %v1377_v15 = vsub.f32 %v10649_v23, %v1376_v52  ;;  %v1567_v5 = vand.u32 4294901760, %v10677_v56  ;;  %v1383_v25 = vsub.f32 %v10653_v24, %v1382_v4 }
 0x5a6   :  { %v1556_v37 = vsub.f32 %v10665_v46, %v1555_v60  ;;  %v1562_v40 = vsub.f32 %v10668_v47, %v1561_v2  ;;  %1344 = vmatpush.msrb.mxu0 %v10622_v59  ;;  %v1573_v42 = vand.u32 4294901760, %v10686_v14  ;;  %v1388_v9 = vand.u32 4294901760, %v10662_v41 }
 0x5a7   :  { %1417 = vmatpush.msra.mxu2 %v10653_v24  ;;  %1446 = vmatpush.msra.mxu3 %v10633_v1  ;;  %v1372_v27 = vand.u32 4294901760, %v1371_v32  ;;  %v1378_v45 = vand.u32 4294901760, %v1377_v15  ;;  %v1568_v48 = vsub.f32 %v10677_v56, %v1567_v5  ;;  %v1384_v3 = vand.u32 4294901760, %v1383_v25 }
 0x5a8   :  { %v1557_v57 = vand.u32 4294901760, %v1556_v37  ;;  %v1563_v58 = vand.u32 4294901760, %v1562_v40  ;;  %1346 = vmatpush.msrb.mxu0 %v10633_v1  ;;  %v1574_v10 = vsub.f32 %v10686_v14, %v1573_v42  ;;  %v1389_v11 = vsub.f32 %v10662_v41, %v1388_v9 }
 0x5a9   :  { %1420 = vmatpush.msra.mxu2 %v10662_v41  ;;  %1373 = vmatpush.msrb.mxu1 %v1372_v27  ;;  %v1569_v17 = vand.u32 4294901760, %v1568_v48  ;;  %v10732_v20 = vand.u32 4294901760, %v1314_v43  ;;  %v10735_v21 = vsub.f32 %v1315_v36, %v10683_v13  ;;  %v10737_v22 = vand.u32 4294901760, %v1313_v16 }
 0x5aa   :  { %1558 = vmatpush.msrb.mxu3 %v1557_v57  ;;  %v1575_v31 = vand.u32 4294901760, %v1574_v10  ;;  %v1390_v34 = vand.u32 4294901760, %v1389_v11  ;;  %v10749_v38 = vand.u32 4294901760, %v1312_v19  ;;  %v1325_v53 = vsel %vm59_vm0, %v1302_v49, 0  ;;  %1469 = vmatpush.msra.mxu0 %v1370_v51 }
 0x5ab   :  { %1513 = vmatpush.msrb.mxu2 %v10635_v6  ;;  %1379 = vmatpush.msrb.mxu1 %v1378_v45  ;;  %v1579_v61 = vand.u32 4294901760, %v10735_v21  ;;  %v10754_v63 = vsub.f32 %v1314_v43, %v10732_v20  ;;  %v10757_v0 = vsub.f32 %v1313_v16, %v10737_v22  ;;  %v10759_v62 = vand.u32 4294901760, %v1325_v53 }
 0x5ac   :  { %1564 = vmatpush.msrb.mxu3 %v1563_v58  ;;  %v10765_v18 = vand.u32 4294901760, %v1311_v28  ;;  %v10768_v36 = vsub.f32 %v1312_v19, %v10749_v38  ;;  %v10770_v51 = vand.u32 4294901760, %v1310_v29  ;;  %v10772_v32 = vand.u32 4294901760, %v1309_v30  ;;  %1473 = vmatpush.msra.mxu0 %v1376_v52  ;;  %v1307_v52 = vld [vmem:[%s14383_s4 + $0x18] sm:$0xff] }
 0x5ad   :  { %1515 = vmatpush.msrb.mxu2 %v10637_v7  ;;  %1385 = vmatpush.msrb.mxu1 %v1384_v3  ;;  %v1580_v15 = vsub.f32 %v10735_v21, %v1579_v61  ;;  %v1585_v25 = vand.u32 4294901760, %v10754_v63  ;;  %v1591_v37 = vand.u32 4294901760, %v10757_v0  ;;  %v10782_v40 = vsub.f32 %v1325_v53, %v10759_v62 }
 0x5ae   :  { %1570 = vmatpush.msrb.mxu3 %v1569_v17  ;;  %v1597_v43 = vand.u32 4294901760, %v10768_v36  ;;  %v10787_v16 = vsub.f32 %v1311_v28, %v10765_v18  ;;  %v10790_v27 = vsub.f32 %v1310_v29, %v10770_v51  ;;  %v10792_v23 = vand.u32 4294901760, %v1308_v8  ;;  %1477 = vmatpush.msra.mxu0 %v1382_v4  ;;  %v1306_v4 = vld [vmem:[%s14383_s4 + $0x10] sm:$0xff]  ;;  %v1305_v28 = vld [vmem:[%s14383_s4 + $0x8] sm:$0xff] }
 0x5af   :  { %1517 = vmatpush.msrb.mxu2 %v10656_v35  ;;  %1391 = vmatpush.msrb.mxu1 %v1390_v34  ;;  %v1581_v45 = vand.u32 4294901760, %v1580_v15  ;;  %v1586_v48 = vsub.f32 %v10754_v63, %v1585_v25  ;;  %v1592_v3 = vsub.f32 %v10757_v0, %v1591_v37  ;;  %v1349_v19 = vand.u32 4294901760, %v10782_v40 }
 0x5b0   :  { %1576 = vmatpush.msrb.mxu3 %v1575_v31  ;;  %v1598_v49 = vsub.f32 %v10768_v36, %v1597_v43  ;;  %v1603_v57 = vand.u32 4294901760, %v10787_v16  ;;  %v1609_v58 = vand.u32 4294901760, %v10790_v27  ;;  %v10813_v24 = vsub.f32 %v1309_v30, %v10772_v32  ;;  %1481 = vmatpush.msra.mxu0 %v1388_v9  ;;  %v1304_v9 = vld [vmem:[%s14383_s4] sm:$0xff] }
 0x5b1   :  { %1519 = vmatpush.msrb.mxu2 %v10670_v50  ;;  %1500 = vmatpush.msra.mxu1 %v10618_v54  ;;  %v1587_v10 = vand.u32 4294901760, %v1586_v48  ;;  %v1350_v11 = vsub.f32 %v10782_v40, %v1349_v19  ;;  %v10824_v17 = vand.u32 4294901760, %v1307_v52  ;;  %v1593_v29 = vand.u32 4294901760, %v1592_v3 }
 0x5b2   :  { %1582 = vmatpush.msrb.mxu3 %v1581_v45  ;;  %v1604_v54 = vsub.f32 %v10787_v16, %v1603_v57  ;;  %v1615_v41 = vand.u32 4294901760, %v10813_v24  ;;  %v10839_v31 = vsub.f32 %v1308_v8, %v10792_v23  ;;  %v10841_v34 = vand.u32 4294901760, %v1306_v4  ;;  %1423 = vmatmul.f32.vlgmr.msra.gmra.mxu2 %v10782_v40 }
 0x5b3   :  { %1521 = vmatpush.msrb.mxu2 %v10683_v13  ;;  %1502 = vmatpush.msra.mxu1 %v10620_v55  ;;  %v1351_v30 = vand.u32 4294901760, %v1350_v11  ;;  %v10844_v53 = vsub.f32 %v1307_v52, %v10824_v17  ;;  %v1599_v15 = vand.u32 4294901760, %v1598_v49  ;;  %v1610_v45 = vsub.f32 %v10790_v27, %v1609_v58 }
 0x5b4   :  { %1588 = vmatpush.msrb.mxu3 %v1587_v10  ;;  %v10851_v55 = vand.u32 4294901760, %v1305_v28  ;;  %v14395_v8 = vand.u32 4294901760, %v10839_v31  ;;  %v10856_v52 = vsub.f32 %v1306_v4, %v10841_v34  ;;  %v10858_v48 = vand.u32 4294901760, %v1304_v9  ;;  %v1301_v4 = vld [vmem:[#allocation2] sm:$0xff]  ;;  %1393 = vmatmul.f32.vlgmr.msrb.gmra.mxu1 %v10759_v62 }
 0x5b5   :  { %1523 = vmatpush.msrb.mxu2 %v10732_v20  ;;  %1504 = vmatpush.msra.mxu1 %v10622_v59  ;;  %v1605_v3 = vand.u32 4294901760, %v1604_v54  ;;  %v1616_v49 = vsub.f32 %v10813_v24, %v1615_v41  ;;  %v14394_v10 = vand.u32 4294901760, %v10844_v53  ;;  %v1611_v11 = vand.u32 4294901760, %v1610_v45 }
 0x5b6   :  { %1352 = vmatmul.f32.vlgmr.msrb.gmra.mxu0 %v1351_v30  ;;  %1594 = vmatpush.msrb.mxu3 %v1593_v29  ;;  %v10866_v59 = vsub.f32 %v1305_v28, %v10851_v55  ;;  %v1622_v29 = vsub.f32 %v10839_v31, %v14395_v8  ;;  %v1633_v54 = vand.u32 4294901760, %v10856_v52  ;;  %v10876_v30 = vsub.f32 %v1304_v9, %v10858_v48 }
 0x5b7   :  { %1525 = vmatpush.msrb.mxu2 %v10737_v22  ;;  %1656 = vmatpush.msrb.mxu0 %v10665_v46  ;;  %v1628_v28 = vsub.f32 %v10844_v53, %v14394_v10  ;;  %v10885_v45 = vand.u32 4294901760, %v1301_v4 }
 0x5b8   :  { %1506 = vmatpush.msra.mxu1 %v10633_v1  ;;  %1600 = vmatpush.msrb.mxu3 %v1599_v15  ;;  %v1617_v1 = vand.u32 4294901760, %v1616_v49  ;;  %v1639_v15 = vand.u32 4294901760, %v10866_v59  ;;  %v1623_v9 = vand.u32 4294901760, %v1622_v29  ;;  %v1645_v49 = vand.u32 4294901760, %v10876_v30 }
 0x5b9   :  { %1527 = vmatpush.msrb.mxu2 %v10749_v38  ;;  %1659 = vmatpush.msrb.mxu0 %v10668_v47  ;;  %v1629_v10 = vand.u32 4294901760, %v1628_v28 }
 0x5ba   :  { %1606 = vmatpush.msrb.mxu3 %v1605_v3  ;;  %1709 = vmatpush.msrb.mxu1 %v10635_v6  ;;  %v1634_v3 = vsub.f32 %v10856_v52, %v1633_v54  ;;  %v1640_v8 = vsub.f32 %v10866_v59, %v1639_v15 }
 0x5bb   :  { %1529 = vmatpush.msrb.mxu2 %v10765_v18  ;;  %1662 = vmatpush.msrb.mxu0 %v10677_v56 }
 0x5bc   :  { %1612 = vmatpush.msrb.mxu3 %v1611_v11  ;;  %1711 = vmatpush.msrb.mxu1 %v10637_v7  ;;  %v10901_v11 = vsub.f32 %v1301_v4, %v10885_v45  ;;  %v1635_v29 = vand.u32 4294901760, %v1634_v3  ;;  %v1641_v4 = vand.u32 4294901760, %v1640_v8 }
 0x5bd   :  { %1531 = vmatpush.msrb.mxu2 %v10770_v51  ;;  %1665 = vmatpush.msrb.mxu0 %v10686_v14 }
 0x5be   :  { %1618 = vmatpush.msrb.mxu3 %v1617_v1  ;;  %1713 = vmatpush.msrb.mxu1 %v10656_v35  ;;  %v1646_v1 = vsub.f32 %v10876_v30, %v1645_v49  ;;  %v1546_v28 = vand.u32 4294901760, %v10901_v11 }
 0x5bf   :  { %1533 = vmatpush.msrb.mxu2 %v10772_v32  ;;  %1668 = vmatpush.msrb.mxu0 %v10735_v21 }
 0x5c0   :  { %1624 = vmatpush.msrb.mxu3 %v1623_v9  ;;  %1715 = vmatpush.msrb.mxu1 %v10670_v50  ;;  %v1647_v9 = vand.u32 4294901760, %v1646_v1  ;;  %v1893_v1 = vld [vmem:[%s14384_s5 + $0x10] sm:$0xff] }
 0x5c1   :  { %1535 = vmatpush.msrb.mxu2 %v10792_v23  ;;  %1671 = vmatpush.msrb.mxu0 %v10754_v63 }
 0x5c2   :  { %1630 = vmatpush.msrb.mxu3 %v1629_v10  ;;  %1717 = vmatpush.msrb.mxu1 %v10683_v13  ;;  %v1547_v10 = vsub.f32 %v10901_v11, %v1546_v28 }
 0x5c3   :  { %1537 = vmatpush.msrb.mxu2 %v10824_v17  ;;  %1674 = vmatpush.msrb.mxu0 %v10757_v0 }
 0x5c4   :  { %1636 = vmatpush.msrb.mxu3 %v1635_v29  ;;  %1719 = vmatpush.msrb.mxu1 %v10732_v20  ;;  %v1548_v8 = vand.u32 4294901760, %v1547_v10 }
 0x5c5   :  { %1539 = vmatpush.msrb.mxu2 %v10841_v34  ;;  %1677 = vmatpush.msrb.mxu0 %v10768_v36 }
 0x5c6   :  { %1642 = vmatpush.msrb.mxu3 %v1641_v4  ;;  %1721 = vmatpush.msrb.mxu1 %v10737_v22 }
 0x5c7   :  { %1541 = vmatpush.msrb.mxu2 %v10851_v55  ;;  %1450 = vmatmul.f32.vlgmr.msra.gmra.mxu3 %v1349_v19 }
 0x5c8   :  { %1648 = vmatpush.msrb.mxu3 %v1647_v9  ;;  %1680 = vmatpush.msrb.mxu0 %v10787_v16  ;;  %v11053_v9 = vand.u32 4294901760, %v1893_v1 }
 0x5c9   :  { %1543 = vmatpush.msrb.mxu2 %v10858_v48  ;;  %1723 = vmatpush.msrb.mxu1 %v10749_v38 }
 0x5ca   :  { %1817 = vmatpush.msra.mxu3 %v10635_v6  ;;  %1683 = vmatpush.msrb.mxu0 %v10790_v27  ;;  %v14408_v6 = vand.u32 4294901760, %v10839_v31  ;;  %v1303_v27 = vld [vmem:[%s14393_s14] sm:$0xff] }
 0x5cb   :  { %1750 = vmatpush.msra.mxu2 %v1555_v60  ;;  %1725 = vmatpush.msrb.mxu1 %v10765_v18 }
 0x5cc   :  { %1819 = vmatpush.msra.mxu3 %v10637_v7  ;;  %1686 = vmatpush.msrb.mxu0 %v10813_v24  ;;  %v14409_v7 = vand.u32 4294901760, %v10844_v53 }
 0x5cd   :  { %1754 = vmatpush.msra.mxu2 %v1561_v2  ;;  %1727 = vmatpush.msrb.mxu1 %v10770_v51 }
 0x5ce   :  { %1549 = vmatmul.f32.vlgmr.msrb.gmra.mxu2 %v1548_v8  ;;  %1821 = vmatpush.msra.mxu3 %v10656_v35 }
 0x5cf   :  { %1758 = vmatpush.msra.mxu2 %v1567_v5  ;;  %1689 = vmatpush.msrb.mxu0 %v10839_v31  ;;  %v1898_v31 = vld [vmem:[%s14386_s7 + $0x18] sm:$0xff] }
 0x5d0   :  { %1729 = vmatpush.msrb.mxu1 %v10772_v32  ;;  %1483 = vmatmul.f32.vlgmr.msra.gmra.mxu0 %v10759_v62 }
 0x5d1   :  { %1762 = vmatpush.msra.mxu2 %v1573_v42  ;;  %1650 = vmatmul.f32.vlgmr.msrb.gmra.mxu3 %v10885_v45 }
 0x5d2   :  { %1823 = vmatpush.msra.mxu3 %v10670_v50  ;;  %1692 = vmatpush.msrb.mxu0 %v10844_v53  ;;  %v1896_v53 = vld [vmem:[%s14386_s7 + $0x8] sm:$0xff] }
 0x5d3   :  { %1766 = vmatpush.msra.mxu2 %v1579_v61  ;;  %1731 = vmatpush.msrb.mxu1 %v10792_v23 }
 0x5d4   :  { %1508 = vmatmul.f32.vlgmr.msra.gmra.mxu1 %v10759_v62  ;;  %1825 = vmatpush.msra.mxu3 %v10683_v13 }
 0x5d5   :  { %1770 = vmatpush.msra.mxu2 %v1585_v25  ;;  %1695 = vmatpush.msrb.mxu0 %v10856_v52 }
 0x5d6   :  { %1733 = vmatpush.msrb.mxu1 %v10824_v17  ;;  %1827 = vmatpush.msra.mxu3 %v10732_v20 }
 0x5d7   :  { %1774 = vmatpush.msra.mxu2 %v1591_v37  ;;  %1698 = vmatpush.msrb.mxu0 %v10866_v59  ;;  %v1895_v59 = vld [vmem:[%s14386_s7] sm:$0xff] }
 0x5d8   :  { %1735 = vmatpush.msrb.mxu1 %v10841_v34  ;;  %1829 = vmatpush.msra.mxu3 %v10737_v22 }
 0x5d9   :  { %1778 = vmatpush.msra.mxu2 %v1597_v43  ;;  %1701 = vmatpush.msrb.mxu0 %v10876_v30  ;;  %v11035_v30 = vand.u32 4294901760, %v1895_v59 }
 0x5da   :  { %1737 = vmatpush.msrb.mxu1 %v10851_v55  ;;  %1704 = vmatmul.f32.vlgmr.msrb.gmra.mxu0 %v10901_v11 }
 0x5db   :  { %1782 = vmatpush.msra.mxu2 %v1603_v57  ;;  %1831 = vmatpush.msra.mxu3 %v10749_v38  ;;  %v1962_v4 = vsub.f32 %v1895_v59, %v11035_v30 }
 0x5dc   :  { %1739 = vmatpush.msrb.mxu1 %v10858_v48 }
 0x5dd   :  { %1743 = vmatmul.f32.vlgmr.msrb.gmra.mxu1 %v1546_v28  ;;  %1786 = vmatpush.msra.mxu2 %v1609_v58 }
 0x5de   :  { %1833 = vmatpush.msra.mxu3 %v10765_v18 }
 0x5df   :  { %1790 = vmatpush.msra.mxu2 %v1615_v41 }
 0x5e0   :  { %1835 = vmatpush.msra.mxu3 %v10770_v51 }
 0x5e1   :  { %1794 = vmatpush.msra.mxu2 %v14408_v6 }
 0x5e2   :  { %1837 = vmatpush.msra.mxu3 %v10772_v32 }
 0x5e3   :  { %1798 = vmatpush.msra.mxu2 %v14409_v7 }
 0x5e4   :  { %1839 = vmatpush.msra.mxu3 %v10792_v23 }
 0x5e5   :  { %1802 = vmatpush.msra.mxu2 %v1633_v54  ;;  %v9812_v54 = vld [vmem:[%s14392_s13 + $0x8] sm:$0xff] }
 0x5e6   :  { %1841 = vmatpush.msra.mxu3 %v10824_v17 }
 0x5e7   :  { %1806 = vmatpush.msra.mxu2 %v1639_v15  ;;  %v1900_v15 = vsel %vm59_vm0, %v9812_v54, 0 }
 0x5e8   :  { %1843 = vmatpush.msra.mxu3 %v10841_v34  ;;  %v1897_v34 = vld [vmem:[%s14386_s7 + $0x10] sm:$0xff]  ;;  %v11045_v29 = vand.u32 4294901760, %v1900_v15 }
 0x5e9   :  { %1810 = vmatpush.msra.mxu2 %v1645_v49  ;;  %v11025_v52 = vand.u32 4294901760, %v1897_v34 }
 0x5ea   :  { %1845 = vmatpush.msra.mxu3 %v10851_v55  ;;  %1812 = vmatmul.f32.vlgmr.msra.gmra.mxu2 %v10885_v45  ;;  %v11023_v55 = vand.u32 4294901760, %v1898_v31  ;;  %v1923_v7 = vsub.f32 %v1900_v15, %v11045_v29 }
 0x5eb   :  { %v1950_v49 = vsub.f32 %v1897_v34, %v11025_v52 }
 0x5ec   :  { %1847 = vmatpush.msra.mxu3 %v10858_v48  ;;  %v11027_v48 = vand.u32 4294901760, %v1896_v53  ;;  %1915 = vmatpush.msra.mxu0 %v11023_v55  ;;  %v1944_v3 = vsub.f32 %v1898_v31, %v11023_v55 }
 0x5ed   :  { %1849 = vmatmul.f32.vlgmr.msra.gmra.mxu3 %v10885_v45  ;;  %v1894_v45 = vld [vmem:[%s14384_s5 + $0x18] sm:$0xff]  ;;  %v1951_v8 = vand.u32 4294901760, %v1950_v49 }
 0x5ee   :  { %v1956_v11 = vsub.f32 %v1896_v53, %v11027_v48  ;;  %v11051_v28 = vand.u32 4294901760, %v1894_v45  ;;  %1917 = vmatpush.msra.mxu0 %v11025_v52  ;;  %v1945_v10 = vand.u32 4294901760, %v1944_v3 }
 0x5f0   :  { %v1957_v6 = vand.u32 4294901760, %v1956_v11  ;;  %2202 = vmatpush.msrb.mxu3 %v11051_v28  ;;  %1919 = vmatpush.msra.mxu0 %v11027_v48 }
 0x5f2   :  { %2204 = vmatpush.msrb.mxu3 %v11053_v9  ;;  %1921 = vmatpush.msra.mxu0 %v11035_v30 }
 0x5f4   :  { %1986 = vmatpush.msrb.mxu0 %v1944_v3 }
 0x5f6   :  { %1989 = vmatpush.msrb.mxu0 %v1950_v49 }
 0x5f8   :  { %1992 = vmatpush.msrb.mxu0 %v1956_v11 }
 0x5fa   :  { %1995 = vmatpush.msrb.mxu0 %v1962_v4 }
 0x631   :  { %v1394_v35 = vpop.f32.mrf.mxu1 }
 0x633   :  { %v1353_v46 = vpop.f32.mrf.mxu0 }
 0x634   :  { %v1395_v47 = vadd.f32 %v1394_v35, %v1353_v46  ;;  %v1963_v35 = vand.u32 4294901760, %v1962_v4  ;;  %v11058_v46 = vsub.f32 %v1894_v45, %v11051_v28 }
 0x635   :  { %v1424_v50 = vpop.f32.mrf.mxu2 }
 0x636   :  { %v1425_v56 = vadd.f32 %v1424_v50, %v1395_v47  ;;  %v1946_v47 = vsub.f32 %v1944_v3, %v1945_v10  ;;  %v1952_v50 = vsub.f32 %v1950_v49, %v1951_v8  ;;  %2173 = vmatpush.msrb.mxu2 %v11058_v46 }
 0x64a   :  { %v1451_v60 = vpop.f32.mrf.mxu3 }
 0x64b   :  { %v1452_v2 = vadd.f32 %v1451_v60, %v1425_v56  ;;  %v1958_v56 = vsub.f32 %v1956_v11, %v1957_v6  ;;  %v1924_v60 = vand.u32 4294901760, %v1923_v7 }
 0x64d   :  { %v1484_v13 = vpop.f32.mrf.mxu0 }
 0x64e   :  { %v1485_v14 = vadd.f32 %v1484_v13, %v1452_v2  ;;  %v11063_v2 = vsub.f32 %v1893_v1, %v11053_v9  ;;  %v1947_v13 = vand.u32 4294901760, %v1946_v47 }
 0x650   :  { %2176 = vmatpush.msrb.mxu2 %v11063_v2  ;;  %1948 = vmatpush.msra.mxu1 %v1947_v13 }
 0x651   :  { %v1509_v5 = vpop.f32.mrf.mxu1  ;;  %v1550_v20 = vpop.f32.mrf.mxu2 }
 0x652   :  { %v1510_v42 = vadd.f32 %v1509_v5, %v1485_v14  ;;  %v1953_v14 = vand.u32 4294901760, %v1952_v50  ;;  %v1925_v5 = vsub.f32 %v1923_v7, %v1924_v60 }
 0x654   :  { %v1551_v21 = vadd.f32 %v1550_v20, %v1510_v42  ;;  %v1651_v22 = vpop.f32.mrf.mxu3  ;;  %v1964_v42 = vsub.f32 %v1962_v4, %v1963_v35  ;;  %v1959_v20 = vand.u32 4294901760, %v1958_v56  ;;  %1954 = vmatpush.msra.mxu1 %v1953_v14 }
 0x656   :  { %v1652_v38 = vadd.f32 %v1651_v22, %v1551_v21  ;;  %v1926_v21 = vand.u32 4294901760, %v1925_v5  ;;  %v1965_v22 = vand.u32 4294901760, %v1964_v42  ;;  %1960 = vmatpush.msra.mxu1 %v1959_v20 }
 0x657   :  { %v1705_v61 = vpop.f32.mrf.mxu0 }
 0x658   :  { %v1706_v63 = vadd.f32 %v1705_v61, %v1652_v38  ;;  %1927 = vmatmul.f32.vlgmr.msra.gmra.mxu0 %v1926_v21  ;;  %1966 = vmatpush.msra.mxu1 %v1965_v22  ;;  %v2132_v38 = vand.u32 4294901760, %v11058_v46  ;;  %v2138_v61 = vand.u32 4294901760, %v11063_v2 }
 0x659   :  { %2044 = vmatpush.msra.mxu0 %v1945_v10  ;;  %1968 = vmatmul.f32.vlgmr.msra.gmra.mxu1 %v11045_v29 }
 0x65a   :  { %v1744_v0 = vpop.f32.mrf.mxu1  ;;  %2015 = vmatpush.msrb.mxu1 %v11023_v55 }
 0x65b   :  { %v1745_v62 = vadd.f32 %v1744_v0, %v1706_v63  ;;  %2048 = vmatpush.msra.mxu0 %v1951_v8  ;;  %v2133_v63 = vsub.f32 %v11058_v46, %v2132_v38 }
 0x65c   :  { %2017 = vmatpush.msrb.mxu1 %v11025_v52 }
 0x65d   :  { %2052 = vmatpush.msra.mxu0 %v1957_v6 }
 0x65e   :  { %2019 = vmatpush.msrb.mxu1 %v11027_v48 }
 0x65f   :  { %2056 = vmatpush.msra.mxu0 %v1963_v35 }
 0x660   :  { %1998 = vmatmul.f32.vlgmr.msrb.gmra.mxu0 %v1923_v7  ;;  %2021 = vmatpush.msrb.mxu1 %v11035_v30 }
 0x661   :  { %2102 = vmatpush.msrb.mxu0 %v11051_v28  ;;  %2025 = vmatmul.f32.vlgmr.msrb.gmra.mxu1 %v1924_v60 }
 0x662   :  { %2075 = vmatpush.msra.mxu1 %v11023_v55 }
 0x663   :  { %2104 = vmatpush.msrb.mxu0 %v11053_v9 }
 0x664   :  { %2077 = vmatpush.msra.mxu1 %v11025_v52 }
 0x666   :  { %2079 = vmatpush.msra.mxu1 %v11027_v48 }
 0x668   :  { %2058 = vmatmul.f32.vlgmr.msra.gmra.mxu0 %v11045_v29  ;;  %2081 = vmatpush.msra.mxu1 %v11035_v30 }
 0x669   :  { %2083 = vmatmul.f32.vlgmr.msra.gmra.mxu1 %v11045_v29 }
 0x66d   :  { %v1813_v18 = vpop.f32.mrf.mxu2 }
 0x66e   :  { %v1814_v36 = vadd.f32 %v1813_v18, %v1745_v62  ;;  %v2139_v62 = vsub.f32 %v11063_v2, %v2138_v61 }
 0x670   :  { %v1850_v51 = vpop.f32.mrf.mxu3 }
 0x671   :  { %v1851_v32 = vadd.f32 %v1850_v51, %v1814_v36  ;;  %v2134_v36 = vand.u32 4294901760, %v2133_v63  ;;  %v2140_v51 = vand.u32 4294901760, %v2139_v62 }
 0x673   :  { %v1853_v25 = vadd.f32 %v10432_v12, %v1851_v32  ;;  %2135 = vmatpush.msrb.mxu1 %v2134_v36  ;;  %v1892_v32 = vld [vmem:[%s14384_s5 + $0x8] sm:$0xff]  ;;  %v2312_v36 = vld [vmem:[%s14389_s10 + $0x10] sm:$0xff] }
 0x675   :  { %v1854_v37 = vmul.f32 %v1853_v25, %v10434_v33  ;;  %2141 = vmatpush.msrb.mxu1 %v2140_v51  ;;  %v2105_v25 = vand.u32 4294901760, %v1892_v32 }
 0x677   :  { %9888 = vtanh.f32 %v1854_v37  ;;  %v1891_v37 = vld [vmem:[%s14384_s5] sm:$0xff]  ;;  %2206 = vmatpush.msrb.mxu3 %v2105_v25  ;;  %2106 = vmatpush.msrb.mxu0 %v2105_v25 }
 0x67d   :  { %v9889_v40 = vpop.eup %9888 }
 0x67e   :  { %v1856_v43 = vmul.f32 %v9889_v40, %v10434_v33  ;;  %v2143_v40 = vsub.f32 %v1892_v32, %v2105_v25  ;;  %v2330_v32 = vand.u32 4294901760, %v2312_v36 }
 0x680   :  { %v10999_v16 = vadd.f32 %v1856_v43, %v10438_v44  ;;  %v2107_v43 = vand.u32 4294901760, %v1891_v37  ;;  %2179 = vmatpush.msrb.mxu2 %v2143_v40 }
 0x682   :  { %1864 = vrot.lane.b32.xlu0 %v10999_v16, %s9961_s8  ;;  %2208 = vmatpush.msrb.mxu3 %v2107_v43 }
 0x683   :  { %2108 = vmatpush.msrb.mxu0 %v2107_v43 }
 0x685   :  { %2231 = vmatpush.msra.mxu0 %v2132_v38 }
 0x687   :  { %2235 = vmatpush.msra.mxu0 %v2138_v61 }
 0x68a   :  { %1859 = vrot.lane.b32.xlu0 %v1303_v27, %s9962_s20  ;;  %v2149_v27 = vsub.f32 %v1891_v37, %v2107_v43  ;;  %v2364_v37 = vsub.f32 %v2312_v36, %v2330_v32 }
 0x68c   :  { %2182 = vmatpush.msrb.mxu2 %v2149_v27 }
 0x6d5   :  { %v1928_v30 = vpop.f32.mrf.mxu0 }
 0x6d6   :  { %v1969_v54 = vpop.f32.mrf.mxu1 }
 0x6d7   :  { %v1970_v3 = vadd.f32 %v1969_v54, %v1928_v30 }
 0x6dd   :  { %v1999_v45 = vpop.f32.mrf.mxu0 }
 0x6de   :  { %v2026_v15 = vpop.f32.mrf.mxu1  ;;  %v2000_v49 = vadd.f32 %v1999_v45, %v1970_v3 }
 0x6e0   :  { %v2027_v29 = vadd.f32 %v2026_v15, %v2000_v49 }
 0x6e5   :  { %v2059_v1 = vpop.f32.mrf.mxu0 }
 0x6e6   :  { %v2084_v11 = vpop.f32.mrf.mxu1  ;;  %v2060_v4 = vadd.f32 %v2059_v1, %v2027_v29 }
 0x6f4   :  { %v1865_v23 = vpop.permute.xlu0 %1864 }
 0x6f5   :  { %v1867_v19 = vmul.f32 %v1865_v23, %v10999_v16 }
 0x6f7   :  { %1869 = vrot.lane.b32.xlu1 %v1867_v19, %s9962_s20  ;;  %v2150_v19 = vand.u32 4294901760, %v2149_v27 }
 0x6fc   :  { %v1860_v57 = vpop.permute.xlu0 %1859 }
 0x6fd   :  { %v1862_v58 = vmul.f32 %v1860_v57, %v10999_v16 }
 0x769   :  { %v1870_v24 = vpop.permute.xlu1 %1869 }
 0x76a   :  { %v11010_v17 = vadd.f32 %v1870_v24, %v1862_v58  ;;  %v2151_v58 = vsub.f32 %v2149_v27, %v2150_v19 }
 0x76c   :  { %9890 = vtanh.f32 %v11010_v17  ;;  %v2152_v24 = vand.u32 4294901760, %v2151_v58 }
 0x772   :  { %v9891_v41 = vpop.eup %9890 }
 0x773   :  { %1875 = vrot.lane.b32.xlu1 %v9891_v41, %s9961_s8  ;;  %v9813_v41 = vld [vmem:[%s14393_s14 + $0x8] sm:$0xff] }
 0x774   :  { %2280 = vrot.lane.b32.xlu0 %v9813_v41, %s9962_s20  ;;  %v2311_v41 = vld [vmem:[%s14389_s10 + $0x8] sm:$0xff] }
 0x7e5   :  { %v1876_v0 = vpop.permute.xlu1 %1875 }
 0x7e6   :  { %v1878_v18 = vmul.f32 %v1876_v0, %v10999_v16  ;;  %v2144_v16 = vand.u32 4294901760, %v2143_v40  ;;  %v2281_v38 = vpop.permute.xlu0 %2280 }
 0x7e8   :  { %1880 = vrot.lane.b32.xlu2 %v1878_v18, %s9962_s20  ;;  %v2145_v23 = vsub.f32 %v2143_v40, %v2144_v16  ;;  %2239 = vmatpush.msra.mxu0 %v2144_v16 }
 0x7ea   :  { %v2146_v57 = vand.u32 4294901760, %v2145_v23  ;;  %2243 = vmatpush.msra.mxu0 %v2150_v19 }
 0x7ec   :  { %2147 = vmatpush.msrb.mxu1 %v2146_v57 }
 0x7ee   :  { %2153 = vmatpush.msrb.mxu1 %v2152_v24 }
 0x7f0   :  { %2262 = vmatpush.msra.mxu1 %v11051_v28  ;;  %v2085_v28 = vadd.f32 %v2084_v11, %v2060_v4 }
 0x7f2   :  { %2264 = vmatpush.msra.mxu1 %v11053_v9 }
 0x7f4   :  { %2266 = vmatpush.msra.mxu1 %v2105_v25 }
 0x7f6   :  { %2268 = vmatpush.msra.mxu1 %v2107_v43  ;;  %v2365_v43 = vand.u32 4294901760, %v2364_v37 }
 0x7f8   :  { %v2366_v27 = vsub.f32 %v2364_v37, %v2365_v43 }
 0x7fa   :  { %v2367_v19 = vand.u32 4294901760, %v2366_v27 }
 0x842   :  { %v1881_v31 = vpop.permute.xlu2 %1880 }
 0x843   :  { %1883 = vst.msk [vmem:[%s14392_s13] sm:$0xff] %vm59_vm0, %v1881_v31  ;;  %v2087_v34 = vsel %vm59_vm0, %v1881_v31, 0  ;;  %v2332_v31 = vand.u32 4294901760, %v2311_v41 }
 0x844   :  { %v2109_v53 = vand.u32 4294901760, %v2087_v34 }
 0x846   :  { %v2110_v55 = vsub.f32 %v2087_v34, %v2109_v53  ;;  %2155 = vmatmul.f32.vlgmr.msrb.gmra.mxu1 %v2109_v53  ;;  %v2310_v34 = vld [vmem:[%s14389_s10] sm:$0xff] }
 0x848   :  { %v2111_v52 = vand.u32 4294901760, %v2110_v55  ;;  %2185 = vmatmul.f32.vlgmr.msrb.gmra.mxu2 %v2110_v55 }
 0x84a   :  { %v2112_v48 = vsub.f32 %v2110_v55, %v2111_v52  ;;  %2212 = vmatmul.f32.vlgmr.msrb.gmra.mxu3 %v2111_v52  ;;  %v2334_v55 = vand.u32 4294901760, %v2310_v34 }
 0x84c   :  { %v2113_v59 = vand.u32 4294901760, %v2112_v48  ;;  %v2376_v48 = vsub.f32 %v2310_v34, %v2334_v55 }
 0x84e   :  { %2114 = vmatmul.f32.vlgmr.msrb.gmra.mxu0 %v2113_v59  ;;  %2270 = vmatmul.f32.vlgmr.msra.gmra.mxu1 %v2109_v53  ;;  %v2377_v54 = vand.u32 4294901760, %v2376_v48 }
 0x850   :  { %v2378_v15 = vsub.f32 %v2376_v48, %v2377_v54 }
 0x852   :  { %v2379_v45 = vand.u32 4294901760, %v2378_v15 }
 0x856   :  { %2245 = vmatmul.f32.vlgmr.msra.gmra.mxu0 %v2109_v53  ;;  %v2370_v53 = vsub.f32 %v2311_v41, %v2332_v31 }
 0x858   :  { %v2371_v52 = vand.u32 4294901760, %v2370_v53 }
 0x85a   :  { %v2372_v59 = vsub.f32 %v2370_v53, %v2371_v52 }
 0x85c   :  { %v2373_v30 = vand.u32 4294901760, %v2372_v59 }
 0x8c3   :  { %v2156_v9 = vpop.f32.mrf.mxu1 }
 0x8cb   :  { %v2115_v10 = vpop.f32.mrf.mxu0  ;;  %v2186_v7 = vpop.f32.mrf.mxu2 }
 0x8cc   :  { %v2116_v8 = vadd.f32 %v2115_v10, %v2085_v28  ;;  %v2271_v60 = vpop.f32.mrf.mxu1 }
 0x8cd   :  { %v2213_v46 = vpop.f32.mrf.mxu3 }
 0x8ce   :  { %v2157_v6 = vadd.f32 %v2156_v9, %v2116_v8 }
 0x8d0   :  { %v2187_v35 = vadd.f32 %v2186_v7, %v2157_v6 }
 0x8d2   :  { %v2214_v47 = vadd.f32 %v2213_v46, %v2187_v35 }
 0x8d3   :  { %v2246_v50 = vpop.f32.mrf.mxu0 }
 0x8d4   :  { %v2247_v56 = vadd.f32 %v2246_v50, %v2214_v47 }
 0x8d6   :  { %v2272_v2 = vadd.f32 %v2271_v60, %v2247_v56 }
 0x8d8   :  { %v2274_v13 = vadd.f32 %v10559_v26, %v2272_v2 }
 0x8da   :  { %v2275_v14 = vmul.f32 %v2274_v13, %v10434_v33 }
 0x8dc   :  { %9892 = vtanh.f32 %v2275_v14 }
 0x8e2   :  { %v9893_v5 = vpop.eup %9892 }
 0x8e3   :  { %v2277_v42 = vmul.f32 %v9893_v5, %v10434_v33 }
 0x8e5   :  { %v2278_v20 = vadd.f32 %v2277_v42, %v10438_v44 }
 0x8e7   :  { %2285 = vrot.lane.b32.xlu2 %v2278_v20, %s9961_s8  ;;  %v2283_v61 = vmul.f32 %v2281_v38, %v2278_v20 }
 0x941   :  { %v2286_v21 = vpop.permute.xlu2 %2285 }
 0x942   :  { %v2288_v22 = vmul.f32 %v2286_v21, %v2278_v20 }
 0x944   :  { %2290 = vrot.lane.b32.xlu1 %v2288_v22, %s9962_s20 }
 0x94c   :  { %1885 = vrot.lane.b32.xlu1 %v11010_v17, %s9963_s9  ;;  %v2313_v17 = vld [vmem:[%s14389_s10 + $0x18] sm:$0xff] }
 0x94d   :  { %v2328_v51 = vand.u32 4294901760, %v2313_v17 }
 0x94f   :  { %v2358_v25 = vsub.f32 %v2313_v17, %v2328_v51  ;;  %2429 = vmatpush.msrb.mxu1 %v2328_v51  ;;  %2329 = vmatpush.msra.mxu2 %v2328_v51 }
 0x951   :  { %v2359_v40 = vand.u32 4294901760, %v2358_v25  ;;  %2400 = vmatpush.msrb.mxu0 %v2358_v25  ;;  %2431 = vmatpush.msrb.mxu1 %v2330_v32 }
 0x952   :  { %2331 = vmatpush.msra.mxu2 %v2330_v32 }
 0x953   :  { %v2360_v16 = vsub.f32 %v2358_v25, %v2359_v40  ;;  %2403 = vmatpush.msrb.mxu0 %v2364_v37  ;;  %2433 = vmatpush.msrb.mxu1 %v2332_v31 }
 0x954   :  { %2333 = vmatpush.msra.mxu2 %v2332_v31 }
 0x955   :  { %v2361_v23 = vand.u32 4294901760, %v2360_v16  ;;  %2406 = vmatpush.msrb.mxu0 %v2370_v53  ;;  %2435 = vmatpush.msrb.mxu1 %v2334_v55 }
 0x956   :  { %2335 = vmatpush.msra.mxu2 %v2334_v55 }
 0x957   :  { %2362 = vmatpush.msra.mxu3 %v2361_v23  ;;  %2409 = vmatpush.msrb.mxu0 %v2376_v48 }
 0x958   :  { %2458 = vmatpush.msrb.mxu2 %v2359_v40 }
 0x959   :  { %2368 = vmatpush.msra.mxu3 %v2367_v19 }
 0x95a   :  { %2462 = vmatpush.msrb.mxu2 %v2365_v43 }
 0x95b   :  { %2374 = vmatpush.msra.mxu3 %v2373_v30 }
 0x95c   :  { %2466 = vmatpush.msrb.mxu2 %v2371_v52 }
 0x95d   :  { %2380 = vmatpush.msra.mxu3 %v2379_v45 }
 0x95e   :  { %2470 = vmatpush.msrb.mxu2 %v2377_v54 }
 0x95f   :  { %2489 = vmatpush.msrb.mxu3 %v2328_v51 }
 0x961   :  { %2491 = vmatpush.msrb.mxu3 %v2330_v32 }
 0x963   :  { %2493 = vmatpush.msrb.mxu3 %v2332_v31 }
 0x965   :  { %2495 = vmatpush.msrb.mxu3 %v2334_v55 }
 0x9b6   :  { %v2291_v63 = vpop.permute.xlu1 %2290 }
 0x9b7   :  { %v2293_v0 = vadd.f32 %v2291_v63, %v2283_v61 }
 0x9b9   :  { %9894 = vtanh.f32 %v2293_v0 }
 0x9be   :  { %v1886_v62 = vpop.permute.xlu1 %1885 }
 0x9bf   :  { %v9895_v18 = vpop.eup %9894  ;;  %1888 = vst.msk [vmem:[%s14393_s14] sm:$0xff] %vm59_vm0, %v1886_v62 }
 0x9c0   :  { %2296 = vrot.lane.b32.xlu2 %v9895_v18, %s9961_s8 }
 0x9c8   :  { %2306 = vrot.lane.b32.xlu2 %v2293_v0, %s9963_s9 }
 0xa1a   :  { %v2297_v57 = vpop.permute.xlu2 %2296 }
 0xa1b   :  { %v2299_v58 = vmul.f32 %v2297_v57, %v2278_v20 }
 0xa1d   :  { %2301 = vrot.lane.b32.xlu0 %v2299_v58, %s9962_s20 }
 0xa22   :  { %v2307_v24 = vpop.permute.xlu2 %2306 }
 0xa23   :  { %9815 = vst.msk [vmem:[%s14393_s14 + $0x8] sm:$0xff] %vm59_vm0, %v2307_v24 }
 0xa8f   :  { %v2302_v3 = vpop.permute.xlu0 %2301 }
 0xa90   :  { %9814 = vst.msk [vmem:[%s14392_s13 + $0x8] sm:$0xff] %vm59_vm0, %v2302_v3  ;;  %v2314_v49 = vsel %vm59_vm0, %v2302_v3, 0 }
 0xa91   :  { %v2336_v11 = vand.u32 4294901760, %v2314_v49 }
 0xa93   :  { %v2337_v29 = vsub.f32 %v2314_v49, %v2336_v11  ;;  %2382 = vmatmul.f32.vlgmr.msra.gmra.mxu3 %v2336_v11 }
 0xa95   :  { %v2338_v1 = vand.u32 4294901760, %v2337_v29  ;;  %2412 = vmatmul.f32.vlgmr.msrb.gmra.mxu0 %v2337_v29 }
 0xa97   :  { %v2339_v4 = vsub.f32 %v2337_v29, %v2338_v1  ;;  %2439 = vmatmul.f32.vlgmr.msrb.gmra.mxu1 %v2338_v1 }
 0xa99   :  { %v2340_v28 = vand.u32 4294901760, %v2339_v4 }
 0xa9b   :  { %2341 = vmatmul.f32.vlgmr.msra.gmra.mxu2 %v2340_v28  ;;  %2497 = vmatmul.f32.vlgmr.msrb.gmra.mxu3 %v2336_v11 }
 0xaa3   :  { %2472 = vmatmul.f32.vlgmr.msrb.gmra.mxu2 %v2336_v11 }
 0xb12   :  { %v2413_v7 = vpop.f32.mrf.mxu0 }
 0xb14   :  { %v2440_v46 = vpop.f32.mrf.mxu1 }
 0xb16   :  { %v2383_v9 = vpop.f32.mrf.mxu3 }
 0xb1e   :  { %v2342_v10 = vpop.f32.mrf.mxu2  ;;  %v2498_v60 = vpop.f32.mrf.mxu3 }
 0xb1f   :  { %v2343_v8 = vadd.f32 %v10600_v39, %v2342_v10 }
 0xb21   :  { %v2384_v6 = vadd.f32 %v2383_v9, %v2343_v8 }
 0xb23   :  { %v2414_v35 = vadd.f32 %v2413_v7, %v2384_v6 }
 0xb25   :  { %v2441_v47 = vadd.f32 %v2440_v46, %v2414_v35 }
 0xb26   :  { %v2473_v50 = vpop.f32.mrf.mxu2 }
 0xb27   :  { %v2474_v56 = vadd.f32 %v2473_v50, %v2441_v47  ;;  %2507 = sbr.rel (%p9818_p2) target bundleno = 2862 (0xb2e), region = 65 }
 0xb29   :  { %v2499_v2 = vadd.f32 %v2498_v60, %v2474_v56 }
 0xb2b   :  { %9816 = vst [vmem:[%s14391_s12 + $0x8] sm:$0xff] %v2499_v2 }
 0xb2c   :  { %v9819_v13 = vld [vmem:[%s14380_s1 + $0x8] sm:$0xff] }
 0xb2d   :  { %2510 = vst [vmem:[#allocation2] sm:$0xff] %v9819_v13 }
 0xb2e PF:  { %p9820_p3 = scmp.ne.s32.totalorder %s9817_s23, 0 }
 0xb30   :  { %2514 = sbr.rel (%p9820_p3) target bundleno = 2870 (0xb36), region = 69 }
 0xb35   :  { %2515 = vst [vmem:[#allocation2] sm:$0xff] %v2499_v2 }
 0xb36 PF:  { %v2538_v14 = vld [vmem:[%s14385_s6 + $0x18] sm:$0xff]  ;;  %v2537_v5 = vld [vmem:[%s14385_s6 + $0x10] sm:$0xff]  ;;  %v2536_v42 = vld [vmem:[%s14385_s6 + $0x8] sm:$0xff]  ;;  %s9826_s2 = sld [smem:[#allocation3 + $0x2]] }
 0xb37   :  { %v11157_v20 = vand.u32 4294901760, %v2538_v14  ;;  %v11159_v21 = vand.u32 4294901760, %v2537_v5  ;;  %v11161_v22 = vand.u32 4294901760, %v2536_v42  ;;  %v2535_v38 = vld [vmem:[%s14385_s6] sm:$0xff]  ;;  %v2534_v61 = vld [vmem:[%s14383_s4 + $0x78] sm:$0xff]  ;;  %v2533_v63 = vld [vmem:[%s14383_s4 + $0x70] sm:$0xff] }
 0xb38   :  { %v11172_v0 = vand.u32 4294901760, %v2535_v38  ;;  %v11174_v62 = vand.u32 4294901760, %v2534_v61  ;;  %v11176_v18 = vand.u32 4294901760, %v2533_v63  ;;  %v2532_v17 = vld [vmem:[%s14383_s4 + $0x68] sm:$0xff]  ;;  %v2531_v36 = vld [vmem:[%s14383_s4 + $0x60] sm:$0xff]  ;;  %v2530_v40 = vld [vmem:[%s14383_s4 + $0x58] sm:$0xff] }
 0xb39   :  { %v11185_v51 = vsub.f32 %v2538_v14, %v11157_v20  ;;  %v11188_v32 = vsub.f32 %v2537_v5, %v11159_v21  ;;  %2655 = vmatpush.msra.mxu3 %v11157_v20  ;;  %v11192_v25 = vsub.f32 %v2536_v42, %v11161_v22  ;;  %2555 = vmatpush.msra.mxu0 %v11157_v20  ;;  %v11195_v37 = vand.u32 4294901760, %v2532_v17  ;;  %v2529_v3 = vld [vmem:[%s14383_s4 + $0x50] sm:$0xff]  ;;  %v2528_v49 = vld [vmem:[%s14383_s4 + $0x48] sm:$0xff]  ;;  %v2527_v28 = vld [vmem:[%s14383_s4 + $0x40] sm:$0xff] }
 0xb3a   :  { %v11201_v43 = vsub.f32 %v2535_v38, %v11172_v0  ;;  %v11204_v16 = vsub.f32 %v2534_v61, %v11174_v62  ;;  %v11207_v27 = vsub.f32 %v2533_v63, %v11176_v18  ;;  %v11209_v23 = vand.u32 4294901760, %v2531_v36  ;;  %v2517_v9 = vld [vmem:[%s14392_s13] sm:$0xff]  ;;  %v2526_v56 = vld [vmem:[%s14383_s4 + $0x38] sm:$0xff]  ;;  %v2525_v60 = vld [vmem:[%s14383_s4 + $0x30] sm:$0xff] }
 0xb3b   :  { %2626 = vmatpush.msra.mxu2 %v11185_v51  ;;  %2657 = vmatpush.msra.mxu3 %v11159_v21  ;;  %v2585_v19 = vand.u32 4294901760, %v11185_v51  ;;  %v2591_v57 = vand.u32 4294901760, %v11188_v32  ;;  %v11216_v58 = vsub.f32 %v2532_v17, %v11195_v37  ;;  %v2597_v24 = vand.u32 4294901760, %v11192_v25  ;;  %v2524_v2 = vld [vmem:[%s14383_s4 + $0x28] sm:$0xff] }
 0xb3c   :  { %v2770_v41 = vand.u32 4294901760, %v11204_v16  ;;  %2557 = vmatpush.msra.mxu0 %v11159_v21  ;;  %v2776_v31 = vand.u32 4294901760, %v11207_v27  ;;  %v11222_v34 = vand.u32 4294901760, %v2530_v40  ;;  %v11225_v53 = vsub.f32 %v2531_v36, %v11209_v23  ;;  %v2523_v36 = vld [vmem:[%s14383_s4 + $0x20] sm:$0xff]  ;;  %p9827_p4 = scmp.eq.s32.totalorder %s9826_s2, 0 }
 0xb3d   :  { %2629 = vmatpush.msra.mxu2 %v11188_v32  ;;  %2659 = vmatpush.msra.mxu3 %v11161_v22  ;;  %v2586_v55 = vsub.f32 %v11185_v51, %v2585_v19  ;;  %v2592_v52 = vsub.f32 %v11188_v32, %v2591_v57  ;;  %v2782_v48 = vand.u32 4294901760, %v11216_v58  ;;  %v2598_v59 = vsub.f32 %v11192_v25, %v2597_v24 }
 0xb3e   :  { %v2771_v54 = vsub.f32 %v11204_v16, %v2770_v41  ;;  %v2777_v30 = vsub.f32 %v11207_v27, %v2776_v31  ;;  %2559 = vmatpush.msra.mxu0 %v11161_v22  ;;  %v2788_v15 = vand.u32 4294901760, %v11225_v53  ;;  %v2603_v45 = vand.u32 4294901760, %v11201_v43 }
 0xb3f   :  { %2632 = vmatpush.msra.mxu2 %v11192_v25  ;;  %2661 = vmatpush.msra.mxu3 %v11172_v0  ;;  %v2587_v11 = vand.u32 4294901760, %v2586_v55  ;;  %v2593_v29 = vand.u32 4294901760, %v2592_v52  ;;  %v2783_v1 = vsub.f32 %v11216_v58, %v2782_v48  ;;  %v2599_v4 = vand.u32 4294901760, %v2598_v59 }
 0xb40   :  { %v2772_v10 = vand.u32 4294901760, %v2771_v54  ;;  %v2778_v8 = vand.u32 4294901760, %v2777_v30  ;;  %2561 = vmatpush.msra.mxu0 %v11172_v0  ;;  %v2789_v6 = vsub.f32 %v11225_v53, %v2788_v15  ;;  %v2604_v7 = vsub.f32 %v11201_v43, %v2603_v45 }
 0xb41   :  { %2635 = vmatpush.msra.mxu2 %v11201_v43  ;;  %2588 = vmatpush.msra.mxu1 %v2587_v11  ;;  %v2784_v35 = vand.u32 4294901760, %v2783_v1  ;;  %v11271_v46 = vand.u32 4294901760, %v2529_v3  ;;  %v11274_v47 = vsub.f32 %v2530_v40, %v11222_v34  ;;  %v11276_v50 = vand.u32 4294901760, %v2528_v49 }
 0xb42   :  { %2773 = vmatpush.msrb.mxu3 %v2772_v10  ;;  %v2790_v13 = vand.u32 4294901760, %v2789_v6  ;;  %v2605_v14 = vand.u32 4294901760, %v2604_v7  ;;  %v11288_v5 = vand.u32 4294901760, %v2527_v28  ;;  %v2540_v42 = vsel %vm59_vm0, %v2517_v9, 0  ;;  %2684 = vmatpush.msrb.mxu0 %v2585_v19 }
 0xb43   :  { %2728 = vmatpush.msrb.mxu2 %v11174_v62  ;;  %2594 = vmatpush.msra.mxu1 %v2593_v29  ;;  %v2794_v38 = vand.u32 4294901760, %v11274_v47  ;;  %v11293_v61 = vsub.f32 %v2529_v3, %v11271_v46  ;;  %v11296_v63 = vsub.f32 %v2528_v49, %v11276_v50  ;;  %v11298_v17 = vand.u32 4294901760, %v2540_v42 }
 0xb44   :  { %2779 = vmatpush.msrb.mxu3 %v2778_v8  ;;  %v11304_v51 = vand.u32 4294901760, %v2526_v56  ;;  %v11307_v40 = vsub.f32 %v2527_v28, %v11288_v5  ;;  %v11309_v19 = vand.u32 4294901760, %v2525_v60  ;;  %v11311_v55 = vand.u32 4294901760, %v2524_v2  ;;  %2688 = vmatpush.msrb.mxu0 %v2591_v57  ;;  %v2522_v57 = vld [vmem:[%s14383_s4 + $0x18] sm:$0xff] }
 0xb45   :  { %2730 = vmatpush.msrb.mxu2 %v11176_v18  ;;  %2600 = vmatpush.msra.mxu1 %v2599_v4  ;;  %v2795_v52 = vsub.f32 %v11274_v47, %v2794_v38  ;;  %v2800_v59 = vand.u32 4294901760, %v11293_v61  ;;  %v2806_v54 = vand.u32 4294901760, %v11296_v63  ;;  %v11321_v30 = vsub.f32 %v2540_v42, %v11298_v17 }
 0xb46   :  { %2785 = vmatpush.msrb.mxu3 %v2784_v35  ;;  %v2812_v3 = vand.u32 4294901760, %v11307_v40  ;;  %v11326_v49 = vsub.f32 %v2526_v56, %v11304_v51  ;;  %v11329_v11 = vsub.f32 %v2525_v60, %v11309_v19  ;;  %v11331_v32 = vand.u32 4294901760, %v2523_v36  ;;  %2692 = vmatpush.msrb.mxu0 %v2597_v24  ;;  %v2521_v24 = vld [vmem:[%s14383_s4 + $0x10] sm:$0xff]  ;;  %v2520_v56 = vld [vmem:[%s14383_s4 + $0x8] sm:$0xff] }
 0xb47   :  { %2732 = vmatpush.msrb.mxu2 %v11195_v37  ;;  %2606 = vmatpush.msra.mxu1 %v2605_v14  ;;  %v2796_v29 = vand.u32 4294901760, %v2795_v52  ;;  %v2801_v1 = vsub.f32 %v11293_v61, %v2800_v59  ;;  %v2807_v4 = vsub.f32 %v11296_v63, %v2806_v54  ;;  %v2564_v28 = vand.u32 4294901760, %v11321_v30 }
 0xb48   :  { %2791 = vmatpush.msrb.mxu3 %v2790_v13  ;;  %v2813_v9 = vsub.f32 %v11307_v40, %v2812_v3  ;;  %v2818_v10 = vand.u32 4294901760, %v11326_v49  ;;  %v2824_v8 = vand.u32 4294901760, %v11329_v11  ;;  %v11352_v25 = vsub.f32 %v2524_v2, %v11311_v55  ;;  %2696 = vmatpush.msrb.mxu0 %v2603_v45  ;;  %v2519_v45 = vld [vmem:[%s14383_s4] sm:$0xff] }
 0xb49   :  { %2734 = vmatpush.msrb.mxu2 %v11209_v23  ;;  %2715 = vmatpush.msrb.mxu1 %v11157_v20  ;;  %v2802_v6 = vand.u32 4294901760, %v2801_v1  ;;  %v2565_v7 = vsub.f32 %v11321_v30, %v2564_v28  ;;  %v11363_v35 = vand.u32 4294901760, %v2522_v57  ;;  %v2808_v60 = vand.u32 4294901760, %v2807_v4 }
 0xb4a   :  { %2797 = vmatpush.msrb.mxu3 %v2796_v29  ;;  %v2819_v20 = vsub.f32 %v11326_v49, %v2818_v10  ;;  %v2830_v43 = vand.u32 4294901760, %v11352_v25  ;;  %v11378_v13 = vsub.f32 %v2523_v36, %v11331_v32  ;;  %v11380_v14 = vand.u32 4294901760, %v2521_v24  ;;  %2638 = vmatmul.f32.vlgmr.msra.gmra.mxu2 %v11321_v30 }
 0xb4b   :  { %2736 = vmatpush.msrb.mxu2 %v11222_v34  ;;  %2717 = vmatpush.msrb.mxu1 %v11159_v21  ;;  %v2566_v2 = vand.u32 4294901760, %v2565_v7  ;;  %v11383_v42 = vsub.f32 %v2522_v57, %v11363_v35  ;;  %v2814_v52 = vand.u32 4294901760, %v2813_v9  ;;  %v2825_v29 = vsub.f32 %v11329_v11, %v2824_v8 }
 0xb4c   :  { %2803 = vmatpush.msrb.mxu3 %v2802_v6  ;;  %v11390_v21 = vand.u32 4294901760, %v2520_v56  ;;  %v14397_v36 = vand.u32 4294901760, %v11378_v13  ;;  %v11395_v57 = vsub.f32 %v2521_v24, %v11380_v14  ;;  %v11397_v1 = vand.u32 4294901760, %v2519_v45  ;;  %v2516_v24 = vld [vmem:[#allocation2] sm:$0xff]  ;;  %2608 = vmatmul.f32.vlgmr.msra.gmra.mxu1 %v11298_v17 }
 0xb4d   :  { %2738 = vmatpush.msrb.mxu2 %v11271_v46  ;;  %2719 = vmatpush.msrb.mxu1 %v11161_v22  ;;  %v2820_v4 = vand.u32 4294901760, %v2819_v20  ;;  %v2831_v9 = vsub.f32 %v11352_v25, %v2830_v43  ;;  %v14396_v6 = vand.u32 4294901760, %v11383_v42  ;;  %v2826_v7 = vand.u32 4294901760, %v2825_v29 }
 0xb4e   :  { %2567 = vmatmul.f32.vlgmr.msra.gmra.mxu0 %v2566_v2  ;;  %2809 = vmatpush.msrb.mxu3 %v2808_v60  ;;  %v11405_v22 = vsub.f32 %v2520_v56, %v11390_v21  ;;  %v2837_v60 = vsub.f32 %v11378_v13, %v14397_v36  ;;  %v2848_v20 = vand.u32 4294901760, %v11395_v57  ;;  %v11415_v2 = vsub.f32 %v2519_v45, %v11397_v1 }
 0xb4f   :  { %2740 = vmatpush.msrb.mxu2 %v11276_v50  ;;  %2871 = vmatpush.msra.mxu0 %v11204_v16  ;;  %v2843_v56 = vsub.f32 %v11383_v42, %v14396_v6  ;;  %v11424_v29 = vand.u32 4294901760, %v2516_v24 }
 0xb50   :  { %2721 = vmatpush.msrb.mxu1 %v11172_v0  ;;  %2815 = vmatpush.msrb.mxu3 %v2814_v52  ;;  %v2832_v0 = vand.u32 4294901760, %v2831_v9  ;;  %v2854_v52 = vand.u32 4294901760, %v11405_v22  ;;  %v2838_v45 = vand.u32 4294901760, %v2837_v60  ;;  %v2860_v9 = vand.u32 4294901760, %v11415_v2 }
 0xb51   :  { %2742 = vmatpush.msrb.mxu2 %v11288_v5  ;;  %2874 = vmatpush.msra.mxu0 %v11207_v27  ;;  %v2844_v6 = vand.u32 4294901760, %v2843_v56 }
 0xb52   :  { %2821 = vmatpush.msrb.mxu3 %v2820_v4  ;;  %2924 = vmatpush.msra.mxu1 %v11174_v62  ;;  %v2849_v4 = vsub.f32 %v11395_v57, %v2848_v20  ;;  %v2855_v36 = vsub.f32 %v11405_v22, %v2854_v52 }
 0xb53   :  { %2744 = vmatpush.msrb.mxu2 %v11304_v51  ;;  %2877 = vmatpush.msra.mxu0 %v11216_v58 }
 0xb54   :  { %2827 = vmatpush.msrb.mxu3 %v2826_v7  ;;  %2926 = vmatpush.msra.mxu1 %v11176_v18  ;;  %v11440_v7 = vsub.f32 %v2516_v24, %v11424_v29  ;;  %v2850_v60 = vand.u32 4294901760, %v2849_v4  ;;  %v2856_v24 = vand.u32 4294901760, %v2855_v36 }
 0xb55   :  { %2746 = vmatpush.msrb.mxu2 %v11309_v19  ;;  %2880 = vmatpush.msra.mxu0 %v11225_v53 }
 0xb56   :  { %2833 = vmatpush.msrb.mxu3 %v2832_v0  ;;  %2928 = vmatpush.msra.mxu1 %v11195_v37  ;;  %v2861_v0 = vsub.f32 %v11415_v2, %v2860_v9  ;;  %v2761_v56 = vand.u32 4294901760, %v11440_v7 }
 0xb57   :  { %2748 = vmatpush.msrb.mxu2 %v11311_v55  ;;  %2883 = vmatpush.msra.mxu0 %v11274_v47 }
 0xb58   :  { %2839 = vmatpush.msrb.mxu3 %v2838_v45  ;;  %2930 = vmatpush.msra.mxu1 %v11209_v23  ;;  %v2862_v45 = vand.u32 4294901760, %v2861_v0  ;;  %v3108_v0 = vld [vmem:[%s14384_s5 + $0x10] sm:$0xff] }
 0xb59   :  { %2750 = vmatpush.msrb.mxu2 %v11331_v32  ;;  %2886 = vmatpush.msra.mxu0 %v11293_v61 }
 0xb5a   :  { %2845 = vmatpush.msrb.mxu3 %v2844_v6  ;;  %2932 = vmatpush.msra.mxu1 %v11222_v34  ;;  %v2762_v6 = vsub.f32 %v11440_v7, %v2761_v56 }
 0xb5b   :  { %2752 = vmatpush.msrb.mxu2 %v11363_v35  ;;  %2889 = vmatpush.msra.mxu0 %v11296_v63 }
 0xb5c   :  { %2851 = vmatpush.msrb.mxu3 %v2850_v60  ;;  %2934 = vmatpush.msra.mxu1 %v11271_v46  ;;  %v2763_v36 = vand.u32 4294901760, %v2762_v6 }
 0xb5d   :  { %2754 = vmatpush.msrb.mxu2 %v11380_v14  ;;  %2892 = vmatpush.msra.mxu0 %v11307_v40 }
 0xb5e   :  { %2857 = vmatpush.msrb.mxu3 %v2856_v24  ;;  %2936 = vmatpush.msra.mxu1 %v11276_v50 }
 0xb5f   :  { %2756 = vmatpush.msrb.mxu2 %v11390_v21  ;;  %2665 = vmatmul.f32.vlgmr.msra.gmra.mxu3 %v2564_v28 }
 0xb60   :  { %2863 = vmatpush.msrb.mxu3 %v2862_v45  ;;  %2895 = vmatpush.msra.mxu0 %v11326_v49  ;;  %v11592_v45 = vand.u32 4294901760, %v3108_v0 }
 0xb61   :  { %2758 = vmatpush.msrb.mxu2 %v11397_v1  ;;  %2938 = vmatpush.msra.mxu1 %v11288_v5 }
 0xb62   :  { %3032 = vmatpush.msra.mxu3 %v11174_v62  ;;  %2898 = vmatpush.msra.mxu0 %v11329_v11  ;;  %v14410_v62 = vand.u32 4294901760, %v11378_v13  ;;  %v2518_v11 = vld [vmem:[%s14393_s14] sm:$0xff] }
 0xb63   :  { %2965 = vmatpush.msra.mxu2 %v2770_v41  ;;  %2940 = vmatpush.msra.mxu1 %v11304_v51 }
 0xb64   :  { %3034 = vmatpush.msra.mxu3 %v11176_v18  ;;  %2901 = vmatpush.msra.mxu0 %v11352_v25  ;;  %v14411_v18 = vand.u32 4294901760, %v11383_v42 }
 0xb65   :  { %2969 = vmatpush.msra.mxu2 %v2776_v31  ;;  %2942 = vmatpush.msra.mxu1 %v11309_v19 }
 0xb66   :  { %2764 = vmatmul.f32.vlgmr.msrb.gmra.mxu2 %v2763_v36  ;;  %3036 = vmatpush.msra.mxu3 %v11195_v37 }
 0xb67   :  { %2973 = vmatpush.msra.mxu2 %v2782_v48  ;;  %2904 = vmatpush.msra.mxu0 %v11378_v13  ;;  %v3113_v13 = vld [vmem:[%s14386_s7 + $0x18] sm:$0xff] }
 0xb68   :  { %2944 = vmatpush.msra.mxu1 %v11311_v55  ;;  %2698 = vmatmul.f32.vlgmr.msrb.gmra.mxu0 %v11298_v17 }
 0xb69   :  { %2977 = vmatpush.msra.mxu2 %v2788_v15  ;;  %2865 = vmatmul.f32.vlgmr.msrb.gmra.mxu3 %v11424_v29 }
 0xb6a   :  { %3038 = vmatpush.msra.mxu3 %v11209_v23  ;;  %2907 = vmatpush.msra.mxu0 %v11383_v42  ;;  %v3111_v42 = vld [vmem:[%s14386_s7 + $0x8] sm:$0xff] }
 0xb6b   :  { %2981 = vmatpush.msra.mxu2 %v2794_v38  ;;  %2946 = vmatpush.msra.mxu1 %v11331_v32 }
 0xb6c   :  { %2723 = vmatmul.f32.vlgmr.msrb.gmra.mxu1 %v11298_v17  ;;  %3040 = vmatpush.msra.mxu3 %v11222_v34 }
 0xb6d   :  { %2985 = vmatpush.msra.mxu2 %v2800_v59  ;;  %2910 = vmatpush.msra.mxu0 %v11395_v57 }
 0xb6e   :  { %2948 = vmatpush.msra.mxu1 %v11363_v35  ;;  %3042 = vmatpush.msra.mxu3 %v11271_v46 }
 0xb6f   :  { %2989 = vmatpush.msra.mxu2 %v2806_v54  ;;  %2913 = vmatpush.msra.mxu0 %v11405_v22  ;;  %v3110_v22 = vld [vmem:[%s14386_s7] sm:$0xff] }
 0xb70   :  { %2950 = vmatpush.msra.mxu1 %v11380_v14  ;;  %3044 = vmatpush.msra.mxu3 %v11276_v50 }
 0xb71   :  { %2993 = vmatpush.msra.mxu2 %v2812_v3  ;;  %2916 = vmatpush.msra.mxu0 %v11415_v2  ;;  %v11574_v2 = vand.u32 4294901760, %v3110_v22 }
 0xb72   :  { %2952 = vmatpush.msra.mxu1 %v11390_v21  ;;  %2919 = vmatmul.f32.vlgmr.msra.gmra.mxu0 %v11440_v7 }
 0xb73   :  { %2997 = vmatpush.msra.mxu2 %v2818_v10  ;;  %3046 = vmatpush.msra.mxu3 %v11288_v5  ;;  %v3177_v24 = vsub.f32 %v3110_v22, %v11574_v2 }
 0xb74   :  { %2954 = vmatpush.msra.mxu1 %v11397_v1 }
 0xb75   :  { %2958 = vmatmul.f32.vlgmr.msra.gmra.mxu1 %v2761_v56  ;;  %3001 = vmatpush.msra.mxu2 %v2824_v8 }
 0xb76   :  { %3048 = vmatpush.msra.mxu3 %v11304_v51 }
 0xb77   :  { %3005 = vmatpush.msra.mxu2 %v2830_v43 }
 0xb78   :  { %3050 = vmatpush.msra.mxu3 %v11309_v19 }
 0xb79   :  { %3009 = vmatpush.msra.mxu2 %v14410_v62 }
 0xb7a   :  { %3052 = vmatpush.msra.mxu3 %v11311_v55 }
 0xb7b   :  { %3013 = vmatpush.msra.mxu2 %v14411_v18 }
 0xb7c   :  { %3054 = vmatpush.msra.mxu3 %v11331_v32 }
 0xb7d   :  { %3017 = vmatpush.msra.mxu2 %v2848_v20  ;;  %v9821_v20 = vld [vmem:[%s14392_s13 + $0x8] sm:$0xff] }
 0xb7e   :  { %3056 = vmatpush.msra.mxu3 %v11363_v35 }
 0xb7f   :  { %3021 = vmatpush.msra.mxu2 %v2854_v52  ;;  %v3115_v52 = vsel %vm59_vm0, %v9821_v20, 0 }
 0xb80   :  { %3058 = vmatpush.msra.mxu3 %v11380_v14  ;;  %v3112_v14 = vld [vmem:[%s14386_s7 + $0x10] sm:$0xff]  ;;  %v11584_v60 = vand.u32 4294901760, %v3115_v52 }
 0xb81   :  { %3025 = vmatpush.msra.mxu2 %v2860_v9  ;;  %v11564_v57 = vand.u32 4294901760, %v3112_v14 }
 0xb82   :  { %3060 = vmatpush.msra.mxu3 %v11390_v21  ;;  %3027 = vmatmul.f32.vlgmr.msra.gmra.mxu2 %v11424_v29  ;;  %v11562_v21 = vand.u32 4294901760, %v3113_v13  ;;  %v3138_v18 = vsub.f32 %v3115_v52, %v11584_v60 }
 0xb83   :  { %v3165_v9 = vsub.f32 %v3112_v14, %v11564_v57 }
 0xb84   :  { %3062 = vmatpush.msra.mxu3 %v11397_v1  ;;  %v11566_v1 = vand.u32 4294901760, %v3111_v42  ;;  %3130 = vmatpush.msrb.mxu0 %v11562_v21  ;;  %v3159_v4 = vsub.f32 %v3113_v13, %v11562_v21 }
 0xb85   :  { %3064 = vmatmul.f32.vlgmr.msra.gmra.mxu3 %v11424_v29  ;;  %v3109_v29 = vld [vmem:[%s14384_s5 + $0x18] sm:$0xff]  ;;  %v3166_v36 = vand.u32 4294901760, %v3165_v9 }
 0xb86   :  { %v3171_v7 = vsub.f32 %v3111_v42, %v11566_v1  ;;  %v11590_v56 = vand.u32 4294901760, %v3109_v29  ;;  %3132 = vmatpush.msrb.mxu0 %v11564_v57  ;;  %v3160_v6 = vand.u32 4294901760, %v3159_v4 }
 0xb88   :  { %v3172_v62 = vand.u32 4294901760, %v3171_v7  ;;  %3417 = vmatpush.msrb.mxu3 %v11590_v56  ;;  %3134 = vmatpush.msrb.mxu0 %v11566_v1 }
 0xb8a   :  { %3419 = vmatpush.msrb.mxu3 %v11592_v45  ;;  %3136 = vmatpush.msrb.mxu0 %v11574_v2 }
 0xb8c   :  { %3201 = vmatpush.msra.mxu0 %v3159_v4 }
 0xb8e   :  { %3204 = vmatpush.msra.mxu0 %v3165_v9 }
 0xb90   :  { %3207 = vmatpush.msra.mxu0 %v3171_v7 }
 0xb92   :  { %3210 = vmatpush.msra.mxu0 %v3177_v24 }
 0xbc9   :  { %v2609_v37 = vpop.f32.mrf.mxu1 }
 0xbcb   :  { %v2568_v16 = vpop.f32.mrf.mxu0 }
 0xbcc   :  { %v2610_v27 = vadd.f32 %v2609_v37, %v2568_v16  ;;  %v3178_v37 = vand.u32 4294901760, %v3177_v24  ;;  %v11597_v16 = vsub.f32 %v3109_v29, %v11590_v56 }
 0xbcd   :  { %v2639_v23 = vpop.f32.mrf.mxu2 }
 0xbce   :  { %v2640_v58 = vadd.f32 %v2639_v23, %v2610_v27  ;;  %v3161_v27 = vsub.f32 %v3159_v4, %v3160_v6  ;;  %v3167_v23 = vsub.f32 %v3165_v9, %v3166_v36  ;;  %3388 = vmatpush.msrb.mxu2 %v11597_v16 }
 0xbe2   :  { %v2666_v41 = vpop.f32.mrf.mxu3 }
 0xbe3   :  { %v2667_v31 = vadd.f32 %v2666_v41, %v2640_v58  ;;  %v3173_v58 = vsub.f32 %v3171_v7, %v3172_v62  ;;  %v3139_v41 = vand.u32 4294901760, %v3138_v18 }
 0xbe5   :  { %v2699_v34 = vpop.f32.mrf.mxu0 }
 0xbe6   :  { %v2700_v53 = vadd.f32 %v2699_v34, %v2667_v31  ;;  %v11602_v31 = vsub.f32 %v3108_v0, %v11592_v45  ;;  %v3162_v34 = vand.u32 4294901760, %v3161_v27 }
 0xbe8   :  { %3391 = vmatpush.msrb.mxu2 %v11602_v31  ;;  %3163 = vmatpush.msrb.mxu1 %v3162_v34 }
 0xbe9   :  { %v2724_v48 = vpop.f32.mrf.mxu1  ;;  %v2765_v46 = vpop.f32.mrf.mxu2 }
 0xbea   :  { %v2725_v15 = vadd.f32 %v2724_v48, %v2700_v53  ;;  %v3168_v53 = vand.u32 4294901760, %v3167_v23  ;;  %v3140_v48 = vsub.f32 %v3138_v18, %v3139_v41 }
 0xbec   :  { %v2766_v47 = vadd.f32 %v2765_v46, %v2725_v15  ;;  %v2866_v50 = vpop.f32.mrf.mxu3  ;;  %v3179_v15 = vsub.f32 %v3177_v24, %v3178_v37  ;;  %v3174_v46 = vand.u32 4294901760, %v3173_v58  ;;  %3169 = vmatpush.msrb.mxu1 %v3168_v53 }
 0xbee   :  { %v2867_v5 = vadd.f32 %v2866_v50, %v2766_v47  ;;  %v3141_v47 = vand.u32 4294901760, %v3140_v48  ;;  %v3180_v50 = vand.u32 4294901760, %v3179_v15  ;;  %3175 = vmatpush.msrb.mxu1 %v3174_v46 }
 0xbef   :  { %v2920_v38 = vpop.f32.mrf.mxu0 }
 0xbf0   :  { %v2921_v61 = vadd.f32 %v2920_v38, %v2867_v5  ;;  %3142 = vmatmul.f32.vlgmr.msrb.gmra.mxu0 %v3141_v47  ;;  %3181 = vmatpush.msrb.mxu1 %v3180_v50  ;;  %v3347_v5 = vand.u32 4294901760, %v11597_v16  ;;  %v3353_v38 = vand.u32 4294901760, %v11602_v31 }
 0xbf1   :  { %3259 = vmatpush.msrb.mxu0 %v3160_v6  ;;  %3183 = vmatmul.f32.vlgmr.msrb.gmra.mxu1 %v11584_v60 }
 0xbf2   :  { %v2959_v63 = vpop.f32.mrf.mxu1  ;;  %3230 = vmatpush.msra.mxu1 %v11562_v21 }
 0xbf3   :  { %v2960_v17 = vadd.f32 %v2959_v63, %v2921_v61  ;;  %3263 = vmatpush.msrb.mxu0 %v3166_v36  ;;  %v3348_v61 = vsub.f32 %v11597_v16, %v3347_v5 }
 0xbf4   :  { %3232 = vmatpush.msra.mxu1 %v11564_v57 }
 0xbf5   :  { %3267 = vmatpush.msrb.mxu0 %v3172_v62 }
 0xbf6   :  { %3234 = vmatpush.msra.mxu1 %v11566_v1 }
 0xbf7   :  { %3271 = vmatpush.msrb.mxu0 %v3178_v37 }
 0xbf8   :  { %3213 = vmatmul.f32.vlgmr.msra.gmra.mxu0 %v3138_v18  ;;  %3236 = vmatpush.msra.mxu1 %v11574_v2 }
 0xbf9   :  { %3317 = vmatpush.msra.mxu0 %v11590_v56  ;;  %3240 = vmatmul.f32.vlgmr.msra.gmra.mxu1 %v3139_v41 }
 0xbfa   :  { %3290 = vmatpush.msrb.mxu1 %v11562_v21 }
 0xbfb   :  { %3319 = vmatpush.msra.mxu0 %v11592_v45 }
 0xbfc   :  { %3292 = vmatpush.msrb.mxu1 %v11564_v57 }
 0xbfe   :  { %3294 = vmatpush.msrb.mxu1 %v11566_v1 }
 0xc00   :  { %3273 = vmatmul.f32.vlgmr.msrb.gmra.mxu0 %v11584_v60  ;;  %3296 = vmatpush.msrb.mxu1 %v11574_v2 }
 0xc01   :  { %3298 = vmatmul.f32.vlgmr.msrb.gmra.mxu1 %v11584_v60 }
 0xc05   :  { %v3028_v51 = vpop.f32.mrf.mxu2 }
 0xc06   :  { %v3029_v40 = vadd.f32 %v3028_v51, %v2960_v17  ;;  %v3354_v17 = vsub.f32 %v11602_v31, %v3353_v38 }
 0xc08   :  { %v3065_v19 = vpop.f32.mrf.mxu3 }
 0xc09   :  { %v3066_v55 = vadd.f32 %v3065_v19, %v3029_v40  ;;  %v3349_v40 = vand.u32 4294901760, %v3348_v61  ;;  %v3355_v19 = vand.u32 4294901760, %v3354_v17 }
 0xc0b   :  { %v3068_v59 = vadd.f32 %v10432_v12, %v3066_v55  ;;  %3350 = vmatpush.msra.mxu1 %v3349_v40  ;;  %v3107_v55 = vld [vmem:[%s14384_s5 + $0x8] sm:$0xff]  ;;  %v3527_v40 = vld [vmem:[%s14389_s10 + $0x10] sm:$0xff] }
 0xc0d   :  { %v3069_v54 = vmul.f32 %v3068_v59, %v10434_v33  ;;  %3356 = vmatpush.msra.mxu1 %v3355_v19  ;;  %v3320_v59 = vand.u32 4294901760, %v3107_v55 }
 0xc0f   :  { %9896 = vtanh.f32 %v3069_v54  ;;  %v3106_v54 = vld [vmem:[%s14384_s5] sm:$0xff]  ;;  %3421 = vmatpush.msrb.mxu3 %v3320_v59  ;;  %3321 = vmatpush.msra.mxu0 %v3320_v59 }
 0xc15   :  { %v9897_v30 = vpop.eup %9896 }
 0xc16   :  { %v3071_v3 = vmul.f32 %v9897_v30, %v10434_v33  ;;  %v3358_v30 = vsub.f32 %v3107_v55, %v3320_v59  ;;  %v3545_v55 = vand.u32 4294901760, %v3527_v40 }
 0xc18   :  { %v11538_v49 = vadd.f32 %v3071_v3, %v10438_v44  ;;  %v3322_v3 = vand.u32 4294901760, %v3106_v54  ;;  %3394 = vmatpush.msrb.mxu2 %v3358_v30 }
 0xc1a   :  { %3079 = vrot.lane.b32.xlu0 %v11538_v49, %s9961_s8  ;;  %3423 = vmatpush.msrb.mxu3 %v3322_v3 }
 0xc1b   :  { %3323 = vmatpush.msra.mxu0 %v3322_v3 }
 0xc1d   :  { %3446 = vmatpush.msrb.mxu0 %v3347_v5 }
 0xc1f   :  { %3450 = vmatpush.msrb.mxu0 %v3353_v38 }
 0xc22   :  { %3074 = vrot.lane.b32.xlu0 %v2518_v11, %s9962_s20  ;;  %v3364_v11 = vsub.f32 %v3106_v54, %v3322_v3  ;;  %v3579_v54 = vsub.f32 %v3527_v40, %v3545_v55 }
 0xc24   :  { %3397 = vmatpush.msrb.mxu2 %v3364_v11 }
 0xc6d   :  { %v3143_v2 = vpop.f32.mrf.mxu0 }
 0xc6e   :  { %v3184_v20 = vpop.f32.mrf.mxu1 }
 0xc6f   :  { %v3185_v4 = vadd.f32 %v3184_v20, %v3143_v2 }
 0xc75   :  { %v3214_v29 = vpop.f32.mrf.mxu0 }
 0xc76   :  { %v3241_v52 = vpop.f32.mrf.mxu1  ;;  %v3215_v9 = vadd.f32 %v3214_v29, %v3185_v4 }
 0xc78   :  { %v3242_v60 = vadd.f32 %v3241_v52, %v3215_v9 }
 0xc7d   :  { %v3274_v0 = vpop.f32.mrf.mxu0 }
 0xc7e   :  { %v3299_v7 = vpop.f32.mrf.mxu1  ;;  %v3275_v24 = vadd.f32 %v3274_v0, %v3242_v60 }
 0xc8c   :  { %v3080_v32 = vpop.permute.xlu0 %3079 }
 0xc8d   :  { %v3082_v28 = vmul.f32 %v3080_v32, %v11538_v49 }
 0xc8f   :  { %3084 = vrot.lane.b32.xlu1 %v3082_v28, %s9962_s20  ;;  %v3365_v28 = vand.u32 4294901760, %v3364_v11 }
 0xc94   :  { %v3075_v10 = vpop.permute.xlu0 %3074 }
 0xc95   :  { %v3077_v8 = vmul.f32 %v3075_v10, %v11538_v49 }
 0xd01   :  { %v3085_v25 = vpop.permute.xlu1 %3084 }
 0xd02   :  { %v11549_v35 = vadd.f32 %v3085_v25, %v3077_v8  ;;  %v3366_v8 = vsub.f32 %v3364_v11, %v3365_v28 }
 0xd04   :  { %9898 = vtanh.f32 %v11549_v35  ;;  %v3367_v25 = vand.u32 4294901760, %v3366_v8 }
 0xd0a   :  { %v9899_v43 = vpop.eup %9898 }
 0xd0b   :  { %3090 = vrot.lane.b32.xlu1 %v9899_v43, %s9961_s8  ;;  %v9822_v43 = vld [vmem:[%s14393_s14 + $0x8] sm:$0xff] }
 0xd0c   :  { %3495 = vrot.lane.b32.xlu0 %v9822_v43, %s9962_s20  ;;  %v3526_v43 = vld [vmem:[%s14389_s10 + $0x8] sm:$0xff] }
 0xd7d   :  { %v3091_v63 = vpop.permute.xlu1 %3090 }
 0xd7e   :  { %v3093_v51 = vmul.f32 %v3091_v63, %v11538_v49  ;;  %v3359_v49 = vand.u32 4294901760, %v3358_v30  ;;  %v3496_v5 = vpop.permute.xlu0 %3495 }
 0xd80   :  { %3095 = vrot.lane.b32.xlu2 %v3093_v51, %s9962_s20  ;;  %v3360_v32 = vsub.f32 %v3358_v30, %v3359_v49  ;;  %3454 = vmatpush.msrb.mxu0 %v3359_v49 }
 0xd82   :  { %v3361_v10 = vand.u32 4294901760, %v3360_v32  ;;  %3458 = vmatpush.msrb.mxu0 %v3365_v28 }
 0xd84   :  { %3362 = vmatpush.msra.mxu1 %v3361_v10 }
 0xd86   :  { %3368 = vmatpush.msra.mxu1 %v3367_v25 }
 0xd88   :  { %3477 = vmatpush.msrb.mxu1 %v11590_v56  ;;  %v3300_v56 = vadd.f32 %v3299_v7, %v3275_v24 }
 0xd8a   :  { %3479 = vmatpush.msrb.mxu1 %v11592_v45 }
 0xd8c   :  { %3481 = vmatpush.msrb.mxu1 %v3320_v59 }
 0xd8e   :  { %3483 = vmatpush.msrb.mxu1 %v3322_v3  ;;  %v3580_v3 = vand.u32 4294901760, %v3579_v54 }
 0xd90   :  { %v3581_v11 = vsub.f32 %v3579_v54, %v3580_v3 }
 0xd92   :  { %v3582_v28 = vand.u32 4294901760, %v3581_v11 }
 0xdda   :  { %v3096_v13 = vpop.permute.xlu2 %3095 }
 0xddb   :  { %3098 = vst.msk [vmem:[%s14392_s13] sm:$0xff] %vm59_vm0, %v3096_v13  ;;  %v3302_v14 = vsel %vm59_vm0, %v3096_v13, 0  ;;  %v3547_v13 = vand.u32 4294901760, %v3526_v43 }
 0xddc   :  { %v3324_v42 = vand.u32 4294901760, %v3302_v14 }
 0xdde   :  { %v3325_v21 = vsub.f32 %v3302_v14, %v3324_v42  ;;  %3370 = vmatmul.f32.vlgmr.msra.gmra.mxu1 %v3324_v42  ;;  %v3525_v14 = vld [vmem:[%s14389_s10] sm:$0xff] }
 0xde0   :  { %v3326_v57 = vand.u32 4294901760, %v3325_v21  ;;  %3400 = vmatmul.f32.vlgmr.msrb.gmra.mxu2 %v3325_v21 }
 0xde2   :  { %v3327_v1 = vsub.f32 %v3325_v21, %v3326_v57  ;;  %3427 = vmatmul.f32.vlgmr.msrb.gmra.mxu3 %v3326_v57  ;;  %v3549_v21 = vand.u32 4294901760, %v3525_v14 }
 0xde4   :  { %v3328_v22 = vand.u32 4294901760, %v3327_v1  ;;  %v3591_v1 = vsub.f32 %v3525_v14, %v3549_v21 }
 0xde6   :  { %3329 = vmatmul.f32.vlgmr.msra.gmra.mxu0 %v3328_v22  ;;  %3485 = vmatmul.f32.vlgmr.msrb.gmra.mxu1 %v3324_v42  ;;  %v3592_v20 = vand.u32 4294901760, %v3591_v1 }
 0xde8   :  { %v3593_v52 = vsub.f32 %v3591_v1, %v3592_v20 }
 0xdea   :  { %v3594_v29 = vand.u32 4294901760, %v3593_v52 }
 0xdee   :  { %3460 = vmatmul.f32.vlgmr.msrb.gmra.mxu0 %v3324_v42  ;;  %v3585_v42 = vsub.f32 %v3526_v43, %v3547_v13 }
 0xdf0   :  { %v3586_v57 = vand.u32 4294901760, %v3585_v42 }
 0xdf2   :  { %v3587_v22 = vsub.f32 %v3585_v42, %v3586_v57 }
 0xdf4   :  { %v3588_v2 = vand.u32 4294901760, %v3587_v22 }
 0xe5b   :  { %v3371_v45 = vpop.f32.mrf.mxu1 }
 0xe63   :  { %v3330_v6 = vpop.f32.mrf.mxu0  ;;  %v3401_v18 = vpop.f32.mrf.mxu2 }
 0xe64   :  { %v3331_v36 = vadd.f32 %v3330_v6, %v3300_v56  ;;  %v3486_v41 = vpop.f32.mrf.mxu1 }
 0xe65   :  { %v3428_v16 = vpop.f32.mrf.mxu3 }
 0xe66   :  { %v3372_v62 = vadd.f32 %v3371_v45, %v3331_v36 }
 0xe68   :  { %v3402_v37 = vadd.f32 %v3401_v18, %v3372_v62 }
 0xe6a   :  { %v3429_v27 = vadd.f32 %v3428_v16, %v3402_v37 }
 0xe6b   :  { %v3461_v23 = vpop.f32.mrf.mxu0 }
 0xe6c   :  { %v3462_v58 = vadd.f32 %v3461_v23, %v3429_v27 }
 0xe6e   :  { %v3487_v31 = vadd.f32 %v3486_v41, %v3462_v58 }
 0xe70   :  { %v3489_v34 = vadd.f32 %v10559_v26, %v3487_v31 }
 0xe72   :  { %v3490_v53 = vmul.f32 %v3489_v34, %v10434_v33 }
 0xe74   :  { %9900 = vtanh.f32 %v3490_v53 }
 0xe7a   :  { %v9901_v48 = vpop.eup %9900 }
 0xe7b   :  { %v3492_v15 = vmul.f32 %v9901_v48, %v10434_v33 }
 0xe7d   :  { %v3493_v46 = vadd.f32 %v3492_v15, %v10438_v44 }
 0xe7f   :  { %3500 = vrot.lane.b32.xlu2 %v3493_v46, %s9961_s8  ;;  %v3498_v38 = vmul.f32 %v3496_v5, %v3493_v46 }
 0xed9   :  { %v3501_v47 = vpop.permute.xlu2 %3500 }
 0xeda   :  { %v3503_v50 = vmul.f32 %v3501_v47, %v3493_v46 }
 0xedc   :  { %3505 = vrot.lane.b32.xlu1 %v3503_v50, %s9962_s20 }
 0xee4   :  { %3100 = vrot.lane.b32.xlu1 %v11549_v35, %s9963_s9  ;;  %v3528_v35 = vld [vmem:[%s14389_s10 + $0x18] sm:$0xff] }
 0xee5   :  { %v3543_v19 = vand.u32 4294901760, %v3528_v35 }
 0xee7   :  { %v3573_v59 = vsub.f32 %v3528_v35, %v3543_v19  ;;  %3644 = vmatpush.msra.mxu1 %v3543_v19  ;;  %3544 = vmatpush.msra.mxu2 %v3543_v19 }
 0xee9   :  { %v3574_v30 = vand.u32 4294901760, %v3573_v59  ;;  %3615 = vmatpush.msra.mxu0 %v3573_v59  ;;  %3646 = vmatpush.msra.mxu1 %v3545_v55 }
 0xeea   :  { %3546 = vmatpush.msra.mxu2 %v3545_v55 }
 0xeeb   :  { %v3575_v49 = vsub.f32 %v3573_v59, %v3574_v30  ;;  %3618 = vmatpush.msra.mxu0 %v3579_v54  ;;  %3648 = vmatpush.msra.mxu1 %v3547_v13 }
 0xeec   :  { %3548 = vmatpush.msra.mxu2 %v3547_v13 }
 0xeed   :  { %v3576_v32 = vand.u32 4294901760, %v3575_v49  ;;  %3621 = vmatpush.msra.mxu0 %v3585_v42  ;;  %3650 = vmatpush.msra.mxu1 %v3549_v21 }
 0xeee   :  { %3550 = vmatpush.msra.mxu2 %v3549_v21 }
 0xeef   :  { %3577 = vmatpush.msra.mxu3 %v3576_v32  ;;  %3624 = vmatpush.msra.mxu0 %v3591_v1 }
 0xef0   :  { %3673 = vmatpush.msrb.mxu2 %v3574_v30 }
 0xef1   :  { %3583 = vmatpush.msra.mxu3 %v3582_v28 }
 0xef2   :  { %3677 = vmatpush.msrb.mxu2 %v3580_v3 }
 0xef3   :  { %3589 = vmatpush.msra.mxu3 %v3588_v2 }
 0xef4   :  { %3681 = vmatpush.msrb.mxu2 %v3586_v57 }
 0xef5   :  { %3595 = vmatpush.msra.mxu3 %v3594_v29 }
 0xef6   :  { %3685 = vmatpush.msrb.mxu2 %v3592_v20 }
 0xef7   :  { %3704 = vmatpush.msrb.mxu3 %v3543_v19 }
 0xef9   :  { %3706 = vmatpush.msrb.mxu3 %v3545_v55 }
 0xefb   :  { %3708 = vmatpush.msrb.mxu3 %v3547_v13 }
 0xefd   :  { %3710 = vmatpush.msrb.mxu3 %v3549_v21 }
 0xf4e   :  { %v3506_v61 = vpop.permute.xlu1 %3505 }
 0xf4f   :  { %v3508_v63 = vadd.f32 %v3506_v61, %v3498_v38 }
 0xf51   :  { %9902 = vtanh.f32 %v3508_v63 }
 0xf56   :  { %v3101_v17 = vpop.permute.xlu1 %3100 }
 0xf57   :  { %v9903_v51 = vpop.eup %9902  ;;  %3103 = vst.msk [vmem:[%s14393_s14] sm:$0xff] %vm59_vm0, %v3101_v17 }
 0xf58   :  { %3511 = vrot.lane.b32.xlu2 %v9903_v51, %s9961_s8 }
 0xf60   :  { %3521 = vrot.lane.b32.xlu2 %v3508_v63, %s9963_s9 }
 0xfb2   :  { %v3512_v10 = vpop.permute.xlu2 %3511 }
 0xfb3   :  { %v3514_v8 = vmul.f32 %v3512_v10, %v3493_v46 }
 0xfb5   :  { %3516 = vrot.lane.b32.xlu0 %v3514_v8, %s9962_s20 }
 0xfba   :  { %v3522_v25 = vpop.permute.xlu2 %3521 }
 0xfbb   :  { %9824 = vst.msk [vmem:[%s14393_s14 + $0x8] sm:$0xff] %vm59_vm0, %v3522_v25 }
0x1027   :  { %v3517_v4 = vpop.permute.xlu0 %3516 }
0x1028   :  { %9823 = vst.msk [vmem:[%s14392_s13 + $0x8] sm:$0xff] %vm59_vm0, %v3517_v4  ;;  %v3529_v9 = vsel %vm59_vm0, %v3517_v4, 0 }
0x1029   :  { %v3551_v7 = vand.u32 4294901760, %v3529_v9 }
0x102b   :  { %v3552_v60 = vsub.f32 %v3529_v9, %v3551_v7  ;;  %3597 = vmatmul.f32.vlgmr.msra.gmra.mxu3 %v3551_v7 }
0x102d   :  { %v3553_v0 = vand.u32 4294901760, %v3552_v60  ;;  %3627 = vmatmul.f32.vlgmr.msra.gmra.mxu0 %v3552_v60 }
0x102f   :  { %v3554_v24 = vsub.f32 %v3552_v60, %v3553_v0  ;;  %3654 = vmatmul.f32.vlgmr.msra.gmra.mxu1 %v3553_v0 }
0x1031   :  { %v3555_v56 = vand.u32 4294901760, %v3554_v24 }
0x1033   :  { %3556 = vmatmul.f32.vlgmr.msra.gmra.mxu2 %v3555_v56  ;;  %3712 = vmatmul.f32.vlgmr.msrb.gmra.mxu3 %v3551_v7 }
0x103b   :  { %3687 = vmatmul.f32.vlgmr.msrb.gmra.mxu2 %v3551_v7 }
0x10aa   :  { %v3628_v18 = vpop.f32.mrf.mxu0 }
0x10ac   :  { %v3655_v16 = vpop.f32.mrf.mxu1 }
0x10ae   :  { %v3598_v45 = vpop.f32.mrf.mxu3 }
0x10b6   :  { %v3557_v6 = vpop.f32.mrf.mxu2  ;;  %v3713_v41 = vpop.f32.mrf.mxu3 }
0x10b7   :  { %v3558_v36 = vadd.f32 %v10600_v39, %v3557_v6 }
0x10b9   :  { %v3599_v62 = vadd.f32 %v3598_v45, %v3558_v36 }
0x10bb   :  { %v3629_v37 = vadd.f32 %v3628_v18, %v3599_v62 }
0x10bd   :  { %v3656_v27 = vadd.f32 %v3655_v16, %v3629_v37 }
0x10be   :  { %v3688_v23 = vpop.f32.mrf.mxu2 }
0x10bf   :  { %v3689_v58 = vadd.f32 %v3688_v23, %v3656_v27  ;;  %3722 = sbr.rel (%p9827_p4) target bundleno = 4294 (0x10c6), region = 73 }
0x10c1   :  { %v3714_v31 = vadd.f32 %v3713_v41, %v3689_v58 }
0x10c3   :  { %9825 = vst [vmem:[%s14391_s12 + $0x10] sm:$0xff] %v3714_v31 }
0x10c4   :  { %v9828_v34 = vld [vmem:[%s14380_s1 + $0x10] sm:$0xff] }
0x10c5   :  { %3725 = vst [vmem:[#allocation2] sm:$0xff] %v9828_v34 }
0x10c6 PF:  { %p9829_p5 = scmp.ne.s32.totalorder %s9826_s2, 0 }
0x10c8   :  { %3729 = sbr.rel (%p9829_p5) target bundleno = 4302 (0x10ce), region = 77 }
0x10cd   :  { %3730 = vst [vmem:[#allocation2] sm:$0xff] %v3714_v31 }
0x10ce PF:  { %v3753_v53 = vld [vmem:[%s14385_s6 + $0x18] sm:$0xff]  ;;  %v3752_v48 = vld [vmem:[%s14385_s6 + $0x10] sm:$0xff]  ;;  %v3751_v15 = vld [vmem:[%s14385_s6 + $0x8] sm:$0xff]  ;;  %s9835_s0 = sld [smem:[#allocation3 + $0x3]] }
0x10cf   :  { %v11696_v46 = vand.u32 4294901760, %v3753_v53  ;;  %v11698_v47 = vand.u32 4294901760, %v3752_v48  ;;  %v11700_v50 = vand.u32 4294901760, %v3751_v15  ;;  %v3750_v5 = vld [vmem:[%s14385_s6] sm:$0xff]  ;;  %v3749_v38 = vld [vmem:[%s14383_s4 + $0x78] sm:$0xff]  ;;  %v3748_v61 = vld [vmem:[%s14383_s4 + $0x70] sm:$0xff] }
0x10d0   :  { %v11711_v63 = vand.u32 4294901760, %v3750_v5  ;;  %v11713_v17 = vand.u32 4294901760, %v3749_v38  ;;  %v11715_v51 = vand.u32 4294901760, %v3748_v61  ;;  %v3747_v35 = vld [vmem:[%s14383_s4 + $0x68] sm:$0xff]  ;;  %v3746_v40 = vld [vmem:[%s14383_s4 + $0x60] sm:$0xff]  ;;  %v3745_v30 = vld [vmem:[%s14383_s4 + $0x58] sm:$0xff] }
0x10d1   :  { %v11724_v19 = vsub.f32 %v3753_v53, %v11696_v46  ;;  %v11727_v55 = vsub.f32 %v3752_v48, %v11698_v47  ;;  %3870 = vmatpush.msra.mxu3 %v11696_v46  ;;  %v11731_v59 = vsub.f32 %v3751_v15, %v11700_v50  ;;  %3770 = vmatpush.msrb.mxu0 %v11696_v46  ;;  %v11734_v54 = vand.u32 4294901760, %v3747_v35  ;;  %v3744_v4 = vld [vmem:[%s14383_s4 + $0x50] sm:$0xff]  ;;  %v3743_v9 = vld [vmem:[%s14383_s4 + $0x48] sm:$0xff]  ;;  %v3742_v56 = vld [vmem:[%s14383_s4 + $0x40] sm:$0xff] }
0x10d2   :  { %v11740_v3 = vsub.f32 %v3750_v5, %v11711_v63  ;;  %v11743_v49 = vsub.f32 %v3749_v38, %v11713_v17  ;;  %v11746_v11 = vsub.f32 %v3748_v61, %v11715_v51  ;;  %v11748_v32 = vand.u32 4294901760, %v3746_v40  ;;  %v3732_v45 = vld [vmem:[%s14392_s13] sm:$0xff]  ;;  %v3741_v58 = vld [vmem:[%s14383_s4 + $0x38] sm:$0xff]  ;;  %v3740_v41 = vld [vmem:[%s14383_s4 + $0x30] sm:$0xff] }
0x10d3   :  { %3841 = vmatpush.msra.mxu2 %v11724_v19  ;;  %3872 = vmatpush.msra.mxu3 %v11698_v47  ;;  %v3800_v28 = vand.u32 4294901760, %v11724_v19  ;;  %v3806_v10 = vand.u32 4294901760, %v11727_v55  ;;  %v11755_v8 = vsub.f32 %v3747_v35, %v11734_v54  ;;  %v3812_v25 = vand.u32 4294901760, %v11731_v59  ;;  %v3739_v31 = vld [vmem:[%s14383_s4 + $0x28] sm:$0xff] }
0x10d4   :  { %v3985_v43 = vand.u32 4294901760, %v11743_v49  ;;  %3772 = vmatpush.msrb.mxu0 %v11698_v47  ;;  %v3991_v13 = vand.u32 4294901760, %v11746_v11  ;;  %v11761_v14 = vand.u32 4294901760, %v3745_v30  ;;  %v11764_v42 = vsub.f32 %v3746_v40, %v11748_v32  ;;  %v3738_v40 = vld [vmem:[%s14383_s4 + $0x20] sm:$0xff]  ;;  %p9836_p6 = scmp.eq.s32.totalorder %s9835_s0, 0 }
0x10d5   :  { %3844 = vmatpush.msra.mxu2 %v11727_v55  ;;  %3874 = vmatpush.msra.mxu3 %v11700_v50  ;;  %v3801_v21 = vsub.f32 %v11724_v19, %v3800_v28  ;;  %v3807_v57 = vsub.f32 %v11727_v55, %v3806_v10  ;;  %v3997_v1 = vand.u32 4294901760, %v11755_v8  ;;  %v3813_v22 = vsub.f32 %v11731_v59, %v3812_v25 }
0x10d6   :  { %v3986_v20 = vsub.f32 %v11743_v49, %v3985_v43  ;;  %v3992_v2 = vsub.f32 %v11746_v11, %v3991_v13  ;;  %3774 = vmatpush.msrb.mxu0 %v11700_v50  ;;  %v4003_v52 = vand.u32 4294901760, %v11764_v42  ;;  %v3818_v29 = vand.u32 4294901760, %v11740_v3 }
0x10d7   :  { %3847 = vmatpush.msra.mxu2 %v11731_v59  ;;  %3876 = vmatpush.msra.mxu3 %v11711_v63  ;;  %v3802_v7 = vand.u32 4294901760, %v3801_v21  ;;  %v3808_v60 = vand.u32 4294901760, %v3807_v57  ;;  %v3998_v0 = vsub.f32 %v11755_v8, %v3997_v1  ;;  %v3814_v24 = vand.u32 4294901760, %v3813_v22 }
0x10d8   :  { %v3987_v6 = vand.u32 4294901760, %v3986_v20  ;;  %v3993_v36 = vand.u32 4294901760, %v3992_v2  ;;  %3776 = vmatpush.msrb.mxu0 %v11711_v63  ;;  %v4004_v62 = vsub.f32 %v11764_v42, %v4003_v52  ;;  %v3819_v18 = vsub.f32 %v11740_v3, %v3818_v29 }
0x10d9   :  { %3850 = vmatpush.msra.mxu2 %v11740_v3  ;;  %3803 = vmatpush.msrb.mxu1 %v3802_v7  ;;  %v3999_v37 = vand.u32 4294901760, %v3998_v0  ;;  %v11810_v16 = vand.u32 4294901760, %v3744_v4  ;;  %v11813_v27 = vsub.f32 %v3745_v30, %v11761_v14  ;;  %v11815_v23 = vand.u32 4294901760, %v3743_v9 }
0x10da   :  { %3988 = vmatpush.msrb.mxu3 %v3987_v6  ;;  %v4005_v34 = vand.u32 4294901760, %v4004_v62  ;;  %v3820_v53 = vand.u32 4294901760, %v3819_v18  ;;  %v11827_v48 = vand.u32 4294901760, %v3742_v56  ;;  %v3755_v15 = vsel %vm59_vm0, %v3732_v45, 0  ;;  %3899 = vmatpush.msra.mxu0 %v3800_v28 }
0x10db   :  { %3943 = vmatpush.msrb.mxu2 %v11713_v17  ;;  %3809 = vmatpush.msrb.mxu1 %v3808_v60  ;;  %v4009_v5 = vand.u32 4294901760, %v11813_v27  ;;  %v11832_v38 = vsub.f32 %v3744_v4, %v11810_v16  ;;  %v11835_v61 = vsub.f32 %v3743_v9, %v11815_v23  ;;  %v11837_v35 = vand.u32 4294901760, %v3755_v15 }
0x10dc   :  { %3994 = vmatpush.msrb.mxu3 %v3993_v36  ;;  %v11843_v19 = vand.u32 4294901760, %v3741_v58  ;;  %v11846_v30 = vsub.f32 %v3742_v56, %v11827_v48  ;;  %v11848_v28 = vand.u32 4294901760, %v3740_v41  ;;  %v11850_v21 = vand.u32 4294901760, %v3739_v31  ;;  %3903 = vmatpush.msra.mxu0 %v3806_v10  ;;  %v3737_v10 = vld [vmem:[%s14383_s4 + $0x18] sm:$0xff] }
0x10dd   :  { %3945 = vmatpush.msrb.mxu2 %v11715_v51  ;;  %3815 = vmatpush.msrb.mxu1 %v3814_v24  ;;  %v4010_v57 = vsub.f32 %v11813_v27, %v4009_v5  ;;  %v4015_v22 = vand.u32 4294901760, %v11832_v38  ;;  %v4021_v20 = vand.u32 4294901760, %v11835_v61  ;;  %v11860_v2 = vsub.f32 %v3755_v15, %v11837_v35 }
0x10de   :  { %4000 = vmatpush.msrb.mxu3 %v3999_v37  ;;  %v4027_v4 = vand.u32 4294901760, %v11846_v30  ;;  %v11865_v9 = vsub.f32 %v3741_v58, %v11843_v19  ;;  %v11868_v7 = vsub.f32 %v3740_v41, %v11848_v28  ;;  %v11870_v55 = vand.u32 4294901760, %v3738_v40  ;;  %3907 = vmatpush.msra.mxu0 %v3812_v25  ;;  %v3736_v25 = vld [vmem:[%s14383_s4 + $0x10] sm:$0xff]  ;;  %v3735_v58 = vld [vmem:[%s14383_s4 + $0x8] sm:$0xff] }
0x10df   :  { %3947 = vmatpush.msrb.mxu2 %v11734_v54  ;;  %3821 = vmatpush.msrb.mxu1 %v3820_v53  ;;  %v4011_v60 = vand.u32 4294901760, %v4010_v57  ;;  %v4016_v0 = vsub.f32 %v11832_v38, %v4015_v22  ;;  %v4022_v24 = vsub.f32 %v11835_v61, %v4021_v20  ;;  %v3779_v56 = vand.u32 4294901760, %v11860_v2 }
0x10e0   :  { %4006 = vmatpush.msrb.mxu3 %v4005_v34  ;;  %v4028_v45 = vsub.f32 %v11846_v30, %v4027_v4  ;;  %v4033_v6 = vand.u32 4294901760, %v11865_v9  ;;  %v4039_v36 = vand.u32 4294901760, %v11868_v7  ;;  %v11891_v59 = vsub.f32 %v3739_v31, %v11850_v21  ;;  %3911 = vmatpush.msra.mxu0 %v3818_v29  ;;  %v3734_v29 = vld [vmem:[%s14383_s4] sm:$0xff] }
0x10e1   :  { %3949 = vmatpush.msrb.mxu2 %v11748_v32  ;;  %3930 = vmatpush.msra.mxu1 %v11696_v46  ;;  %v4017_v62 = vand.u32 4294901760, %v4016_v0  ;;  %v3780_v18 = vsub.f32 %v11860_v2, %v3779_v56  ;;  %v11902_v37 = vand.u32 4294901760, %v3737_v10  ;;  %v4023_v41 = vand.u32 4294901760, %v4022_v24 }
0x10e2   :  { %4012 = vmatpush.msrb.mxu3 %v4011_v60  ;;  %v4034_v46 = vsub.f32 %v11865_v9, %v4033_v6  ;;  %v4045_v3 = vand.u32 4294901760, %v11891_v59  ;;  %v11917_v34 = vsub.f32 %v3738_v40, %v11870_v55  ;;  %v11919_v53 = vand.u32 4294901760, %v3736_v25  ;;  %3853 = vmatmul.f32.vlgmr.msra.gmra.mxu2 %v11860_v2 }
0x10e3   :  { %3951 = vmatpush.msrb.mxu2 %v11761_v14  ;;  %3932 = vmatpush.msra.mxu1 %v11698_v47  ;;  %v3781_v31 = vand.u32 4294901760, %v3780_v18  ;;  %v11922_v15 = vsub.f32 %v3737_v10, %v11902_v37  ;;  %v4029_v57 = vand.u32 4294901760, %v4028_v45  ;;  %v4040_v60 = vsub.f32 %v11868_v7, %v4039_v36 }
0x10e4   :  { %4018 = vmatpush.msrb.mxu3 %v4017_v62  ;;  %v11929_v47 = vand.u32 4294901760, %v3735_v58  ;;  %v14399_v40 = vand.u32 4294901760, %v11917_v34  ;;  %v11934_v10 = vsub.f32 %v3736_v25, %v11919_v53  ;;  %v11936_v0 = vand.u32 4294901760, %v3734_v29  ;;  %v3731_v25 = vld [vmem:[#allocation2] sm:$0xff]  ;;  %3823 = vmatmul.f32.vlgmr.msrb.gmra.mxu1 %v11837_v35 }
0x10e5   :  { %3953 = vmatpush.msrb.mxu2 %v11810_v16  ;;  %3934 = vmatpush.msra.mxu1 %v11700_v50  ;;  %v4035_v24 = vand.u32 4294901760, %v4034_v46  ;;  %v4046_v45 = vsub.f32 %v11891_v59, %v4045_v3  ;;  %v14398_v62 = vand.u32 4294901760, %v11922_v15  ;;  %v4041_v18 = vand.u32 4294901760, %v4040_v60 }
0x10e6   :  { %3782 = vmatmul.f32.vlgmr.msrb.gmra.mxu0 %v3781_v31  ;;  %4024 = vmatpush.msrb.mxu3 %v4023_v41  ;;  %v11944_v50 = vsub.f32 %v3735_v58, %v11929_v47  ;;  %v4052_v41 = vsub.f32 %v11917_v34, %v14399_v40  ;;  %v4063_v46 = vand.u32 4294901760, %v11934_v10  ;;  %v11954_v31 = vsub.f32 %v3734_v29, %v11936_v0 }
0x10e7   :  { %3955 = vmatpush.msrb.mxu2 %v11815_v23  ;;  %4086 = vmatpush.msrb.mxu0 %v11743_v49  ;;  %v4058_v58 = vsub.f32 %v11922_v15, %v14398_v62  ;;  %v11963_v60 = vand.u32 4294901760, %v3731_v25 }
0x10e8   :  { %3936 = vmatpush.msra.mxu1 %v11711_v63  ;;  %4030 = vmatpush.msrb.mxu3 %v4029_v57  ;;  %v4047_v63 = vand.u32 4294901760, %v4046_v45  ;;  %v4069_v57 = vand.u32 4294901760, %v11944_v50  ;;  %v4053_v29 = vand.u32 4294901760, %v4052_v41  ;;  %v4075_v45 = vand.u32 4294901760, %v11954_v31 }
0x10e9   :  { %3957 = vmatpush.msrb.mxu2 %v11827_v48  ;;  %4089 = vmatpush.msrb.mxu0 %v11746_v11  ;;  %v4059_v62 = vand.u32 4294901760, %v4058_v58 }
0x10ea   :  { %4036 = vmatpush.msrb.mxu3 %v4035_v24  ;;  %4139 = vmatpush.msrb.mxu1 %v11713_v17  ;;  %v4064_v24 = vsub.f32 %v11934_v10, %v4063_v46  ;;  %v4070_v40 = vsub.f32 %v11944_v50, %v4069_v57 }
0x10eb   :  { %3959 = vmatpush.msrb.mxu2 %v11843_v19  ;;  %4092 = vmatpush.msrb.mxu0 %v11755_v8 }
0x10ec   :  { %4042 = vmatpush.msrb.mxu3 %v4041_v18  ;;  %4141 = vmatpush.msrb.mxu1 %v11715_v51  ;;  %v11979_v18 = vsub.f32 %v3731_v25, %v11963_v60  ;;  %v4065_v41 = vand.u32 4294901760, %v4064_v24  ;;  %v4071_v25 = vand.u32 4294901760, %v4070_v40 }
0x10ed   :  { %3961 = vmatpush.msrb.mxu2 %v11848_v28  ;;  %4095 = vmatpush.msrb.mxu0 %v11764_v42 }
0x10ee   :  { %4048 = vmatpush.msrb.mxu3 %v4047_v63  ;;  %4143 = vmatpush.msrb.mxu1 %v11734_v54  ;;  %v4076_v63 = vsub.f32 %v11954_v31, %v4075_v45  ;;  %v3976_v58 = vand.u32 4294901760, %v11979_v18 }
0x10ef   :  { %3963 = vmatpush.msrb.mxu2 %v11850_v21  ;;  %4098 = vmatpush.msrb.mxu0 %v11813_v27 }
0x10f0   :  { %4054 = vmatpush.msrb.mxu3 %v4053_v29  ;;  %4145 = vmatpush.msrb.mxu1 %v11748_v32  ;;  %v4077_v29 = vand.u32 4294901760, %v4076_v63  ;;  %v4323_v63 = vld [vmem:[%s14384_s5 + $0x10] sm:$0xff] }
0x10f1   :  { %3965 = vmatpush.msrb.mxu2 %v11870_v55  ;;  %4101 = vmatpush.msrb.mxu0 %v11832_v38 }
0x10f2   :  { %4060 = vmatpush.msrb.mxu3 %v4059_v62  ;;  %4147 = vmatpush.msrb.mxu1 %v11761_v14  ;;  %v3977_v62 = vsub.f32 %v11979_v18, %v3976_v58 }
0x10f3   :  { %3967 = vmatpush.msrb.mxu2 %v11902_v37  ;;  %4104 = vmatpush.msrb.mxu0 %v11835_v61 }
0x10f4   :  { %4066 = vmatpush.msrb.mxu3 %v4065_v41  ;;  %4149 = vmatpush.msrb.mxu1 %v11810_v16  ;;  %v3978_v40 = vand.u32 4294901760, %v3977_v62 }
0x10f5   :  { %3969 = vmatpush.msrb.mxu2 %v11919_v53  ;;  %4107 = vmatpush.msrb.mxu0 %v11846_v30 }
0x10f6   :  { %4072 = vmatpush.msrb.mxu3 %v4071_v25  ;;  %4151 = vmatpush.msrb.mxu1 %v11815_v23 }
0x10f7   :  { %3971 = vmatpush.msrb.mxu2 %v11929_v47  ;;  %3880 = vmatmul.f32.vlgmr.msra.gmra.mxu3 %v3779_v56 }
0x10f8   :  { %4078 = vmatpush.msrb.mxu3 %v4077_v29  ;;  %4110 = vmatpush.msrb.mxu0 %v11865_v9  ;;  %v12131_v29 = vand.u32 4294901760, %v4323_v63 }
0x10f9   :  { %3973 = vmatpush.msrb.mxu2 %v11936_v0  ;;  %4153 = vmatpush.msrb.mxu1 %v11827_v48 }
0x10fa   :  { %4247 = vmatpush.msra.mxu3 %v11713_v17  ;;  %4113 = vmatpush.msrb.mxu0 %v11868_v7  ;;  %v14412_v17 = vand.u32 4294901760, %v11917_v34  ;;  %v3733_v7 = vld [vmem:[%s14393_s14] sm:$0xff] }
0x10fb   :  { %4180 = vmatpush.msra.mxu2 %v3985_v43  ;;  %4155 = vmatpush.msrb.mxu1 %v11843_v19 }
0x10fc   :  { %4249 = vmatpush.msra.mxu3 %v11715_v51  ;;  %4116 = vmatpush.msrb.mxu0 %v11891_v59  ;;  %v14413_v51 = vand.u32 4294901760, %v11922_v15 }
0x10fd   :  { %4184 = vmatpush.msra.mxu2 %v3991_v13  ;;  %4157 = vmatpush.msrb.mxu1 %v11848_v28 }
0x10fe   :  { %3979 = vmatmul.f32.vlgmr.msrb.gmra.mxu2 %v3978_v40  ;;  %4251 = vmatpush.msra.mxu3 %v11734_v54 }
0x10ff   :  { %4188 = vmatpush.msra.mxu2 %v3997_v1  ;;  %4119 = vmatpush.msrb.mxu0 %v11917_v34  ;;  %v4328_v34 = vld [vmem:[%s14386_s7 + $0x18] sm:$0xff] }
0x1100   :  { %4159 = vmatpush.msrb.mxu1 %v11850_v21  ;;  %3913 = vmatmul.f32.vlgmr.msra.gmra.mxu0 %v11837_v35 }
0x1101   :  { %4192 = vmatpush.msra.mxu2 %v4003_v52  ;;  %4080 = vmatmul.f32.vlgmr.msrb.gmra.mxu3 %v11963_v60 }
0x1102   :  { %4253 = vmatpush.msra.mxu3 %v11748_v32  ;;  %4122 = vmatpush.msrb.mxu0 %v11922_v15  ;;  %v4326_v15 = vld [vmem:[%s14386_s7 + $0x8] sm:$0xff] }
0x1103   :  { %4196 = vmatpush.msra.mxu2 %v4009_v5  ;;  %4161 = vmatpush.msrb.mxu1 %v11870_v55 }
0x1104   :  { %3938 = vmatmul.f32.vlgmr.msra.gmra.mxu1 %v11837_v35  ;;  %4255 = vmatpush.msra.mxu3 %v11761_v14 }
0x1105   :  { %4200 = vmatpush.msra.mxu2 %v4015_v22  ;;  %4125 = vmatpush.msrb.mxu0 %v11934_v10 }
0x1106   :  { %4163 = vmatpush.msrb.mxu1 %v11902_v37  ;;  %4257 = vmatpush.msra.mxu3 %v11810_v16 }
0x1107   :  { %4204 = vmatpush.msra.mxu2 %v4021_v20  ;;  %4128 = vmatpush.msrb.mxu0 %v11944_v50  ;;  %v4325_v50 = vld [vmem:[%s14386_s7] sm:$0xff] }
0x1108   :  { %4165 = vmatpush.msrb.mxu1 %v11919_v53  ;;  %4259 = vmatpush.msra.mxu3 %v11815_v23 }
0x1109   :  { %4208 = vmatpush.msra.mxu2 %v4027_v4  ;;  %4131 = vmatpush.msrb.mxu0 %v11954_v31  ;;  %v12113_v31 = vand.u32 4294901760, %v4325_v50 }
0x110a   :  { %4167 = vmatpush.msrb.mxu1 %v11929_v47  ;;  %4134 = vmatmul.f32.vlgmr.msrb.gmra.mxu0 %v11979_v18 }
0x110b   :  { %4212 = vmatpush.msra.mxu2 %v4033_v6  ;;  %4261 = vmatpush.msra.mxu3 %v11827_v48  ;;  %v4392_v25 = vsub.f32 %v4325_v50, %v12113_v31 }
0x110c   :  { %4169 = vmatpush.msrb.mxu1 %v11936_v0 }
0x110d   :  { %4173 = vmatmul.f32.vlgmr.msrb.gmra.mxu1 %v3976_v58  ;;  %4216 = vmatpush.msra.mxu2 %v4039_v36 }
0x110e   :  { %4263 = vmatpush.msra.mxu3 %v11843_v19 }
0x110f   :  { %4220 = vmatpush.msra.mxu2 %v4045_v3 }
0x1110   :  { %4265 = vmatpush.msra.mxu3 %v11848_v28 }
0x1111   :  { %4224 = vmatpush.msra.mxu2 %v14412_v17 }
0x1112   :  { %4267 = vmatpush.msra.mxu3 %v11850_v21 }
0x1113   :  { %4228 = vmatpush.msra.mxu2 %v14413_v51 }
0x1114   :  { %4269 = vmatpush.msra.mxu3 %v11870_v55 }
0x1115   :  { %4232 = vmatpush.msra.mxu2 %v4063_v46  ;;  %v9830_v46 = vld [vmem:[%s14392_s13 + $0x8] sm:$0xff] }
0x1116   :  { %4271 = vmatpush.msra.mxu3 %v11902_v37 }
0x1117   :  { %4236 = vmatpush.msra.mxu2 %v4069_v57  ;;  %v4330_v57 = vsel %vm59_vm0, %v9830_v46, 0 }
0x1118   :  { %4273 = vmatpush.msra.mxu3 %v11919_v53  ;;  %v4327_v53 = vld [vmem:[%s14386_s7 + $0x10] sm:$0xff]  ;;  %v12123_v41 = vand.u32 4294901760, %v4330_v57 }
0x1119   :  { %4240 = vmatpush.msra.mxu2 %v4075_v45  ;;  %v12103_v10 = vand.u32 4294901760, %v4327_v53 }
0x111a   :  { %4275 = vmatpush.msra.mxu3 %v11929_v47  ;;  %4242 = vmatmul.f32.vlgmr.msra.gmra.mxu2 %v11963_v60  ;;  %v12101_v47 = vand.u32 4294901760, %v4328_v34  ;;  %v4353_v51 = vsub.f32 %v4330_v57, %v12123_v41 }
0x111b   :  { %v4380_v45 = vsub.f32 %v4327_v53, %v12103_v10 }
0x111c   :  { %4277 = vmatpush.msra.mxu3 %v11936_v0  ;;  %v12105_v0 = vand.u32 4294901760, %v4326_v15  ;;  %4345 = vmatpush.msra.mxu0 %v12101_v47  ;;  %v4374_v24 = vsub.f32 %v4328_v34, %v12101_v47 }
0x111d   :  { %4279 = vmatmul.f32.vlgmr.msra.gmra.mxu3 %v11963_v60  ;;  %v4324_v60 = vld [vmem:[%s14384_s5 + $0x18] sm:$0xff]  ;;  %v4381_v40 = vand.u32 4294901760, %v4380_v45 }
0x111e   :  { %v4386_v18 = vsub.f32 %v4326_v15, %v12105_v0  ;;  %v12129_v58 = vand.u32 4294901760, %v4324_v60  ;;  %4347 = vmatpush.msra.mxu0 %v12103_v10  ;;  %v4375_v62 = vand.u32 4294901760, %v4374_v24 }
0x1120   :  { %v4387_v17 = vand.u32 4294901760, %v4386_v18  ;;  %4632 = vmatpush.msrb.mxu3 %v12129_v58  ;;  %4349 = vmatpush.msra.mxu0 %v12105_v0 }
0x1122   :  { %4634 = vmatpush.msrb.mxu3 %v12131_v29  ;;  %4351 = vmatpush.msra.mxu0 %v12113_v31 }
0x1124   :  { %4416 = vmatpush.msrb.mxu0 %v4374_v24 }
0x1126   :  { %4419 = vmatpush.msrb.mxu0 %v4380_v45 }
0x1128   :  { %4422 = vmatpush.msrb.mxu0 %v4386_v18 }
0x112a   :  { %4425 = vmatpush.msrb.mxu0 %v4392_v25 }
0x1161   :  { %v3824_v54 = vpop.f32.mrf.mxu1 }
0x1163   :  { %v3783_v49 = vpop.f32.mrf.mxu0 }
0x1164   :  { %v3825_v11 = vadd.f32 %v3824_v54, %v3783_v49  ;;  %v4393_v54 = vand.u32 4294901760, %v4392_v25  ;;  %v12136_v49 = vsub.f32 %v4324_v60, %v12129_v58 }
0x1165   :  { %v3854_v32 = vpop.f32.mrf.mxu2 }
0x1166   :  { %v3855_v8 = vadd.f32 %v3854_v32, %v3825_v11  ;;  %v4376_v11 = vsub.f32 %v4374_v24, %v4375_v62  ;;  %v4382_v32 = vsub.f32 %v4380_v45, %v4381_v40  ;;  %4603 = vmatpush.msrb.mxu2 %v12136_v49 }
0x117a   :  { %v3881_v43 = vpop.f32.mrf.mxu3 }
0x117b   :  { %v3882_v13 = vadd.f32 %v3881_v43, %v3855_v8  ;;  %v4388_v8 = vsub.f32 %v4386_v18, %v4387_v17  ;;  %v4354_v43 = vand.u32 4294901760, %v4353_v51 }
0x117d   :  { %v3914_v14 = vpop.f32.mrf.mxu0 }
0x117e   :  { %v3915_v42 = vadd.f32 %v3914_v14, %v3882_v13  ;;  %v12141_v13 = vsub.f32 %v4323_v63, %v12131_v29  ;;  %v4377_v14 = vand.u32 4294901760, %v4376_v11 }
0x1180   :  { %4606 = vmatpush.msrb.mxu2 %v12141_v13  ;;  %4378 = vmatpush.msra.mxu1 %v4377_v14 }
0x1181   :  { %v3939_v1 = vpop.f32.mrf.mxu1  ;;  %v3980_v16 = vpop.f32.mrf.mxu2 }
0x1182   :  { %v3940_v52 = vadd.f32 %v3939_v1, %v3915_v42  ;;  %v4383_v42 = vand.u32 4294901760, %v4382_v32  ;;  %v4355_v1 = vsub.f32 %v4353_v51, %v4354_v43 }
0x1184   :  { %v3981_v27 = vadd.f32 %v3980_v16, %v3940_v52  ;;  %v4081_v23 = vpop.f32.mrf.mxu3  ;;  %v4394_v52 = vsub.f32 %v4392_v25, %v4393_v54  ;;  %v4389_v16 = vand.u32 4294901760, %v4388_v8  ;;  %4384 = vmatpush.msra.mxu1 %v4383_v42 }
0x1186   :  { %v4082_v48 = vadd.f32 %v4081_v23, %v3981_v27  ;;  %v4356_v27 = vand.u32 4294901760, %v4355_v1  ;;  %v4395_v23 = vand.u32 4294901760, %v4394_v52  ;;  %4390 = vmatpush.msra.mxu1 %v4389_v16 }
0x1187   :  { %v4135_v5 = vpop.f32.mrf.mxu0 }
0x1188   :  { %v4136_v38 = vadd.f32 %v4135_v5, %v4082_v48  ;;  %4357 = vmatmul.f32.vlgmr.msra.gmra.mxu0 %v4356_v27  ;;  %4396 = vmatpush.msra.mxu1 %v4395_v23  ;;  %v4562_v48 = vand.u32 4294901760, %v12136_v49  ;;  %v4568_v5 = vand.u32 4294901760, %v12141_v13 }
0x1189   :  { %4474 = vmatpush.msra.mxu0 %v4375_v62  ;;  %4398 = vmatmul.f32.vlgmr.msra.gmra.mxu1 %v12123_v41 }
0x118a   :  { %v4174_v61 = vpop.f32.mrf.mxu1  ;;  %4445 = vmatpush.msrb.mxu1 %v12101_v47 }
0x118b   :  { %v4175_v35 = vadd.f32 %v4174_v61, %v4136_v38  ;;  %4478 = vmatpush.msra.mxu0 %v4381_v40  ;;  %v4563_v38 = vsub.f32 %v12136_v49, %v4562_v48 }
0x118c   :  { %4447 = vmatpush.msrb.mxu1 %v12103_v10 }
0x118d   :  { %4482 = vmatpush.msra.mxu0 %v4387_v17 }
0x118e   :  { %4449 = vmatpush.msrb.mxu1 %v12105_v0 }
0x118f   :  { %4486 = vmatpush.msra.mxu0 %v4393_v54 }
0x1190   :  { %4428 = vmatmul.f32.vlgmr.msrb.gmra.mxu0 %v4353_v51  ;;  %4451 = vmatpush.msrb.mxu1 %v12113_v31 }
0x1191   :  { %4532 = vmatpush.msrb.mxu0 %v12129_v58  ;;  %4455 = vmatmul.f32.vlgmr.msrb.gmra.mxu1 %v4354_v43 }
0x1192   :  { %4505 = vmatpush.msra.mxu1 %v12101_v47 }
0x1193   :  { %4534 = vmatpush.msrb.mxu0 %v12131_v29 }
0x1194   :  { %4507 = vmatpush.msra.mxu1 %v12103_v10 }
0x1196   :  { %4509 = vmatpush.msra.mxu1 %v12105_v0 }
0x1198   :  { %4488 = vmatmul.f32.vlgmr.msra.gmra.mxu0 %v12123_v41  ;;  %4511 = vmatpush.msra.mxu1 %v12113_v31 }
0x1199   :  { %4513 = vmatmul.f32.vlgmr.msra.gmra.mxu1 %v12123_v41 }
0x119d   :  { %v4243_v19 = vpop.f32.mrf.mxu2 }
0x119e   :  { %v4244_v30 = vadd.f32 %v4243_v19, %v4175_v35  ;;  %v4569_v35 = vsub.f32 %v12141_v13, %v4568_v5 }
0x11a0   :  { %v4280_v28 = vpop.f32.mrf.mxu3 }
0x11a1   :  { %v4281_v21 = vadd.f32 %v4280_v28, %v4244_v30  ;;  %v4564_v30 = vand.u32 4294901760, %v4563_v38  ;;  %v4570_v28 = vand.u32 4294901760, %v4569_v35 }
0x11a3   :  { %v4283_v22 = vadd.f32 %v10432_v12, %v4281_v21  ;;  %4565 = vmatpush.msrb.mxu1 %v4564_v30  ;;  %v4322_v21 = vld [vmem:[%s14384_s5 + $0x8] sm:$0xff]  ;;  %v4742_v30 = vld [vmem:[%s14389_s10 + $0x10] sm:$0xff] }
0x11a5   :  { %v4284_v20 = vmul.f32 %v4283_v22, %v10434_v33  ;;  %4571 = vmatpush.msrb.mxu1 %v4570_v28  ;;  %v4535_v22 = vand.u32 4294901760, %v4322_v21 }
0x11a7   :  { %9904 = vtanh.f32 %v4284_v20  ;;  %v4321_v20 = vld [vmem:[%s14384_s5] sm:$0xff]  ;;  %4636 = vmatpush.msrb.mxu3 %v4535_v22  ;;  %4536 = vmatpush.msrb.mxu0 %v4535_v22 }
0x11ad   :  { %v9905_v2 = vpop.eup %9904 }
0x11ae   :  { %v4286_v4 = vmul.f32 %v9905_v2, %v10434_v33  ;;  %v4573_v2 = vsub.f32 %v4322_v21, %v4535_v22  ;;  %v4760_v21 = vand.u32 4294901760, %v4742_v30 }
0x11b0   :  { %v12077_v9 = vadd.f32 %v4286_v4, %v10438_v44  ;;  %v4537_v4 = vand.u32 4294901760, %v4321_v20  ;;  %4609 = vmatpush.msrb.mxu2 %v4573_v2 }
0x11b2   :  { %4294 = vrot.lane.b32.xlu0 %v12077_v9, %s9961_s8  ;;  %4638 = vmatpush.msrb.mxu3 %v4537_v4 }
0x11b3   :  { %4538 = vmatpush.msrb.mxu0 %v4537_v4 }
0x11b5   :  { %4661 = vmatpush.msra.mxu0 %v4562_v48 }
0x11b7   :  { %4665 = vmatpush.msra.mxu0 %v4568_v5 }
0x11ba   :  { %4289 = vrot.lane.b32.xlu0 %v3733_v7, %s9962_s20  ;;  %v4579_v7 = vsub.f32 %v4321_v20, %v4537_v4  ;;  %v4794_v20 = vsub.f32 %v4742_v30, %v4760_v21 }
0x11bc   :  { %4612 = vmatpush.msrb.mxu2 %v4579_v7 }
0x1205   :  { %v4358_v31 = vpop.f32.mrf.mxu0 }
0x1206   :  { %v4399_v46 = vpop.f32.mrf.mxu1 }
0x1207   :  { %v4400_v24 = vadd.f32 %v4399_v46, %v4358_v31 }
0x120d   :  { %v4429_v60 = vpop.f32.mrf.mxu0 }
0x120e   :  { %v4456_v57 = vpop.f32.mrf.mxu1  ;;  %v4430_v45 = vadd.f32 %v4429_v60, %v4400_v24 }
0x1210   :  { %v4457_v41 = vadd.f32 %v4456_v57, %v4430_v45 }
0x1215   :  { %v4489_v63 = vpop.f32.mrf.mxu0 }
0x1216   :  { %v4514_v18 = vpop.f32.mrf.mxu1  ;;  %v4490_v25 = vadd.f32 %v4489_v63, %v4457_v41 }
0x1224   :  { %v4295_v55 = vpop.permute.xlu0 %4294 }
0x1225   :  { %v4297_v56 = vmul.f32 %v4295_v55, %v12077_v9 }
0x1227   :  { %4299 = vrot.lane.b32.xlu1 %v4297_v56, %s9962_s20  ;;  %v4580_v56 = vand.u32 4294901760, %v4579_v7 }
0x122c   :  { %v4290_v6 = vpop.permute.xlu0 %4289 }
0x122d   :  { %v4292_v36 = vmul.f32 %v4290_v6, %v12077_v9 }
0x1299   :  { %v4300_v59 = vpop.permute.xlu1 %4299 }
0x129a   :  { %v12088_v37 = vadd.f32 %v4300_v59, %v4292_v36  ;;  %v4581_v36 = vsub.f32 %v4579_v7, %v4580_v56 }
0x129c   :  { %9906 = vtanh.f32 %v12088_v37  ;;  %v4582_v59 = vand.u32 4294901760, %v4581_v36 }
0x12a2   :  { %v9907_v3 = vpop.eup %9906 }
0x12a3   :  { %4305 = vrot.lane.b32.xlu1 %v9907_v3, %s9961_s8  ;;  %v9831_v3 = vld [vmem:[%s14393_s14 + $0x8] sm:$0xff] }
0x12a4   :  { %4710 = vrot.lane.b32.xlu0 %v9831_v3, %s9962_s20  ;;  %v4741_v3 = vld [vmem:[%s14389_s10 + $0x8] sm:$0xff] }
0x1315   :  { %v4306_v61 = vpop.permute.xlu1 %4305 }
0x1316   :  { %v4308_v19 = vmul.f32 %v4306_v61, %v12077_v9  ;;  %v4574_v9 = vand.u32 4294901760, %v4573_v2  ;;  %v4711_v48 = vpop.permute.xlu0 %4710 }
0x1318   :  { %4310 = vrot.lane.b32.xlu2 %v4308_v19, %s9962_s20  ;;  %v4575_v55 = vsub.f32 %v4573_v2, %v4574_v9  ;;  %4669 = vmatpush.msra.mxu0 %v4574_v9 }
0x131a   :  { %v4576_v6 = vand.u32 4294901760, %v4575_v55  ;;  %4673 = vmatpush.msra.mxu0 %v4580_v56 }
0x131c   :  { %4577 = vmatpush.msrb.mxu1 %v4576_v6 }
0x131e   :  { %4583 = vmatpush.msrb.mxu1 %v4582_v59 }
0x1320   :  { %4692 = vmatpush.msra.mxu1 %v12129_v58  ;;  %v4515_v58 = vadd.f32 %v4514_v18, %v4490_v25 }
0x1322   :  { %4694 = vmatpush.msra.mxu1 %v12131_v29 }
0x1324   :  { %4696 = vmatpush.msra.mxu1 %v4535_v22 }
0x1326   :  { %4698 = vmatpush.msra.mxu1 %v4537_v4  ;;  %v4795_v4 = vand.u32 4294901760, %v4794_v20 }
0x1328   :  { %v4796_v7 = vsub.f32 %v4794_v20, %v4795_v4 }
0x132a   :  { %v4797_v56 = vand.u32 4294901760, %v4796_v7 }
0x1372   :  { %v4311_v34 = vpop.permute.xlu2 %4310 }
0x1373   :  { %4313 = vst.msk [vmem:[%s14392_s13] sm:$0xff] %vm59_vm0, %v4311_v34  ;;  %v4517_v53 = vsel %vm59_vm0, %v4311_v34, 0  ;;  %v4762_v34 = vand.u32 4294901760, %v4741_v3 }
0x1374   :  { %v4539_v15 = vand.u32 4294901760, %v4517_v53 }
0x1376   :  { %v4540_v47 = vsub.f32 %v4517_v53, %v4539_v15  ;;  %4585 = vmatmul.f32.vlgmr.msrb.gmra.mxu1 %v4539_v15  ;;  %v4740_v53 = vld [vmem:[%s14389_s10] sm:$0xff] }
0x1378   :  { %v4541_v10 = vand.u32 4294901760, %v4540_v47  ;;  %4615 = vmatmul.f32.vlgmr.msrb.gmra.mxu2 %v4540_v47 }
0x137a   :  { %v4542_v0 = vsub.f32 %v4540_v47, %v4541_v10  ;;  %4642 = vmatmul.f32.vlgmr.msrb.gmra.mxu3 %v4541_v10  ;;  %v4764_v47 = vand.u32 4294901760, %v4740_v53 }
0x137c   :  { %v4543_v50 = vand.u32 4294901760, %v4542_v0  ;;  %v4806_v0 = vsub.f32 %v4740_v53, %v4764_v47 }
0x137e   :  { %4544 = vmatmul.f32.vlgmr.msrb.gmra.mxu0 %v4543_v50  ;;  %4700 = vmatmul.f32.vlgmr.msra.gmra.mxu1 %v4539_v15  ;;  %v4807_v46 = vand.u32 4294901760, %v4806_v0 }
0x1380   :  { %v4808_v57 = vsub.f32 %v4806_v0, %v4807_v46 }
0x1382   :  { %v4809_v60 = vand.u32 4294901760, %v4808_v57 }
0x1386   :  { %4675 = vmatmul.f32.vlgmr.msra.gmra.mxu0 %v4539_v15  ;;  %v4800_v15 = vsub.f32 %v4741_v3, %v4762_v34 }
0x1388   :  { %v4801_v10 = vand.u32 4294901760, %v4800_v15 }
0x138a   :  { %v4802_v50 = vsub.f32 %v4800_v15, %v4801_v10 }
0x138c   :  { %v4803_v31 = vand.u32 4294901760, %v4802_v50 }
0x13f3   :  { %v4586_v29 = vpop.f32.mrf.mxu1 }
0x13fb   :  { %v4545_v62 = vpop.f32.mrf.mxu0  ;;  %v4616_v51 = vpop.f32.mrf.mxu2 }
0x13fc   :  { %v4546_v40 = vadd.f32 %v4545_v62, %v4515_v58  ;;  %v4701_v43 = vpop.f32.mrf.mxu1 }
0x13fd   :  { %v4643_v49 = vpop.f32.mrf.mxu3 }
0x13fe   :  { %v4587_v17 = vadd.f32 %v4586_v29, %v4546_v40 }
0x1400   :  { %v4617_v54 = vadd.f32 %v4616_v51, %v4587_v17 }
0x1402   :  { %v4644_v11 = vadd.f32 %v4643_v49, %v4617_v54 }
0x1403   :  { %v4676_v32 = vpop.f32.mrf.mxu0 }
0x1404   :  { %v4677_v8 = vadd.f32 %v4676_v32, %v4644_v11 }
0x1406   :  { %v4702_v13 = vadd.f32 %v4701_v43, %v4677_v8 }
0x1408   :  { %v4704_v14 = vadd.f32 %v10559_v26, %v4702_v13 }
0x140a   :  { %v4705_v42 = vmul.f32 %v4704_v14, %v10434_v33 }
0x140c   :  { %9908 = vtanh.f32 %v4705_v42 }
0x1412   :  { %v9909_v1 = vpop.eup %9908 }
0x1413   :  { %v4707_v52 = vmul.f32 %v9909_v1, %v10434_v33 }
0x1415   :  { %v4708_v16 = vadd.f32 %v4707_v52, %v10438_v44 }
0x1417   :  { %4715 = vrot.lane.b32.xlu2 %v4708_v16, %s9961_s8  ;;  %v4713_v5 = vmul.f32 %v4711_v48, %v4708_v16 }
0x1471   :  { %v4716_v27 = vpop.permute.xlu2 %4715 }
0x1472   :  { %v4718_v23 = vmul.f32 %v4716_v27, %v4708_v16 }
0x1474   :  { %4720 = vrot.lane.b32.xlu1 %v4718_v23, %s9962_s20 }
0x147c   :  { %4315 = vrot.lane.b32.xlu1 %v12088_v37, %s9963_s9  ;;  %v4743_v37 = vld [vmem:[%s14389_s10 + $0x18] sm:$0xff] }
0x147d   :  { %v4758_v28 = vand.u32 4294901760, %v4743_v37 }
0x147f   :  { %v4788_v22 = vsub.f32 %v4743_v37, %v4758_v28  ;;  %4859 = vmatpush.msrb.mxu1 %v4758_v28  ;;  %4759 = vmatpush.msra.mxu2 %v4758_v28 }
0x1481   :  { %v4789_v2 = vand.u32 4294901760, %v4788_v22  ;;  %4830 = vmatpush.msrb.mxu0 %v4788_v22  ;;  %4861 = vmatpush.msrb.mxu1 %v4760_v21 }
0x1482   :  { %4761 = vmatpush.msra.mxu2 %v4760_v21 }
0x1483   :  { %v4790_v9 = vsub.f32 %v4788_v22, %v4789_v2  ;;  %4833 = vmatpush.msrb.mxu0 %v4794_v20  ;;  %4863 = vmatpush.msrb.mxu1 %v4762_v34 }
0x1484   :  { %4763 = vmatpush.msra.mxu2 %v4762_v34 }
0x1485   :  { %v4791_v55 = vand.u32 4294901760, %v4790_v9  ;;  %4836 = vmatpush.msrb.mxu0 %v4800_v15  ;;  %4865 = vmatpush.msrb.mxu1 %v4764_v47 }
0x1486   :  { %4765 = vmatpush.msra.mxu2 %v4764_v47 }
0x1487   :  { %4792 = vmatpush.msra.mxu3 %v4791_v55  ;;  %4839 = vmatpush.msrb.mxu0 %v4806_v0 }
0x1488   :  { %4888 = vmatpush.msrb.mxu2 %v4789_v2 }
0x1489   :  { %4798 = vmatpush.msra.mxu3 %v4797_v56 }
0x148a   :  { %4892 = vmatpush.msrb.mxu2 %v4795_v4 }
0x148b   :  { %4804 = vmatpush.msra.mxu3 %v4803_v31 }
0x148c   :  { %4896 = vmatpush.msrb.mxu2 %v4801_v10 }
0x148d   :  { %4810 = vmatpush.msra.mxu3 %v4809_v60 }
0x148e   :  { %4900 = vmatpush.msrb.mxu2 %v4807_v46 }
0x148f   :  { %4919 = vmatpush.msrb.mxu3 %v4758_v28 }
0x1491   :  { %4921 = vmatpush.msrb.mxu3 %v4760_v21 }
0x1493   :  { %4923 = vmatpush.msrb.mxu3 %v4762_v34 }
0x1495   :  { %4925 = vmatpush.msrb.mxu3 %v4764_v47 }
0x14e6   :  { %v4721_v38 = vpop.permute.xlu1 %4720 }
0x14e7   :  { %v4723_v61 = vadd.f32 %v4721_v38, %v4713_v5 }
0x14e9   :  { %9910 = vtanh.f32 %v4723_v61 }
0x14ee   :  { %v4316_v35 = vpop.permute.xlu1 %4315 }
0x14ef   :  { %v9911_v19 = vpop.eup %9910  ;;  %4318 = vst.msk [vmem:[%s14393_s14] sm:$0xff] %vm59_vm0, %v4316_v35 }
0x14f0   :  { %4726 = vrot.lane.b32.xlu2 %v9911_v19, %s9961_s8 }
0x14f8   :  { %4736 = vrot.lane.b32.xlu2 %v4723_v61, %s9963_s9 }
0x154a   :  { %v4727_v6 = vpop.permute.xlu2 %4726 }
0x154b   :  { %v4729_v36 = vmul.f32 %v4727_v6, %v4708_v16 }
0x154d   :  { %4731 = vrot.lane.b32.xlu0 %v4729_v36, %s9962_s20 }
0x1552   :  { %v4737_v59 = vpop.permute.xlu2 %4736 }
0x1553   :  { %9833 = vst.msk [vmem:[%s14393_s14 + $0x8] sm:$0xff] %vm59_vm0, %v4737_v59 }
0x15bf   :  { %v4732_v24 = vpop.permute.xlu0 %4731 }
0x15c0   :  { %9832 = vst.msk [vmem:[%s14392_s13 + $0x8] sm:$0xff] %vm59_vm0, %v4732_v24  ;;  %v4744_v45 = vsel %vm59_vm0, %v4732_v24, 0 }
0x15c1   :  { %v4766_v18 = vand.u32 4294901760, %v4744_v45 }
0x15c3   :  { %v4767_v41 = vsub.f32 %v4744_v45, %v4766_v18  ;;  %4812 = vmatmul.f32.vlgmr.msra.gmra.mxu3 %v4766_v18 }
0x15c5   :  { %v4768_v63 = vand.u32 4294901760, %v4767_v41  ;;  %4842 = vmatmul.f32.vlgmr.msrb.gmra.mxu0 %v4767_v41 }
0x15c7   :  { %v4769_v25 = vsub.f32 %v4767_v41, %v4768_v63  ;;  %4869 = vmatmul.f32.vlgmr.msrb.gmra.mxu1 %v4768_v63 }
0x15c9   :  { %v4770_v58 = vand.u32 4294901760, %v4769_v25 }
0x15cb   :  { %4771 = vmatmul.f32.vlgmr.msra.gmra.mxu2 %v4770_v58  ;;  %4927 = vmatmul.f32.vlgmr.msrb.gmra.mxu3 %v4766_v18 }
0x15d3   :  { %4902 = vmatmul.f32.vlgmr.msrb.gmra.mxu2 %v4766_v18 }
0x1642   :  { %v4843_v51 = vpop.f32.mrf.mxu0 }
0x1644   :  { %v4870_v49 = vpop.f32.mrf.mxu1 }
0x1646   :  { %v4813_v29 = vpop.f32.mrf.mxu3 }
0x164e   :  { %v4772_v62 = vpop.f32.mrf.mxu2  ;;  %v4928_v43 = vpop.f32.mrf.mxu3 }
0x164f   :  { %v4773_v40 = vadd.f32 %v10600_v39, %v4772_v62 }
0x1651   :  { %v4814_v17 = vadd.f32 %v4813_v29, %v4773_v40 }
0x1653   :  { %v4844_v54 = vadd.f32 %v4843_v51, %v4814_v17 }
0x1655   :  { %v4871_v11 = vadd.f32 %v4870_v49, %v4844_v54 }
0x1656   :  { %v4903_v32 = vpop.f32.mrf.mxu2 }
0x1657   :  { %v4904_v8 = vadd.f32 %v4903_v32, %v4871_v11  ;;  %4937 = sbr.rel (%p9836_p6) target bundleno = 5726 (0x165e), region = 81 }
0x1659   :  { %v4929_v13 = vadd.f32 %v4928_v43, %v4904_v8 }
0x165b   :  { %9834 = vst [vmem:[%s14391_s12 + $0x18] sm:$0xff] %v4929_v13 }
0x165c   :  { %v9837_v14 = vld [vmem:[%s14380_s1 + $0x18] sm:$0xff] }
0x165d   :  { %4940 = vst [vmem:[#allocation2] sm:$0xff] %v9837_v14 }
0x165e PF:  { %p9838_p7 = scmp.ne.s32.totalorder %s9835_s0, 0 }
0x1660   :  { %4944 = sbr.rel (%p9838_p7) target bundleno = 5734 (0x1666), region = 85 }
0x1665   :  { %4945 = vst [vmem:[#allocation2] sm:$0xff] %v4929_v13 }
0x1666 PF:  { %v4968_v42 = vld [vmem:[%s14385_s6 + $0x18] sm:$0xff]  ;;  %v4967_v1 = vld [vmem:[%s14385_s6 + $0x10] sm:$0xff]  ;;  %v4966_v52 = vld [vmem:[%s14385_s6 + $0x8] sm:$0xff]  ;;  %s9844_s15 = sld [smem:[#allocation3 + $0x4]] }
0x1667   :  { %v12235_v16 = vand.u32 4294901760, %v4968_v42  ;;  %v12237_v27 = vand.u32 4294901760, %v4967_v1  ;;  %v12239_v23 = vand.u32 4294901760, %v4966_v52  ;;  %v4965_v48 = vld [vmem:[%s14385_s6] sm:$0xff]  ;;  %v4964_v5 = vld [vmem:[%s14383_s4 + $0x78] sm:$0xff]  ;;  %v4963_v38 = vld [vmem:[%s14383_s4 + $0x70] sm:$0xff] }
0x1668   :  { %v12250_v61 = vand.u32 4294901760, %v4965_v48  ;;  %v12252_v35 = vand.u32 4294901760, %v4964_v5  ;;  %v12254_v19 = vand.u32 4294901760, %v4963_v38  ;;  %v4962_v37 = vld [vmem:[%s14383_s4 + $0x68] sm:$0xff]  ;;  %v4961_v30 = vld [vmem:[%s14383_s4 + $0x60] sm:$0xff]  ;;  %v4960_v2 = vld [vmem:[%s14383_s4 + $0x58] sm:$0xff] }
0x1669   :  { %v12263_v28 = vsub.f32 %v4968_v42, %v12235_v16  ;;  %v12266_v21 = vsub.f32 %v4967_v1, %v12237_v27  ;;  %5085 = vmatpush.msra.mxu3 %v12235_v16  ;;  %v12270_v22 = vsub.f32 %v4966_v52, %v12239_v23  ;;  %4985 = vmatpush.msra.mxu0 %v12235_v16  ;;  %v12273_v20 = vand.u32 4294901760, %v4962_v37  ;;  %v4959_v24 = vld [vmem:[%s14383_s4 + $0x50] sm:$0xff]  ;;  %v4958_v45 = vld [vmem:[%s14383_s4 + $0x48] sm:$0xff]  ;;  %v4957_v58 = vld [vmem:[%s14383_s4 + $0x40] sm:$0xff] }
0x166a   :  { %v12279_v4 = vsub.f32 %v4965_v48, %v12250_v61  ;;  %v12282_v9 = vsub.f32 %v4964_v5, %v12252_v35  ;;  %v12285_v7 = vsub.f32 %v4963_v38, %v12254_v19  ;;  %v12287_v55 = vand.u32 4294901760, %v4961_v30  ;;  %v4947_v29 = vld [vmem:[%s14392_s13] sm:$0xff]  ;;  %v4956_v8 = vld [vmem:[%s14383_s4 + $0x38] sm:$0xff]  ;;  %v4955_v43 = vld [vmem:[%s14383_s4 + $0x30] sm:$0xff] }
0x166b   :  { %5056 = vmatpush.msra.mxu2 %v12263_v28  ;;  %5087 = vmatpush.msra.mxu3 %v12237_v27  ;;  %v5015_v56 = vand.u32 4294901760, %v12263_v28  ;;  %v5021_v6 = vand.u32 4294901760, %v12266_v21  ;;  %v12294_v36 = vsub.f32 %v4962_v37, %v12273_v20  ;;  %v5027_v59 = vand.u32 4294901760, %v12270_v22  ;;  %v4954_v13 = vld [vmem:[%s14383_s4 + $0x28] sm:$0xff] }
0x166c   :  { %v5200_v3 = vand.u32 4294901760, %v12282_v9  ;;  %4987 = vmatpush.msra.mxu0 %v12237_v27  ;;  %v5206_v34 = vand.u32 4294901760, %v12285_v7  ;;  %v12300_v53 = vand.u32 4294901760, %v4960_v2  ;;  %v12303_v15 = vsub.f32 %v4961_v30, %v12287_v55  ;;  %v4953_v30 = vld [vmem:[%s14383_s4 + $0x20] sm:$0xff]  ;;  %p9845_p8 = scmp.eq.s32.totalorder %s9844_s15, 0 }
0x166d   :  { %5059 = vmatpush.msra.mxu2 %v12266_v21  ;;  %5089 = vmatpush.msra.mxu3 %v12239_v23  ;;  %v5016_v47 = vsub.f32 %v12263_v28, %v5015_v56  ;;  %v5022_v10 = vsub.f32 %v12266_v21, %v5021_v6  ;;  %v5212_v0 = vand.u32 4294901760, %v12294_v36  ;;  %v5028_v50 = vsub.f32 %v12270_v22, %v5027_v59 }
0x166e   :  { %v5201_v46 = vsub.f32 %v12282_v9, %v5200_v3  ;;  %v5207_v31 = vsub.f32 %v12285_v7, %v5206_v34  ;;  %4989 = vmatpush.msra.mxu0 %v12239_v23  ;;  %v5218_v57 = vand.u32 4294901760, %v12303_v15  ;;  %v5033_v60 = vand.u32 4294901760, %v12279_v4 }
0x166f   :  { %5062 = vmatpush.msra.mxu2 %v12270_v22  ;;  %5091 = vmatpush.msra.mxu3 %v12250_v61  ;;  %v5017_v18 = vand.u32 4294901760, %v5016_v47  ;;  %v5023_v41 = vand.u32 4294901760, %v5022_v10  ;;  %v5213_v63 = vsub.f32 %v12294_v36, %v5212_v0  ;;  %v5029_v25 = vand.u32 4294901760, %v5028_v50 }
0x1670   :  { %v5202_v62 = vand.u32 4294901760, %v5201_v46  ;;  %v5208_v40 = vand.u32 4294901760, %v5207_v31  ;;  %4991 = vmatpush.msra.mxu0 %v12250_v61  ;;  %v5219_v17 = vsub.f32 %v12303_v15, %v5218_v57  ;;  %v5034_v51 = vsub.f32 %v12279_v4, %v5033_v60 }
0x1671   :  { %5065 = vmatpush.msra.mxu2 %v12279_v4  ;;  %5018 = vmatpush.msra.mxu1 %v5017_v18  ;;  %v5214_v54 = vand.u32 4294901760, %v5213_v63  ;;  %v12349_v49 = vand.u32 4294901760, %v4959_v24  ;;  %v12352_v11 = vsub.f32 %v4960_v2, %v12300_v53  ;;  %v12354_v32 = vand.u32 4294901760, %v4958_v45 }
0x1672   :  { %5203 = vmatpush.msrb.mxu3 %v5202_v62  ;;  %v5220_v14 = vand.u32 4294901760, %v5219_v17  ;;  %v5035_v42 = vand.u32 4294901760, %v5034_v51  ;;  %v12366_v1 = vand.u32 4294901760, %v4957_v58  ;;  %v4970_v52 = vsel %vm59_vm0, %v4947_v29, 0  ;;  %5114 = vmatpush.msrb.mxu0 %v5015_v56 }
0x1673   :  { %5158 = vmatpush.msrb.mxu2 %v12252_v35  ;;  %5024 = vmatpush.msra.mxu1 %v5023_v41  ;;  %v5224_v48 = vand.u32 4294901760, %v12352_v11  ;;  %v12371_v5 = vsub.f32 %v4959_v24, %v12349_v49  ;;  %v12374_v38 = vsub.f32 %v4958_v45, %v12354_v32  ;;  %v12376_v37 = vand.u32 4294901760, %v4970_v52 }
0x1674   :  { %5209 = vmatpush.msrb.mxu3 %v5208_v40  ;;  %v12382_v28 = vand.u32 4294901760, %v4956_v8  ;;  %v12385_v2 = vsub.f32 %v4957_v58, %v12366_v1  ;;  %v12387_v56 = vand.u32 4294901760, %v4955_v43  ;;  %v12389_v47 = vand.u32 4294901760, %v4954_v13  ;;  %5118 = vmatpush.msrb.mxu0 %v5021_v6  ;;  %v4952_v6 = vld [vmem:[%s14383_s4 + $0x18] sm:$0xff] }
0x1675   :  { %5160 = vmatpush.msrb.mxu2 %v12254_v19  ;;  %5030 = vmatpush.msra.mxu1 %v5029_v25  ;;  %v5225_v10 = vsub.f32 %v12352_v11, %v5224_v48  ;;  %v5230_v50 = vand.u32 4294901760, %v12371_v5  ;;  %v5236_v46 = vand.u32 4294901760, %v12374_v38  ;;  %v12399_v31 = vsub.f32 %v4970_v52, %v12376_v37 }
0x1676   :  { %5215 = vmatpush.msrb.mxu3 %v5214_v54  ;;  %v5242_v24 = vand.u32 4294901760, %v12385_v2  ;;  %v12404_v45 = vsub.f32 %v4956_v8, %v12382_v28  ;;  %v12407_v18 = vsub.f32 %v4955_v43, %v12387_v56  ;;  %v12409_v21 = vand.u32 4294901760, %v4953_v30  ;;  %5122 = vmatpush.msrb.mxu0 %v5027_v59  ;;  %v4951_v59 = vld [vmem:[%s14383_s4 + $0x10] sm:$0xff]  ;;  %v4950_v8 = vld [vmem:[%s14383_s4 + $0x8] sm:$0xff] }
0x1677   :  { %5162 = vmatpush.msrb.mxu2 %v12273_v20  ;;  %5036 = vmatpush.msra.mxu1 %v5035_v42  ;;  %v5226_v41 = vand.u32 4294901760, %v5225_v10  ;;  %v5231_v63 = vsub.f32 %v12371_v5, %v5230_v50  ;;  %v5237_v25 = vsub.f32 %v12374_v38, %v5236_v46  ;;  %v4994_v58 = vand.u32 4294901760, %v12399_v31 }
0x1678   :  { %5221 = vmatpush.msrb.mxu3 %v5220_v14  ;;  %v5243_v29 = vsub.f32 %v12385_v2, %v5242_v24  ;;  %v5248_v62 = vand.u32 4294901760, %v12404_v45  ;;  %v5254_v40 = vand.u32 4294901760, %v12407_v18  ;;  %v12430_v22 = vsub.f32 %v4954_v13, %v12389_v47  ;;  %5126 = vmatpush.msrb.mxu0 %v5033_v60  ;;  %v4949_v60 = vld [vmem:[%s14383_s4] sm:$0xff] }
0x1679   :  { %5164 = vmatpush.msrb.mxu2 %v12287_v55  ;;  %5145 = vmatpush.msrb.mxu1 %v12235_v16  ;;  %v5232_v17 = vand.u32 4294901760, %v5231_v63  ;;  %v4995_v51 = vsub.f32 %v12399_v31, %v4994_v58  ;;  %v12441_v54 = vand.u32 4294901760, %v4952_v6  ;;  %v5238_v43 = vand.u32 4294901760, %v5237_v25 }
0x167a   :  { %5227 = vmatpush.msrb.mxu3 %v5226_v41  ;;  %v5249_v16 = vsub.f32 %v12404_v45, %v5248_v62  ;;  %v5260_v4 = vand.u32 4294901760, %v12430_v22  ;;  %v12456_v14 = vsub.f32 %v4953_v30, %v12409_v21  ;;  %v12458_v42 = vand.u32 4294901760, %v4951_v59  ;;  %5068 = vmatmul.f32.vlgmr.msra.gmra.mxu2 %v12399_v31 }
0x167b   :  { %5166 = vmatpush.msrb.mxu2 %v12300_v53  ;;  %5147 = vmatpush.msrb.mxu1 %v12237_v27  ;;  %v4996_v13 = vand.u32 4294901760, %v4995_v51  ;;  %v12461_v52 = vsub.f32 %v4952_v6, %v12441_v54  ;;  %v5244_v10 = vand.u32 4294901760, %v5243_v29  ;;  %v5255_v41 = vsub.f32 %v12407_v18, %v5254_v40 }
0x167c   :  { %5233 = vmatpush.msrb.mxu3 %v5232_v17  ;;  %v12468_v27 = vand.u32 4294901760, %v4950_v8  ;;  %v14401_v30 = vand.u32 4294901760, %v12456_v14  ;;  %v12473_v6 = vsub.f32 %v4951_v59, %v12458_v42  ;;  %v12475_v63 = vand.u32 4294901760, %v4949_v60  ;;  %v4946_v59 = vld [vmem:[#allocation2] sm:$0xff]  ;;  %5038 = vmatmul.f32.vlgmr.msra.gmra.mxu1 %v12376_v37 }
0x167d   :  { %5168 = vmatpush.msrb.mxu2 %v12349_v49  ;;  %5149 = vmatpush.msrb.mxu1 %v12239_v23  ;;  %v5250_v25 = vand.u32 4294901760, %v5249_v16  ;;  %v5261_v29 = vsub.f32 %v12430_v22, %v5260_v4  ;;  %v14400_v17 = vand.u32 4294901760, %v12461_v52  ;;  %v5256_v51 = vand.u32 4294901760, %v5255_v41 }
0x167e   :  { %4997 = vmatmul.f32.vlgmr.msra.gmra.mxu0 %v4996_v13  ;;  %5239 = vmatpush.msrb.mxu3 %v5238_v43  ;;  %v12483_v23 = vsub.f32 %v4950_v8, %v12468_v27  ;;  %v5267_v43 = vsub.f32 %v12456_v14, %v14401_v30  ;;  %v5278_v16 = vand.u32 4294901760, %v12473_v6  ;;  %v12493_v13 = vsub.f32 %v4949_v60, %v12475_v63 }
0x167f   :  { %5170 = vmatpush.msrb.mxu2 %v12354_v32  ;;  %5301 = vmatpush.msra.mxu0 %v12282_v9  ;;  %v5273_v8 = vsub.f32 %v12461_v52, %v14400_v17  ;;  %v12502_v41 = vand.u32 4294901760, %v4946_v59 }
0x1680   :  { %5151 = vmatpush.msrb.mxu1 %v12250_v61  ;;  %5245 = vmatpush.msrb.mxu3 %v5244_v10  ;;  %v5262_v61 = vand.u32 4294901760, %v5261_v29  ;;  %v5284_v10 = vand.u32 4294901760, %v12483_v23  ;;  %v5268_v60 = vand.u32 4294901760, %v5267_v43  ;;  %v5290_v29 = vand.u32 4294901760, %v12493_v13 }
0x1681   :  { %5172 = vmatpush.msrb.mxu2 %v12366_v1  ;;  %5304 = vmatpush.msra.mxu0 %v12285_v7  ;;  %v5274_v17 = vand.u32 4294901760, %v5273_v8 }
0x1682   :  { %5251 = vmatpush.msrb.mxu3 %v5250_v25  ;;  %5354 = vmatpush.msra.mxu1 %v12252_v35  ;;  %v5279_v25 = vsub.f32 %v12473_v6, %v5278_v16  ;;  %v5285_v30 = vsub.f32 %v12483_v23, %v5284_v10 }
0x1683   :  { %5174 = vmatpush.msrb.mxu2 %v12382_v28  ;;  %5307 = vmatpush.msra.mxu0 %v12294_v36 }
0x1684   :  { %5257 = vmatpush.msrb.mxu3 %v5256_v51  ;;  %5356 = vmatpush.msra.mxu1 %v12254_v19  ;;  %v12518_v51 = vsub.f32 %v4946_v59, %v12502_v41  ;;  %v5280_v43 = vand.u32 4294901760, %v5279_v25  ;;  %v5286_v59 = vand.u32 4294901760, %v5285_v30 }
0x1685   :  { %5176 = vmatpush.msrb.mxu2 %v12387_v56  ;;  %5310 = vmatpush.msra.mxu0 %v12303_v15 }
0x1686   :  { %5263 = vmatpush.msrb.mxu3 %v5262_v61  ;;  %5358 = vmatpush.msra.mxu1 %v12273_v20  ;;  %v5291_v61 = vsub.f32 %v12493_v13, %v5290_v29  ;;  %v5191_v8 = vand.u32 4294901760, %v12518_v51 }
0x1687   :  { %5178 = vmatpush.msrb.mxu2 %v12389_v47  ;;  %5313 = vmatpush.msra.mxu0 %v12352_v11 }
0x1688   :  { %5269 = vmatpush.msrb.mxu3 %v5268_v60  ;;  %5360 = vmatpush.msra.mxu1 %v12287_v55  ;;  %v5292_v60 = vand.u32 4294901760, %v5291_v61  ;;  %v5538_v61 = vld [vmem:[%s14384_s5 + $0x10] sm:$0xff] }
0x1689   :  { %5180 = vmatpush.msrb.mxu2 %v12409_v21  ;;  %5316 = vmatpush.msra.mxu0 %v12371_v5 }
0x168a   :  { %5275 = vmatpush.msrb.mxu3 %v5274_v17  ;;  %5362 = vmatpush.msra.mxu1 %v12300_v53  ;;  %v5192_v17 = vsub.f32 %v12518_v51, %v5191_v8 }
0x168b   :  { %5182 = vmatpush.msrb.mxu2 %v12441_v54  ;;  %5319 = vmatpush.msra.mxu0 %v12374_v38 }
0x168c   :  { %5281 = vmatpush.msrb.mxu3 %v5280_v43  ;;  %5364 = vmatpush.msra.mxu1 %v12349_v49  ;;  %v5193_v30 = vand.u32 4294901760, %v5192_v17 }
0x168d   :  { %5184 = vmatpush.msrb.mxu2 %v12458_v42  ;;  %5322 = vmatpush.msra.mxu0 %v12385_v2 }
0x168e   :  { %5287 = vmatpush.msrb.mxu3 %v5286_v59  ;;  %5366 = vmatpush.msra.mxu1 %v12354_v32 }
0x168f   :  { %5186 = vmatpush.msrb.mxu2 %v12468_v27  ;;  %5095 = vmatmul.f32.vlgmr.msra.gmra.mxu3 %v4994_v58 }
0x1690   :  { %5293 = vmatpush.msrb.mxu3 %v5292_v60  ;;  %5325 = vmatpush.msra.mxu0 %v12404_v45  ;;  %v12670_v60 = vand.u32 4294901760, %v5538_v61 }
0x1691   :  { %5188 = vmatpush.msrb.mxu2 %v12475_v63  ;;  %5368 = vmatpush.msra.mxu1 %v12366_v1 }
0x1692   :  { %5462 = vmatpush.msra.mxu3 %v12252_v35  ;;  %5328 = vmatpush.msra.mxu0 %v12407_v18  ;;  %v14414_v35 = vand.u32 4294901760, %v12456_v14  ;;  %v4948_v18 = vld [vmem:[%s14393_s14] sm:$0xff] }
0x1693   :  { %5395 = vmatpush.msra.mxu2 %v5200_v3  ;;  %5370 = vmatpush.msra.mxu1 %v12382_v28 }
0x1694   :  { %5464 = vmatpush.msra.mxu3 %v12254_v19  ;;  %5331 = vmatpush.msra.mxu0 %v12430_v22  ;;  %v14415_v19 = vand.u32 4294901760, %v12461_v52 }
0x1695   :  { %5399 = vmatpush.msra.mxu2 %v5206_v34  ;;  %5372 = vmatpush.msra.mxu1 %v12387_v56 }
0x1696   :  { %5194 = vmatmul.f32.vlgmr.msrb.gmra.mxu2 %v5193_v30  ;;  %5466 = vmatpush.msra.mxu3 %v12273_v20 }
0x1697   :  { %5403 = vmatpush.msra.mxu2 %v5212_v0  ;;  %5334 = vmatpush.msra.mxu0 %v12456_v14  ;;  %v5543_v14 = vld [vmem:[%s14386_s7 + $0x18] sm:$0xff] }
0x1698   :  { %5374 = vmatpush.msra.mxu1 %v12389_v47  ;;  %5128 = vmatmul.f32.vlgmr.msrb.gmra.mxu0 %v12376_v37 }
0x1699   :  { %5407 = vmatpush.msra.mxu2 %v5218_v57  ;;  %5295 = vmatmul.f32.vlgmr.msrb.gmra.mxu3 %v12502_v41 }
0x169a   :  { %5468 = vmatpush.msra.mxu3 %v12287_v55  ;;  %5337 = vmatpush.msra.mxu0 %v12461_v52  ;;  %v5541_v52 = vld [vmem:[%s14386_s7 + $0x8] sm:$0xff] }
0x169b   :  { %5411 = vmatpush.msra.mxu2 %v5224_v48  ;;  %5376 = vmatpush.msra.mxu1 %v12409_v21 }
0x169c   :  { %5153 = vmatmul.f32.vlgmr.msrb.gmra.mxu1 %v12376_v37  ;;  %5470 = vmatpush.msra.mxu3 %v12300_v53 }
0x169d   :  { %5415 = vmatpush.msra.mxu2 %v5230_v50  ;;  %5340 = vmatpush.msra.mxu0 %v12473_v6 }
0x169e   :  { %5378 = vmatpush.msra.mxu1 %v12441_v54  ;;  %5472 = vmatpush.msra.mxu3 %v12349_v49 }
0x169f   :  { %5419 = vmatpush.msra.mxu2 %v5236_v46  ;;  %5343 = vmatpush.msra.mxu0 %v12483_v23  ;;  %v5540_v23 = vld [vmem:[%s14386_s7] sm:$0xff] }
0x16a0   :  { %5380 = vmatpush.msra.mxu1 %v12458_v42  ;;  %5474 = vmatpush.msra.mxu3 %v12354_v32 }
0x16a1   :  { %5423 = vmatpush.msra.mxu2 %v5242_v24  ;;  %5346 = vmatpush.msra.mxu0 %v12493_v13  ;;  %v12652_v13 = vand.u32 4294901760, %v5540_v23 }
0x16a2   :  { %5382 = vmatpush.msra.mxu1 %v12468_v27  ;;  %5349 = vmatmul.f32.vlgmr.msra.gmra.mxu0 %v12518_v51 }
0x16a3   :  { %5427 = vmatpush.msra.mxu2 %v5248_v62  ;;  %5476 = vmatpush.msra.mxu3 %v12366_v1  ;;  %v5607_v59 = vsub.f32 %v5540_v23, %v12652_v13 }
0x16a4   :  { %5384 = vmatpush.msra.mxu1 %v12475_v63 }
0x16a5   :  { %5388 = vmatmul.f32.vlgmr.msra.gmra.mxu1 %v5191_v8  ;;  %5431 = vmatpush.msra.mxu2 %v5254_v40 }
0x16a6   :  { %5478 = vmatpush.msra.mxu3 %v12382_v28 }
0x16a7   :  { %5435 = vmatpush.msra.mxu2 %v5260_v4 }
0x16a8   :  { %5480 = vmatpush.msra.mxu3 %v12387_v56 }
0x16a9   :  { %5439 = vmatpush.msra.mxu2 %v14414_v35 }
0x16aa   :  { %5482 = vmatpush.msra.mxu3 %v12389_v47 }
0x16ab   :  { %5443 = vmatpush.msra.mxu2 %v14415_v19 }
0x16ac   :  { %5484 = vmatpush.msra.mxu3 %v12409_v21 }
0x16ad   :  { %5447 = vmatpush.msra.mxu2 %v5278_v16  ;;  %v9839_v16 = vld [vmem:[%s14392_s13 + $0x8] sm:$0xff] }
0x16ae   :  { %5486 = vmatpush.msra.mxu3 %v12441_v54 }
0x16af   :  { %5451 = vmatpush.msra.mxu2 %v5284_v10  ;;  %v5545_v10 = vsel %vm59_vm0, %v9839_v16, 0 }
0x16b0   :  { %5488 = vmatpush.msra.mxu3 %v12458_v42  ;;  %v5542_v42 = vld [vmem:[%s14386_s7 + $0x10] sm:$0xff]  ;;  %v12662_v43 = vand.u32 4294901760, %v5545_v10 }
0x16b1   :  { %5455 = vmatpush.msra.mxu2 %v5290_v29  ;;  %v12642_v6 = vand.u32 4294901760, %v5542_v42 }
0x16b2   :  { %5490 = vmatpush.msra.mxu3 %v12468_v27  ;;  %5457 = vmatmul.f32.vlgmr.msra.gmra.mxu2 %v12502_v41  ;;  %v12640_v27 = vand.u32 4294901760, %v5543_v14  ;;  %v5568_v19 = vsub.f32 %v5545_v10, %v12662_v43 }
0x16b3   :  { %v5595_v29 = vsub.f32 %v5542_v42, %v12642_v6 }
0x16b4   :  { %5492 = vmatpush.msra.mxu3 %v12475_v63  ;;  %v12644_v63 = vand.u32 4294901760, %v5541_v52  ;;  %5560 = vmatpush.msrb.mxu0 %v12640_v27  ;;  %v5589_v25 = vsub.f32 %v5543_v14, %v12640_v27 }
0x16b5   :  { %5494 = vmatmul.f32.vlgmr.msra.gmra.mxu3 %v12502_v41  ;;  %v5539_v41 = vld [vmem:[%s14384_s5 + $0x18] sm:$0xff]  ;;  %v5596_v30 = vand.u32 4294901760, %v5595_v29 }
0x16b6   :  { %v5601_v51 = vsub.f32 %v5541_v52, %v12644_v63  ;;  %v12668_v8 = vand.u32 4294901760, %v5539_v41  ;;  %5562 = vmatpush.msrb.mxu0 %v12642_v6  ;;  %v5590_v17 = vand.u32 4294901760, %v5589_v25 }
0x16b8   :  { %v5602_v35 = vand.u32 4294901760, %v5601_v51  ;;  %5847 = vmatpush.msrb.mxu3 %v12668_v8  ;;  %5564 = vmatpush.msrb.mxu0 %v12644_v63 }
0x16ba   :  { %5849 = vmatpush.msrb.mxu3 %v12670_v60  ;;  %5566 = vmatpush.msrb.mxu0 %v12652_v13 }
0x16bc   :  { %5631 = vmatpush.msra.mxu0 %v5589_v25 }
0x16be   :  { %5634 = vmatpush.msra.mxu0 %v5595_v29 }
0x16c0   :  { %5637 = vmatpush.msra.mxu0 %v5601_v51 }
0x16c2   :  { %5640 = vmatpush.msra.mxu0 %v5607_v59 }
0x16f9   :  { %v5039_v20 = vpop.f32.mrf.mxu1 }
0x16fb   :  { %v4998_v9 = vpop.f32.mrf.mxu0 }
0x16fc   :  { %v5040_v7 = vadd.f32 %v5039_v20, %v4998_v9  ;;  %v5608_v20 = vand.u32 4294901760, %v5607_v59  ;;  %v12675_v9 = vsub.f32 %v5539_v41, %v12668_v8 }
0x16fd   :  { %v5069_v55 = vpop.f32.mrf.mxu2 }
0x16fe   :  { %v5070_v36 = vadd.f32 %v5069_v55, %v5040_v7  ;;  %v5591_v7 = vsub.f32 %v5589_v25, %v5590_v17  ;;  %v5597_v55 = vsub.f32 %v5595_v29, %v5596_v30  ;;  %5818 = vmatpush.msrb.mxu2 %v12675_v9 }
0x1712   :  { %v5096_v3 = vpop.f32.mrf.mxu3 }
0x1713   :  { %v5097_v34 = vadd.f32 %v5096_v3, %v5070_v36  ;;  %v5603_v36 = vsub.f32 %v5601_v51, %v5602_v35  ;;  %v5569_v3 = vand.u32 4294901760, %v5568_v19 }
0x1715   :  { %v5129_v53 = vpop.f32.mrf.mxu0 }
0x1716   :  { %v5130_v15 = vadd.f32 %v5129_v53, %v5097_v34  ;;  %v12680_v34 = vsub.f32 %v5538_v61, %v12670_v60  ;;  %v5592_v53 = vand.u32 4294901760, %v5591_v7 }
0x1718   :  { %5821 = vmatpush.msrb.mxu2 %v12680_v34  ;;  %5593 = vmatpush.msrb.mxu1 %v5592_v53 }
0x1719   :  { %v5154_v0 = vpop.f32.mrf.mxu1  ;;  %v5195_v49 = vpop.f32.mrf.mxu2 }
0x171a   :  { %v5155_v57 = vadd.f32 %v5154_v0, %v5130_v15  ;;  %v5598_v15 = vand.u32 4294901760, %v5597_v55  ;;  %v5570_v0 = vsub.f32 %v5568_v19, %v5569_v3 }
0x171c   :  { %v5196_v11 = vadd.f32 %v5195_v49, %v5155_v57  ;;  %v5296_v32 = vpop.f32.mrf.mxu3  ;;  %v5609_v57 = vsub.f32 %v5607_v59, %v5608_v20  ;;  %v5604_v49 = vand.u32 4294901760, %v5603_v36  ;;  %5599 = vmatpush.msrb.mxu1 %v5598_v15 }
0x171e   :  { %v5297_v1 = vadd.f32 %v5296_v32, %v5196_v11  ;;  %v5571_v11 = vand.u32 4294901760, %v5570_v0  ;;  %v5610_v32 = vand.u32 4294901760, %v5609_v57  ;;  %5605 = vmatpush.msrb.mxu1 %v5604_v49 }
0x171f   :  { %v5350_v48 = vpop.f32.mrf.mxu0 }
0x1720   :  { %v5351_v5 = vadd.f32 %v5350_v48, %v5297_v1  ;;  %5572 = vmatmul.f32.vlgmr.msrb.gmra.mxu0 %v5571_v11  ;;  %5611 = vmatpush.msrb.mxu1 %v5610_v32  ;;  %v5777_v1 = vand.u32 4294901760, %v12675_v9  ;;  %v5783_v48 = vand.u32 4294901760, %v12680_v34 }
0x1721   :  { %5689 = vmatpush.msrb.mxu0 %v5590_v17  ;;  %5613 = vmatmul.f32.vlgmr.msrb.gmra.mxu1 %v12662_v43 }
0x1722   :  { %v5389_v38 = vpop.f32.mrf.mxu1  ;;  %5660 = vmatpush.msra.mxu1 %v12640_v27 }
0x1723   :  { %v5390_v37 = vadd.f32 %v5389_v38, %v5351_v5  ;;  %5693 = vmatpush.msrb.mxu0 %v5596_v30  ;;  %v5778_v5 = vsub.f32 %v12675_v9, %v5777_v1 }
0x1724   :  { %5662 = vmatpush.msra.mxu1 %v12642_v6 }
0x1725   :  { %5697 = vmatpush.msrb.mxu0 %v5602_v35 }
0x1726   :  { %5664 = vmatpush.msra.mxu1 %v12644_v63 }
0x1727   :  { %5701 = vmatpush.msrb.mxu0 %v5608_v20 }
0x1728   :  { %5643 = vmatmul.f32.vlgmr.msra.gmra.mxu0 %v5568_v19  ;;  %5666 = vmatpush.msra.mxu1 %v12652_v13 }
0x1729   :  { %5747 = vmatpush.msra.mxu0 %v12668_v8  ;;  %5670 = vmatmul.f32.vlgmr.msra.gmra.mxu1 %v5569_v3 }
0x172a   :  { %5720 = vmatpush.msrb.mxu1 %v12640_v27 }
0x172b   :  { %5749 = vmatpush.msra.mxu0 %v12670_v60 }
0x172c   :  { %5722 = vmatpush.msrb.mxu1 %v12642_v6 }
0x172e   :  { %5724 = vmatpush.msrb.mxu1 %v12644_v63 }
0x1730   :  { %5703 = vmatmul.f32.vlgmr.msrb.gmra.mxu0 %v12662_v43  ;;  %5726 = vmatpush.msrb.mxu1 %v12652_v13 }
0x1731   :  { %5728 = vmatmul.f32.vlgmr.msrb.gmra.mxu1 %v12662_v43 }
0x1735   :  { %v5458_v28 = vpop.f32.mrf.mxu2 }
0x1736   :  { %v5459_v2 = vadd.f32 %v5458_v28, %v5390_v37  ;;  %v5784_v37 = vsub.f32 %v12680_v34, %v5783_v48 }
0x1738   :  { %v5495_v56 = vpop.f32.mrf.mxu3 }
0x1739   :  { %v5496_v47 = vadd.f32 %v5495_v56, %v5459_v2  ;;  %v5779_v2 = vand.u32 4294901760, %v5778_v5  ;;  %v5785_v56 = vand.u32 4294901760, %v5784_v37 }
0x173b   :  { %v5498_v50 = vadd.f32 %v10432_v12, %v5496_v47  ;;  %5780 = vmatpush.msra.mxu1 %v5779_v2  ;;  %v5537_v47 = vld [vmem:[%s14384_s5 + $0x8] sm:$0xff]  ;;  %v5957_v2 = vld [vmem:[%s14389_s10 + $0x10] sm:$0xff] }
0x173d   :  { %v5499_v46 = vmul.f32 %v5498_v50, %v10434_v33  ;;  %5786 = vmatpush.msra.mxu1 %v5785_v56  ;;  %v5750_v50 = vand.u32 4294901760, %v5537_v47 }
0x173f   :  { %9912 = vtanh.f32 %v5499_v46  ;;  %v5536_v46 = vld [vmem:[%s14384_s5] sm:$0xff]  ;;  %5851 = vmatpush.msrb.mxu3 %v5750_v50  ;;  %5751 = vmatpush.msra.mxu0 %v5750_v50 }
0x1745   :  { %v9913_v31 = vpop.eup %9912 }
0x1746   :  { %v5501_v24 = vmul.f32 %v9913_v31, %v10434_v33  ;;  %v5788_v31 = vsub.f32 %v5537_v47, %v5750_v50  ;;  %v5975_v47 = vand.u32 4294901760, %v5957_v2 }
0x1748   :  { %v12616_v45 = vadd.f32 %v5501_v24, %v10438_v44  ;;  %v5752_v24 = vand.u32 4294901760, %v5536_v46  ;;  %5824 = vmatpush.msrb.mxu2 %v5788_v31 }
0x174a   :  { %5509 = vrot.lane.b32.xlu0 %v12616_v45, %s9961_s8  ;;  %5853 = vmatpush.msrb.mxu3 %v5752_v24 }
0x174b   :  { %5753 = vmatpush.msra.mxu0 %v5752_v24 }
0x174d   :  { %5876 = vmatpush.msrb.mxu0 %v5777_v1 }
0x174f   :  { %5880 = vmatpush.msrb.mxu0 %v5783_v48 }
0x1752   :  { %5504 = vrot.lane.b32.xlu0 %v4948_v18, %s9962_s20  ;;  %v5794_v18 = vsub.f32 %v5536_v46, %v5752_v24  ;;  %v6009_v46 = vsub.f32 %v5957_v2, %v5975_v47 }
0x1754   :  { %5827 = vmatpush.msrb.mxu2 %v5794_v18 }
0x179d   :  { %v5573_v13 = vpop.f32.mrf.mxu0 }
0x179e   :  { %v5614_v16 = vpop.f32.mrf.mxu1 }
0x179f   :  { %v5615_v25 = vadd.f32 %v5614_v16, %v5573_v13 }
0x17a5   :  { %v5644_v41 = vpop.f32.mrf.mxu0 }
0x17a6   :  { %v5671_v10 = vpop.f32.mrf.mxu1  ;;  %v5645_v29 = vadd.f32 %v5644_v41, %v5615_v25 }
0x17a8   :  { %v5672_v43 = vadd.f32 %v5671_v10, %v5645_v29 }
0x17ad   :  { %v5704_v61 = vpop.f32.mrf.mxu0 }
0x17ae   :  { %v5729_v51 = vpop.f32.mrf.mxu1  ;;  %v5705_v59 = vadd.f32 %v5704_v61, %v5672_v43 }
0x17bc   :  { %v5510_v21 = vpop.permute.xlu0 %5509 }
0x17bd   :  { %v5512_v58 = vmul.f32 %v5510_v21, %v12616_v45 }
0x17bf   :  { %5514 = vrot.lane.b32.xlu1 %v5512_v58, %s9962_s20  ;;  %v5795_v58 = vand.u32 4294901760, %v5794_v18 }
0x17c4   :  { %v5505_v62 = vpop.permute.xlu0 %5504 }
0x17c5   :  { %v5507_v40 = vmul.f32 %v5505_v62, %v12616_v45 }
0x1831   :  { %v5515_v22 = vpop.permute.xlu1 %5514 }
0x1832   :  { %v12627_v54 = vadd.f32 %v5515_v22, %v5507_v40  ;;  %v5796_v40 = vsub.f32 %v5794_v18, %v5795_v58 }
0x1834   :  { %9914 = vtanh.f32 %v12627_v54  ;;  %v5797_v22 = vand.u32 4294901760, %v5796_v40 }
0x183a   :  { %v9915_v4 = vpop.eup %9914 }
0x183b   :  { %5520 = vrot.lane.b32.xlu1 %v9915_v4, %s9961_s8  ;;  %v9840_v4 = vld [vmem:[%s14393_s14 + $0x8] sm:$0xff] }
0x183c   :  { %5925 = vrot.lane.b32.xlu0 %v9840_v4, %s9962_s20  ;;  %v5956_v4 = vld [vmem:[%s14389_s10 + $0x8] sm:$0xff] }
0x18ad   :  { %v5521_v38 = vpop.permute.xlu1 %5520 }
0x18ae   :  { %v5523_v28 = vmul.f32 %v5521_v38, %v12616_v45  ;;  %v5789_v45 = vand.u32 4294901760, %v5788_v31  ;;  %v5926_v1 = vpop.permute.xlu0 %5925 }
0x18b0   :  { %5525 = vrot.lane.b32.xlu2 %v5523_v28, %s9962_s20  ;;  %v5790_v21 = vsub.f32 %v5788_v31, %v5789_v45  ;;  %5884 = vmatpush.msrb.mxu0 %v5789_v45 }
0x18b2   :  { %v5791_v62 = vand.u32 4294901760, %v5790_v21  ;;  %5888 = vmatpush.msrb.mxu0 %v5795_v58 }
0x18b4   :  { %5792 = vmatpush.msra.mxu1 %v5791_v62 }
0x18b6   :  { %5798 = vmatpush.msra.mxu1 %v5797_v22 }
0x18b8   :  { %5907 = vmatpush.msrb.mxu1 %v12668_v8  ;;  %v5730_v8 = vadd.f32 %v5729_v51, %v5705_v59 }
0x18ba   :  { %5909 = vmatpush.msrb.mxu1 %v12670_v60 }
0x18bc   :  { %5911 = vmatpush.msrb.mxu1 %v5750_v50 }
0x18be   :  { %5913 = vmatpush.msrb.mxu1 %v5752_v24  ;;  %v6010_v24 = vand.u32 4294901760, %v6009_v46 }
0x18c0   :  { %v6011_v18 = vsub.f32 %v6009_v46, %v6010_v24 }
0x18c2   :  { %v6012_v58 = vand.u32 4294901760, %v6011_v18 }
0x190a   :  { %v5526_v14 = vpop.permute.xlu2 %5525 }
0x190b   :  { %5528 = vst.msk [vmem:[%s14392_s13] sm:$0xff] %vm59_vm0, %v5526_v14  ;;  %v5732_v42 = vsel %vm59_vm0, %v5526_v14, 0  ;;  %v5977_v14 = vand.u32 4294901760, %v5956_v4 }
0x190c   :  { %v5754_v52 = vand.u32 4294901760, %v5732_v42 }
0x190e   :  { %v5755_v27 = vsub.f32 %v5732_v42, %v5754_v52  ;;  %5800 = vmatmul.f32.vlgmr.msra.gmra.mxu1 %v5754_v52  ;;  %v5955_v42 = vld [vmem:[%s14389_s10] sm:$0xff] }
0x1910   :  { %v5756_v6 = vand.u32 4294901760, %v5755_v27  ;;  %5830 = vmatmul.f32.vlgmr.msrb.gmra.mxu2 %v5755_v27 }
0x1912   :  { %v5757_v63 = vsub.f32 %v5755_v27, %v5756_v6  ;;  %5857 = vmatmul.f32.vlgmr.msrb.gmra.mxu3 %v5756_v6  ;;  %v5979_v27 = vand.u32 4294901760, %v5955_v42 }
0x1914   :  { %v5758_v23 = vand.u32 4294901760, %v5757_v63  ;;  %v6021_v63 = vsub.f32 %v5955_v42, %v5979_v27 }
0x1916   :  { %5759 = vmatmul.f32.vlgmr.msra.gmra.mxu0 %v5758_v23  ;;  %5915 = vmatmul.f32.vlgmr.msrb.gmra.mxu1 %v5754_v52  ;;  %v6022_v16 = vand.u32 4294901760, %v6021_v63 }
0x1918   :  { %v6023_v10 = vsub.f32 %v6021_v63, %v6022_v16 }
0x191a   :  { %v6024_v41 = vand.u32 4294901760, %v6023_v10 }
0x191e   :  { %5890 = vmatmul.f32.vlgmr.msrb.gmra.mxu0 %v5754_v52  ;;  %v6015_v52 = vsub.f32 %v5956_v4, %v5977_v14 }
0x1920   :  { %v6016_v6 = vand.u32 4294901760, %v6015_v52 }
0x1922   :  { %v6017_v23 = vsub.f32 %v6015_v52, %v6016_v6 }
0x1924   :  { %v6018_v13 = vand.u32 4294901760, %v6017_v23 }
0x198b   :  { %v5801_v60 = vpop.f32.mrf.mxu1 }
0x1993   :  { %v5760_v17 = vpop.f32.mrf.mxu0  ;;  %v5831_v19 = vpop.f32.mrf.mxu2 }
0x1994   :  { %v5761_v30 = vadd.f32 %v5760_v17, %v5730_v8  ;;  %v5916_v3 = vpop.f32.mrf.mxu1 }
0x1995   :  { %v5858_v9 = vpop.f32.mrf.mxu3 }
0x1996   :  { %v5802_v35 = vadd.f32 %v5801_v60, %v5761_v30 }
0x1998   :  { %v5832_v20 = vadd.f32 %v5831_v19, %v5802_v35 }
0x199a   :  { %v5859_v7 = vadd.f32 %v5858_v9, %v5832_v20 }
0x199b   :  { %v5891_v55 = vpop.f32.mrf.mxu0 }
0x199c   :  { %v5892_v36 = vadd.f32 %v5891_v55, %v5859_v7 }
0x199e   :  { %v5917_v34 = vadd.f32 %v5916_v3, %v5892_v36 }
0x19a0   :  { %v5919_v53 = vadd.f32 %v10559_v26, %v5917_v34 }
0x19a2   :  { %v5920_v15 = vmul.f32 %v5919_v53, %v10434_v33 }
0x19a4   :  { %9916 = vtanh.f32 %v5920_v15 }
0x19aa   :  { %v9917_v0 = vpop.eup %9916 }
0x19ab   :  { %v5922_v57 = vmul.f32 %v9917_v0, %v10434_v33 }
0x19ad   :  { %v5923_v49 = vadd.f32 %v5922_v57, %v10438_v44 }
0x19af   :  { %5930 = vrot.lane.b32.xlu2 %v5923_v49, %s9961_s8  ;;  %v5928_v48 = vmul.f32 %v5926_v1, %v5923_v49 }
0x1a09   :  { %v5931_v11 = vpop.permute.xlu2 %5930 }
0x1a0a   :  { %v5933_v32 = vmul.f32 %v5931_v11, %v5923_v49 }
0x1a0c   :  { %5935 = vrot.lane.b32.xlu1 %v5933_v32, %s9962_s20 }
0x1a14   :  { %5530 = vrot.lane.b32.xlu1 %v12627_v54, %s9963_s9  ;;  %v5958_v54 = vld [vmem:[%s14389_s10 + $0x18] sm:$0xff] }
0x1a15   :  { %v5973_v56 = vand.u32 4294901760, %v5958_v54 }
0x1a17   :  { %v6003_v50 = vsub.f32 %v5958_v54, %v5973_v56  ;;  %6074 = vmatpush.msra.mxu1 %v5973_v56  ;;  %5974 = vmatpush.msra.mxu2 %v5973_v56 }
0x1a19   :  { %v6004_v31 = vand.u32 4294901760, %v6003_v50  ;;  %6045 = vmatpush.msra.mxu0 %v6003_v50  ;;  %6076 = vmatpush.msra.mxu1 %v5975_v47 }
0x1a1a   :  { %5976 = vmatpush.msra.mxu2 %v5975_v47 }
0x1a1b   :  { %v6005_v45 = vsub.f32 %v6003_v50, %v6004_v31  ;;  %6048 = vmatpush.msra.mxu0 %v6009_v46  ;;  %6078 = vmatpush.msra.mxu1 %v5977_v14 }
0x1a1c   :  { %5978 = vmatpush.msra.mxu2 %v5977_v14 }
0x1a1d   :  { %v6006_v21 = vand.u32 4294901760, %v6005_v45  ;;  %6051 = vmatpush.msra.mxu0 %v6015_v52  ;;  %6080 = vmatpush.msra.mxu1 %v5979_v27 }
0x1a1e   :  { %5980 = vmatpush.msra.mxu2 %v5979_v27 }
0x1a1f   :  { %6007 = vmatpush.msra.mxu3 %v6006_v21  ;;  %6054 = vmatpush.msra.mxu0 %v6021_v63 }
0x1a20   :  { %6103 = vmatpush.msrb.mxu2 %v6004_v31 }
0x1a21   :  { %6013 = vmatpush.msra.mxu3 %v6012_v58 }
0x1a22   :  { %6107 = vmatpush.msrb.mxu2 %v6010_v24 }
0x1a23   :  { %6019 = vmatpush.msra.mxu3 %v6018_v13 }
0x1a24   :  { %6111 = vmatpush.msrb.mxu2 %v6016_v6 }
0x1a25   :  { %6025 = vmatpush.msra.mxu3 %v6024_v41 }
0x1a26   :  { %6115 = vmatpush.msrb.mxu2 %v6022_v16 }
0x1a27   :  { %6134 = vmatpush.msrb.mxu3 %v5973_v56 }
0x1a29   :  { %6136 = vmatpush.msrb.mxu3 %v5975_v47 }
0x1a2b   :  { %6138 = vmatpush.msrb.mxu3 %v5977_v14 }
0x1a2d   :  { %6140 = vmatpush.msrb.mxu3 %v5979_v27 }
0x1a7e   :  { %v5936_v5 = vpop.permute.xlu1 %5935 }
0x1a7f   :  { %v5938_v38 = vadd.f32 %v5936_v5, %v5928_v48 }
0x1a81   :  { %9918 = vtanh.f32 %v5938_v38 }
0x1a86   :  { %v5531_v37 = vpop.permute.xlu1 %5530 }
0x1a87   :  { %v9919_v28 = vpop.eup %9918  ;;  %5533 = vst.msk [vmem:[%s14393_s14] sm:$0xff] %vm59_vm0, %v5531_v37 }
0x1a88   :  { %5941 = vrot.lane.b32.xlu2 %v9919_v28, %s9961_s8 }
0x1a90   :  { %5951 = vrot.lane.b32.xlu2 %v5938_v38, %s9963_s9 }
0x1ae2   :  { %v5942_v62 = vpop.permute.xlu2 %5941 }
0x1ae3   :  { %v5944_v40 = vmul.f32 %v5942_v62, %v5923_v49 }
0x1ae5   :  { %5946 = vrot.lane.b32.xlu0 %v5944_v40, %s9962_s20 }
0x1aea   :  { %v5952_v22 = vpop.permute.xlu2 %5951 }
0x1aeb   :  { %9842 = vst.msk [vmem:[%s14393_s14 + $0x8] sm:$0xff] %vm59_vm0, %v5952_v22 }
0x1b57   :  { %v5947_v25 = vpop.permute.xlu0 %5946 }
0x1b58   :  { %9841 = vst.msk [vmem:[%s14392_s13 + $0x8] sm:$0xff] %vm59_vm0, %v5947_v25  ;;  %v5959_v29 = vsel %vm59_vm0, %v5947_v25, 0 }
0x1b59   :  { %v5981_v51 = vand.u32 4294901760, %v5959_v29 }
0x1b5b   :  { %v5982_v43 = vsub.f32 %v5959_v29, %v5981_v51  ;;  %6027 = vmatmul.f32.vlgmr.msra.gmra.mxu3 %v5981_v51 }
0x1b5d   :  { %v5983_v61 = vand.u32 4294901760, %v5982_v43  ;;  %6057 = vmatmul.f32.vlgmr.msra.gmra.mxu0 %v5982_v43 }
0x1b5f   :  { %v5984_v59 = vsub.f32 %v5982_v43, %v5983_v61  ;;  %6084 = vmatmul.f32.vlgmr.msra.gmra.mxu1 %v5983_v61 }
0x1b61   :  { %v5985_v8 = vand.u32 4294901760, %v5984_v59 }
0x1b63   :  { %5986 = vmatmul.f32.vlgmr.msra.gmra.mxu2 %v5985_v8  ;;  %6142 = vmatmul.f32.vlgmr.msrb.gmra.mxu3 %v5981_v51 }
0x1b6b   :  { %6117 = vmatmul.f32.vlgmr.msrb.gmra.mxu2 %v5981_v51 }
0x1bda   :  { %v6058_v19 = vpop.f32.mrf.mxu0 }
0x1bdc   :  { %v6085_v9 = vpop.f32.mrf.mxu1 }
0x1bde   :  { %v6028_v60 = vpop.f32.mrf.mxu3 }
0x1be6   :  { %v5987_v17 = vpop.f32.mrf.mxu2  ;;  %v6143_v3 = vpop.f32.mrf.mxu3 }
0x1be7   :  { %v5988_v30 = vadd.f32 %v10600_v39, %v5987_v17 }
0x1be9   :  { %v6029_v35 = vadd.f32 %v6028_v60, %v5988_v30 }
0x1beb   :  { %v6059_v20 = vadd.f32 %v6058_v19, %v6029_v35 }
0x1bed   :  { %v6086_v7 = vadd.f32 %v6085_v9, %v6059_v20 }
0x1bee   :  { %v6118_v55 = vpop.f32.mrf.mxu2 }
0x1bef   :  { %v6119_v36 = vadd.f32 %v6118_v55, %v6086_v7  ;;  %6152 = sbr.rel (%p9845_p8) target bundleno = 7158 (0x1bf6), region = 89 }
0x1bf1   :  { %v6144_v34 = vadd.f32 %v6143_v3, %v6119_v36 }
0x1bf3   :  { %9843 = vst [vmem:[%s14391_s12 + $0x20] sm:$0xff] %v6144_v34 }
0x1bf4   :  { %v9846_v53 = vld [vmem:[%s14380_s1 + $0x20] sm:$0xff] }
0x1bf5   :  { %6155 = vst [vmem:[#allocation2] sm:$0xff] %v9846_v53 }
0x1bf6 PF:  { %p9847_p9 = scmp.ne.s32.totalorder %s9844_s15, 0 }
0x1bf8   :  { %6159 = sbr.rel (%p9847_p9) target bundleno = 7166 (0x1bfe), region = 93 }
0x1bfd   :  { %6160 = vst [vmem:[#allocation2] sm:$0xff] %v6144_v34 }
0x1bfe PF:  { %v6183_v15 = vld [vmem:[%s14385_s6 + $0x18] sm:$0xff]  ;;  %v6182_v0 = vld [vmem:[%s14385_s6 + $0x10] sm:$0xff]  ;;  %v6181_v57 = vld [vmem:[%s14385_s6 + $0x8] sm:$0xff]  ;;  %s9853_s22 = sld [smem:[#allocation3 + $0x5]] }
0x1bff   :  { %v12774_v49 = vand.u32 4294901760, %v6183_v15  ;;  %v12776_v11 = vand.u32 4294901760, %v6182_v0  ;;  %v12778_v32 = vand.u32 4294901760, %v6181_v57  ;;  %v6180_v1 = vld [vmem:[%s14385_s6] sm:$0xff]  ;;  %v6179_v48 = vld [vmem:[%s14383_s4 + $0x78] sm:$0xff]  ;;  %v6178_v5 = vld [vmem:[%s14383_s4 + $0x70] sm:$0xff] }
0x1c00   :  { %v12789_v38 = vand.u32 4294901760, %v6180_v1  ;;  %v12791_v37 = vand.u32 4294901760, %v6179_v48  ;;  %v12793_v28 = vand.u32 4294901760, %v6178_v5  ;;  %v6177_v54 = vld [vmem:[%s14383_s4 + $0x68] sm:$0xff]  ;;  %v6176_v2 = vld [vmem:[%s14383_s4 + $0x60] sm:$0xff]  ;;  %v6175_v31 = vld [vmem:[%s14383_s4 + $0x58] sm:$0xff] }
0x1c01   :  { %v12802_v56 = vsub.f32 %v6183_v15, %v12774_v49  ;;  %v12805_v47 = vsub.f32 %v6182_v0, %v12776_v11  ;;  %6300 = vmatpush.msra.mxu3 %v12774_v49  ;;  %v12809_v50 = vsub.f32 %v6181_v57, %v12778_v32  ;;  %6200 = vmatpush.msrb.mxu0 %v12774_v49  ;;  %v12812_v46 = vand.u32 4294901760, %v6177_v54  ;;  %v6174_v25 = vld [vmem:[%s14383_s4 + $0x50] sm:$0xff]  ;;  %v6173_v29 = vld [vmem:[%s14383_s4 + $0x48] sm:$0xff]  ;;  %v6172_v8 = vld [vmem:[%s14383_s4 + $0x40] sm:$0xff] }
0x1c02   :  { %v12818_v24 = vsub.f32 %v6180_v1, %v12789_v38  ;;  %v12821_v45 = vsub.f32 %v6179_v48, %v12791_v37  ;;  %v12824_v18 = vsub.f32 %v6178_v5, %v12793_v28  ;;  %v12826_v21 = vand.u32 4294901760, %v6176_v2  ;;  %v6162_v60 = vld [vmem:[%s14392_s13] sm:$0xff]  ;;  %v6171_v36 = vld [vmem:[%s14383_s4 + $0x38] sm:$0xff]  ;;  %v6170_v3 = vld [vmem:[%s14383_s4 + $0x30] sm:$0xff] }
0x1c03   :  { %6271 = vmatpush.msra.mxu2 %v12802_v56  ;;  %6302 = vmatpush.msra.mxu3 %v12776_v11  ;;  %v6230_v58 = vand.u32 4294901760, %v12802_v56  ;;  %v6236_v62 = vand.u32 4294901760, %v12805_v47  ;;  %v12833_v40 = vsub.f32 %v6177_v54, %v12812_v46  ;;  %v6242_v22 = vand.u32 4294901760, %v12809_v50  ;;  %v6169_v34 = vld [vmem:[%s14383_s4 + $0x28] sm:$0xff] }
0x1c04   :  { %v6415_v4 = vand.u32 4294901760, %v12821_v45  ;;  %6202 = vmatpush.msrb.mxu0 %v12776_v11  ;;  %v6421_v14 = vand.u32 4294901760, %v12824_v18  ;;  %v12839_v42 = vand.u32 4294901760, %v6175_v31  ;;  %v12842_v52 = vsub.f32 %v6176_v2, %v12826_v21  ;;  %v6168_v2 = vld [vmem:[%s14383_s4 + $0x20] sm:$0xff]  ;;  %p9854_p10 = scmp.eq.s32.totalorder %s9853_s22, 0 }
0x1c05   :  { %6274 = vmatpush.msra.mxu2 %v12805_v47  ;;  %6304 = vmatpush.msra.mxu3 %v12778_v32  ;;  %v6231_v27 = vsub.f32 %v12802_v56, %v6230_v58  ;;  %v6237_v6 = vsub.f32 %v12805_v47, %v6236_v62  ;;  %v6427_v63 = vand.u32 4294901760, %v12833_v40  ;;  %v6243_v23 = vsub.f32 %v12809_v50, %v6242_v22 }
0x1c06   :  { %v6416_v16 = vsub.f32 %v12821_v45, %v6415_v4  ;;  %v6422_v13 = vsub.f32 %v12824_v18, %v6421_v14  ;;  %6204 = vmatpush.msrb.mxu0 %v12778_v32  ;;  %v6433_v10 = vand.u32 4294901760, %v12842_v52  ;;  %v6248_v41 = vand.u32 4294901760, %v12818_v24 }
0x1c07   :  { %6277 = vmatpush.msra.mxu2 %v12809_v50  ;;  %6306 = vmatpush.msra.mxu3 %v12789_v38  ;;  %v6232_v51 = vand.u32 4294901760, %v6231_v27  ;;  %v6238_v43 = vand.u32 4294901760, %v6237_v6  ;;  %v6428_v61 = vsub.f32 %v12833_v40, %v6427_v63  ;;  %v6244_v59 = vand.u32 4294901760, %v6243_v23 }
0x1c08   :  { %v6417_v17 = vand.u32 4294901760, %v6416_v16  ;;  %v6423_v30 = vand.u32 4294901760, %v6422_v13  ;;  %6206 = vmatpush.msrb.mxu0 %v12789_v38  ;;  %v6434_v35 = vsub.f32 %v12842_v52, %v6433_v10  ;;  %v6249_v19 = vsub.f32 %v12818_v24, %v6248_v41 }
0x1c09   :  { %6280 = vmatpush.msra.mxu2 %v12818_v24  ;;  %6233 = vmatpush.msrb.mxu1 %v6232_v51  ;;  %v6429_v20 = vand.u32 4294901760, %v6428_v61  ;;  %v12888_v9 = vand.u32 4294901760, %v6174_v25  ;;  %v12891_v7 = vsub.f32 %v6175_v31, %v12839_v42  ;;  %v12893_v55 = vand.u32 4294901760, %v6173_v29 }
0x1c0a   :  { %6418 = vmatpush.msrb.mxu3 %v6417_v17  ;;  %v6435_v53 = vand.u32 4294901760, %v6434_v35  ;;  %v6250_v15 = vand.u32 4294901760, %v6249_v19  ;;  %v12905_v0 = vand.u32 4294901760, %v6172_v8  ;;  %v6185_v57 = vsel %vm59_vm0, %v6162_v60, 0  ;;  %6329 = vmatpush.msra.mxu0 %v6230_v58 }
0x1c0b   :  { %6373 = vmatpush.msrb.mxu2 %v12791_v37  ;;  %6239 = vmatpush.msrb.mxu1 %v6238_v43  ;;  %v6439_v1 = vand.u32 4294901760, %v12891_v7  ;;  %v12910_v48 = vsub.f32 %v6174_v25, %v12888_v9  ;;  %v12913_v5 = vsub.f32 %v6173_v29, %v12893_v55  ;;  %v12915_v54 = vand.u32 4294901760, %v6185_v57 }
0x1c0c   :  { %6424 = vmatpush.msrb.mxu3 %v6423_v30  ;;  %v12921_v56 = vand.u32 4294901760, %v6171_v36  ;;  %v12924_v31 = vsub.f32 %v6172_v8, %v12905_v0  ;;  %v12926_v58 = vand.u32 4294901760, %v6170_v3  ;;  %v12928_v27 = vand.u32 4294901760, %v6169_v34  ;;  %6333 = vmatpush.msra.mxu0 %v6236_v62  ;;  %v6167_v62 = vld [vmem:[%s14383_s4 + $0x18] sm:$0xff] }
0x1c0d   :  { %6375 = vmatpush.msrb.mxu2 %v12793_v28  ;;  %6245 = vmatpush.msrb.mxu1 %v6244_v59  ;;  %v6440_v6 = vsub.f32 %v12891_v7, %v6439_v1  ;;  %v6445_v23 = vand.u32 4294901760, %v12910_v48  ;;  %v6451_v16 = vand.u32 4294901760, %v12913_v5  ;;  %v12938_v13 = vsub.f32 %v6185_v57, %v12915_v54 }
0x1c0e   :  { %6430 = vmatpush.msrb.mxu3 %v6429_v20  ;;  %v6457_v25 = vand.u32 4294901760, %v12924_v31  ;;  %v12943_v29 = vsub.f32 %v6171_v36, %v12921_v56  ;;  %v12946_v51 = vsub.f32 %v6170_v3, %v12926_v58  ;;  %v12948_v47 = vand.u32 4294901760, %v6168_v2  ;;  %6337 = vmatpush.msra.mxu0 %v6242_v22  ;;  %v6166_v22 = vld [vmem:[%s14383_s4 + $0x10] sm:$0xff]  ;;  %v6165_v36 = vld [vmem:[%s14383_s4 + $0x8] sm:$0xff] }
0x1c0f   :  { %6377 = vmatpush.msrb.mxu2 %v12812_v46  ;;  %6251 = vmatpush.msrb.mxu1 %v6250_v15  ;;  %v6441_v43 = vand.u32 4294901760, %v6440_v6  ;;  %v6446_v61 = vsub.f32 %v12910_v48, %v6445_v23  ;;  %v6452_v59 = vsub.f32 %v12913_v5, %v6451_v16  ;;  %v6209_v8 = vand.u32 4294901760, %v12938_v13 }
0x1c10   :  { %6436 = vmatpush.msrb.mxu3 %v6435_v53  ;;  %v6458_v60 = vsub.f32 %v12924_v31, %v6457_v25  ;;  %v6463_v17 = vand.u32 4294901760, %v12943_v29  ;;  %v6469_v30 = vand.u32 4294901760, %v12946_v51  ;;  %v12969_v50 = vsub.f32 %v6169_v34, %v12928_v27  ;;  %6341 = vmatpush.msra.mxu0 %v6248_v41  ;;  %v6164_v41 = vld [vmem:[%s14383_s4] sm:$0xff] }
0x1c11   :  { %6379 = vmatpush.msrb.mxu2 %v12826_v21  ;;  %6360 = vmatpush.msra.mxu1 %v12774_v49  ;;  %v6447_v35 = vand.u32 4294901760, %v6446_v61  ;;  %v6210_v19 = vsub.f32 %v12938_v13, %v6209_v8  ;;  %v12980_v20 = vand.u32 4294901760, %v6167_v62  ;;  %v6453_v3 = vand.u32 4294901760, %v6452_v59 }
0x1c12   :  { %6442 = vmatpush.msrb.mxu3 %v6441_v43  ;;  %v6464_v49 = vsub.f32 %v12943_v29, %v6463_v17  ;;  %v6475_v24 = vand.u32 4294901760, %v12969_v50  ;;  %v12995_v53 = vsub.f32 %v6168_v2, %v12948_v47  ;;  %v12997_v15 = vand.u32 4294901760, %v6166_v22  ;;  %6283 = vmatmul.f32.vlgmr.msra.gmra.mxu2 %v12938_v13 }
0x1c13   :  { %6381 = vmatpush.msrb.mxu2 %v12839_v42  ;;  %6362 = vmatpush.msra.mxu1 %v12776_v11  ;;  %v6211_v34 = vand.u32 4294901760, %v6210_v19  ;;  %v13000_v57 = vsub.f32 %v6167_v62, %v12980_v20  ;;  %v6459_v6 = vand.u32 4294901760, %v6458_v60  ;;  %v6470_v43 = vsub.f32 %v12946_v51, %v6469_v30 }
0x1c14   :  { %6448 = vmatpush.msrb.mxu3 %v6447_v35  ;;  %v13007_v11 = vand.u32 4294901760, %v6165_v36  ;;  %v14403_v2 = vand.u32 4294901760, %v12995_v53  ;;  %v13012_v62 = vsub.f32 %v6166_v22, %v12997_v15  ;;  %v13014_v61 = vand.u32 4294901760, %v6164_v41  ;;  %v6161_v22 = vld [vmem:[#allocation2] sm:$0xff]  ;;  %6253 = vmatmul.f32.vlgmr.msrb.gmra.mxu1 %v12915_v54 }
0x1c15   :  { %6383 = vmatpush.msrb.mxu2 %v12888_v9  ;;  %6364 = vmatpush.msra.mxu1 %v12778_v32  ;;  %v6465_v59 = vand.u32 4294901760, %v6464_v49  ;;  %v6476_v60 = vsub.f32 %v12969_v50, %v6475_v24  ;;  %v14402_v35 = vand.u32 4294901760, %v13000_v57  ;;  %v6471_v19 = vand.u32 4294901760, %v6470_v43 }
0x1c16   :  { %6212 = vmatmul.f32.vlgmr.msrb.gmra.mxu0 %v6211_v34  ;;  %6454 = vmatpush.msrb.mxu3 %v6453_v3  ;;  %v13022_v32 = vsub.f32 %v6165_v36, %v13007_v11  ;;  %v6482_v3 = vsub.f32 %v12995_v53, %v14403_v2  ;;  %v6493_v49 = vand.u32 4294901760, %v13012_v62  ;;  %v13032_v34 = vsub.f32 %v6164_v41, %v13014_v61 }
0x1c17   :  { %6385 = vmatpush.msrb.mxu2 %v12893_v55  ;;  %6516 = vmatpush.msrb.mxu0 %v12821_v45  ;;  %v6488_v36 = vsub.f32 %v13000_v57, %v14402_v35  ;;  %v13041_v43 = vand.u32 4294901760, %v6161_v22 }
0x1c18   :  { %6366 = vmatpush.msra.mxu1 %v12789_v38  ;;  %6460 = vmatpush.msrb.mxu3 %v6459_v6  ;;  %v6477_v38 = vand.u32 4294901760, %v6476_v60  ;;  %v6499_v6 = vand.u32 4294901760, %v13022_v32  ;;  %v6483_v41 = vand.u32 4294901760, %v6482_v3  ;;  %v6505_v60 = vand.u32 4294901760, %v13032_v34 }
0x1c19   :  { %6387 = vmatpush.msrb.mxu2 %v12905_v0  ;;  %6519 = vmatpush.msrb.mxu0 %v12824_v18  ;;  %v6489_v35 = vand.u32 4294901760, %v6488_v36 }
0x1c1a   :  { %6466 = vmatpush.msrb.mxu3 %v6465_v59  ;;  %6569 = vmatpush.msrb.mxu1 %v12791_v37  ;;  %v6494_v59 = vsub.f32 %v13012_v62, %v6493_v49  ;;  %v6500_v2 = vsub.f32 %v13022_v32, %v6499_v6 }
0x1c1b   :  { %6389 = vmatpush.msrb.mxu2 %v12921_v56  ;;  %6522 = vmatpush.msrb.mxu0 %v12833_v40 }
0x1c1c   :  { %6472 = vmatpush.msrb.mxu3 %v6471_v19  ;;  %6571 = vmatpush.msrb.mxu1 %v12793_v28  ;;  %v13057_v19 = vsub.f32 %v6161_v22, %v13041_v43  ;;  %v6495_v3 = vand.u32 4294901760, %v6494_v59  ;;  %v6501_v22 = vand.u32 4294901760, %v6500_v2 }
0x1c1d   :  { %6391 = vmatpush.msrb.mxu2 %v12926_v58  ;;  %6525 = vmatpush.msrb.mxu0 %v12842_v52 }
0x1c1e   :  { %6478 = vmatpush.msrb.mxu3 %v6477_v38  ;;  %6573 = vmatpush.msrb.mxu1 %v12812_v46  ;;  %v6506_v38 = vsub.f32 %v13032_v34, %v6505_v60  ;;  %v6406_v36 = vand.u32 4294901760, %v13057_v19 }
0x1c1f   :  { %6393 = vmatpush.msrb.mxu2 %v12928_v27  ;;  %6528 = vmatpush.msrb.mxu0 %v12891_v7 }
0x1c20   :  { %6484 = vmatpush.msrb.mxu3 %v6483_v41  ;;  %6575 = vmatpush.msrb.mxu1 %v12826_v21  ;;  %v6507_v41 = vand.u32 4294901760, %v6506_v38  ;;  %v6753_v38 = vld [vmem:[%s14384_s5 + $0x10] sm:$0xff] }
0x1c21   :  { %6395 = vmatpush.msrb.mxu2 %v12948_v47  ;;  %6531 = vmatpush.msrb.mxu0 %v12910_v48 }
0x1c22   :  { %6490 = vmatpush.msrb.mxu3 %v6489_v35  ;;  %6577 = vmatpush.msrb.mxu1 %v12839_v42  ;;  %v6407_v35 = vsub.f32 %v13057_v19, %v6406_v36 }
0x1c23   :  { %6397 = vmatpush.msrb.mxu2 %v12980_v20  ;;  %6534 = vmatpush.msrb.mxu0 %v12913_v5 }
0x1c24   :  { %6496 = vmatpush.msrb.mxu3 %v6495_v3  ;;  %6579 = vmatpush.msrb.mxu1 %v12888_v9  ;;  %v6408_v2 = vand.u32 4294901760, %v6407_v35 }
0x1c25   :  { %6399 = vmatpush.msrb.mxu2 %v12997_v15  ;;  %6537 = vmatpush.msrb.mxu0 %v12924_v31 }
0x1c26   :  { %6502 = vmatpush.msrb.mxu3 %v6501_v22  ;;  %6581 = vmatpush.msrb.mxu1 %v12893_v55 }
0x1c27   :  { %6401 = vmatpush.msrb.mxu2 %v13007_v11  ;;  %6310 = vmatmul.f32.vlgmr.msra.gmra.mxu3 %v6209_v8 }
0x1c28   :  { %6508 = vmatpush.msrb.mxu3 %v6507_v41  ;;  %6540 = vmatpush.msrb.mxu0 %v12943_v29  ;;  %v13209_v41 = vand.u32 4294901760, %v6753_v38 }
0x1c29   :  { %6403 = vmatpush.msrb.mxu2 %v13014_v61  ;;  %6583 = vmatpush.msrb.mxu1 %v12905_v0 }
0x1c2a   :  { %6677 = vmatpush.msra.mxu3 %v12791_v37  ;;  %6543 = vmatpush.msrb.mxu0 %v12946_v51  ;;  %v14416_v37 = vand.u32 4294901760, %v12995_v53  ;;  %v6163_v51 = vld [vmem:[%s14393_s14] sm:$0xff] }
0x1c2b   :  { %6610 = vmatpush.msra.mxu2 %v6415_v4  ;;  %6585 = vmatpush.msrb.mxu1 %v12921_v56 }
0x1c2c   :  { %6679 = vmatpush.msra.mxu3 %v12793_v28  ;;  %6546 = vmatpush.msrb.mxu0 %v12969_v50  ;;  %v14417_v28 = vand.u32 4294901760, %v13000_v57 }
0x1c2d   :  { %6614 = vmatpush.msra.mxu2 %v6421_v14  ;;  %6587 = vmatpush.msrb.mxu1 %v12926_v58 }
0x1c2e   :  { %6409 = vmatmul.f32.vlgmr.msrb.gmra.mxu2 %v6408_v2  ;;  %6681 = vmatpush.msra.mxu3 %v12812_v46 }
0x1c2f   :  { %6618 = vmatpush.msra.mxu2 %v6427_v63  ;;  %6549 = vmatpush.msrb.mxu0 %v12995_v53  ;;  %v6758_v53 = vld [vmem:[%s14386_s7 + $0x18] sm:$0xff] }
0x1c30   :  { %6589 = vmatpush.msrb.mxu1 %v12928_v27  ;;  %6343 = vmatmul.f32.vlgmr.msra.gmra.mxu0 %v12915_v54 }
0x1c31   :  { %6622 = vmatpush.msra.mxu2 %v6433_v10  ;;  %6510 = vmatmul.f32.vlgmr.msrb.gmra.mxu3 %v13041_v43 }
0x1c32   :  { %6683 = vmatpush.msra.mxu3 %v12826_v21  ;;  %6552 = vmatpush.msrb.mxu0 %v13000_v57  ;;  %v6756_v57 = vld [vmem:[%s14386_s7 + $0x8] sm:$0xff] }
0x1c33   :  { %6626 = vmatpush.msra.mxu2 %v6439_v1  ;;  %6591 = vmatpush.msrb.mxu1 %v12948_v47 }
0x1c34   :  { %6368 = vmatmul.f32.vlgmr.msra.gmra.mxu1 %v12915_v54  ;;  %6685 = vmatpush.msra.mxu3 %v12839_v42 }
0x1c35   :  { %6630 = vmatpush.msra.mxu2 %v6445_v23  ;;  %6555 = vmatpush.msrb.mxu0 %v13012_v62 }
0x1c36   :  { %6593 = vmatpush.msrb.mxu1 %v12980_v20  ;;  %6687 = vmatpush.msra.mxu3 %v12888_v9 }
0x1c37   :  { %6634 = vmatpush.msra.mxu2 %v6451_v16  ;;  %6558 = vmatpush.msrb.mxu0 %v13022_v32  ;;  %v6755_v32 = vld [vmem:[%s14386_s7] sm:$0xff] }
0x1c38   :  { %6595 = vmatpush.msrb.mxu1 %v12997_v15  ;;  %6689 = vmatpush.msra.mxu3 %v12893_v55 }
0x1c39   :  { %6638 = vmatpush.msra.mxu2 %v6457_v25  ;;  %6561 = vmatpush.msrb.mxu0 %v13032_v34  ;;  %v13191_v34 = vand.u32 4294901760, %v6755_v32 }
0x1c3a   :  { %6597 = vmatpush.msrb.mxu1 %v13007_v11  ;;  %6564 = vmatmul.f32.vlgmr.msrb.gmra.mxu0 %v13057_v19 }
0x1c3b   :  { %6642 = vmatpush.msra.mxu2 %v6463_v17  ;;  %6691 = vmatpush.msra.mxu3 %v12905_v0  ;;  %v6822_v22 = vsub.f32 %v6755_v32, %v13191_v34 }
0x1c3c   :  { %6599 = vmatpush.msrb.mxu1 %v13014_v61 }
0x1c3d   :  { %6603 = vmatmul.f32.vlgmr.msrb.gmra.mxu1 %v6406_v36  ;;  %6646 = vmatpush.msra.mxu2 %v6469_v30 }
0x1c3e   :  { %6693 = vmatpush.msra.mxu3 %v12921_v56 }
0x1c3f   :  { %6650 = vmatpush.msra.mxu2 %v6475_v24 }
0x1c40   :  { %6695 = vmatpush.msra.mxu3 %v12926_v58 }
0x1c41   :  { %6654 = vmatpush.msra.mxu2 %v14416_v37 }
0x1c42   :  { %6697 = vmatpush.msra.mxu3 %v12928_v27 }
0x1c43   :  { %6658 = vmatpush.msra.mxu2 %v14417_v28 }
0x1c44   :  { %6699 = vmatpush.msra.mxu3 %v12948_v47 }
0x1c45   :  { %6662 = vmatpush.msra.mxu2 %v6493_v49  ;;  %v9848_v49 = vld [vmem:[%s14392_s13 + $0x8] sm:$0xff] }
0x1c46   :  { %6701 = vmatpush.msra.mxu3 %v12980_v20 }
0x1c47   :  { %6666 = vmatpush.msra.mxu2 %v6499_v6  ;;  %v6760_v6 = vsel %vm59_vm0, %v9848_v49, 0 }
0x1c48   :  { %6703 = vmatpush.msra.mxu3 %v12997_v15  ;;  %v6757_v15 = vld [vmem:[%s14386_s7 + $0x10] sm:$0xff]  ;;  %v13201_v3 = vand.u32 4294901760, %v6760_v6 }
0x1c49   :  { %6670 = vmatpush.msra.mxu2 %v6505_v60  ;;  %v13181_v62 = vand.u32 4294901760, %v6757_v15 }
0x1c4a   :  { %6705 = vmatpush.msra.mxu3 %v13007_v11  ;;  %6672 = vmatmul.f32.vlgmr.msra.gmra.mxu2 %v13041_v43  ;;  %v13179_v11 = vand.u32 4294901760, %v6758_v53  ;;  %v6783_v28 = vsub.f32 %v6760_v6, %v13201_v3 }
0x1c4b   :  { %v6810_v60 = vsub.f32 %v6757_v15, %v13181_v62 }
0x1c4c   :  { %6707 = vmatpush.msra.mxu3 %v13014_v61  ;;  %v13183_v61 = vand.u32 4294901760, %v6756_v57  ;;  %6775 = vmatpush.msra.mxu0 %v13179_v11  ;;  %v6804_v59 = vsub.f32 %v6758_v53, %v13179_v11 }
0x1c4d   :  { %6709 = vmatmul.f32.vlgmr.msra.gmra.mxu3 %v13041_v43  ;;  %v6754_v43 = vld [vmem:[%s14384_s5 + $0x18] sm:$0xff]  ;;  %v6811_v2 = vand.u32 4294901760, %v6810_v60 }
0x1c4e   :  { %v6816_v19 = vsub.f32 %v6756_v57, %v13183_v61  ;;  %v13207_v36 = vand.u32 4294901760, %v6754_v43  ;;  %6777 = vmatpush.msra.mxu0 %v13181_v62  ;;  %v6805_v35 = vand.u32 4294901760, %v6804_v59 }
0x1c50   :  { %v6817_v37 = vand.u32 4294901760, %v6816_v19  ;;  %7062 = vmatpush.msrb.mxu3 %v13207_v36  ;;  %6779 = vmatpush.msra.mxu0 %v13183_v61 }
0x1c52   :  { %7064 = vmatpush.msrb.mxu3 %v13209_v41  ;;  %6781 = vmatpush.msra.mxu0 %v13191_v34 }
0x1c54   :  { %6846 = vmatpush.msrb.mxu0 %v6804_v59 }
0x1c56   :  { %6849 = vmatpush.msrb.mxu0 %v6810_v60 }
0x1c58   :  { %6852 = vmatpush.msrb.mxu0 %v6816_v19 }
0x1c5a   :  { %6855 = vmatpush.msrb.mxu0 %v6822_v22 }
0x1c91   :  { %v6254_v46 = vpop.f32.mrf.mxu1 }
0x1c93   :  { %v6213_v45 = vpop.f32.mrf.mxu0 }
0x1c94   :  { %v6255_v18 = vadd.f32 %v6254_v46, %v6213_v45  ;;  %v6823_v46 = vand.u32 4294901760, %v6822_v22  ;;  %v13214_v45 = vsub.f32 %v6754_v43, %v13207_v36 }
0x1c95   :  { %v6284_v21 = vpop.f32.mrf.mxu2 }
0x1c96   :  { %v6285_v40 = vadd.f32 %v6284_v21, %v6255_v18  ;;  %v6806_v18 = vsub.f32 %v6804_v59, %v6805_v35  ;;  %v6812_v21 = vsub.f32 %v6810_v60, %v6811_v2  ;;  %7033 = vmatpush.msrb.mxu2 %v13214_v45 }
0x1caa   :  { %v6311_v4 = vpop.f32.mrf.mxu3 }
0x1cab   :  { %v6312_v14 = vadd.f32 %v6311_v4, %v6285_v40  ;;  %v6818_v40 = vsub.f32 %v6816_v19, %v6817_v37  ;;  %v6784_v4 = vand.u32 4294901760, %v6783_v28 }
0x1cad   :  { %v6344_v42 = vpop.f32.mrf.mxu0 }
0x1cae   :  { %v6345_v52 = vadd.f32 %v6344_v42, %v6312_v14  ;;  %v13219_v14 = vsub.f32 %v6753_v38, %v13209_v41  ;;  %v6807_v42 = vand.u32 4294901760, %v6806_v18 }
0x1cb0   :  { %7036 = vmatpush.msrb.mxu2 %v13219_v14  ;;  %6808 = vmatpush.msra.mxu1 %v6807_v42 }
0x1cb1   :  { %v6369_v63 = vpop.f32.mrf.mxu1  ;;  %v6410_v9 = vpop.f32.mrf.mxu2 }
0x1cb2   :  { %v6370_v10 = vadd.f32 %v6369_v63, %v6345_v52  ;;  %v6813_v52 = vand.u32 4294901760, %v6812_v21  ;;  %v6785_v63 = vsub.f32 %v6783_v28, %v6784_v4 }
0x1cb4   :  { %v6411_v7 = vadd.f32 %v6410_v9, %v6370_v10  ;;  %v6511_v55 = vpop.f32.mrf.mxu3  ;;  %v6824_v10 = vsub.f32 %v6822_v22, %v6823_v46  ;;  %v6819_v9 = vand.u32 4294901760, %v6818_v40  ;;  %6814 = vmatpush.msra.mxu1 %v6813_v52 }
0x1cb6   :  { %v6512_v0 = vadd.f32 %v6511_v55, %v6411_v7  ;;  %v6786_v7 = vand.u32 4294901760, %v6785_v63  ;;  %v6825_v55 = vand.u32 4294901760, %v6824_v10  ;;  %6820 = vmatpush.msra.mxu1 %v6819_v9 }
0x1cb7   :  { %v6565_v1 = vpop.f32.mrf.mxu0 }
0x1cb8   :  { %v6566_v48 = vadd.f32 %v6565_v1, %v6512_v0  ;;  %6787 = vmatmul.f32.vlgmr.msra.gmra.mxu0 %v6786_v7  ;;  %6826 = vmatpush.msra.mxu1 %v6825_v55  ;;  %v6992_v0 = vand.u32 4294901760, %v13214_v45  ;;  %v6998_v1 = vand.u32 4294901760, %v13219_v14 }
0x1cb9   :  { %6904 = vmatpush.msra.mxu0 %v6805_v35  ;;  %6828 = vmatmul.f32.vlgmr.msra.gmra.mxu1 %v13201_v3 }
0x1cba   :  { %v6604_v5 = vpop.f32.mrf.mxu1  ;;  %6875 = vmatpush.msrb.mxu1 %v13179_v11 }
0x1cbb   :  { %v6605_v54 = vadd.f32 %v6604_v5, %v6566_v48  ;;  %6908 = vmatpush.msra.mxu0 %v6811_v2  ;;  %v6993_v48 = vsub.f32 %v13214_v45, %v6992_v0 }
0x1cbc   :  { %6877 = vmatpush.msrb.mxu1 %v13181_v62 }
0x1cbd   :  { %6912 = vmatpush.msra.mxu0 %v6817_v37 }
0x1cbe   :  { %6879 = vmatpush.msrb.mxu1 %v13183_v61 }
0x1cbf   :  { %6916 = vmatpush.msra.mxu0 %v6823_v46 }
0x1cc0   :  { %6858 = vmatmul.f32.vlgmr.msrb.gmra.mxu0 %v6783_v28  ;;  %6881 = vmatpush.msrb.mxu1 %v13191_v34 }
0x1cc1   :  { %6962 = vmatpush.msrb.mxu0 %v13207_v36  ;;  %6885 = vmatmul.f32.vlgmr.msrb.gmra.mxu1 %v6784_v4 }
0x1cc2   :  { %6935 = vmatpush.msra.mxu1 %v13179_v11 }
0x1cc3   :  { %6964 = vmatpush.msrb.mxu0 %v13209_v41 }
0x1cc4   :  { %6937 = vmatpush.msra.mxu1 %v13181_v62 }
0x1cc6   :  { %6939 = vmatpush.msra.mxu1 %v13183_v61 }
0x1cc8   :  { %6918 = vmatmul.f32.vlgmr.msra.gmra.mxu0 %v13201_v3  ;;  %6941 = vmatpush.msra.mxu1 %v13191_v34 }
0x1cc9   :  { %6943 = vmatmul.f32.vlgmr.msra.gmra.mxu1 %v13201_v3 }
0x1ccd   :  { %v6673_v56 = vpop.f32.mrf.mxu2 }
0x1cce   :  { %v6674_v31 = vadd.f32 %v6673_v56, %v6605_v54  ;;  %v6999_v54 = vsub.f32 %v13219_v14, %v6998_v1 }
0x1cd0   :  { %v6710_v58 = vpop.f32.mrf.mxu3 }
0x1cd1   :  { %v6711_v27 = vadd.f32 %v6710_v58, %v6674_v31  ;;  %v6994_v31 = vand.u32 4294901760, %v6993_v48  ;;  %v7000_v58 = vand.u32 4294901760, %v6999_v54 }
0x1cd3   :  { %v6713_v23 = vadd.f32 %v10432_v12, %v6711_v27  ;;  %6995 = vmatpush.msrb.mxu1 %v6994_v31  ;;  %v6752_v27 = vld [vmem:[%s14384_s5 + $0x8] sm:$0xff]  ;;  %v7172_v31 = vld [vmem:[%s14389_s10 + $0x10] sm:$0xff] }
0x1cd5   :  { %v6714_v16 = vmul.f32 %v6713_v23, %v10434_v33  ;;  %7001 = vmatpush.msrb.mxu1 %v7000_v58  ;;  %v6965_v23 = vand.u32 4294901760, %v6752_v27 }
0x1cd7   :  { %9920 = vtanh.f32 %v6714_v16  ;;  %v6751_v16 = vld [vmem:[%s14384_s5] sm:$0xff]  ;;  %7066 = vmatpush.msrb.mxu3 %v6965_v23  ;;  %6966 = vmatpush.msrb.mxu0 %v6965_v23 }
0x1cdd   :  { %v9921_v13 = vpop.eup %9920 }
0x1cde   :  { %v6716_v25 = vmul.f32 %v9921_v13, %v10434_v33  ;;  %v7003_v13 = vsub.f32 %v6752_v27, %v6965_v23  ;;  %v7190_v27 = vand.u32 4294901760, %v7172_v31 }
0x1ce0   :  { %v13155_v29 = vadd.f32 %v6716_v25, %v10438_v44  ;;  %v6967_v25 = vand.u32 4294901760, %v6751_v16  ;;  %7039 = vmatpush.msrb.mxu2 %v7003_v13 }
0x1ce2   :  { %6724 = vrot.lane.b32.xlu0 %v13155_v29, %s9961_s8  ;;  %7068 = vmatpush.msrb.mxu3 %v6967_v25 }
0x1ce3   :  { %6968 = vmatpush.msrb.mxu0 %v6967_v25 }
0x1ce5   :  { %7091 = vmatpush.msra.mxu0 %v6992_v0 }
0x1ce7   :  { %7095 = vmatpush.msra.mxu0 %v6998_v1 }
0x1cea   :  { %6719 = vrot.lane.b32.xlu0 %v6163_v51, %s9962_s20  ;;  %v7009_v51 = vsub.f32 %v6751_v16, %v6967_v25  ;;  %v7224_v16 = vsub.f32 %v7172_v31, %v7190_v27 }
0x1cec   :  { %7042 = vmatpush.msrb.mxu2 %v7009_v51 }
0x1d35   :  { %v6788_v34 = vpop.f32.mrf.mxu0 }
0x1d36   :  { %v6829_v49 = vpop.f32.mrf.mxu1 }
0x1d37   :  { %v6830_v59 = vadd.f32 %v6829_v49, %v6788_v34 }
0x1d3d   :  { %v6859_v43 = vpop.f32.mrf.mxu0 }
0x1d3e   :  { %v6886_v6 = vpop.f32.mrf.mxu1  ;;  %v6860_v60 = vadd.f32 %v6859_v43, %v6830_v59 }
0x1d40   :  { %v6887_v3 = vadd.f32 %v6886_v6, %v6860_v60 }
0x1d45   :  { %v6919_v38 = vpop.f32.mrf.mxu0 }
0x1d46   :  { %v6944_v19 = vpop.f32.mrf.mxu1  ;;  %v6920_v22 = vadd.f32 %v6919_v38, %v6887_v3 }
0x1d54   :  { %v6725_v47 = vpop.permute.xlu0 %6724 }
0x1d55   :  { %v6727_v8 = vmul.f32 %v6725_v47, %v13155_v29 }
0x1d57   :  { %6729 = vrot.lane.b32.xlu1 %v6727_v8, %s9962_s20  ;;  %v7010_v8 = vand.u32 4294901760, %v7009_v51 }
0x1d5c   :  { %v6720_v17 = vpop.permute.xlu0 %6719 }
0x1d5d   :  { %v6722_v30 = vmul.f32 %v6720_v17, %v13155_v29 }
0x1dc9   :  { %v6730_v50 = vpop.permute.xlu1 %6729 }
0x1dca   :  { %v13166_v20 = vadd.f32 %v6730_v50, %v6722_v30  ;;  %v7011_v30 = vsub.f32 %v7009_v51, %v7010_v8 }
0x1dcc   :  { %9922 = vtanh.f32 %v13166_v20  ;;  %v7012_v50 = vand.u32 4294901760, %v7011_v30 }
0x1dd2   :  { %v9923_v24 = vpop.eup %9922 }
0x1dd3   :  { %6735 = vrot.lane.b32.xlu1 %v9923_v24, %s9961_s8  ;;  %v9849_v24 = vld [vmem:[%s14393_s14 + $0x8] sm:$0xff] }
0x1dd4   :  { %7140 = vrot.lane.b32.xlu0 %v9849_v24, %s9962_s20  ;;  %v7171_v24 = vld [vmem:[%s14389_s10 + $0x8] sm:$0xff] }
0x1e45   :  { %v6736_v5 = vpop.permute.xlu1 %6735 }
0x1e46   :  { %v6738_v56 = vmul.f32 %v6736_v5, %v13155_v29  ;;  %v7004_v29 = vand.u32 4294901760, %v7003_v13  ;;  %v7141_v0 = vpop.permute.xlu0 %7140 }
0x1e48   :  { %6740 = vrot.lane.b32.xlu2 %v6738_v56, %s9962_s20  ;;  %v7005_v47 = vsub.f32 %v7003_v13, %v7004_v29  ;;  %7099 = vmatpush.msra.mxu0 %v7004_v29 }
0x1e4a   :  { %v7006_v17 = vand.u32 4294901760, %v7005_v47  ;;  %7103 = vmatpush.msra.mxu0 %v7010_v8 }
0x1e4c   :  { %7007 = vmatpush.msrb.mxu1 %v7006_v17 }
0x1e4e   :  { %7013 = vmatpush.msrb.mxu1 %v7012_v50 }
0x1e50   :  { %7122 = vmatpush.msra.mxu1 %v13207_v36  ;;  %v6945_v36 = vadd.f32 %v6944_v19, %v6920_v22 }
0x1e52   :  { %7124 = vmatpush.msra.mxu1 %v13209_v41 }
0x1e54   :  { %7126 = vmatpush.msra.mxu1 %v6965_v23 }
0x1e56   :  { %7128 = vmatpush.msra.mxu1 %v6967_v25  ;;  %v7225_v25 = vand.u32 4294901760, %v7224_v16 }
0x1e58   :  { %v7226_v51 = vsub.f32 %v7224_v16, %v7225_v25 }
0x1e5a   :  { %v7227_v8 = vand.u32 4294901760, %v7226_v51 }
0x1ea2   :  { %v6741_v53 = vpop.permute.xlu2 %6740 }
0x1ea3   :  { %6743 = vst.msk [vmem:[%s14392_s13] sm:$0xff] %vm59_vm0, %v6741_v53  ;;  %v6947_v15 = vsel %vm59_vm0, %v6741_v53, 0  ;;  %v7192_v53 = vand.u32 4294901760, %v7171_v24 }
0x1ea4   :  { %v6969_v57 = vand.u32 4294901760, %v6947_v15 }
0x1ea6   :  { %v6970_v11 = vsub.f32 %v6947_v15, %v6969_v57  ;;  %7015 = vmatmul.f32.vlgmr.msrb.gmra.mxu1 %v6969_v57  ;;  %v7170_v15 = vld [vmem:[%s14389_s10] sm:$0xff] }
0x1ea8   :  { %v6971_v62 = vand.u32 4294901760, %v6970_v11  ;;  %7045 = vmatmul.f32.vlgmr.msrb.gmra.mxu2 %v6970_v11 }
0x1eaa   :  { %v6972_v61 = vsub.f32 %v6970_v11, %v6971_v62  ;;  %7072 = vmatmul.f32.vlgmr.msrb.gmra.mxu3 %v6971_v62  ;;  %v7194_v11 = vand.u32 4294901760, %v7170_v15 }
0x1eac   :  { %v6973_v32 = vand.u32 4294901760, %v6972_v61  ;;  %v7236_v61 = vsub.f32 %v7170_v15, %v7194_v11 }
0x1eae   :  { %6974 = vmatmul.f32.vlgmr.msrb.gmra.mxu0 %v6973_v32  ;;  %7130 = vmatmul.f32.vlgmr.msra.gmra.mxu1 %v6969_v57  ;;  %v7237_v49 = vand.u32 4294901760, %v7236_v61 }
0x1eb0   :  { %v7238_v6 = vsub.f32 %v7236_v61, %v7237_v49 }
0x1eb2   :  { %v7239_v43 = vand.u32 4294901760, %v7238_v6 }
0x1eb6   :  { %7105 = vmatmul.f32.vlgmr.msra.gmra.mxu0 %v6969_v57  ;;  %v7230_v57 = vsub.f32 %v7171_v24, %v7192_v53 }
0x1eb8   :  { %v7231_v62 = vand.u32 4294901760, %v7230_v57 }
0x1eba   :  { %v7232_v32 = vsub.f32 %v7230_v57, %v7231_v62 }
0x1ebc   :  { %v7233_v34 = vand.u32 4294901760, %v7232_v32 }
0x1f23   :  { %v7016_v41 = vpop.f32.mrf.mxu1 }
0x1f2b   :  { %v6975_v35 = vpop.f32.mrf.mxu0  ;;  %v7046_v28 = vpop.f32.mrf.mxu2 }
0x1f2c   :  { %v6976_v2 = vadd.f32 %v6975_v35, %v6945_v36  ;;  %v7131_v4 = vpop.f32.mrf.mxu1 }
0x1f2d   :  { %v7073_v45 = vpop.f32.mrf.mxu3 }
0x1f2e   :  { %v7017_v37 = vadd.f32 %v7016_v41, %v6976_v2 }
0x1f30   :  { %v7047_v46 = vadd.f32 %v7046_v28, %v7017_v37 }
0x1f32   :  { %v7074_v18 = vadd.f32 %v7073_v45, %v7047_v46 }
0x1f33   :  { %v7106_v21 = vpop.f32.mrf.mxu0 }
0x1f34   :  { %v7107_v40 = vadd.f32 %v7106_v21, %v7074_v18 }
0x1f36   :  { %v7132_v14 = vadd.f32 %v7131_v4, %v7107_v40 }
0x1f38   :  { %v7134_v42 = vadd.f32 %v10559_v26, %v7132_v14 }
0x1f3a   :  { %v7135_v52 = vmul.f32 %v7134_v42, %v10434_v33 }
0x1f3c   :  { %9924 = vtanh.f32 %v7135_v52 }
0x1f42   :  { %v9925_v63 = vpop.eup %9924 }
0x1f43   :  { %v7137_v10 = vmul.f32 %v9925_v63, %v10434_v33 }
0x1f45   :  { %v7138_v9 = vadd.f32 %v7137_v10, %v10438_v44 }
0x1f47   :  { %7145 = vrot.lane.b32.xlu2 %v7138_v9, %s9961_s8  ;;  %v7143_v1 = vmul.f32 %v7141_v0, %v7138_v9 }
0x1fa1   :  { %v7146_v7 = vpop.permute.xlu2 %7145 }
0x1fa2   :  { %v7148_v55 = vmul.f32 %v7146_v7, %v7138_v9 }
0x1fa4   :  { %7150 = vrot.lane.b32.xlu1 %v7148_v55, %s9962_s20 }
0x1fac   :  { %6745 = vrot.lane.b32.xlu1 %v13166_v20, %s9963_s9  ;;  %v7173_v20 = vld [vmem:[%s14389_s10 + $0x18] sm:$0xff] }
0x1fad   :  { %v7188_v58 = vand.u32 4294901760, %v7173_v20 }
0x1faf   :  { %v7218_v23 = vsub.f32 %v7173_v20, %v7188_v58  ;;  %7289 = vmatpush.msrb.mxu1 %v7188_v58  ;;  %7189 = vmatpush.msra.mxu2 %v7188_v58 }
0x1fb1   :  { %v7219_v13 = vand.u32 4294901760, %v7218_v23  ;;  %7260 = vmatpush.msrb.mxu0 %v7218_v23  ;;  %7291 = vmatpush.msrb.mxu1 %v7190_v27 }
0x1fb2   :  { %7191 = vmatpush.msra.mxu2 %v7190_v27 }
0x1fb3   :  { %v7220_v29 = vsub.f32 %v7218_v23, %v7219_v13  ;;  %7263 = vmatpush.msrb.mxu0 %v7224_v16  ;;  %7293 = vmatpush.msrb.mxu1 %v7192_v53 }
0x1fb4   :  { %7193 = vmatpush.msra.mxu2 %v7192_v53 }
0x1fb5   :  { %v7221_v47 = vand.u32 4294901760, %v7220_v29  ;;  %7266 = vmatpush.msrb.mxu0 %v7230_v57  ;;  %7295 = vmatpush.msrb.mxu1 %v7194_v11 }
0x1fb6   :  { %7195 = vmatpush.msra.mxu2 %v7194_v11 }
0x1fb7   :  { %7222 = vmatpush.msra.mxu3 %v7221_v47  ;;  %7269 = vmatpush.msrb.mxu0 %v7236_v61 }
0x1fb8   :  { %7318 = vmatpush.msrb.mxu2 %v7219_v13 }
0x1fb9   :  { %7228 = vmatpush.msra.mxu3 %v7227_v8 }
0x1fba   :  { %7322 = vmatpush.msrb.mxu2 %v7225_v25 }
0x1fbb   :  { %7234 = vmatpush.msra.mxu3 %v7233_v34 }
0x1fbc   :  { %7326 = vmatpush.msrb.mxu2 %v7231_v62 }
0x1fbd   :  { %7240 = vmatpush.msra.mxu3 %v7239_v43 }
0x1fbe   :  { %7330 = vmatpush.msrb.mxu2 %v7237_v49 }
0x1fbf   :  { %7349 = vmatpush.msrb.mxu3 %v7188_v58 }
0x1fc1   :  { %7351 = vmatpush.msrb.mxu3 %v7190_v27 }
0x1fc3   :  { %7353 = vmatpush.msrb.mxu3 %v7192_v53 }
0x1fc5   :  { %7355 = vmatpush.msrb.mxu3 %v7194_v11 }
0x2016   :  { %v7151_v48 = vpop.permute.xlu1 %7150 }
0x2017   :  { %v7153_v5 = vadd.f32 %v7151_v48, %v7143_v1 }
0x2019   :  { %9926 = vtanh.f32 %v7153_v5 }
0x201e   :  { %v6746_v54 = vpop.permute.xlu1 %6745 }
0x201f   :  { %v9927_v56 = vpop.eup %9926  ;;  %6748 = vst.msk [vmem:[%s14393_s14] sm:$0xff] %vm59_vm0, %v6746_v54 }
0x2020   :  { %7156 = vrot.lane.b32.xlu2 %v9927_v56, %s9961_s8 }
0x2028   :  { %7166 = vrot.lane.b32.xlu2 %v7153_v5, %s9963_s9 }
0x207a   :  { %v7157_v17 = vpop.permute.xlu2 %7156 }
0x207b   :  { %v7159_v30 = vmul.f32 %v7157_v17, %v7138_v9 }
0x207d   :  { %7161 = vrot.lane.b32.xlu0 %v7159_v30, %s9962_s20 }
0x2082   :  { %v7167_v50 = vpop.permute.xlu2 %7166 }
0x2083   :  { %9851 = vst.msk [vmem:[%s14393_s14 + $0x8] sm:$0xff] %vm59_vm0, %v7167_v50 }
0x20ef   :  { %v7162_v59 = vpop.permute.xlu0 %7161 }
0x20f0   :  { %9850 = vst.msk [vmem:[%s14392_s13 + $0x8] sm:$0xff] %vm59_vm0, %v7162_v59  ;;  %v7174_v60 = vsel %vm59_vm0, %v7162_v59, 0 }
0x20f1   :  { %v7196_v19 = vand.u32 4294901760, %v7174_v60 }
0x20f3   :  { %v7197_v3 = vsub.f32 %v7174_v60, %v7196_v19  ;;  %7242 = vmatmul.f32.vlgmr.msra.gmra.mxu3 %v7196_v19 }
0x20f5   :  { %v7198_v38 = vand.u32 4294901760, %v7197_v3  ;;  %7272 = vmatmul.f32.vlgmr.msrb.gmra.mxu0 %v7197_v3 }
0x20f7   :  { %v7199_v22 = vsub.f32 %v7197_v3, %v7198_v38  ;;  %7299 = vmatmul.f32.vlgmr.msrb.gmra.mxu1 %v7198_v38 }
0x20f9   :  { %v7200_v36 = vand.u32 4294901760, %v7199_v22 }
0x20fb   :  { %7201 = vmatmul.f32.vlgmr.msra.gmra.mxu2 %v7200_v36  ;;  %7357 = vmatmul.f32.vlgmr.msrb.gmra.mxu3 %v7196_v19 }
0x2103   :  { %7332 = vmatmul.f32.vlgmr.msrb.gmra.mxu2 %v7196_v19 }
0x2172   :  { %v7273_v28 = vpop.f32.mrf.mxu0 }
0x2174   :  { %v7300_v45 = vpop.f32.mrf.mxu1 }
0x2176   :  { %v7243_v41 = vpop.f32.mrf.mxu3 }
0x217e   :  { %v7202_v35 = vpop.f32.mrf.mxu2  ;;  %v7358_v4 = vpop.f32.mrf.mxu3 }
0x217f   :  { %v7203_v2 = vadd.f32 %v10600_v39, %v7202_v35 }
0x2181   :  { %v7244_v37 = vadd.f32 %v7243_v41, %v7203_v2 }
0x2183   :  { %v7274_v46 = vadd.f32 %v7273_v28, %v7244_v37 }
0x2185   :  { %v7301_v18 = vadd.f32 %v7300_v45, %v7274_v46 }
0x2186   :  { %v7333_v21 = vpop.f32.mrf.mxu2 }
0x2187   :  { %v7334_v40 = vadd.f32 %v7333_v21, %v7301_v18  ;;  %7367 = sbr.rel (%p9854_p10) target bundleno = 8590 (0x218e), region = 97 }
0x2189   :  { %v7359_v14 = vadd.f32 %v7358_v4, %v7334_v40 }
0x218b   :  { %9852 = vst [vmem:[%s14391_s12 + $0x28] sm:$0xff] %v7359_v14 }
0x218c   :  { %v9855_v42 = vld [vmem:[%s14380_s1 + $0x28] sm:$0xff] }
0x218d   :  { %7370 = vst [vmem:[#allocation2] sm:$0xff] %v9855_v42 }
0x218e PF:  { %p9856_p11 = scmp.ne.s32.totalorder %s9853_s22, 0 }
0x2190   :  { %7374 = sbr.rel (%p9856_p11) target bundleno = 8598 (0x2196), region = 101 }
0x2195   :  { %7375 = vst [vmem:[#allocation2] sm:$0xff] %v7359_v14 }
0x2196 PF:  { %v7398_v52 = vld [vmem:[%s14385_s6 + $0x18] sm:$0xff]  ;;  %v7397_v63 = vld [vmem:[%s14385_s6 + $0x10] sm:$0xff]  ;;  %v7396_v10 = vld [vmem:[%s14385_s6 + $0x8] sm:$0xff]  ;;  %s9862_s30 = sld [smem:[#allocation3 + $0x6]] }
0x2197   :  { %v13313_v9 = vand.u32 4294901760, %v7398_v52  ;;  %v13315_v7 = vand.u32 4294901760, %v7397_v63  ;;  %v13317_v55 = vand.u32 4294901760, %v7396_v10  ;;  %v7395_v0 = vld [vmem:[%s14385_s6] sm:$0xff]  ;;  %v7394_v1 = vld [vmem:[%s14383_s4 + $0x78] sm:$0xff]  ;;  %v7393_v48 = vld [vmem:[%s14383_s4 + $0x70] sm:$0xff] }
0x2198   :  { %v13328_v5 = vand.u32 4294901760, %v7395_v0  ;;  %v13330_v54 = vand.u32 4294901760, %v7394_v1  ;;  %v13332_v56 = vand.u32 4294901760, %v7393_v48  ;;  %v7392_v20 = vld [vmem:[%s14383_s4 + $0x68] sm:$0xff]  ;;  %v7391_v31 = vld [vmem:[%s14383_s4 + $0x60] sm:$0xff]  ;;  %v7390_v13 = vld [vmem:[%s14383_s4 + $0x58] sm:$0xff] }
0x2199   :  { %v13341_v58 = vsub.f32 %v7398_v52, %v13313_v9  ;;  %v13344_v27 = vsub.f32 %v7397_v63, %v13315_v7  ;;  %7515 = vmatpush.msra.mxu3 %v13313_v9  ;;  %v13348_v23 = vsub.f32 %v7396_v10, %v13317_v55  ;;  %7415 = vmatpush.msra.mxu0 %v13313_v9  ;;  %v13351_v16 = vand.u32 4294901760, %v7392_v20  ;;  %v7389_v59 = vld [vmem:[%s14383_s4 + $0x50] sm:$0xff]  ;;  %v7388_v60 = vld [vmem:[%s14383_s4 + $0x48] sm:$0xff]  ;;  %v7387_v36 = vld [vmem:[%s14383_s4 + $0x40] sm:$0xff] }
0x219a   :  { %v13357_v25 = vsub.f32 %v7395_v0, %v13328_v5  ;;  %v13360_v29 = vsub.f32 %v7394_v1, %v13330_v54  ;;  %v13363_v51 = vsub.f32 %v7393_v48, %v13332_v56  ;;  %v13365_v47 = vand.u32 4294901760, %v7391_v31  ;;  %v7377_v41 = vld [vmem:[%s14392_s13] sm:$0xff]  ;;  %v7386_v40 = vld [vmem:[%s14383_s4 + $0x38] sm:$0xff]  ;;  %v7385_v4 = vld [vmem:[%s14383_s4 + $0x30] sm:$0xff] }
0x219b   :  { %7486 = vmatpush.msra.mxu2 %v13341_v58  ;;  %7517 = vmatpush.msra.mxu3 %v13315_v7  ;;  %v7445_v8 = vand.u32 4294901760, %v13341_v58  ;;  %v7451_v17 = vand.u32 4294901760, %v13344_v27  ;;  %v13372_v30 = vsub.f32 %v7392_v20, %v13351_v16  ;;  %v7457_v50 = vand.u32 4294901760, %v13348_v23  ;;  %v7384_v14 = vld [vmem:[%s14383_s4 + $0x28] sm:$0xff] }
0x219c   :  { %v7630_v24 = vand.u32 4294901760, %v13360_v29  ;;  %7417 = vmatpush.msra.mxu0 %v13315_v7  ;;  %v7636_v53 = vand.u32 4294901760, %v13363_v51  ;;  %v13378_v15 = vand.u32 4294901760, %v7390_v13  ;;  %v13381_v57 = vsub.f32 %v7391_v31, %v13365_v47  ;;  %v7383_v31 = vld [vmem:[%s14383_s4 + $0x20] sm:$0xff]  ;;  %p9863_p12 = scmp.eq.s32.totalorder %s9862_s30, 0 }
0x219d   :  { %7489 = vmatpush.msra.mxu2 %v13344_v27  ;;  %7519 = vmatpush.msra.mxu3 %v13317_v55  ;;  %v7446_v11 = vsub.f32 %v13341_v58, %v7445_v8  ;;  %v7452_v62 = vsub.f32 %v13344_v27, %v7451_v17  ;;  %v7642_v61 = vand.u32 4294901760, %v13372_v30  ;;  %v7458_v32 = vsub.f32 %v13348_v23, %v7457_v50 }
0x219e   :  { %v7631_v49 = vsub.f32 %v13360_v29, %v7630_v24  ;;  %v7637_v34 = vsub.f32 %v13363_v51, %v7636_v53  ;;  %7419 = vmatpush.msra.mxu0 %v13317_v55  ;;  %v7648_v6 = vand.u32 4294901760, %v13381_v57  ;;  %v7463_v43 = vand.u32 4294901760, %v13357_v25 }
0x219f   :  { %7492 = vmatpush.msra.mxu2 %v13348_v23  ;;  %7521 = vmatpush.msra.mxu3 %v13328_v5  ;;  %v7447_v19 = vand.u32 4294901760, %v7446_v11  ;;  %v7453_v3 = vand.u32 4294901760, %v7452_v62  ;;  %v7643_v38 = vsub.f32 %v13372_v30, %v7642_v61  ;;  %v7459_v22 = vand.u32 4294901760, %v7458_v32 }
0x21a0   :  { %v7632_v35 = vand.u32 4294901760, %v7631_v49  ;;  %v7638_v2 = vand.u32 4294901760, %v7637_v34  ;;  %7421 = vmatpush.msra.mxu0 %v13328_v5  ;;  %v7649_v37 = vsub.f32 %v13381_v57, %v7648_v6  ;;  %v7464_v28 = vsub.f32 %v13357_v25, %v7463_v43 }
0x21a1   :  { %7495 = vmatpush.msra.mxu2 %v13357_v25  ;;  %7448 = vmatpush.msra.mxu1 %v7447_v19  ;;  %v7644_v46 = vand.u32 4294901760, %v7643_v38  ;;  %v13427_v45 = vand.u32 4294901760, %v7389_v59  ;;  %v13430_v18 = vsub.f32 %v7390_v13, %v13378_v15  ;;  %v13432_v21 = vand.u32 4294901760, %v7388_v60 }
0x21a2   :  { %7633 = vmatpush.msrb.mxu3 %v7632_v35  ;;  %v7650_v42 = vand.u32 4294901760, %v7649_v37  ;;  %v7465_v52 = vand.u32 4294901760, %v7464_v28  ;;  %v13444_v63 = vand.u32 4294901760, %v7387_v36  ;;  %v7400_v10 = vsel %vm59_vm0, %v7377_v41, 0  ;;  %7544 = vmatpush.msrb.mxu0 %v7445_v8 }
0x21a3   :  { %7588 = vmatpush.msrb.mxu2 %v13330_v54  ;;  %7454 = vmatpush.msra.mxu1 %v7453_v3  ;;  %v7654_v0 = vand.u32 4294901760, %v13430_v18  ;;  %v13449_v1 = vsub.f32 %v7389_v59, %v13427_v45  ;;  %v13452_v48 = vsub.f32 %v7388_v60, %v13432_v21  ;;  %v13454_v20 = vand.u32 4294901760, %v7400_v10 }
0x21a4   :  { %7639 = vmatpush.msrb.mxu3 %v7638_v2  ;;  %v13460_v58 = vand.u32 4294901760, %v7386_v40  ;;  %v13463_v13 = vsub.f32 %v7387_v36, %v13444_v63  ;;  %v13465_v8 = vand.u32 4294901760, %v7385_v4  ;;  %v13467_v11 = vand.u32 4294901760, %v7384_v14  ;;  %7548 = vmatpush.msrb.mxu0 %v7451_v17  ;;  %v7382_v17 = vld [vmem:[%s14383_s4 + $0x18] sm:$0xff] }
0x21a5   :  { %7590 = vmatpush.msrb.mxu2 %v13332_v56  ;;  %7460 = vmatpush.msra.mxu1 %v7459_v22  ;;  %v7655_v62 = vsub.f32 %v13430_v18, %v7654_v0  ;;  %v7660_v32 = vand.u32 4294901760, %v13449_v1  ;;  %v7666_v49 = vand.u32 4294901760, %v13452_v48  ;;  %v13477_v34 = vsub.f32 %v7400_v10, %v13454_v20 }
0x21a6   :  { %7645 = vmatpush.msrb.mxu3 %v7644_v46  ;;  %v7672_v59 = vand.u32 4294901760, %v13463_v13  ;;  %v13482_v60 = vsub.f32 %v7386_v40, %v13460_v58  ;;  %v13485_v19 = vsub.f32 %v7385_v4, %v13465_v8  ;;  %v13487_v27 = vand.u32 4294901760, %v7383_v31  ;;  %7552 = vmatpush.msrb.mxu0 %v7457_v50  ;;  %v7381_v50 = vld [vmem:[%s14383_s4 + $0x10] sm:$0xff]  ;;  %v7380_v40 = vld [vmem:[%s14383_s4 + $0x8] sm:$0xff] }
0x21a7   :  { %7592 = vmatpush.msrb.mxu2 %v13351_v16  ;;  %7466 = vmatpush.msra.mxu1 %v7465_v52  ;;  %v7656_v3 = vand.u32 4294901760, %v7655_v62  ;;  %v7661_v38 = vsub.f32 %v13449_v1, %v7660_v32  ;;  %v7667_v22 = vsub.f32 %v13452_v48, %v7666_v49  ;;  %v7424_v36 = vand.u32 4294901760, %v13477_v34 }
0x21a8   :  { %7651 = vmatpush.msrb.mxu3 %v7650_v42  ;;  %v7673_v41 = vsub.f32 %v13463_v13, %v7672_v59  ;;  %v7678_v35 = vand.u32 4294901760, %v13482_v60  ;;  %v7684_v2 = vand.u32 4294901760, %v13485_v19  ;;  %v13508_v23 = vsub.f32 %v7384_v14, %v13467_v11  ;;  %7556 = vmatpush.msrb.mxu0 %v7463_v43  ;;  %v7379_v43 = vld [vmem:[%s14383_s4] sm:$0xff] }
0x21a9   :  { %7594 = vmatpush.msrb.mxu2 %v13365_v47  ;;  %7575 = vmatpush.msrb.mxu1 %v13313_v9  ;;  %v7662_v37 = vand.u32 4294901760, %v7661_v38  ;;  %v7425_v28 = vsub.f32 %v13477_v34, %v7424_v36  ;;  %v13519_v46 = vand.u32 4294901760, %v7382_v17  ;;  %v7668_v4 = vand.u32 4294901760, %v7667_v22 }
0x21aa   :  { %7657 = vmatpush.msrb.mxu3 %v7656_v3  ;;  %v7679_v9 = vsub.f32 %v13482_v60, %v7678_v35  ;;  %v7690_v25 = vand.u32 4294901760, %v13508_v23  ;;  %v13534_v42 = vsub.f32 %v7383_v31, %v13487_v27  ;;  %v13536_v52 = vand.u32 4294901760, %v7381_v50  ;;  %7498 = vmatmul.f32.vlgmr.msra.gmra.mxu2 %v13477_v34 }
0x21ab   :  { %7596 = vmatpush.msrb.mxu2 %v13378_v15  ;;  %7577 = vmatpush.msrb.mxu1 %v13315_v7  ;;  %v7426_v14 = vand.u32 4294901760, %v7425_v28  ;;  %v13539_v10 = vsub.f32 %v7382_v17, %v13519_v46  ;;  %v7674_v62 = vand.u32 4294901760, %v7673_v41  ;;  %v7685_v3 = vsub.f32 %v13485_v19, %v7684_v2 }
0x21ac   :  { %7663 = vmatpush.msrb.mxu3 %v7662_v37  ;;  %v13546_v7 = vand.u32 4294901760, %v7380_v40  ;;  %v14405_v31 = vand.u32 4294901760, %v13534_v42  ;;  %v13551_v17 = vsub.f32 %v7381_v50, %v13536_v52  ;;  %v13553_v38 = vand.u32 4294901760, %v7379_v43  ;;  %v7376_v50 = vld [vmem:[#allocation2] sm:$0xff]  ;;  %7468 = vmatmul.f32.vlgmr.msra.gmra.mxu1 %v13454_v20 }
0x21ad   :  { %7598 = vmatpush.msrb.mxu2 %v13427_v45  ;;  %7579 = vmatpush.msrb.mxu1 %v13317_v55  ;;  %v7680_v22 = vand.u32 4294901760, %v7679_v9  ;;  %v7691_v41 = vsub.f32 %v13508_v23, %v7690_v25  ;;  %v14404_v37 = vand.u32 4294901760, %v13539_v10  ;;  %v7686_v28 = vand.u32 4294901760, %v7685_v3 }
0x21ae   :  { %7427 = vmatmul.f32.vlgmr.msra.gmra.mxu0 %v7426_v14  ;;  %7669 = vmatpush.msrb.mxu3 %v7668_v4  ;;  %v13561_v55 = vsub.f32 %v7380_v40, %v13546_v7  ;;  %v7697_v4 = vsub.f32 %v13534_v42, %v14405_v31  ;;  %v7708_v9 = vand.u32 4294901760, %v13551_v17  ;;  %v13571_v14 = vsub.f32 %v7379_v43, %v13553_v38 }
0x21af   :  { %7600 = vmatpush.msrb.mxu2 %v13432_v21  ;;  %7731 = vmatpush.msra.mxu0 %v13360_v29  ;;  %v7703_v40 = vsub.f32 %v13539_v10, %v14404_v37  ;;  %v13580_v3 = vand.u32 4294901760, %v7376_v50 }
0x21b0   :  { %7581 = vmatpush.msrb.mxu1 %v13328_v5  ;;  %7675 = vmatpush.msrb.mxu3 %v7674_v62  ;;  %v7692_v5 = vand.u32 4294901760, %v7691_v41  ;;  %v7714_v62 = vand.u32 4294901760, %v13561_v55  ;;  %v7698_v43 = vand.u32 4294901760, %v7697_v4  ;;  %v7720_v41 = vand.u32 4294901760, %v13571_v14 }
0x21b1   :  { %7602 = vmatpush.msrb.mxu2 %v13444_v63  ;;  %7734 = vmatpush.msra.mxu0 %v13363_v51  ;;  %v7704_v37 = vand.u32 4294901760, %v7703_v40 }
0x21b2   :  { %7681 = vmatpush.msrb.mxu3 %v7680_v22  ;;  %7784 = vmatpush.msra.mxu1 %v13330_v54  ;;  %v7709_v22 = vsub.f32 %v13551_v17, %v7708_v9  ;;  %v7715_v31 = vsub.f32 %v13561_v55, %v7714_v62 }
0x21b3   :  { %7604 = vmatpush.msrb.mxu2 %v13460_v58  ;;  %7737 = vmatpush.msra.mxu0 %v13372_v30 }
0x21b4   :  { %7687 = vmatpush.msrb.mxu3 %v7686_v28  ;;  %7786 = vmatpush.msra.mxu1 %v13332_v56  ;;  %v13596_v28 = vsub.f32 %v7376_v50, %v13580_v3  ;;  %v7710_v4 = vand.u32 4294901760, %v7709_v22  ;;  %v7716_v50 = vand.u32 4294901760, %v7715_v31 }
0x21b5   :  { %7606 = vmatpush.msrb.mxu2 %v13465_v8  ;;  %7740 = vmatpush.msra.mxu0 %v13381_v57 }
0x21b6   :  { %7693 = vmatpush.msrb.mxu3 %v7692_v5  ;;  %7788 = vmatpush.msra.mxu1 %v13351_v16  ;;  %v7721_v5 = vsub.f32 %v13571_v14, %v7720_v41  ;;  %v7621_v40 = vand.u32 4294901760, %v13596_v28 }
0x21b7   :  { %7608 = vmatpush.msrb.mxu2 %v13467_v11  ;;  %7743 = vmatpush.msra.mxu0 %v13430_v18 }
0x21b8   :  { %7699 = vmatpush.msrb.mxu3 %v7698_v43  ;;  %7790 = vmatpush.msra.mxu1 %v13365_v47  ;;  %v7722_v43 = vand.u32 4294901760, %v7721_v5  ;;  %v7968_v5 = vld [vmem:[%s14384_s5 + $0x10] sm:$0xff] }
0x21b9   :  { %7610 = vmatpush.msrb.mxu2 %v13487_v27  ;;  %7746 = vmatpush.msra.mxu0 %v13449_v1 }
0x21ba   :  { %7705 = vmatpush.msrb.mxu3 %v7704_v37  ;;  %7792 = vmatpush.msra.mxu1 %v13378_v15  ;;  %v7622_v37 = vsub.f32 %v13596_v28, %v7621_v40 }
0x21bb   :  { %7612 = vmatpush.msrb.mxu2 %v13519_v46  ;;  %7749 = vmatpush.msra.mxu0 %v13452_v48 }
0x21bc   :  { %7711 = vmatpush.msrb.mxu3 %v7710_v4  ;;  %7794 = vmatpush.msra.mxu1 %v13427_v45  ;;  %v7623_v31 = vand.u32 4294901760, %v7622_v37 }
0x21bd   :  { %7614 = vmatpush.msrb.mxu2 %v13536_v52  ;;  %7752 = vmatpush.msra.mxu0 %v13463_v13 }
0x21be   :  { %7717 = vmatpush.msrb.mxu3 %v7716_v50  ;;  %7796 = vmatpush.msra.mxu1 %v13432_v21 }
0x21bf   :  { %7616 = vmatpush.msrb.mxu2 %v13546_v7  ;;  %7525 = vmatmul.f32.vlgmr.msra.gmra.mxu3 %v7424_v36 }
0x21c0   :  { %7723 = vmatpush.msrb.mxu3 %v7722_v43  ;;  %7755 = vmatpush.msra.mxu0 %v13482_v60  ;;  %v13748_v43 = vand.u32 4294901760, %v7968_v5 }
0x21c1   :  { %7618 = vmatpush.msrb.mxu2 %v13553_v38  ;;  %7798 = vmatpush.msra.mxu1 %v13444_v63 }
0x21c2   :  { %7892 = vmatpush.msra.mxu3 %v13330_v54  ;;  %7758 = vmatpush.msra.mxu0 %v13485_v19  ;;  %v14418_v54 = vand.u32 4294901760, %v13534_v42  ;;  %v7378_v19 = vld [vmem:[%s14393_s14] sm:$0xff] }
0x21c3   :  { %7825 = vmatpush.msra.mxu2 %v7630_v24  ;;  %7800 = vmatpush.msra.mxu1 %v13460_v58 }
0x21c4   :  { %7894 = vmatpush.msra.mxu3 %v13332_v56  ;;  %7761 = vmatpush.msra.mxu0 %v13508_v23  ;;  %v14419_v56 = vand.u32 4294901760, %v13539_v10 }
0x21c5   :  { %7829 = vmatpush.msra.mxu2 %v7636_v53  ;;  %7802 = vmatpush.msra.mxu1 %v13465_v8 }
0x21c6   :  { %7624 = vmatmul.f32.vlgmr.msrb.gmra.mxu2 %v7623_v31  ;;  %7896 = vmatpush.msra.mxu3 %v13351_v16 }
0x21c7   :  { %7833 = vmatpush.msra.mxu2 %v7642_v61  ;;  %7764 = vmatpush.msra.mxu0 %v13534_v42  ;;  %v7973_v42 = vld [vmem:[%s14386_s7 + $0x18] sm:$0xff] }
0x21c8   :  { %7804 = vmatpush.msra.mxu1 %v13467_v11  ;;  %7558 = vmatmul.f32.vlgmr.msrb.gmra.mxu0 %v13454_v20 }
0x21c9   :  { %7837 = vmatpush.msra.mxu2 %v7648_v6  ;;  %7725 = vmatmul.f32.vlgmr.msrb.gmra.mxu3 %v13580_v3 }
0x21ca   :  { %7898 = vmatpush.msra.mxu3 %v13365_v47  ;;  %7767 = vmatpush.msra.mxu0 %v13539_v10  ;;  %v7971_v10 = vld [vmem:[%s14386_s7 + $0x8] sm:$0xff] }
0x21cb   :  { %7841 = vmatpush.msra.mxu2 %v7654_v0  ;;  %7806 = vmatpush.msra.mxu1 %v13487_v27 }
0x21cc   :  { %7583 = vmatmul.f32.vlgmr.msrb.gmra.mxu1 %v13454_v20  ;;  %7900 = vmatpush.msra.mxu3 %v13378_v15 }
0x21cd   :  { %7845 = vmatpush.msra.mxu2 %v7660_v32  ;;  %7770 = vmatpush.msra.mxu0 %v13551_v17 }
0x21ce   :  { %7808 = vmatpush.msra.mxu1 %v13519_v46  ;;  %7902 = vmatpush.msra.mxu3 %v13427_v45 }
0x21cf   :  { %7849 = vmatpush.msra.mxu2 %v7666_v49  ;;  %7773 = vmatpush.msra.mxu0 %v13561_v55  ;;  %v7970_v55 = vld [vmem:[%s14386_s7] sm:$0xff] }
0x21d0   :  { %7810 = vmatpush.msra.mxu1 %v13536_v52  ;;  %7904 = vmatpush.msra.mxu3 %v13432_v21 }
0x21d1   :  { %7853 = vmatpush.msra.mxu2 %v7672_v59  ;;  %7776 = vmatpush.msra.mxu0 %v13571_v14  ;;  %v13730_v14 = vand.u32 4294901760, %v7970_v55 }
0x21d2   :  { %7812 = vmatpush.msra.mxu1 %v13546_v7  ;;  %7779 = vmatmul.f32.vlgmr.msra.gmra.mxu0 %v13596_v28 }
0x21d3   :  { %7857 = vmatpush.msra.mxu2 %v7678_v35  ;;  %7906 = vmatpush.msra.mxu3 %v13444_v63  ;;  %v8037_v50 = vsub.f32 %v7970_v55, %v13730_v14 }
0x21d4   :  { %7814 = vmatpush.msra.mxu1 %v13553_v38 }
0x21d5   :  { %7818 = vmatmul.f32.vlgmr.msra.gmra.mxu1 %v7621_v40  ;;  %7861 = vmatpush.msra.mxu2 %v7684_v2 }
0x21d6   :  { %7908 = vmatpush.msra.mxu3 %v13460_v58 }
0x21d7   :  { %7865 = vmatpush.msra.mxu2 %v7690_v25 }
0x21d8   :  { %7910 = vmatpush.msra.mxu3 %v13465_v8 }
0x21d9   :  { %7869 = vmatpush.msra.mxu2 %v14418_v54 }
0x21da   :  { %7912 = vmatpush.msra.mxu3 %v13467_v11 }
0x21db   :  { %7873 = vmatpush.msra.mxu2 %v14419_v56 }
0x21dc   :  { %7914 = vmatpush.msra.mxu3 %v13487_v27 }
0x21dd   :  { %7877 = vmatpush.msra.mxu2 %v7708_v9  ;;  %v9857_v9 = vld [vmem:[%s14392_s13 + $0x8] sm:$0xff] }
0x21de   :  { %7916 = vmatpush.msra.mxu3 %v13519_v46 }
0x21df   :  { %7881 = vmatpush.msra.mxu2 %v7714_v62  ;;  %v7975_v62 = vsel %vm59_vm0, %v9857_v9, 0 }
0x21e0   :  { %7918 = vmatpush.msra.mxu3 %v13536_v52  ;;  %v7972_v52 = vld [vmem:[%s14386_s7 + $0x10] sm:$0xff]  ;;  %v13740_v4 = vand.u32 4294901760, %v7975_v62 }
0x21e1   :  { %7885 = vmatpush.msra.mxu2 %v7720_v41  ;;  %v13720_v17 = vand.u32 4294901760, %v7972_v52 }
0x21e2   :  { %7920 = vmatpush.msra.mxu3 %v13546_v7  ;;  %7887 = vmatmul.f32.vlgmr.msra.gmra.mxu2 %v13580_v3  ;;  %v13718_v7 = vand.u32 4294901760, %v7973_v42  ;;  %v7998_v56 = vsub.f32 %v7975_v62, %v13740_v4 }
0x21e3   :  { %v8025_v41 = vsub.f32 %v7972_v52, %v13720_v17 }
0x21e4   :  { %7922 = vmatpush.msra.mxu3 %v13553_v38  ;;  %v13722_v38 = vand.u32 4294901760, %v7971_v10  ;;  %7990 = vmatpush.msrb.mxu0 %v13718_v7  ;;  %v8019_v22 = vsub.f32 %v7973_v42, %v13718_v7 }
0x21e5   :  { %7924 = vmatmul.f32.vlgmr.msra.gmra.mxu3 %v13580_v3  ;;  %v7969_v3 = vld [vmem:[%s14384_s5 + $0x18] sm:$0xff]  ;;  %v8026_v31 = vand.u32 4294901760, %v8025_v41 }
0x21e6   :  { %v8031_v28 = vsub.f32 %v7971_v10, %v13722_v38  ;;  %v13746_v40 = vand.u32 4294901760, %v7969_v3  ;;  %7992 = vmatpush.msrb.mxu0 %v13720_v17  ;;  %v8020_v37 = vand.u32 4294901760, %v8019_v22 }
0x21e8   :  { %v8032_v54 = vand.u32 4294901760, %v8031_v28  ;;  %8277 = vmatpush.msrb.mxu3 %v13746_v40  ;;  %7994 = vmatpush.msrb.mxu0 %v13722_v38 }
0x21ea   :  { %8279 = vmatpush.msrb.mxu3 %v13748_v43  ;;  %7996 = vmatpush.msrb.mxu0 %v13730_v14 }
0x21ec   :  { %8061 = vmatpush.msra.mxu0 %v8019_v22 }
0x21ee   :  { %8064 = vmatpush.msra.mxu0 %v8025_v41 }
0x21f0   :  { %8067 = vmatpush.msra.mxu0 %v8031_v28 }
0x21f2   :  { %8070 = vmatpush.msra.mxu0 %v8037_v50 }
0x2229   :  { %v7469_v16 = vpop.f32.mrf.mxu1 }
0x222b   :  { %v7428_v29 = vpop.f32.mrf.mxu0 }
0x222c   :  { %v7470_v51 = vadd.f32 %v7469_v16, %v7428_v29  ;;  %v8038_v16 = vand.u32 4294901760, %v8037_v50  ;;  %v13753_v29 = vsub.f32 %v7969_v3, %v13746_v40 }
0x222d   :  { %v7499_v47 = vpop.f32.mrf.mxu2 }
0x222e   :  { %v7500_v30 = vadd.f32 %v7499_v47, %v7470_v51  ;;  %v8021_v51 = vsub.f32 %v8019_v22, %v8020_v37  ;;  %v8027_v47 = vsub.f32 %v8025_v41, %v8026_v31  ;;  %8248 = vmatpush.msrb.mxu2 %v13753_v29 }
0x2242   :  { %v7526_v24 = vpop.f32.mrf.mxu3 }
0x2243   :  { %v7527_v53 = vadd.f32 %v7526_v24, %v7500_v30  ;;  %v8033_v30 = vsub.f32 %v8031_v28, %v8032_v54  ;;  %v7999_v24 = vand.u32 4294901760, %v7998_v56 }
0x2245   :  { %v7559_v15 = vpop.f32.mrf.mxu0 }
0x2246   :  { %v7560_v57 = vadd.f32 %v7559_v15, %v7527_v53  ;;  %v13758_v53 = vsub.f32 %v7968_v5, %v13748_v43  ;;  %v8022_v15 = vand.u32 4294901760, %v8021_v51 }
0x2248   :  { %8251 = vmatpush.msrb.mxu2 %v13758_v53  ;;  %8023 = vmatpush.msrb.mxu1 %v8022_v15 }
0x2249   :  { %v7584_v61 = vpop.f32.mrf.mxu1  ;;  %v7625_v45 = vpop.f32.mrf.mxu2 }
0x224a   :  { %v7585_v6 = vadd.f32 %v7584_v61, %v7560_v57  ;;  %v8028_v57 = vand.u32 4294901760, %v8027_v47  ;;  %v8000_v61 = vsub.f32 %v7998_v56, %v7999_v24 }
0x224c   :  { %v7626_v18 = vadd.f32 %v7625_v45, %v7585_v6  ;;  %v7726_v21 = vpop.f32.mrf.mxu3  ;;  %v8039_v6 = vsub.f32 %v8037_v50, %v8038_v16  ;;  %v8034_v45 = vand.u32 4294901760, %v8033_v30  ;;  %8029 = vmatpush.msrb.mxu1 %v8028_v57 }
0x224e   :  { %v7727_v63 = vadd.f32 %v7726_v21, %v7626_v18  ;;  %v8001_v18 = vand.u32 4294901760, %v8000_v61  ;;  %v8040_v21 = vand.u32 4294901760, %v8039_v6  ;;  %8035 = vmatpush.msrb.mxu1 %v8034_v45 }
0x224f   :  { %v7780_v0 = vpop.f32.mrf.mxu0 }
0x2250   :  { %v7781_v1 = vadd.f32 %v7780_v0, %v7727_v63  ;;  %8002 = vmatmul.f32.vlgmr.msrb.gmra.mxu0 %v8001_v18  ;;  %8041 = vmatpush.msrb.mxu1 %v8040_v21  ;;  %v8207_v63 = vand.u32 4294901760, %v13753_v29  ;;  %v8213_v0 = vand.u32 4294901760, %v13758_v53 }
0x2251   :  { %8119 = vmatpush.msrb.mxu0 %v8020_v37  ;;  %8043 = vmatmul.f32.vlgmr.msrb.gmra.mxu1 %v13740_v4 }
0x2252   :  { %v7819_v48 = vpop.f32.mrf.mxu1  ;;  %8090 = vmatpush.msra.mxu1 %v13718_v7 }
0x2253   :  { %v7820_v20 = vadd.f32 %v7819_v48, %v7781_v1  ;;  %8123 = vmatpush.msrb.mxu0 %v8026_v31  ;;  %v8208_v1 = vsub.f32 %v13753_v29, %v8207_v63 }
0x2254   :  { %8092 = vmatpush.msra.mxu1 %v13720_v17 }
0x2255   :  { %8127 = vmatpush.msrb.mxu0 %v8032_v54 }
0x2256   :  { %8094 = vmatpush.msra.mxu1 %v13722_v38 }
0x2257   :  { %8131 = vmatpush.msrb.mxu0 %v8038_v16 }
0x2258   :  { %8073 = vmatmul.f32.vlgmr.msra.gmra.mxu0 %v7998_v56  ;;  %8096 = vmatpush.msra.mxu1 %v13730_v14 }
0x2259   :  { %8177 = vmatpush.msra.mxu0 %v13746_v40  ;;  %8100 = vmatmul.f32.vlgmr.msra.gmra.mxu1 %v7999_v24 }
0x225a   :  { %8150 = vmatpush.msrb.mxu1 %v13718_v7 }
0x225b   :  { %8179 = vmatpush.msra.mxu0 %v13748_v43 }
0x225c   :  { %8152 = vmatpush.msrb.mxu1 %v13720_v17 }
0x225e   :  { %8154 = vmatpush.msrb.mxu1 %v13722_v38 }
0x2260   :  { %8133 = vmatmul.f32.vlgmr.msrb.gmra.mxu0 %v13740_v4  ;;  %8156 = vmatpush.msrb.mxu1 %v13730_v14 }
0x2261   :  { %8158 = vmatmul.f32.vlgmr.msrb.gmra.mxu1 %v13740_v4 }
0x2265   :  { %v7888_v58 = vpop.f32.mrf.mxu2 }
0x2266   :  { %v7889_v13 = vadd.f32 %v7888_v58, %v7820_v20  ;;  %v8214_v20 = vsub.f32 %v13758_v53, %v8213_v0 }
0x2268   :  { %v7925_v8 = vpop.f32.mrf.mxu3 }
0x2269   :  { %v7926_v11 = vadd.f32 %v7925_v8, %v7889_v13  ;;  %v8209_v13 = vand.u32 4294901760, %v8208_v1  ;;  %v8215_v8 = vand.u32 4294901760, %v8214_v20 }
0x226b   :  { %v7928_v32 = vadd.f32 %v10432_v12, %v7926_v11  ;;  %8210 = vmatpush.msra.mxu1 %v8209_v13  ;;  %v7967_v11 = vld [vmem:[%s14384_s5 + $0x8] sm:$0xff]  ;;  %v8387_v13 = vld [vmem:[%s14389_s10 + $0x10] sm:$0xff] }
0x226d   :  { %v7929_v49 = vmul.f32 %v7928_v32, %v10434_v33  ;;  %8216 = vmatpush.msra.mxu1 %v8215_v8  ;;  %v8180_v32 = vand.u32 4294901760, %v7967_v11 }
0x226f   :  { %9928 = vtanh.f32 %v7929_v49  ;;  %v7966_v49 = vld [vmem:[%s14384_s5] sm:$0xff]  ;;  %8281 = vmatpush.msrb.mxu3 %v8180_v32  ;;  %8181 = vmatpush.msra.mxu0 %v8180_v32 }
0x2275   :  { %v9929_v34 = vpop.eup %9928 }
0x2276   :  { %v7931_v59 = vmul.f32 %v9929_v34, %v10434_v33  ;;  %v8218_v34 = vsub.f32 %v7967_v11, %v8180_v32  ;;  %v8405_v11 = vand.u32 4294901760, %v8387_v13 }
0x2278   :  { %v13694_v60 = vadd.f32 %v7931_v59, %v10438_v44  ;;  %v8182_v59 = vand.u32 4294901760, %v7966_v49  ;;  %8254 = vmatpush.msrb.mxu2 %v8218_v34 }
0x227a   :  { %7939 = vrot.lane.b32.xlu0 %v13694_v60, %s9961_s8  ;;  %8283 = vmatpush.msrb.mxu3 %v8182_v59 }
0x227b   :  { %8183 = vmatpush.msra.mxu0 %v8182_v59 }
0x227d   :  { %8306 = vmatpush.msrb.mxu0 %v8207_v63 }
0x227f   :  { %8310 = vmatpush.msrb.mxu0 %v8213_v0 }
0x2282   :  { %7934 = vrot.lane.b32.xlu0 %v7378_v19, %s9962_s20  ;;  %v8224_v19 = vsub.f32 %v7966_v49, %v8182_v59  ;;  %v8439_v49 = vsub.f32 %v8387_v13, %v8405_v11 }
0x2284   :  { %8257 = vmatpush.msrb.mxu2 %v8224_v19 }
0x22cd   :  { %v8003_v14 = vpop.f32.mrf.mxu0 }
0x22ce   :  { %v8044_v9 = vpop.f32.mrf.mxu1 }
0x22cf   :  { %v8045_v22 = vadd.f32 %v8044_v9, %v8003_v14 }
0x22d5   :  { %v8074_v3 = vpop.f32.mrf.mxu0 }
0x22d6   :  { %v8101_v62 = vpop.f32.mrf.mxu1  ;;  %v8075_v41 = vadd.f32 %v8074_v3, %v8045_v22 }
0x22d8   :  { %v8102_v4 = vadd.f32 %v8101_v62, %v8075_v41 }
0x22dd   :  { %v8134_v5 = vpop.f32.mrf.mxu0 }
0x22de   :  { %v8159_v28 = vpop.f32.mrf.mxu1  ;;  %v8135_v50 = vadd.f32 %v8134_v5, %v8102_v4 }
0x22ec   :  { %v7940_v27 = vpop.permute.xlu0 %7939 }
0x22ed   :  { %v7942_v36 = vmul.f32 %v7940_v27, %v13694_v60 }
0x22ef   :  { %7944 = vrot.lane.b32.xlu1 %v7942_v36, %s9962_s20  ;;  %v8225_v36 = vand.u32 4294901760, %v8224_v19 }
0x22f4   :  { %v7935_v35 = vpop.permute.xlu0 %7934 }
0x22f5   :  { %v7937_v2 = vmul.f32 %v7935_v35, %v13694_v60 }
0x2361   :  { %v7945_v23 = vpop.permute.xlu1 %7944 }
0x2362   :  { %v13705_v46 = vadd.f32 %v7945_v23, %v7937_v2  ;;  %v8226_v2 = vsub.f32 %v8224_v19, %v8225_v36 }
0x2364   :  { %9930 = vtanh.f32 %v13705_v46  ;;  %v8227_v23 = vand.u32 4294901760, %v8226_v2 }
0x236a   :  { %v9931_v25 = vpop.eup %9930 }
0x236b   :  { %7950 = vrot.lane.b32.xlu1 %v9931_v25, %s9961_s8  ;;  %v9858_v25 = vld [vmem:[%s14393_s14 + $0x8] sm:$0xff] }
0x236c   :  { %8355 = vrot.lane.b32.xlu0 %v9858_v25, %s9962_s20  ;;  %v8386_v25 = vld [vmem:[%s14389_s10 + $0x8] sm:$0xff] }
0x23dd   :  { %v7951_v48 = vpop.permute.xlu1 %7950 }
0x23de   :  { %v7953_v58 = vmul.f32 %v7951_v48, %v13694_v60  ;;  %v8219_v60 = vand.u32 4294901760, %v8218_v34  ;;  %v8356_v63 = vpop.permute.xlu0 %8355 }
0x23e0   :  { %7955 = vrot.lane.b32.xlu2 %v7953_v58, %s9962_s20  ;;  %v8220_v27 = vsub.f32 %v8218_v34, %v8219_v60  ;;  %8314 = vmatpush.msrb.mxu0 %v8219_v60 }
0x23e2   :  { %v8221_v35 = vand.u32 4294901760, %v8220_v27  ;;  %8318 = vmatpush.msrb.mxu0 %v8225_v36 }
0x23e4   :  { %8222 = vmatpush.msra.mxu1 %v8221_v35 }
0x23e6   :  { %8228 = vmatpush.msra.mxu1 %v8227_v23 }
0x23e8   :  { %8337 = vmatpush.msrb.mxu1 %v13746_v40  ;;  %v8160_v40 = vadd.f32 %v8159_v28, %v8135_v50 }
0x23ea   :  { %8339 = vmatpush.msrb.mxu1 %v13748_v43 }
0x23ec   :  { %8341 = vmatpush.msrb.mxu1 %v8180_v32 }
0x23ee   :  { %8343 = vmatpush.msrb.mxu1 %v8182_v59  ;;  %v8440_v59 = vand.u32 4294901760, %v8439_v49 }
0x23f0   :  { %v8441_v19 = vsub.f32 %v8439_v49, %v8440_v59 }
0x23f2   :  { %v8442_v36 = vand.u32 4294901760, %v8441_v19 }
0x243a   :  { %v7956_v42 = vpop.permute.xlu2 %7955 }
0x243b   :  { %7958 = vst.msk [vmem:[%s14392_s13] sm:$0xff] %vm59_vm0, %v7956_v42  ;;  %v8162_v52 = vsel %vm59_vm0, %v7956_v42, 0  ;;  %v8407_v42 = vand.u32 4294901760, %v8386_v25 }
0x243c   :  { %v8184_v10 = vand.u32 4294901760, %v8162_v52 }
0x243e   :  { %v8185_v7 = vsub.f32 %v8162_v52, %v8184_v10  ;;  %8230 = vmatmul.f32.vlgmr.msra.gmra.mxu1 %v8184_v10  ;;  %v8385_v52 = vld [vmem:[%s14389_s10] sm:$0xff] }
0x2440   :  { %v8186_v17 = vand.u32 4294901760, %v8185_v7  ;;  %8260 = vmatmul.f32.vlgmr.msrb.gmra.mxu2 %v8185_v7 }
0x2442   :  { %v8187_v38 = vsub.f32 %v8185_v7, %v8186_v17  ;;  %8287 = vmatmul.f32.vlgmr.msrb.gmra.mxu3 %v8186_v17  ;;  %v8409_v7 = vand.u32 4294901760, %v8385_v52 }
0x2444   :  { %v8188_v55 = vand.u32 4294901760, %v8187_v38  ;;  %v8451_v38 = vsub.f32 %v8385_v52, %v8409_v7 }
0x2446   :  { %8189 = vmatmul.f32.vlgmr.msra.gmra.mxu0 %v8188_v55  ;;  %8345 = vmatmul.f32.vlgmr.msrb.gmra.mxu1 %v8184_v10  ;;  %v8452_v9 = vand.u32 4294901760, %v8451_v38 }
0x2448   :  { %v8453_v62 = vsub.f32 %v8451_v38, %v8452_v9 }
0x244a   :  { %v8454_v3 = vand.u32 4294901760, %v8453_v62 }
0x244e   :  { %8320 = vmatmul.f32.vlgmr.msrb.gmra.mxu0 %v8184_v10  ;;  %v8445_v10 = vsub.f32 %v8386_v25, %v8407_v42 }
0x2450   :  { %v8446_v17 = vand.u32 4294901760, %v8445_v10 }
0x2452   :  { %v8447_v55 = vsub.f32 %v8445_v10, %v8446_v17 }
0x2454   :  { %v8448_v14 = vand.u32 4294901760, %v8447_v55 }
0x24bb   :  { %v8231_v43 = vpop.f32.mrf.mxu1 }
0x24c3   :  { %v8190_v37 = vpop.f32.mrf.mxu0  ;;  %v8261_v56 = vpop.f32.mrf.mxu2 }
0x24c4   :  { %v8191_v31 = vadd.f32 %v8190_v37, %v8160_v40  ;;  %v8346_v24 = vpop.f32.mrf.mxu1 }
0x24c5   :  { %v8288_v29 = vpop.f32.mrf.mxu3 }
0x24c6   :  { %v8232_v54 = vadd.f32 %v8231_v43, %v8191_v31 }
0x24c8   :  { %v8262_v16 = vadd.f32 %v8261_v56, %v8232_v54 }
0x24ca   :  { %v8289_v51 = vadd.f32 %v8288_v29, %v8262_v16 }
0x24cb   :  { %v8321_v47 = vpop.f32.mrf.mxu0 }
0x24cc   :  { %v8322_v30 = vadd.f32 %v8321_v47, %v8289_v51 }
0x24ce   :  { %v8347_v53 = vadd.f32 %v8346_v24, %v8322_v30 }
0x24d0   :  { %v8349_v15 = vadd.f32 %v10559_v26, %v8347_v53 }
0x24d2   :  { %v8350_v57 = vmul.f32 %v8349_v15, %v10434_v33 }
0x24d4   :  { %9932 = vtanh.f32 %v8350_v57 }
0x24da   :  { %v9933_v61 = vpop.eup %9932 }
0x24db   :  { %v8352_v6 = vmul.f32 %v9933_v61, %v10434_v33 }
0x24dd   :  { %v8353_v45 = vadd.f32 %v8352_v6, %v10438_v44 }
0x24df   :  { %8360 = vrot.lane.b32.xlu2 %v8353_v45, %s9961_s8  ;;  %v8358_v0 = vmul.f32 %v8356_v63, %v8353_v45 }
0x2539   :  { %v8361_v18 = vpop.permute.xlu2 %8360 }
0x253a   :  { %v8363_v21 = vmul.f32 %v8361_v18, %v8353_v45 }
0x253c   :  { %8365 = vrot.lane.b32.xlu1 %v8363_v21, %s9962_s20 }
0x2544   :  { %7960 = vrot.lane.b32.xlu1 %v13705_v46, %s9963_s9  ;;  %v8388_v46 = vld [vmem:[%s14389_s10 + $0x18] sm:$0xff] }
0x2545   :  { %v8403_v8 = vand.u32 4294901760, %v8388_v46 }
0x2547   :  { %v8433_v32 = vsub.f32 %v8388_v46, %v8403_v8  ;;  %8504 = vmatpush.msra.mxu1 %v8403_v8  ;;  %8404 = vmatpush.msra.mxu2 %v8403_v8 }
0x2549   :  { %v8434_v34 = vand.u32 4294901760, %v8433_v32  ;;  %8475 = vmatpush.msra.mxu0 %v8433_v32  ;;  %8506 = vmatpush.msra.mxu1 %v8405_v11 }
0x254a   :  { %8406 = vmatpush.msra.mxu2 %v8405_v11 }
0x254b   :  { %v8435_v60 = vsub.f32 %v8433_v32, %v8434_v34  ;;  %8478 = vmatpush.msra.mxu0 %v8439_v49  ;;  %8508 = vmatpush.msra.mxu1 %v8407_v42 }
0x254c   :  { %8408 = vmatpush.msra.mxu2 %v8407_v42 }
0x254d   :  { %v8436_v27 = vand.u32 4294901760, %v8435_v60  ;;  %8481 = vmatpush.msra.mxu0 %v8445_v10  ;;  %8510 = vmatpush.msra.mxu1 %v8409_v7 }
0x254e   :  { %8410 = vmatpush.msra.mxu2 %v8409_v7 }
0x254f   :  { %8437 = vmatpush.msra.mxu3 %v8436_v27  ;;  %8484 = vmatpush.msra.mxu0 %v8451_v38 }
0x2550   :  { %8533 = vmatpush.msrb.mxu2 %v8434_v34 }
0x2551   :  { %8443 = vmatpush.msra.mxu3 %v8442_v36 }
0x2552   :  { %8537 = vmatpush.msrb.mxu2 %v8440_v59 }
0x2553   :  { %8449 = vmatpush.msra.mxu3 %v8448_v14 }
0x2554   :  { %8541 = vmatpush.msrb.mxu2 %v8446_v17 }
0x2555   :  { %8455 = vmatpush.msra.mxu3 %v8454_v3 }
0x2556   :  { %8545 = vmatpush.msrb.mxu2 %v8452_v9 }
0x2557   :  { %8564 = vmatpush.msrb.mxu3 %v8403_v8 }
0x2559   :  { %8566 = vmatpush.msrb.mxu3 %v8405_v11 }
0x255b   :  { %8568 = vmatpush.msrb.mxu3 %v8407_v42 }
0x255d   :  { %8570 = vmatpush.msrb.mxu3 %v8409_v7 }
0x25ae   :  { %v8366_v1 = vpop.permute.xlu1 %8365 }
0x25af   :  { %v8368_v48 = vadd.f32 %v8366_v1, %v8358_v0 }
0x25b1   :  { %9934 = vtanh.f32 %v8368_v48 }
0x25b6   :  { %v7961_v20 = vpop.permute.xlu1 %7960 }
0x25b7   :  { %v9935_v58 = vpop.eup %9934  ;;  %7963 = vst.msk [vmem:[%s14393_s14] sm:$0xff] %vm59_vm0, %v7961_v20 }
0x25b8   :  { %8371 = vrot.lane.b32.xlu2 %v9935_v58, %s9961_s8 }
0x25c0   :  { %8381 = vrot.lane.b32.xlu2 %v8368_v48, %s9963_s9 }
0x2612   :  { %v8372_v35 = vpop.permute.xlu2 %8371 }
0x2613   :  { %v8374_v2 = vmul.f32 %v8372_v35, %v8353_v45 }
0x2615   :  { %8376 = vrot.lane.b32.xlu0 %v8374_v2, %s9962_s20 }
0x261a   :  { %v8382_v23 = vpop.permute.xlu2 %8381 }
0x261b   :  { %9860 = vst.msk [vmem:[%s14393_s14 + $0x8] sm:$0xff] %vm59_vm0, %v8382_v23 }
0x2687   :  { %v8377_v22 = vpop.permute.xlu0 %8376 }
0x2688   :  { %9859 = vst.msk [vmem:[%s14392_s13 + $0x8] sm:$0xff] %vm59_vm0, %v8377_v22  ;;  %v8389_v41 = vsel %vm59_vm0, %v8377_v22, 0 }
0x2689   :  { %v8411_v28 = vand.u32 4294901760, %v8389_v41 }
0x268b   :  { %v8412_v4 = vsub.f32 %v8389_v41, %v8411_v28  ;;  %8457 = vmatmul.f32.vlgmr.msra.gmra.mxu3 %v8411_v28 }
0x268d   :  { %v8413_v5 = vand.u32 4294901760, %v8412_v4  ;;  %8487 = vmatmul.f32.vlgmr.msra.gmra.mxu0 %v8412_v4 }
0x268f   :  { %v8414_v50 = vsub.f32 %v8412_v4, %v8413_v5  ;;  %8514 = vmatmul.f32.vlgmr.msra.gmra.mxu1 %v8413_v5 }
0x2691   :  { %v8415_v40 = vand.u32 4294901760, %v8414_v50 }
0x2693   :  { %8416 = vmatmul.f32.vlgmr.msra.gmra.mxu2 %v8415_v40  ;;  %8572 = vmatmul.f32.vlgmr.msrb.gmra.mxu3 %v8411_v28 }
0x269b   :  { %8547 = vmatmul.f32.vlgmr.msrb.gmra.mxu2 %v8411_v28 }
0x270a   :  { %v8488_v56 = vpop.f32.mrf.mxu0 }
0x270c   :  { %v8515_v29 = vpop.f32.mrf.mxu1 }
0x270e   :  { %v8458_v43 = vpop.f32.mrf.mxu3 }
0x2716   :  { %v8417_v37 = vpop.f32.mrf.mxu2  ;;  %v8573_v24 = vpop.f32.mrf.mxu3 }
0x2717   :  { %v8418_v31 = vadd.f32 %v10600_v39, %v8417_v37 }
0x2719   :  { %v8459_v54 = vadd.f32 %v8458_v43, %v8418_v31 }
0x271b   :  { %v8489_v16 = vadd.f32 %v8488_v56, %v8459_v54 }
0x271d   :  { %v8516_v51 = vadd.f32 %v8515_v29, %v8489_v16 }
0x271e   :  { %v8548_v47 = vpop.f32.mrf.mxu2 }
0x271f   :  { %v8549_v30 = vadd.f32 %v8548_v47, %v8516_v51  ;;  %8582 = sbr.rel (%p9863_p12) target bundleno = 10022 (0x2726), region = 105 }
0x2721   :  { %v8574_v53 = vadd.f32 %v8573_v24, %v8549_v30 }
0x2723   :  { %9861 = vst [vmem:[%s14391_s12 + $0x30] sm:$0xff] %v8574_v53 }
0x2724   :  { %v9864_v15 = vld [vmem:[%s14380_s1 + $0x30] sm:$0xff] }
0x2725   :  { %8585 = vst [vmem:[#allocation2] sm:$0xff] %v9864_v15 }
0x2726 PF:  { %p9865_p13 = scmp.ne.s32.totalorder %s9862_s30, 0 }
0x2728   :  { %8589 = sbr.rel (%p9865_p13) target bundleno = 10030 (0x272e), region = 109 }
0x272d   :  { %8590 = vst [vmem:[#allocation2] sm:$0xff] %v8574_v53 }
0x272e PF:  { %v8613_v57 = vld [vmem:[%s14385_s6 + $0x18] sm:$0xff]  ;;  %v8612_v61 = vld [vmem:[%s14385_s6 + $0x10] sm:$0xff]  ;;  %v8611_v6 = vld [vmem:[%s14385_s6 + $0x8] sm:$0xff] }
0x272f   :  { %v13852_v45 = vand.u32 4294901760, %v8613_v57  ;;  %v13854_v18 = vand.u32 4294901760, %v8612_v61  ;;  %v13856_v21 = vand.u32 4294901760, %v8611_v6  ;;  %v8610_v63 = vld [vmem:[%s14385_s6] sm:$0xff]  ;;  %v8609_v0 = vld [vmem:[%s14383_s4 + $0x78] sm:$0xff]  ;;  %v8608_v1 = vld [vmem:[%s14383_s4 + $0x70] sm:$0xff] }
0x2730   :  { %v13867_v48 = vand.u32 4294901760, %v8610_v63  ;;  %v13869_v20 = vand.u32 4294901760, %v8609_v0  ;;  %v13871_v58 = vand.u32 4294901760, %v8608_v1  ;;  %v8607_v46 = vld [vmem:[%s14383_s4 + $0x68] sm:$0xff]  ;;  %v8606_v13 = vld [vmem:[%s14383_s4 + $0x60] sm:$0xff]  ;;  %v8605_v34 = vld [vmem:[%s14383_s4 + $0x58] sm:$0xff] }
0x2731   :  { %v13880_v8 = vsub.f32 %v8613_v57, %v13852_v45  ;;  %v13883_v11 = vsub.f32 %v8612_v61, %v13854_v18  ;;  %8730 = vmatpush.msra.mxu3 %v13852_v45  ;;  %v13887_v32 = vsub.f32 %v8611_v6, %v13856_v21  ;;  %8630 = vmatpush.msrb.mxu0 %v13852_v45  ;;  %v13890_v49 = vand.u32 4294901760, %v8607_v46  ;;  %v8604_v22 = vld [vmem:[%s14383_s4 + $0x50] sm:$0xff]  ;;  %v8603_v41 = vld [vmem:[%s14383_s4 + $0x48] sm:$0xff]  ;;  %v8602_v40 = vld [vmem:[%s14383_s4 + $0x40] sm:$0xff] }
0x2732   :  { %v13896_v59 = vsub.f32 %v8610_v63, %v13867_v48  ;;  %v13899_v60 = vsub.f32 %v8609_v0, %v13869_v20  ;;  %v13902_v19 = vsub.f32 %v8608_v1, %v13871_v58  ;;  %v13904_v27 = vand.u32 4294901760, %v8606_v13  ;;  %v8592_v43 = vld [vmem:[%s14392_s13] sm:$0xff]  ;;  %v8601_v30 = vld [vmem:[%s14383_s4 + $0x38] sm:$0xff]  ;;  %v8600_v24 = vld [vmem:[%s14383_s4 + $0x30] sm:$0xff] }
0x2733   :  { %8701 = vmatpush.msra.mxu2 %v13880_v8  ;;  %8732 = vmatpush.msra.mxu3 %v13854_v18  ;;  %v8660_v36 = vand.u32 4294901760, %v13880_v8  ;;  %v8666_v35 = vand.u32 4294901760, %v13883_v11  ;;  %v13911_v2 = vsub.f32 %v8607_v46, %v13890_v49  ;;  %v8672_v23 = vand.u32 4294901760, %v13887_v32  ;;  %v8599_v53 = vld [vmem:[%s14383_s4 + $0x28] sm:$0xff] }
0x2734   :  { %v8845_v25 = vand.u32 4294901760, %v13899_v60  ;;  %8632 = vmatpush.msrb.mxu0 %v13854_v18  ;;  %v8851_v42 = vand.u32 4294901760, %v13902_v19  ;;  %v13917_v52 = vand.u32 4294901760, %v8605_v34  ;;  %v13920_v10 = vsub.f32 %v8606_v13, %v13904_v27  ;;  %v8598_v13 = vld [vmem:[%s14383_s4 + $0x20] sm:$0xff] }
0x2735   :  { %8704 = vmatpush.msra.mxu2 %v13883_v11  ;;  %8734 = vmatpush.msra.mxu3 %v13856_v21  ;;  %v8661_v7 = vsub.f32 %v13880_v8, %v8660_v36  ;;  %v8667_v17 = vsub.f32 %v13883_v11, %v8666_v35  ;;  %v8857_v38 = vand.u32 4294901760, %v13911_v2  ;;  %v8673_v55 = vsub.f32 %v13887_v32, %v8672_v23 }
0x2736   :  { %v8846_v9 = vsub.f32 %v13899_v60, %v8845_v25  ;;  %v8852_v14 = vsub.f32 %v13902_v19, %v8851_v42  ;;  %8634 = vmatpush.msrb.mxu0 %v13856_v21  ;;  %v8863_v62 = vand.u32 4294901760, %v13920_v10  ;;  %v8678_v3 = vand.u32 4294901760, %v13896_v59 }
0x2737   :  { %8707 = vmatpush.msra.mxu2 %v13887_v32  ;;  %8736 = vmatpush.msra.mxu3 %v13867_v48  ;;  %v8662_v28 = vand.u32 4294901760, %v8661_v7  ;;  %v8668_v4 = vand.u32 4294901760, %v8667_v17  ;;  %v8858_v5 = vsub.f32 %v13911_v2, %v8857_v38  ;;  %v8674_v50 = vand.u32 4294901760, %v8673_v55 }
0x2738   :  { %v8847_v37 = vand.u32 4294901760, %v8846_v9  ;;  %v8853_v31 = vand.u32 4294901760, %v8852_v14  ;;  %8636 = vmatpush.msrb.mxu0 %v13867_v48  ;;  %v8864_v54 = vsub.f32 %v13920_v10, %v8863_v62  ;;  %v8679_v56 = vsub.f32 %v13896_v59, %v8678_v3 }
0x2739   :  { %8710 = vmatpush.msra.mxu2 %v13896_v59  ;;  %8663 = vmatpush.msrb.mxu1 %v8662_v28  ;;  %v8859_v16 = vand.u32 4294901760, %v8858_v5  ;;  %v13966_v29 = vand.u32 4294901760, %v8604_v22  ;;  %v13969_v51 = vsub.f32 %v8605_v34, %v13917_v52  ;;  %v13971_v47 = vand.u32 4294901760, %v8603_v41 }
0x273a   :  { %8848 = vmatpush.msrb.mxu3 %v8847_v37  ;;  %v8865_v15 = vand.u32 4294901760, %v8864_v54  ;;  %v8680_v57 = vand.u32 4294901760, %v8679_v56  ;;  %v13983_v61 = vand.u32 4294901760, %v8602_v40  ;;  %v8615_v6 = vsel %vm59_vm0, %v8592_v43, 0  ;;  %8759 = vmatpush.msra.mxu0 %v8660_v36 }
0x273b   :  { %8803 = vmatpush.msrb.mxu2 %v13869_v20  ;;  %8669 = vmatpush.msrb.mxu1 %v8668_v4  ;;  %v8869_v63 = vand.u32 4294901760, %v13969_v51  ;;  %v13988_v0 = vsub.f32 %v8604_v22, %v13966_v29  ;;  %v13991_v1 = vsub.f32 %v8603_v41, %v13971_v47  ;;  %v13993_v46 = vand.u32 4294901760, %v8615_v6 }
0x273c   :  { %8854 = vmatpush.msrb.mxu3 %v8853_v31  ;;  %v13999_v8 = vand.u32 4294901760, %v8601_v30  ;;  %v14002_v34 = vsub.f32 %v8602_v40, %v13983_v61  ;;  %v14004_v36 = vand.u32 4294901760, %v8600_v24  ;;  %v14006_v7 = vand.u32 4294901760, %v8599_v53  ;;  %8763 = vmatpush.msra.mxu0 %v8666_v35  ;;  %v8597_v35 = vld [vmem:[%s14383_s4 + $0x18] sm:$0xff] }
0x273d   :  { %8805 = vmatpush.msrb.mxu2 %v13871_v58  ;;  %8675 = vmatpush.msrb.mxu1 %v8674_v50  ;;  %v8870_v17 = vsub.f32 %v13969_v51, %v8869_v63  ;;  %v8875_v55 = vand.u32 4294901760, %v13988_v0  ;;  %v8881_v9 = vand.u32 4294901760, %v13991_v1  ;;  %v14016_v14 = vsub.f32 %v8615_v6, %v13993_v46 }
0x273e   :  { %8860 = vmatpush.msrb.mxu3 %v8859_v16  ;;  %v8887_v22 = vand.u32 4294901760, %v14002_v34  ;;  %v14021_v41 = vsub.f32 %v8601_v30, %v13999_v8  ;;  %v14024_v28 = vsub.f32 %v8600_v24, %v14004_v36  ;;  %v14026_v11 = vand.u32 4294901760, %v8598_v13  ;;  %8767 = vmatpush.msra.mxu0 %v8672_v23  ;;  %v8596_v23 = vld [vmem:[%s14383_s4 + $0x10] sm:$0xff]  ;;  %v8595_v30 = vld [vmem:[%s14383_s4 + $0x8] sm:$0xff] }
0x273f   :  { %8807 = vmatpush.msrb.mxu2 %v13890_v49  ;;  %8681 = vmatpush.msrb.mxu1 %v8680_v57  ;;  %v8871_v4 = vand.u32 4294901760, %v8870_v17  ;;  %v8876_v5 = vsub.f32 %v13988_v0, %v8875_v55  ;;  %v8882_v50 = vsub.f32 %v13991_v1, %v8881_v9  ;;  %v8639_v40 = vand.u32 4294901760, %v14016_v14 }
0x2740   :  { %8866 = vmatpush.msrb.mxu3 %v8865_v15  ;;  %v8888_v43 = vsub.f32 %v14002_v34, %v8887_v22  ;;  %v8893_v37 = vand.u32 4294901760, %v14021_v41  ;;  %v8899_v31 = vand.u32 4294901760, %v14024_v28  ;;  %v14047_v32 = vsub.f32 %v8599_v53, %v14006_v7  ;;  %8771 = vmatpush.msra.mxu0 %v8678_v3  ;;  %v8594_v3 = vld [vmem:[%s14383_s4] sm:$0xff] }
0x2741   :  { %8809 = vmatpush.msrb.mxu2 %v13904_v27  ;;  %8790 = vmatpush.msra.mxu1 %v13852_v45  ;;  %v8877_v54 = vand.u32 4294901760, %v8876_v5  ;;  %v8640_v56 = vsub.f32 %v14016_v14, %v8639_v40  ;;  %v14058_v16 = vand.u32 4294901760, %v8597_v35  ;;  %v8883_v24 = vand.u32 4294901760, %v8882_v50 }
0x2742   :  { %8872 = vmatpush.msrb.mxu3 %v8871_v4  ;;  %v8894_v45 = vsub.f32 %v14021_v41, %v8893_v37  ;;  %v8905_v59 = vand.u32 4294901760, %v14047_v32  ;;  %v14073_v15 = vsub.f32 %v8598_v13, %v14026_v11  ;;  %v14075_v57 = vand.u32 4294901760, %v8596_v23  ;;  %8713 = vmatmul.f32.vlgmr.msra.gmra.mxu2 %v14016_v14 }
0x2743   :  { %8811 = vmatpush.msrb.mxu2 %v13917_v52  ;;  %8792 = vmatpush.msra.mxu1 %v13854_v18  ;;  %v8641_v53 = vand.u32 4294901760, %v8640_v56  ;;  %v14078_v6 = vsub.f32 %v8597_v35, %v14058_v16  ;;  %v8889_v17 = vand.u32 4294901760, %v8888_v43  ;;  %v8900_v4 = vsub.f32 %v14024_v28, %v8899_v31 }
0x2744   :  { %8878 = vmatpush.msrb.mxu3 %v8877_v54  ;;  %v14085_v18 = vand.u32 4294901760, %v8595_v30  ;;  %v14407_v13 = vand.u32 4294901760, %v14073_v15  ;;  %v14090_v35 = vsub.f32 %v8596_v23, %v14075_v57  ;;  %v14092_v5 = vand.u32 4294901760, %v8594_v3  ;;  %v8591_v23 = vld [vmem:[#allocation2] sm:$0xff]  ;;  %8683 = vmatmul.f32.vlgmr.msrb.gmra.mxu1 %v13993_v46 }
0x2745   :  { %8813 = vmatpush.msrb.mxu2 %v13966_v29  ;;  %8794 = vmatpush.msra.mxu1 %v13856_v21  ;;  %v8895_v50 = vand.u32 4294901760, %v8894_v45  ;;  %v8906_v43 = vsub.f32 %v14047_v32, %v8905_v59  ;;  %v14406_v54 = vand.u32 4294901760, %v14078_v6  ;;  %v8901_v56 = vand.u32 4294901760, %v8900_v4 }
0x2746   :  { %8642 = vmatmul.f32.vlgmr.msrb.gmra.mxu0 %v8641_v53  ;;  %8884 = vmatpush.msrb.mxu3 %v8883_v24  ;;  %v14100_v21 = vsub.f32 %v8595_v30, %v14085_v18  ;;  %v8912_v24 = vsub.f32 %v14073_v15, %v14407_v13  ;;  %v8923_v45 = vand.u32 4294901760, %v14090_v35  ;;  %v14110_v53 = vsub.f32 %v8594_v3, %v14092_v5 }
0x2747   :  { %8815 = vmatpush.msrb.mxu2 %v13971_v47  ;;  %8946 = vmatpush.msrb.mxu0 %v13899_v60  ;;  %v8918_v30 = vsub.f32 %v14078_v6, %v14406_v54  ;;  %v14119_v4 = vand.u32 4294901760, %v8591_v23 }
0x2748   :  { %8796 = vmatpush.msra.mxu1 %v13867_v48  ;;  %8890 = vmatpush.msrb.mxu3 %v8889_v17  ;;  %v8907_v48 = vand.u32 4294901760, %v8906_v43  ;;  %v8929_v17 = vand.u32 4294901760, %v14100_v21  ;;  %v8913_v3 = vand.u32 4294901760, %v8912_v24  ;;  %v8935_v43 = vand.u32 4294901760, %v14110_v53 }
0x2749   :  { %8817 = vmatpush.msrb.mxu2 %v13983_v61  ;;  %8949 = vmatpush.msrb.mxu0 %v13902_v19  ;;  %v8919_v54 = vand.u32 4294901760, %v8918_v30 }
0x274a   :  { %8896 = vmatpush.msrb.mxu3 %v8895_v50  ;;  %8999 = vmatpush.msrb.mxu1 %v13869_v20  ;;  %v8924_v50 = vsub.f32 %v14090_v35, %v8923_v45  ;;  %v8930_v13 = vsub.f32 %v14100_v21, %v8929_v17 }
0x274b   :  { %8819 = vmatpush.msrb.mxu2 %v13999_v8  ;;  %8952 = vmatpush.msrb.mxu0 %v13911_v2 }
0x274c   :  { %8902 = vmatpush.msrb.mxu3 %v8901_v56  ;;  %9001 = vmatpush.msrb.mxu1 %v13871_v58  ;;  %v14135_v56 = vsub.f32 %v8591_v23, %v14119_v4  ;;  %v8925_v24 = vand.u32 4294901760, %v8924_v50  ;;  %v8931_v23 = vand.u32 4294901760, %v8930_v13 }
0x274d   :  { %8821 = vmatpush.msrb.mxu2 %v14004_v36  ;;  %8955 = vmatpush.msrb.mxu0 %v13920_v10 }
0x274e   :  { %8908 = vmatpush.msrb.mxu3 %v8907_v48  ;;  %9003 = vmatpush.msrb.mxu1 %v13890_v49  ;;  %v8936_v48 = vsub.f32 %v14110_v53, %v8935_v43  ;;  %v8836_v30 = vand.u32 4294901760, %v14135_v56 }
0x274f   :  { %8823 = vmatpush.msrb.mxu2 %v14006_v7  ;;  %8958 = vmatpush.msrb.mxu0 %v13969_v51 }
0x2750   :  { %8914 = vmatpush.msrb.mxu3 %v8913_v3  ;;  %9005 = vmatpush.msrb.mxu1 %v13904_v27  ;;  %v8937_v3 = vand.u32 4294901760, %v8936_v48 }
0x2751   :  { %8825 = vmatpush.msrb.mxu2 %v14026_v11  ;;  %8961 = vmatpush.msrb.mxu0 %v13988_v0 }
0x2752   :  { %8920 = vmatpush.msrb.mxu3 %v8919_v54  ;;  %9007 = vmatpush.msrb.mxu1 %v13917_v52  ;;  %v8837_v54 = vsub.f32 %v14135_v56, %v8836_v30 }
0x2753   :  { %8827 = vmatpush.msrb.mxu2 %v14058_v16  ;;  %8964 = vmatpush.msrb.mxu0 %v13991_v1 }
0x2754   :  { %8926 = vmatpush.msrb.mxu3 %v8925_v24  ;;  %9009 = vmatpush.msrb.mxu1 %v13966_v29  ;;  %v8838_v13 = vand.u32 4294901760, %v8837_v54  ;;  %v9183_v24 = vld [vmem:[%s14384_s5 + $0x10] sm:$0xff] }
0x2755   :  { %8829 = vmatpush.msrb.mxu2 %v14075_v57  ;;  %8967 = vmatpush.msrb.mxu0 %v14002_v34 }
0x2756   :  { %8932 = vmatpush.msrb.mxu3 %v8931_v23  ;;  %9011 = vmatpush.msrb.mxu1 %v13971_v47 }
0x2757   :  { %8831 = vmatpush.msrb.mxu2 %v14085_v18  ;;  %8740 = vmatmul.f32.vlgmr.msra.gmra.mxu3 %v8639_v40 }
0x2758   :  { %8938 = vmatpush.msrb.mxu3 %v8937_v3  ;;  %8970 = vmatpush.msrb.mxu0 %v14021_v41 }
0x2759   :  { %8833 = vmatpush.msrb.mxu2 %v14092_v5  ;;  %9013 = vmatpush.msrb.mxu1 %v13983_v61 }
0x275a   :  { %9107 = vmatpush.msra.mxu3 %v13869_v20  ;;  %8973 = vmatpush.msrb.mxu0 %v14024_v28  ;;  %v14420_v20 = vand.u32 4294901760, %v14073_v15  ;;  %v8593_v28 = vld [vmem:[%s14393_s14] sm:$0xff] }
0x275b   :  { %9040 = vmatpush.msra.mxu2 %v8845_v25  ;;  %9015 = vmatpush.msrb.mxu1 %v13999_v8 }
0x275c   :  { %9109 = vmatpush.msra.mxu3 %v13871_v58  ;;  %8976 = vmatpush.msrb.mxu0 %v14047_v32  ;;  %v14421_v58 = vand.u32 4294901760, %v14078_v6 }
0x275d   :  { %9044 = vmatpush.msra.mxu2 %v8851_v42  ;;  %9017 = vmatpush.msrb.mxu1 %v14004_v36 }
0x275e   :  { %8839 = vmatmul.f32.vlgmr.msrb.gmra.mxu2 %v8838_v13  ;;  %9111 = vmatpush.msra.mxu3 %v13890_v49 }
0x275f   :  { %9048 = vmatpush.msra.mxu2 %v8857_v38  ;;  %8979 = vmatpush.msrb.mxu0 %v14073_v15  ;;  %v9187_v15 = vld [vmem:[%s14386_s7 + $0x10] sm:$0xff] }
0x2760   :  { %9019 = vmatpush.msrb.mxu1 %v14006_v7  ;;  %8773 = vmatmul.f32.vlgmr.msra.gmra.mxu0 %v13993_v46 }
0x2761   :  { %9052 = vmatpush.msra.mxu2 %v8863_v62  ;;  %8940 = vmatmul.f32.vlgmr.msrb.gmra.mxu3 %v14119_v4 }
0x2762   :  { %9113 = vmatpush.msra.mxu3 %v13904_v27  ;;  %8982 = vmatpush.msrb.mxu0 %v14078_v6 }
0x2763   :  { %9056 = vmatpush.msra.mxu2 %v8869_v63  ;;  %9021 = vmatpush.msrb.mxu1 %v14026_v11 }
0x2764   :  { %8798 = vmatmul.f32.vlgmr.msra.gmra.mxu1 %v13993_v46  ;;  %9115 = vmatpush.msra.mxu3 %v13917_v52 }
0x2765   :  { %9060 = vmatpush.msra.mxu2 %v8875_v55  ;;  %8985 = vmatpush.msrb.mxu0 %v14090_v35 }
0x2766   :  { %9023 = vmatpush.msrb.mxu1 %v14058_v16  ;;  %9117 = vmatpush.msra.mxu3 %v13966_v29 }
0x2767   :  { %9064 = vmatpush.msra.mxu2 %v8881_v9  ;;  %8988 = vmatpush.msrb.mxu0 %v14100_v21  ;;  %v9866_v21 = vld [vmem:[%s14392_s13 + $0x8] sm:$0xff] }
0x2768   :  { %9025 = vmatpush.msrb.mxu1 %v14075_v57  ;;  %9119 = vmatpush.msra.mxu3 %v13971_v47 }
0x2769   :  { %9068 = vmatpush.msra.mxu2 %v8887_v22  ;;  %8991 = vmatpush.msrb.mxu0 %v14110_v53  ;;  %v9190_v53 = vsel %vm59_vm0, %v9866_v21, 0 }
0x276a   :  { %9027 = vmatpush.msrb.mxu1 %v14085_v18  ;;  %8994 = vmatmul.f32.vlgmr.msrb.gmra.mxu0 %v14135_v56  ;;  %v14279_v56 = vand.u32 4294901760, %v9190_v53 }
0x276b   :  { %9072 = vmatpush.msra.mxu2 %v8893_v37  ;;  %9121 = vmatpush.msra.mxu3 %v13983_v61 }
0x276c   :  { %9029 = vmatpush.msrb.mxu1 %v14092_v5 }
0x276d   :  { %9033 = vmatmul.f32.vlgmr.msrb.gmra.mxu1 %v8836_v30  ;;  %9076 = vmatpush.msra.mxu2 %v8899_v31  ;;  %v14287_v30 = vand.u32 4294901760, %v9183_v24 }
0x276e   :  { %9123 = vmatpush.msra.mxu3 %v13999_v8 }
0x276f   :  { %9080 = vmatpush.msra.mxu2 %v8905_v59  ;;  %v9188_v59 = vld [vmem:[%s14386_s7 + $0x18] sm:$0xff] }
0x2770   :  { %9125 = vmatpush.msra.mxu3 %v14004_v36  ;;  %v14257_v6 = vand.u32 4294901760, %v9188_v59 }
0x2771   :  { %9084 = vmatpush.msra.mxu2 %v14420_v20  ;;  %v9213_v20 = vsub.f32 %v9190_v53, %v14279_v56 }
0x2772   :  { %9127 = vmatpush.msra.mxu3 %v14006_v7  ;;  %9205 = vmatpush.msra.mxu0 %v14257_v6 }
0x2773   :  { %9088 = vmatpush.msra.mxu2 %v14421_v58 }
0x2774   :  { %9129 = vmatpush.msra.mxu3 %v14026_v11 }
0x2775   :  { %9092 = vmatpush.msra.mxu2 %v8923_v45 }
0x2776   :  { %9131 = vmatpush.msra.mxu3 %v14058_v16 }
0x2777   :  { %9096 = vmatpush.msra.mxu2 %v8929_v17  ;;  %v9184_v17 = vld [vmem:[%s14384_s5 + $0x18] sm:$0xff] }
0x2778   :  { %9133 = vmatpush.msra.mxu3 %v14075_v57  ;;  %v9186_v57 = vld [vmem:[%s14386_s7 + $0x8] sm:$0xff]  ;;  %v14285_v23 = vand.u32 4294901760, %v9184_v17 }
0x2779   :  { %9100 = vmatpush.msra.mxu2 %v8935_v43  ;;  %v14261_v35 = vand.u32 4294901760, %v9186_v57 }
0x277a   :  { %9135 = vmatpush.msra.mxu3 %v14085_v18  ;;  %9102 = vmatmul.f32.vlgmr.msra.gmra.mxu2 %v14119_v4  ;;  %v14259_v18 = vand.u32 4294901760, %v9187_v15 }
0x277b   :  { %v9246_v43 = vsub.f32 %v9186_v57, %v14261_v35 }
0x277c   :  { %9137 = vmatpush.msra.mxu3 %v14092_v5  ;;  %v9185_v5 = vld [vmem:[%s14386_s7] sm:$0xff]  ;;  %v9240_v50 = vsub.f32 %v9187_v15, %v14259_v18  ;;  %9207 = vmatpush.msra.mxu0 %v14259_v18 }
0x277d   :  { %9139 = vmatmul.f32.vlgmr.msra.gmra.mxu3 %v14119_v4  ;;  %v14269_v45 = vand.u32 4294901760, %v9185_v5  ;;  %v9234_v4 = vsub.f32 %v9188_v59, %v14257_v6  ;;  %v9247_v13 = vand.u32 4294901760, %v9246_v43 }
0x277e   :  { %v9241_v54 = vand.u32 4294901760, %v9240_v50  ;;  %9492 = vmatpush.msrb.mxu3 %v14285_v23  ;;  %9209 = vmatpush.msra.mxu0 %v14261_v35 }
0x277f   :  { %v9252_v48 = vsub.f32 %v9185_v5, %v14269_v45  ;;  %v9235_v3 = vand.u32 4294901760, %v9234_v4 }
0x2780   :  { %9494 = vmatpush.msrb.mxu3 %v14287_v30  ;;  %9211 = vmatpush.msra.mxu0 %v14269_v45 }
0x2781   :  { %v9253_v58 = vand.u32 4294901760, %v9252_v48 }
0x2782   :  { %9276 = vmatpush.msrb.mxu0 %v9234_v4 }
0x2784   :  { %9279 = vmatpush.msrb.mxu0 %v9240_v50 }
0x2786   :  { %9282 = vmatpush.msrb.mxu0 %v9246_v43 }
0x2788   :  { %9285 = vmatpush.msrb.mxu0 %v9252_v48 }
0x27c1   :  { %v8684_v49 = vpop.f32.mrf.mxu1 }
0x27c3   :  { %v8643_v60 = vpop.f32.mrf.mxu0 }
0x27c4   :  { %v8685_v19 = vadd.f32 %v8684_v49, %v8643_v60  ;;  %v14292_v49 = vsub.f32 %v9184_v17, %v14285_v23  ;;  %v9236_v60 = vsub.f32 %v9234_v4, %v9235_v3 }
0x27c5   :  { %v8714_v27 = vpop.f32.mrf.mxu2 }
0x27c6   :  { %v8715_v2 = vadd.f32 %v8714_v27, %v8685_v19  ;;  %v9242_v19 = vsub.f32 %v9240_v50, %v9241_v54  ;;  %v9248_v27 = vsub.f32 %v9246_v43, %v9247_v13  ;;  %9463 = vmatpush.msrb.mxu2 %v14292_v49 }
0x27da   :  { %v8741_v25 = vpop.f32.mrf.mxu3 }
0x27db   :  { %v8742_v42 = vadd.f32 %v8741_v25, %v8715_v2  ;;  %v9214_v2 = vand.u32 4294901760, %v9213_v20  ;;  %v14297_v25 = vsub.f32 %v9183_v24, %v14287_v30 }
0x27dd   :  { %v8774_v52 = vpop.f32.mrf.mxu0  ;;  %9466 = vmatpush.msrb.mxu2 %v14297_v25 }
0x27de   :  { %v8775_v10 = vadd.f32 %v8774_v52, %v8742_v42  ;;  %v9237_v42 = vand.u32 4294901760, %v9236_v60  ;;  %v9243_v52 = vand.u32 4294901760, %v9242_v19 }
0x27e0   :  { %9238 = vmatpush.msra.mxu1 %v9237_v42 }
0x27e1   :  { %v8799_v38 = vpop.f32.mrf.mxu1  ;;  %v8840_v29 = vpop.f32.mrf.mxu2 }
0x27e2   :  { %v8800_v62 = vadd.f32 %v8799_v38, %v8775_v10  ;;  %v9215_v10 = vsub.f32 %v9213_v20, %v9214_v2  ;;  %v9254_v38 = vsub.f32 %v9252_v48, %v9253_v58  ;;  %9244 = vmatpush.msra.mxu1 %v9243_v52 }
0x27e4   :  { %v8841_v51 = vadd.f32 %v8840_v29, %v8800_v62  ;;  %v8941_v47 = vpop.f32.mrf.mxu3  ;;  %v9249_v62 = vand.u32 4294901760, %v9248_v27  ;;  %v9216_v29 = vand.u32 4294901760, %v9215_v10 }
0x27e6   :  { %v8942_v61 = vadd.f32 %v8941_v47, %v8841_v51  ;;  %9217 = vmatmul.f32.vlgmr.msra.gmra.mxu0 %v9216_v29  ;;  %v9255_v51 = vand.u32 4294901760, %v9254_v38  ;;  %9250 = vmatpush.msra.mxu1 %v9249_v62  ;;  %v9422_v47 = vand.u32 4294901760, %v14292_v49 }
0x27e7   :  { %v8995_v63 = vpop.f32.mrf.mxu0  ;;  %9334 = vmatpush.msra.mxu0 %v9235_v3 }
0x27e8   :  { %v8996_v0 = vadd.f32 %v8995_v63, %v8942_v61  ;;  %9256 = vmatpush.msra.mxu1 %v9255_v51  ;;  %v9428_v61 = vand.u32 4294901760, %v14297_v25  ;;  %v9423_v63 = vsub.f32 %v14292_v49, %v9422_v47 }
0x27e9   :  { %9258 = vmatmul.f32.vlgmr.msra.gmra.mxu1 %v14279_v56  ;;  %9338 = vmatpush.msra.mxu0 %v9241_v54 }
0x27ea   :  { %v9034_v1 = vpop.f32.mrf.mxu1  ;;  %9305 = vmatpush.msrb.mxu1 %v14257_v6 }
0x27eb   :  { %v9035_v46 = vadd.f32 %v9034_v1, %v8996_v0  ;;  %9342 = vmatpush.msra.mxu0 %v9247_v13  ;;  %v9429_v1 = vsub.f32 %v14297_v25, %v9428_v61 }
0x27ec   :  { %9307 = vmatpush.msrb.mxu1 %v14259_v18 }
0x27ed   :  { %9346 = vmatpush.msra.mxu0 %v9253_v58 }
0x27ee   :  { %9288 = vmatmul.f32.vlgmr.msrb.gmra.mxu0 %v9213_v20  ;;  %9309 = vmatpush.msrb.mxu1 %v14261_v35 }
0x27ef   :  { %9392 = vmatpush.msrb.mxu0 %v14285_v23 }
0x27f0   :  { %9311 = vmatpush.msrb.mxu1 %v14269_v45 }
0x27f1   :  { %9315 = vmatmul.f32.vlgmr.msrb.gmra.mxu1 %v9214_v2  ;;  %9394 = vmatpush.msrb.mxu0 %v14287_v30 }
0x27f2   :  { %9365 = vmatpush.msra.mxu1 %v14257_v6 }
0x27f4   :  { %9367 = vmatpush.msra.mxu1 %v14259_v18 }
0x27f6   :  { %9348 = vmatmul.f32.vlgmr.msra.gmra.mxu0 %v14279_v56  ;;  %9369 = vmatpush.msra.mxu1 %v14261_v35 }
0x27f8   :  { %9371 = vmatpush.msra.mxu1 %v14269_v45 }
0x27f9   :  { %9373 = vmatmul.f32.vlgmr.msra.gmra.mxu1 %v14279_v56 }
0x27fd   :  { %v9103_v8 = vpop.f32.mrf.mxu2 }
0x27fe   :  { %v9104_v34 = vadd.f32 %v9103_v8, %v9035_v46  ;;  %v9424_v8 = vand.u32 4294901760, %v9423_v63 }
0x2800   :  { %v9140_v36 = vpop.f32.mrf.mxu3  ;;  %9425 = vmatpush.msrb.mxu1 %v9424_v8 }
0x2801   :  { %v9141_v7 = vadd.f32 %v9140_v36, %v9104_v34  ;;  %v9430_v34 = vand.u32 4294901760, %v9429_v1  ;;  %v9182_v36 = vld [vmem:[%s14384_s5 + $0x8] sm:$0xff] }
0x2803   :  { %v9143_v55 = vadd.f32 %v10432_v12, %v9141_v7  ;;  %9431 = vmatpush.msrb.mxu1 %v9430_v34  ;;  %v9395_v7 = vand.u32 4294901760, %v9182_v36 }
0x2805   :  { %v9144_v9 = vmul.f32 %v9143_v55, %v10434_v33  ;;  %v9181_v55 = vld [vmem:[%s14384_s5] sm:$0xff]  ;;  %9496 = vmatpush.msrb.mxu3 %v9395_v7  ;;  %9396 = vmatpush.msrb.mxu0 %v9395_v7 }
0x2807   :  { %9936 = vtanh.f32 %v9144_v9  ;;  %v9433_v9 = vsub.f32 %v9182_v36, %v9395_v7 }
0x2809   :  { %9469 = vmatpush.msrb.mxu2 %v9433_v9 }
0x280d   :  { %v9937_v14 = vpop.eup %9936 }
0x280e   :  { %v9146_v22 = vmul.f32 %v9937_v14, %v10434_v33  ;;  %v9397_v14 = vand.u32 4294901760, %v9181_v55 }
0x2810   :  { %v14233_v41 = vadd.f32 %v9146_v22, %v10438_v44  ;;  %v9434_v22 = vand.u32 4294901760, %v9433_v9  ;;  %9498 = vmatpush.msrb.mxu3 %v9397_v14  ;;  %9398 = vmatpush.msrb.mxu0 %v9397_v14 }
0x2812   :  { %9154 = vrot.lane.b32.xlu0 %v14233_v41, %s9961_s8  ;;  %9521 = vmatpush.msra.mxu0 %v9422_v47 }
0x2814   :  { %9525 = vmatpush.msra.mxu0 %v9428_v61 }
0x2816   :  { %9529 = vmatpush.msra.mxu0 %v9434_v22 }
0x281a   :  { %9149 = vrot.lane.b32.xlu0 %v8593_v28, %s9962_s20  ;;  %v9435_v28 = vsub.f32 %v9433_v9, %v9434_v22 }
0x2863   :  { %v9218_v21 = vpop.f32.mrf.mxu0 }
0x2866   :  { %v9259_v5 = vpop.f32.mrf.mxu1 }
0x2867   :  { %v9260_v17 = vadd.f32 %v9259_v5, %v9218_v21 }
0x286b   :  { %v9289_v53 = vpop.f32.mrf.mxu0 }
0x286c   :  { %v9290_v4 = vadd.f32 %v9289_v53, %v9260_v17 }
0x286e   :  { %v9316_v45 = vpop.f32.mrf.mxu1 }
0x286f   :  { %v9317_v43 = vadd.f32 %v9316_v45, %v9290_v4 }
0x2873   :  { %v9349_v56 = vpop.f32.mrf.mxu0 }
0x2874   :  { %v9350_v24 = vadd.f32 %v9349_v56, %v9317_v43 }
0x2876   :  { %v9374_v50 = vpop.f32.mrf.mxu1 }
0x2877   :  { %v9375_v48 = vadd.f32 %v9374_v50, %v9350_v24 }
0x2884   :  { %v9155_v11 = vpop.permute.xlu0 %9154 }
0x2885   :  { %v9157_v12 = vmul.f32 %v9155_v11, %v14233_v41 }
0x2887   :  { %9159 = vrot.lane.b32.xlu1 %v9157_v12, %s9962_s20  ;;  %v9436_v12 = vand.u32 4294901760, %v9435_v28 }
0x2889   :  { %9437 = vmatpush.msrb.mxu1 %v9436_v12 }
0x288c   :  { %v9150_v40 = vpop.permute.xlu0 %9149 }
0x288d   :  { %v9152_v37 = vmul.f32 %v9150_v40, %v14233_v41 }
0x28f9   :  { %v9160_v31 = vpop.permute.xlu1 %9159 }
0x28fa   :  { %v14244_v32 = vadd.f32 %v9160_v31, %v9152_v37  ;;  %v9867_v31 = vld [vmem:[%s14393_s14 + $0x8] sm:$0xff] }
0x28fb   :  { %9570 = vrot.lane.b32.xlu0 %v9867_v31, %s9962_s20 }
0x28fc   :  { %9938 = vtanh.f32 %v14244_v32 }
0x2902   :  { %v9939_v16 = vpop.eup %9938 }
0x2903   :  { %9165 = vrot.lane.b32.xlu1 %v9939_v16, %s9961_s8 }
0x296d   :  { %v9571_v51 = vpop.permute.xlu0 %9570 }
0x2975   :  { %v9166_v0 = vpop.permute.xlu1 %9165 }
0x2976   :  { %v9168_v46 = vmul.f32 %v9166_v0, %v14233_v41  ;;  %v9439_v41 = vsub.f32 %v9181_v55, %v9397_v14 }
0x2978   :  { %9170 = vrot.lane.b32.xlu2 %v9168_v46, %s9962_s20  ;;  %v9440_v11 = vand.u32 4294901760, %v9439_v41  ;;  %9472 = vmatpush.msrb.mxu2 %v9439_v41 }
0x297a   :  { %v9441_v40 = vsub.f32 %v9439_v41, %v9440_v11  ;;  %9533 = vmatpush.msra.mxu0 %v9440_v11  ;;  %v9601_v11 = vld [vmem:[%s14389_s10 + $0x8] sm:$0xff] }
0x297b   :  { %v9622_v12 = vand.u32 4294901760, %v9601_v11 }
0x297c   :  { %v9442_v37 = vand.u32 4294901760, %v9441_v40  ;;  %v9600_v40 = vld [vmem:[%s14389_s10] sm:$0xff] }
0x297d   :  { %v9624_v31 = vand.u32 4294901760, %v9600_v40 }
0x297e   :  { %9443 = vmatpush.msrb.mxu1 %v9442_v37  ;;  %v9660_v37 = vsub.f32 %v9601_v11, %v9622_v12 }
0x2980   :  { %9552 = vmatpush.msra.mxu1 %v14285_v23 }
0x2982   :  { %9554 = vmatpush.msra.mxu1 %v14287_v30 }
0x2984   :  { %9556 = vmatpush.msra.mxu1 %v9395_v7 }
0x2986   :  { %9558 = vmatpush.msra.mxu1 %v9397_v14 }
0x29d2   :  { %v9171_v16 = vpop.permute.xlu2 %9170 }
0x29d3   :  { %9173 = vst.msk [vmem:[%s14392_s13] sm:$0xff] %vm59_vm0, %v9171_v16  ;;  %v9377_v59 = vsel %vm59_vm0, %v9171_v16, 0  ;;  %v9661_v16 = vand.u32 4294901760, %v9660_v37 }
0x29d4   :  { %v9399_v15 = vand.u32 4294901760, %v9377_v59 }
0x29d6   :  { %v9400_v57 = vsub.f32 %v9377_v59, %v9399_v15  ;;  %9445 = vmatmul.f32.vlgmr.msrb.gmra.mxu1 %v9399_v15  ;;  %v9666_v59 = vsub.f32 %v9600_v40, %v9624_v31 }
0x29d8   :  { %v9401_v6 = vand.u32 4294901760, %v9400_v57  ;;  %9475 = vmatmul.f32.vlgmr.msrb.gmra.mxu2 %v9400_v57 }
0x29da   :  { %v9402_v18 = vsub.f32 %v9400_v57, %v9401_v6  ;;  %9502 = vmatmul.f32.vlgmr.msrb.gmra.mxu3 %v9401_v6  ;;  %v9667_v57 = vand.u32 4294901760, %v9666_v59 }
0x29dc   :  { %v9403_v35 = vand.u32 4294901760, %v9402_v18  ;;  %v9668_v18 = vsub.f32 %v9666_v59, %v9667_v57 }
0x29de   :  { %9404 = vmatmul.f32.vlgmr.msrb.gmra.mxu0 %v9403_v35  ;;  %9560 = vmatmul.f32.vlgmr.msra.gmra.mxu1 %v9399_v15  ;;  %v9669_v35 = vand.u32 4294901760, %v9668_v18 }
0x29e6   :  { %9535 = vmatmul.f32.vlgmr.msra.gmra.mxu0 %v9399_v15  ;;  %v9662_v15 = vsub.f32 %v9660_v37, %v9661_v16 }
0x29e8   :  { %v9663_v6 = vand.u32 4294901760, %v9662_v15 }
0x2a53   :  { %v9446_v23 = vpop.f32.mrf.mxu1 }
0x2a5b   :  { %v9405_v30 = vpop.f32.mrf.mxu0  ;;  %v9476_v13 = vpop.f32.mrf.mxu2 }
0x2a5c   :  { %v9406_v3 = vadd.f32 %v9405_v30, %v9375_v48  ;;  %v9561_v27 = vpop.f32.mrf.mxu1 }
0x2a5d   :  { %v9503_v58 = vpop.f32.mrf.mxu3 }
0x2a5e   :  { %v9447_v54 = vadd.f32 %v9446_v23, %v9406_v3 }
0x2a60   :  { %v9477_v20 = vadd.f32 %v9476_v13, %v9447_v54 }
0x2a62   :  { %v9504_v49 = vadd.f32 %v9503_v58, %v9477_v20 }
0x2a63   :  { %v9536_v60 = vpop.f32.mrf.mxu0 }
0x2a64   :  { %v9537_v19 = vadd.f32 %v9536_v60, %v9504_v49 }
0x2a66   :  { %v9562_v2 = vadd.f32 %v9561_v27, %v9537_v19 }
0x2a68   :  { %v9564_v25 = vadd.f32 %v10559_v26, %v9562_v2 }
0x2a6a   :  { %v9565_v42 = vmul.f32 %v9564_v25, %v10434_v33 }
0x2a6c   :  { %9940 = vtanh.f32 %v9565_v42 }
0x2a72   :  { %v9941_v52 = vpop.eup %9940 }
0x2a73   :  { %v9567_v10 = vmul.f32 %v9941_v52, %v10434_v33  ;;  %v9603_v33 = vld [vmem:[%s14389_s10 + $0x18] sm:$0xff] }
0x2a75   :  { %v9568_v38 = vadd.f32 %v9567_v10, %v10438_v44  ;;  %v9602_v44 = vld [vmem:[%s14389_s10 + $0x10] sm:$0xff] }
0x2a76   :  { %v9620_v1 = vand.u32 4294901760, %v9602_v44 }
0x2a77   :  { %9575 = vrot.lane.b32.xlu2 %v9568_v38, %s9961_s8  ;;  %v9573_v47 = vmul.f32 %v9571_v51, %v9568_v38 }
0x2a78   :  { %v9654_v8 = vsub.f32 %v9602_v44, %v9620_v1 }
0x2a7a   :  { %v9655_v36 = vand.u32 4294901760, %v9654_v8 }
0x2a7c   :  { %v9656_v55 = vsub.f32 %v9654_v8, %v9655_v36 }
0x2a7e   :  { %v9657_v14 = vand.u32 4294901760, %v9656_v55 }
0x2ad1   :  { %v9576_v62 = vpop.permute.xlu2 %9575 }
0x2ad2   :  { %v9578_v29 = vmul.f32 %v9576_v62, %v9568_v38 }
0x2ad4   :  { %9580 = vrot.lane.b32.xlu1 %v9578_v29, %s9962_s20 }
0x2adc   :  { %9175 = vrot.lane.b32.xlu1 %v14244_v32, %s9963_s9  ;;  %v9618_v32 = vand.u32 4294901760, %v9603_v33 }
0x2ade   :  { %v9648_v46 = vsub.f32 %v9603_v33, %v9618_v32  ;;  %9719 = vmatpush.msrb.mxu1 %v9618_v32  ;;  %9619 = vmatpush.msra.mxu2 %v9618_v32 }
0x2ae0   :  { %v9649_v34 = vand.u32 4294901760, %v9648_v46  ;;  %9690 = vmatpush.msrb.mxu0 %v9648_v46  ;;  %9721 = vmatpush.msrb.mxu1 %v9620_v1 }
0x2ae1   :  { %9621 = vmatpush.msra.mxu2 %v9620_v1 }
0x2ae2   :  { %v9650_v7 = vsub.f32 %v9648_v46, %v9649_v34  ;;  %9693 = vmatpush.msrb.mxu0 %v9654_v8  ;;  %9723 = vmatpush.msrb.mxu1 %v9622_v12 }
0x2ae3   :  { %9623 = vmatpush.msra.mxu2 %v9622_v12 }
0x2ae4   :  { %v9651_v9 = vand.u32 4294901760, %v9650_v7  ;;  %9696 = vmatpush.msrb.mxu0 %v9660_v37  ;;  %9725 = vmatpush.msrb.mxu1 %v9624_v31 }
0x2ae5   :  { %9625 = vmatpush.msra.mxu2 %v9624_v31 }
0x2ae6   :  { %9652 = vmatpush.msra.mxu3 %v9651_v9  ;;  %9699 = vmatpush.msrb.mxu0 %v9666_v59 }
0x2ae7   :  { %9748 = vmatpush.msrb.mxu2 %v9649_v34 }
0x2ae8   :  { %9658 = vmatpush.msra.mxu3 %v9657_v14 }
0x2ae9   :  { %9752 = vmatpush.msrb.mxu2 %v9655_v36 }
0x2aea   :  { %9664 = vmatpush.msra.mxu3 %v9663_v6 }
0x2aeb   :  { %9756 = vmatpush.msrb.mxu2 %v9661_v16 }
0x2aec   :  { %9670 = vmatpush.msra.mxu3 %v9669_v35 }
0x2aed   :  { %9760 = vmatpush.msrb.mxu2 %v9667_v57 }
0x2aee   :  { %9779 = vmatpush.msrb.mxu3 %v9618_v32 }
0x2af0   :  { %9781 = vmatpush.msrb.mxu3 %v9620_v1 }
0x2af2   :  { %9783 = vmatpush.msrb.mxu3 %v9622_v12 }
0x2af4   :  { %9785 = vmatpush.msrb.mxu3 %v9624_v31 }
0x2b46   :  { %v9581_v26 = vpop.permute.xlu1 %9580 }
0x2b47   :  { %v9583_v61 = vadd.f32 %v9581_v26, %v9573_v47 }
0x2b49   :  { %9942 = vtanh.f32 %v9583_v61 }
0x2b4e   :  { %v9176_v63 = vpop.permute.xlu1 %9175 }
0x2b4f   :  { %v9943_v0 = vpop.eup %9942  ;;  %9178 = vst.msk [vmem:[%s14393_s14] sm:$0xff] %vm59_vm0, %v9176_v63 }
0x2b50   :  { %9586 = vrot.lane.b32.xlu2 %v9943_v0, %s9961_s8 }
0x2b58   :  { %9596 = vrot.lane.b32.xlu2 %v9583_v61, %s9963_s9 }
0x2baa   :  { %v9587_v22 = vpop.permute.xlu2 %9586 }
0x2bab   :  { %v9589_v41 = vmul.f32 %v9587_v22, %v9568_v38 }
0x2bad   :  { %9591 = vrot.lane.b32.xlu0 %v9589_v41, %s9962_s20 }
0x2bb2   :  { %v9597_v28 = vpop.permute.xlu2 %9596 }
0x2bb3   :  { %9869 = vst.msk [vmem:[%s14393_s14 + $0x8] sm:$0xff] %vm59_vm0, %v9597_v28 }
0x2c1f   :  { %v9592_v5 = vpop.permute.xlu0 %9591 }
0x2c20   :  { %9868 = vst.msk [vmem:[%s14392_s13 + $0x8] sm:$0xff] %vm59_vm0, %v9592_v5  ;;  %v9604_v21 = vsel %vm59_vm0, %v9592_v5, 0 }
0x2c21   :  { %v9626_v45 = vand.u32 4294901760, %v9604_v21 }
0x2c23   :  { %v9627_v53 = vsub.f32 %v9604_v21, %v9626_v45  ;;  %9672 = vmatmul.f32.vlgmr.msra.gmra.mxu3 %v9626_v45 }
0x2c25   :  { %v9628_v17 = vand.u32 4294901760, %v9627_v53  ;;  %9702 = vmatmul.f32.vlgmr.msrb.gmra.mxu0 %v9627_v53 }
0x2c27   :  { %v9629_v4 = vsub.f32 %v9627_v53, %v9628_v17  ;;  %9729 = vmatmul.f32.vlgmr.msrb.gmra.mxu1 %v9628_v17 }
0x2c29   :  { %v9630_v50 = vand.u32 4294901760, %v9629_v4 }
0x2c2b   :  { %9631 = vmatmul.f32.vlgmr.msra.gmra.mxu2 %v9630_v50  ;;  %9787 = vmatmul.f32.vlgmr.msrb.gmra.mxu3 %v9626_v45 }
0x2c33   :  { %9762 = vmatmul.f32.vlgmr.msrb.gmra.mxu2 %v9626_v45 }
0x2ca2   :  { %v9703_v23 = vpop.f32.mrf.mxu0 }
0x2ca4   :  { %v9730_v3 = vpop.f32.mrf.mxu1 }
0x2ca6   :  { %v9673_v43 = vpop.f32.mrf.mxu3 }
0x2cae   :  { %v9632_v56 = vpop.f32.mrf.mxu2  ;;  %v9788_v58 = vpop.f32.mrf.mxu3 }
0x2caf   :  { %v9633_v24 = vadd.f32 %v10600_v39, %v9632_v56 }
0x2cb1   :  { %v9674_v48 = vadd.f32 %v9673_v43, %v9633_v24 }
0x2cb3   :  { %v9704_v30 = vadd.f32 %v9703_v23, %v9674_v48 }
0x2cb5   :  { %v9731_v54 = vadd.f32 %v9730_v3, %v9704_v30 }
0x2cb6   :  { %v9763_v13 = vpop.f32.mrf.mxu2 }
0x2cb7   :  { %v9764_v20 = vadd.f32 %v9763_v13, %v9731_v54 }
0x2cb9   :  { %v9789_v49 = vadd.f32 %v9788_v58, %v9764_v20 }
0x2cbb   :  { %9870 = vst [vmem:[%s14391_s12 + $0x38] sm:$0xff] %v9789_v49 }
0x2cbc   :  { %9805 = vsyncpa [#allocation4], 1 }

</bundles_post_ra>
